<compile_context>
chip_gen: v5e
topology: v5e:2x2
jax: 0.10.0
libtpu: 0.0.40
codegen_flags: <defaults>
</compile_context>

<pallas_src>
import functools

import jax
import jax.numpy as jnp
from jax.experimental import pallas as pl
from jax.experimental.pallas import tpu as pltpu


def _round_up(a, b):
    return ((a + b - 1) // b) * b


def _round_down(a, b):
    return (a // b) * b


def _chip_info():
    """Best-effort (vmem_bytes, has_two_tensorcores); safe fallbacks."""
    vmem_bytes = 128 * 1024 * 1024
    try:
        info = pltpu.get_tpu_info()
        for attr in ("vmem_capacity_bytes", "vmem_size_bytes", "vmem_bytes"):
            v = getattr(info, attr, None)
            if v:
                vmem_bytes = int(v)
                break
    except Exception:
        pass
    kind = ""
    try:
        kind = jax.devices()[0].device_kind.lower()
    except Exception:
        pass
    two_cores = ("v7" in kind) or ("7x" in kind)   # v7x: 2 TCs; v5e/v6e: 1
    return vmem_bytes, two_cores


def _pick_hidden_chunk(hidden, target):
    """Largest multiple-of-128 divisor of `hidden` that is <= target."""
    if hidden <= target:
        return hidden
    hk = _round_down(target, 128)
    while hk >= 128:
        if hidden % hk == 0:
            return hk
        hk -= 128
    return hidden


# ---------------------------------------------------------------------------
# Fused MetaFormerBlock kernel
# ---------------------------------------------------------------------------
def _metaformer_block_kernel(x_ref, ln_ref, fc1_ref, fc2_ref, star_ref,
                             o_ref, acc_ref, *, eps, mxu_dtype,
                             hidden, hidden_chunk):
    f32 = jnp.float32
    x = x_ref[...].astype(f32)                    # (tm, dim)
    ln = ln_ref[...].astype(f32)                  # (4, dim): ln1_w, ln1_b, ln2_w, ln2_b
    ln1_w, ln1_b = ln[0:1, :], ln[1:2, :]
    ln2_w, ln2_b = ln[2:3, :], ln[3:4, :]

    def layer_norm(v, w, b):
        mu = jnp.mean(v, axis=-1, keepdims=True)
        c = v - mu
        var = jnp.mean(c * c, axis=-1, keepdims=True)
        return c * jax.lax.rsqrt(var + eps) * w + b

    # --- sub-block 1: token mixer is Identity -> x1 = x + LN1(x) ---
    x1 = x + layer_norm(x, ln1_w, ln1_b)

    # --- sub-block 2: channel MLP (fc1 -> StarReLU -> fc2), residual ---
    n2 = layer_norm(x1, ln2_w, ln2_b).astype(mxu_dtype)   # MXU operand, cast once
    s_scale = star_ref[0]
    s_bias = star_ref[1]

    acc_ref[...] = jnp.zeros_like(acc_ref)        # (tm, dim) f32 accumulator
    n_chunks = hidden // hidden_chunk

    def chunk_body(c, carry):
        start = pl.multiple_of(c * hidden_chunk, hidden_chunk)
        h = jnp.dot(n2, fc1_ref[:, pl.ds(start, hidden_chunk)],
                    preferred_element_type=f32)   # (tm, hk)
        r = jnp.maximum(h, 0.0)
        h = s_scale * r * r + s_bias              # StarReLU: s*relu(x)^2 + b
        acc_ref[...] += jnp.dot(h.astype(mxu_dtype),
                                fc2_ref[pl.ds(start, hidden_chunk), :],
                                preferred_element_type=f32)
        return carry

    jax.lax.fori_loop(0, n_chunks, chunk_body, 0, unroll=(n_chunks <= 4))

    o_ref[...] = (x1 + acc_ref[...]).astype(o_ref.dtype)


# ---------------------------------------------------------------------------
# Parameter preparation (one-time, OUTSIDE the hot path)
# ---------------------------------------------------------------------------
def prepare_metaformer_params(params, mxu_dtype=jnp.bfloat16):
    return {
        "ln_stack": jnp.stack([params["ln1_w"], params["ln1_b"],
                               params["ln2_w"], params["ln2_b"]]
                              ).astype(jnp.float32),
        "fc1_w": jnp.asarray(params["fc1_w"], mxu_dtype),    # (dim, hidden)
        "fc2_w": jnp.asarray(params["fc2_w"], mxu_dtype),    # (hidden, dim)
        "star": jnp.concatenate([jnp.reshape(params["star_scale"], (1,)),
                                 jnp.reshape(params["star_bias"], (1,))]
                                ).astype(jnp.float32),
    }


# ---------------------------------------------------------------------------
# Host wrapper
# ---------------------------------------------------------------------------
def metaformer_block(x, prepared, *, eps=1e-5):
    """Forward of MetaFormerBlock (default token_mixer=Identity) on TPU."""
    dim = x.shape[-1]
    ln_stack = prepared["ln_stack"]
    fc1_w = prepared["fc1_w"]
    fc2_w = prepared["fc2_w"]
    star = prepared["star"]
    hidden = fc1_w.shape[1]
    mxu_dtype = fc1_w.dtype

    x2d = x.reshape(-1, dim)                      # native dtype, no f32 up-cast
    n = x2d.shape[0]

    vmem_bytes, two_cores = _chip_info()
    small_vmem = vmem_bytes <= (64 << 20)         # v7x: 64 MiB / TensorCore

    # Row tile: lane-dense, sublane(8)-aligned; 512 rows on 128 MiB chips,
    # 256 on v7x.  Only force >= 2 grid steps where a 2nd TensorCore exists.
    tm_target = 256 if small_vmem else 512
    tm = max(8, min(_round_up(tm_target, 8), _round_up(n, 8)))
    if two_cores:
        while tm > 8 and pl.cdiv(n, tm) < 2:
            tm = max(8, _round_down(tm // 2, 8))
    grid = (pl.cdiv(n, tm),)                      # ragged last tile: Pallas
                                                  # boundary masking (row-wise
                                                  # math, OOB rows never stored)

    hk = _pick_hidden_chunk(hidden, 256 if small_vmem else 512)

    itemsize = x2d.dtype.itemsize
    w_bytes = (fc1_w.size * fc1_w.dtype.itemsize
               + fc2_w.size * fc2_w.dtype.itemsize)
    ln_bytes = ln_stack.size * 4
    # VMEM budget: double-buffered x/out tiles + single-copy resident weights
    # + chunked f32 intermediates + accumulator scratch + headroom.
    vmem_need = (2 * 2 * tm * dim * itemsize
                 + w_bytes + ln_bytes
                 + 2 * tm * hk * 4 + tm * dim * 4
                 + (8 << 20))
    vmem_cap = (48 << 20) if small_vmem else (100 << 20)
    vmem_limit = int(min(max(vmem_need, 32 << 20), vmem_cap))

    cost = pl.CostEstimate(
        flops=4 * n * dim * hidden + 24 * n * dim,
        transcendentals=2 * n,
        bytes_accessed=2 * n * dim * itemsize + w_bytes + ln_bytes + 8,
    )

    kernel = functools.partial(_metaformer_block_kernel, eps=eps,
                               mxu_dtype=mxu_dtype, hidden=hidden,
                               hidden_chunk=hk)

    out = pl.pallas_call(
        kernel,
        out_shape=jax.ShapeDtypeStruct((n, dim), x2d.dtype),
        grid=grid,
        in_specs=[
            pl.BlockSpec((tm, dim), lambda i: (i, 0)),           # x rows (pipelined)
            pl.BlockSpec(memory_space=pltpu.MemorySpace.VMEM),   # LN params (resident)
            pl.BlockSpec(memory_space=pltpu.MemorySpace.VMEM),   # fc1 weight (resident)
            pl.BlockSpec(memory_space=pltpu.MemorySpace.VMEM),   # fc2 weight (resident)
            pl.BlockSpec(memory_space=pltpu.MemorySpace.SMEM),   # StarReLU scale/bias
        ],
        out_specs=pl.BlockSpec((tm, dim), lambda i: (i, 0)),
        scratch_shapes=[pltpu.VMEM((tm, dim), jnp.float32)],
        compiler_params=pltpu.CompilerParams(
            dimension_semantics=("parallel",),
            vmem_limit_bytes=vmem_limit),
        cost_estimate=cost,
    )(x2d, ln_stack, fc1_w, fc2_w, star)

    return out.reshape(x.shape)


# ---------------------------------------------------------------------------
# Pure-JAX reference (mirrors the PyTorch forward) for a sanity check.
# ---------------------------------------------------------------------------
def metaformer_block_reference(x, params, *, eps=1e-5):
    hp = jax.lax.Precision.HIGHEST

    def layer_norm(v, w, b):
        mu = jnp.mean(v, axis=-1, keepdims=True)
        var = jnp.mean((v - mu) ** 2, axis=-1, keepdims=True)
        return (v - mu) * jax.lax.rsqrt(var + eps) * w + b

    x1 = x + layer_norm(x, params["ln1_w"], params["ln1_b"])
    n2 = layer_norm(x1, params["ln2_w"], params["ln2_b"])
    h = jnp.einsum("...c,cd->...d", n2, params["fc1_w"], precision=hp)
    h = params["star_scale"] * jnp.maximum(h, 0.0) ** 2 + params["star_bias"]
    y = jnp.einsum("...d,dc->...c", h, params["fc2_w"], precision=hp)
    return x1 + y


if __name__ == "__main__":
    # Small shapes consistent with the module: dim=32, mlp_ratio=4 -> hidden=128,
    # spatial 16x16, batch 2 (LayerNorm / Linear act over the last channel dim).
    B, H, W, dim = 2, 16, 16, 32
    mlp_ratio = 4
    hidden = mlp_ratio * dim

    key = jax.random.PRNGKey(0)
    k = jax.random.split(key, 7)
    params = {
        "ln1_w": 1.0 + 0.1 * jax.random.normal(k[0], (dim,), jnp.float32),
        "ln1_b": 0.1 * jax.random.normal(k[1], (dim,), jnp.float32),
        "ln2_w": 1.0 + 0.1 * jax.random.normal(k[2], (dim,), jnp.float32),
        "ln2_b": 0.1 * jax.random.normal(k[3], (dim,), jnp.float32),
        "fc1_w": 0.02 * jax.random.normal(k[4], (dim, hidden), jnp.float32),
        "fc2_w": 0.02 * jax.random.normal(k[5], (hidden, dim), jnp.float32),
        "star_scale": jnp.full((1,), 1.1, jnp.float32),
        "star_bias": jnp.full((1,), 0.05, jnp.float32),
    }
    x = jax.random.normal(k[6], (B, H, W, dim), jnp.float32)

    prepared = prepare_metaformer_params(params)          # one-time weight prep
    ref = jax.block_until_ready(metaformer_block_reference(x, params))

    # f32 input path
    out = jax.block_until_ready(metaformer_block(x, prepared))
    assert out.shape == x.shape, out.shape
    assert out.dtype == x.dtype, out.dtype
    err = float(jnp.max(jnp.abs(out - ref)))
    assert err < 5e-3, f"max abs err (f32 input) {err}"

    # bf16 input path (native-dtype I/O, dtype preserved)
    x_bf16 = x.astype(jnp.bfloat16)
    out_bf16 = jax.block_until_ready(metaformer_block(x_bf16, prepared))
    assert out_bf16.dtype == jnp.bfloat16, out_bf16.dtype
    err_bf16 = float(jnp.max(jnp.abs(out_bf16.astype(jnp.float32) - ref)))
    assert err_bf16 < 2.5e-1, f"max abs err (bf16 input) {err_bf16}"

    print("KERNEL_OK")
</pallas_src>

<mosaic_0001>
module attributes {stable_mosaic.version = 11 : i64} {
  func.func @_metaformer_block_kernel(%arg0: i32, %arg1: memref<512x32xf32, #tpu.memory_space<vmem>>, %arg2: memref<4x32xf32, #tpu.memory_space<vmem>>, %arg3: memref<32x128xbf16, #tpu.memory_space<vmem>>, %arg4: memref<128x32xbf16, #tpu.memory_space<vmem>>, %arg5: memref<2xf32, #tpu.memory_space<smem>>, %arg6: memref<512x32xf32, #tpu.memory_space<vmem>>, %arg7: memref<512x32xf32, #tpu.memory_space<vmem>>) attributes {dimension_semantics = [#tpu.dimension_semantics<parallel>], iteration_bounds = array<i64: 1>, scalar_prefetch = 0 : i64, scratch_operands = 1 : i64, tpu.core_type = #tpu.core_type<tc>, window_params = [{transform_indices = @transform_0, window_bounds = array<i64: 512, 32>}, {pipeline_mode = #tpu.pipeline_mode<synchronous>, transform_indices = @transform_1, window_bounds = array<i64: 4, 32>}, {pipeline_mode = #tpu.pipeline_mode<synchronous>, transform_indices = @transform_2, window_bounds = array<i64: 32, 128>}, {pipeline_mode = #tpu.pipeline_mode<synchronous>, transform_indices = @transform_3, window_bounds = array<i64: 128, 32>}, {transform_indices = @transform_4, window_bounds = array<i64: 2>}, {transform_indices = @transform_5, window_bounds = array<i64: 512, 32>}]} {
    %c0 = arith.constant 0 : index
    %c0_0 = arith.constant 0 : index
    %0 = vector.load %arg1[%c0, %c0_0] : memref<512x32xf32, #tpu.memory_space<vmem>>, vector<512x32xf32>
    %c0_1 = arith.constant 0 : index
    %c0_2 = arith.constant 0 : index
    %1 = vector.load %arg2[%c0_1, %c0_2] : memref<4x32xf32, #tpu.memory_space<vmem>>, vector<4x32xf32>
    %2 = vector.extract_strided_slice %1 {offsets = [0, 0], sizes = [1, 32], strides = [1, 1]} : vector<4x32xf32> to vector<1x32xf32>
    %3 = vector.extract_strided_slice %1 {offsets = [1, 0], sizes = [1, 32], strides = [1, 1]} : vector<4x32xf32> to vector<1x32xf32>
    %4 = vector.extract_strided_slice %1 {offsets = [2, 0], sizes = [1, 32], strides = [1, 1]} : vector<4x32xf32> to vector<1x32xf32>
    %5 = vector.extract_strided_slice %1 {offsets = [3, 0], sizes = [1, 32], strides = [1, 1]} : vector<4x32xf32> to vector<1x32xf32>
    %cst = arith.constant dense<0.000000e+00> : vector<512xf32>
    %6 = vector.multi_reduction <add>, %0, %cst [1] : vector<512x32xf32> to vector<512xf32>
    %7 = vector.shape_cast %6 : vector<512xf32> to vector<512x1xf32>
    %cst_3 = arith.constant 3.200000e+01 : f32
    %8 = vector.broadcast %cst_3 : f32 to vector<512x1xf32>
    %9 = arith.divf %7, %8 : vector<512x1xf32>
    %10 = vector.broadcast %9 : vector<512x1xf32> to vector<512x32xf32>
    %11 = arith.subf %0, %10 : vector<512x32xf32>
    %12 = arith.mulf %11, %11 : vector<512x32xf32>
    %cst_4 = arith.constant dense<0.000000e+00> : vector<512xf32>
    %13 = vector.multi_reduction <add>, %12, %cst_4 [1] : vector<512x32xf32> to vector<512xf32>
    %14 = vector.shape_cast %13 : vector<512xf32> to vector<512x1xf32>
    %cst_5 = arith.constant 3.200000e+01 : f32
    %15 = vector.broadcast %cst_5 : f32 to vector<512x1xf32>
    %16 = arith.divf %14, %15 : vector<512x1xf32>
    %cst_6 = arith.constant 9.99999974E-6 : f32
    %17 = vector.broadcast %cst_6 : f32 to vector<512x1xf32>
    %18 = arith.addf %16, %17 : vector<512x1xf32>
    %19 = math.rsqrt %18 : vector<512x1xf32>
    %20 = vector.broadcast %19 : vector<512x1xf32> to vector<512x32xf32>
    %21 = arith.mulf %11, %20 : vector<512x32xf32>
    %22 = vector.broadcast %2 : vector<1x32xf32> to vector<512x32xf32>
    %23 = arith.mulf %21, %22 : vector<512x32xf32>
    %24 = vector.broadcast %3 : vector<1x32xf32> to vector<512x32xf32>
    %25 = arith.addf %23, %24 : vector<512x32xf32>
    %26 = arith.addf %0, %25 : vector<512x32xf32>
    %cst_7 = arith.constant dense<0.000000e+00> : vector<512xf32>
    %27 = vector.multi_reduction <add>, %26, %cst_7 [1] : vector<512x32xf32> to vector<512xf32>
    %28 = vector.shape_cast %27 : vector<512xf32> to vector<512x1xf32>
    %cst_8 = arith.constant 3.200000e+01 : f32
    %29 = vector.broadcast %cst_8 : f32 to vector<512x1xf32>
    %30 = arith.divf %28, %29 : vector<512x1xf32>
    %31 = vector.broadcast %30 : vector<512x1xf32> to vector<512x32xf32>
    %32 = arith.subf %26, %31 : vector<512x32xf32>
    %33 = arith.mulf %32, %32 : vector<512x32xf32>
    %cst_9 = arith.constant dense<0.000000e+00> : vector<512xf32>
    %34 = vector.multi_reduction <add>, %33, %cst_9 [1] : vector<512x32xf32> to vector<512xf32>
    %35 = vector.shape_cast %34 : vector<512xf32> to vector<512x1xf32>
    %cst_10 = arith.constant 3.200000e+01 : f32
    %36 = vector.broadcast %cst_10 : f32 to vector<512x1xf32>
    %37 = arith.divf %35, %36 : vector<512x1xf32>
    %cst_11 = arith.constant 9.99999974E-6 : f32
    %38 = vector.broadcast %cst_11 : f32 to vector<512x1xf32>
    %39 = arith.addf %37, %38 : vector<512x1xf32>
    %40 = math.rsqrt %39 : vector<512x1xf32>
    %41 = vector.broadcast %40 : vector<512x1xf32> to vector<512x32xf32>
    %42 = arith.mulf %32, %41 : vector<512x32xf32>
    %43 = vector.broadcast %4 : vector<1x32xf32> to vector<512x32xf32>
    %44 = arith.mulf %42, %43 : vector<512x32xf32>
    %45 = vector.broadcast %5 : vector<1x32xf32> to vector<512x32xf32>
    %46 = arith.addf %44, %45 : vector<512x32xf32>
    %47 = arith.truncf %46 : vector<512x32xf32> to vector<512x32xbf16>
    %c0_12 = arith.constant 0 : index
    %48 = memref.load %arg5[%c0_12] : memref<2xf32, #tpu.memory_space<smem>>
    %c1 = arith.constant 1 : index
    %49 = memref.load %arg5[%c1] : memref<2xf32, #tpu.memory_space<smem>>
    %cst_13 = arith.constant 0.000000e+00 : f32
    %50 = vector.broadcast %cst_13 : f32 to vector<512x32xf32>
    %c0_14 = arith.constant 0 : index
    %c0_15 = arith.constant 0 : index
    %51 = vector.load %arg7[%c0_14, %c0_15] : memref<512x32xf32, #tpu.memory_space<vmem>>, vector<512x32xf32>
    tpu.vector_store %arg7[%c0_14, %c0_15], %50 {strides = array<i32>} : memref<512x32xf32, #tpu.memory_space<vmem>>, vector<512x32xf32>,
    %c0_i32 = arith.constant 0 : i32
    %c128_i32 = arith.constant 128 : i32
    %52 = arith.muli %c0_i32, %c128_i32 : i32
    %53 = tpu.assume_multiple %52, 128 : i32
    %c0_16 = arith.constant 0 : index
    %54 = arith.index_cast %53 : i32 to index
    %55 = vector.load %arg3[%c0_16, %54] : memref<32x128xbf16, #tpu.memory_space<vmem>>, vector<32x128xbf16>
    %cst_17 = arith.constant dense<0.000000e+00> : vector<512x128xf32>
    %56 = tpu.matmul %47, %55, %cst_17 {dimension_numbers = #tpu.dot_dimension_numbers<[1], [0], [0], [1], [0, 0, 1, 1], [], []>} : vector<512x32xbf16>, vector<32x128xbf16>, vector<512x128xf32> -> vector<512x128xf32>
    %cst_18 = arith.constant 0.000000e+00 : f32
    %57 = vector.broadcast %cst_18 : f32 to vector<512x128xf32>
    %58 = arith.maximumf %56, %57 : vector<512x128xf32>
    %59 = vector.broadcast %48 : f32 to vector<512x128xf32>
    %60 = arith.mulf %59, %58 : vector<512x128xf32>
    %61 = arith.mulf %60, %58 : vector<512x128xf32>
    %62 = vector.broadcast %49 : f32 to vector<512x128xf32>
    %63 = arith.addf %61, %62 : vector<512x128xf32>
    %c0_19 = arith.constant 0 : index
    %c0_20 = arith.constant 0 : index
    %64 = vector.load %arg7[%c0_19, %c0_20] : memref<512x32xf32, #tpu.memory_space<vmem>>, vector<512x32xf32>
    %65 = arith.truncf %63 : vector<512x128xf32> to vector<512x128xbf16>
    %66 = arith.index_cast %53 : i32 to index
    %c0_21 = arith.constant 0 : index
    %67 = vector.load %arg4[%66, %c0_21] : memref<128x32xbf16, #tpu.memory_space<vmem>>, vector<128x32xbf16>
    %cst_22 = arith.constant dense<0.000000e+00> : vector<512x32xf32>
    %68 = tpu.matmul %65, %67, %cst_22 {dimension_numbers = #tpu.dot_dimension_numbers<[1], [0], [0], [1], [0, 0, 1, 1], [], []>} : vector<512x128xbf16>, vector<128x32xbf16>, vector<512x32xf32> -> vector<512x32xf32>
    %69 = arith.addf %64, %68 : vector<512x32xf32>
    %c0_23 = arith.constant 0 : index
    %c0_24 = arith.constant 0 : index
    %70 = vector.load %arg7[%c0_23, %c0_24] : memref<512x32xf32, #tpu.memory_space<vmem>>, vector<512x32xf32>
    tpu.vector_store %arg7[%c0_23, %c0_24], %69 {strides = array<i32>} : memref<512x32xf32, #tpu.memory_space<vmem>>, vector<512x32xf32>,
    %c1_i32 = arith.constant 1 : i32
    %c0_25 = arith.constant 0 : index
    %c0_26 = arith.constant 0 : index
    %71 = vector.load %arg7[%c0_25, %c0_26] : memref<512x32xf32, #tpu.memory_space<vmem>>, vector<512x32xf32>
    %72 = arith.addf %26, %71 : vector<512x32xf32>
    %c0_27 = arith.constant 0 : index
    %c0_28 = arith.constant 0 : index
    %73 = vector.load %arg6[%c0_27, %c0_28] : memref<512x32xf32, #tpu.memory_space<vmem>>, vector<512x32xf32>
    tpu.vector_store %arg6[%c0_27, %c0_28], %72 {strides = array<i32>} : memref<512x32xf32, #tpu.memory_space<vmem>>, vector<512x32xf32>,
    return
  }
  func.func @transform_0(%arg0: i32) -> (i32, i32) {
    %c0_i32 = arith.constant 0 : i32
    %c0_i32_0 = arith.constant 0 : i32
    return %arg0, %c0_i32 : i32, i32
  }
  func.func @transform_1(%arg0: i32) -> (i32, i32) {
    %c0_i32 = arith.constant 0 : i32
    %c0_i32_0 = arith.constant 0 : i32
    %c0_i32_1 = arith.constant 0 : i32
    return %c0_i32, %c0_i32_0 : i32, i32
  }
  func.func @transform_2(%arg0: i32) -> (i32, i32) {
    %c0_i32 = arith.constant 0 : i32
    %c0_i32_0 = arith.constant 0 : i32
    %c0_i32_1 = arith.constant 0 : i32
    return %c0_i32, %c0_i32_0 : i32, i32
  }
  func.func @transform_3(%arg0: i32) -> (i32, i32) {
    %c0_i32 = arith.constant 0 : i32
    %c0_i32_0 = arith.constant 0 : i32
    %c0_i32_1 = arith.constant 0 : i32
    return %c0_i32, %c0_i32_0 : i32, i32
  }
  func.func @transform_4(%arg0: i32) -> i32 {
    %c0_i32 = arith.constant 0 : i32
    %c0_i32_0 = arith.constant 0 : i32
    return %c0_i32 : i32
  }
  func.func @transform_5(%arg0: i32) -> (i32, i32) {
    %c0_i32 = arith.constant 0 : i32
    %c0_i32_0 = arith.constant 0 : i32
    return %arg0, %c0_i32 : i32, i32
  }
}

</mosaic_0001>

<bundles_post_ra>
// kernel: tpu_custom_call.1
= control target key start
LH: loop header
LB: loop body
LE: loop exit
PB: predicated region body
PF: predicated region fallthrough
CT: control target
= control target key end

     0   :  { %10 = vsyncpa [#allocation4], 0  ;;  %s4976_s21 = smov [#allocation3]   ;;  %s10071_s0 = inlined_call_operand.vmem [shape: f32[512,32], index: 0, kind: input, shape index: {}]   ;;  %s10072_s1 = inlined_call_operand.vmem [shape: f32[4,32], index: 1, kind: input, shape index: {}]   ;;  %s10073_s2 = inlined_call_operand.vmem [shape: bf16[32,128], index: 2, kind: input, shape index: {}]   ;;  %s10074_s3 = inlined_call_operand.vmem [shape: bf16[128,32], index: 3, kind: input, shape index: {}]   ;;  %s10075_s4 = inlined_call_operand.vmem [shape: f32[2], index: 4, kind: input, shape index: {}]   ;;  %s10076_s5 = inlined_call_operand.vmem [shape: f32[512,32], index: 5, kind: output, shape index: {}]  }
   0x1   :  { %s24_s20 = sshll.u32 %s10075_s4, 4  ;;  %s25_s20 = int_to_ptr.vmem [resolvable:$true] %s24_s20 }
   0x2   :  { %27 = dma.vmem_to_smem %s25_s20, 16, %s4976_s21, [#allocation4]  }
   0x3   :  { %4974 = dma.done.wait [#allocation4], 16  }
   0x4   :  { %4975 = vsyncadd [#allocation4], 4294967280 }
   0x5   :  { %32 = sfence }
   0x6   :  { %v5015_v0 = vld [vmem:[%s10071_s0 + $0x20] sm:$0xff]  ;;  %vm99_vm0 = vcmask 261120   ;;  %v5020_v1 = vld [vmem:[%s10071_s0 + $0x10] sm:$0xff]  ;;  %v5036_v6 = vld [vmem:[%s10071_s0 + $0x28] sm:$0xff]  ;;  %v4977_v48 = vmov 32.0   ;;  %s7350_s22 = sld [smem:[#allocation3]] }
   0x7   :  { %v5025_v2 = vld [vmem:[%s10071_s0] sm:$0xff]  ;;  %v112_v3 = vsel %vm99_vm0, %v5015_v0, 0.0  ;;  %v106_v4 = vsel %vm99_vm0, %v5020_v1, 0.0  ;;  %v5041_v7 = vld [vmem:[%s10071_s0 + $0x18] sm:$0xff]  ;;  %v5046_v8 = vld [vmem:[%s10071_s0 + $0x8] sm:$0xff]  ;;  %v115_v9 = vsel %vm99_vm0, %v5036_v6, 0.0  ;;  %4634 = vrcp.f32 %v4977_v48 }
   0x8   :  { %v100_v5 = vsel %vm99_vm0, %v5025_v2, 0.0  ;;  %113 = vadd.xlane.f32.xlu2 %v112_v3  ;;  %107 = vadd.xlane.f32.xlu1 %v106_v4  ;;  %v109_v10 = vsel %vm99_vm0, %v5041_v7, 0.0  ;;  %v103_v11 = vsel %vm99_vm0, %v5046_v8, 0.0  ;;  %v5057_v12 = vld [vmem:[%s10071_s0 + $0x30] sm:$0xff]  ;;  %v5062_v13 = vld [vmem:[%s10071_s0 + $0x48] sm:$0xff]  ;;  %v5067_v14 = vld [vmem:[%s10071_s0 + $0x38] sm:$0xff] }
   0x9   :  { %101 = vadd.xlane.f32.xlu0 %v100_v5  ;;  %v118_v15 = vsel %vm99_vm0, %v5057_v12, 0.0  ;;  %v127_v16 = vsel %vm99_vm0, %v5062_v13, 0.0  ;;  %v121_v17 = vsel %vm99_vm0, %v5067_v14, 0.0  ;;  %v5078_v18 = vld [vmem:[%s10071_s0 + $0x58] sm:$0xff]  ;;  %v5083_v19 = vld [vmem:[%s10071_s0 + $0x50] sm:$0xff]  ;;  %v5088_v20 = vld [vmem:[%s10071_s0 + $0x40] sm:$0xff] }
   0xa   :  { %v133_v21 = vsel %vm99_vm0, %v5078_v18, 0.0  ;;  %v130_v22 = vsel %vm99_vm0, %v5083_v19, 0.0  ;;  %v124_v23 = vsel %vm99_vm0, %v5088_v20, 0.0  ;;  %v5099_v24 = vld [vmem:[%s10071_s0 + $0x78] sm:$0xff]  ;;  %v5104_v25 = vld [vmem:[%s10071_s0 + $0x60] sm:$0xff]  ;;  %v5109_v26 = vld [vmem:[%s10071_s0 + $0x68] sm:$0xff] }
   0xb   :  { %v145_v27 = vsel %vm99_vm0, %v5099_v24, 0.0  ;;  %v136_v28 = vsel %vm99_vm0, %v5104_v25, 0.0  ;;  %v139_v29 = vsel %vm99_vm0, %v5109_v26, 0.0  ;;  %v5120_v30 = vld [vmem:[%s10071_s0 + $0x88] sm:$0xff]  ;;  %v5125_v31 = vld [vmem:[%s10071_s0 + $0xb0] sm:$0xff]  ;;  %v5141_v36 = vld [vmem:[%s10071_s0 + $0x98] sm:$0xff] }
   0xc   :  { %v5130_v32 = vld [vmem:[%s10071_s0 + $0x70] sm:$0xff]  ;;  %v151_v33 = vsel %vm99_vm0, %v5120_v30, 0.0  ;;  %v166_v34 = vsel %vm99_vm0, %v5125_v31, 0.0  ;;  %v5146_v37 = vld [vmem:[%s10071_s0 + $0x80] sm:$0xff]  ;;  %v157_v38 = vsel %vm99_vm0, %v5141_v36, 0.0  ;;  %v5155_v40 = vld [vmem:[%s10071_s0 + $0xa8] sm:$0xff] }
   0xd   :  { %v142_v35 = vsel %vm99_vm0, %v5130_v32, 0.0  ;;  %v148_v39 = vsel %vm99_vm0, %v5146_v37, 0.0  ;;  %v5160_v41 = vld [vmem:[%s10071_s0 + $0x90] sm:$0xff]  ;;  %v163_v42 = vsel %vm99_vm0, %v5155_v40, 0.0  ;;  %v5169_v44 = vld [vmem:[%s10071_s0 + $0xa0] sm:$0xff]  ;;  %v5176_v46 = vld [vmem:[%s10071_s0 + $0xb8] sm:$0xff]  ;;  %v4635_v49 = vpop.eup %4634 }
   0xe   :  { %v154_v43 = vsel %vm99_vm0, %v5160_v41, 0.0  ;;  %v160_v45 = vsel %vm99_vm0, %v5169_v44, 0.0  ;;  %v169_v47 = vsel %vm99_vm0, %v5176_v46, 0.0  ;;  %v293_v50 = vmul.f32 32.0, %v4635_v49  ;;  %s7401_s28 = sld [smem:[#allocation3 + $0x1]] }
   0xf   :  { %vm297_vm1 = vweird.f32 %v4635_v49 }
  0x10   :  { %116 = vadd.xlane.f32.xlu2 %v115_v9  ;;  %110 = vadd.xlane.f32.xlu1 %v109_v10  ;;  %v294_v51 = vsub.f32 1.0, %v293_v50 }
  0x11   :  { %104 = vadd.xlane.f32.xlu0 %v103_v11 }
  0x12   :  { %v295_v52 = vmul.f32 %v4635_v49, %v294_v51 }
  0x14   :  { %v296_v53 = vadd.f32 %v4635_v49, %v295_v52 }
  0x16   :  { %v5180_v54 = vsel %vm297_vm1, %v4635_v49, %v296_v53 }
  0x18   :  { %119 = vadd.xlane.f32.xlu2 %v118_v15  ;;  %128 = vadd.xlane.f32.xlu1 %v127_v16 }
  0x19   :  { %122 = vadd.xlane.f32.xlu0 %v121_v17 }
  0x20   :  { %134 = vadd.xlane.f32.xlu2 %v133_v21  ;;  %131 = vadd.xlane.f32.xlu1 %v130_v22 }
  0x21   :  { %125 = vadd.xlane.f32.xlu0 %v124_v23 }
  0x28   :  { %146 = vadd.xlane.f32.xlu1 %v145_v27  ;;  %137 = vadd.xlane.f32.xlu2 %v136_v28 }
  0x29   :  { %140 = vadd.xlane.f32.xlu0 %v139_v29 }
  0x30   :  { %152 = vadd.xlane.f32.xlu1 %v151_v33  ;;  %167 = vadd.xlane.f32.xlu2 %v166_v34 }
  0x31   :  { %143 = vadd.xlane.f32.xlu0 %v142_v35 }
  0x38   :  { %158 = vadd.xlane.f32.xlu1 %v157_v38 }
  0x39   :  { %149 = vadd.xlane.f32.xlu0 %v148_v39 }
  0x40   :  { %164 = vadd.xlane.f32.xlu1 %v163_v42 }
  0x41   :  { %155 = vadd.xlane.f32.xlu0 %v154_v43 }
  0x49   :  { %161 = vadd.xlane.f32.xlu0 %v160_v45 }
  0x51   :  { %170 = vadd.xlane.f32.xlu0 %v169_v47 }
  0x7b   :  { %v114_v55 = vpop.xlane.xlu2 %113  ;;  %v108_v56 = vpop.xlane.xlu1 %107 }
  0x7c   :  { %v102_v57 = vpop.xlane.xlu0 %101  ;;  %v303_v3 = vmul.f32 %v5180_v54, %v114_v55  ;;  %v301_v10 = vmul.f32 %v5180_v54, %v108_v56 }
  0x7d   :  { %v299_v58 = vmul.f32 %v5180_v54, %v102_v57 }
  0x7e   :  { %v5204_v17 = vsub.f32 %v5015_v0, %v303_v3  ;;  %v5211_v23 = vsub.f32 %v5020_v1, %v301_v10 }
  0x7f   :  { %v5184_v59 = vsub.f32 %v5025_v2, %v299_v58 }
  0x80   :  { %v431_v1 = vmul.f32 %v5204_v17, %v5204_v17  ;;  %v429_v39 = vmul.f32 %v5211_v23, %v5211_v23 }
  0x81   :  { %v427_v60 = vmul.f32 %v5184_v59, %v5184_v59 }
  0x82   :  { %v503_v43 = vsel %vm99_vm0, %v431_v1, 0.0  ;;  %v497_v49 = vsel %vm99_vm0, %v429_v39, 0.0 }
  0x83   :  { %v117_v61 = vpop.xlane.xlu2 %116  ;;  %v111_v62 = vpop.xlane.xlu1 %110  ;;  %v491_v63 = vsel %vm99_vm0, %v427_v60, 0.0 }
  0x84   :  { %v304_v4 = vmul.f32 %v5180_v54, %v117_v61  ;;  %v302_v5 = vmul.f32 %v5180_v54, %v111_v62  ;;  %492 = vadd.xlane.f32.xlu0 %v491_v63  ;;  %v105_v9 = vpop.xlane.xlu0 %104 }
  0x85   :  { %v300_v2 = vmul.f32 %v5180_v54, %v105_v9 }
  0x86   :  { %v5195_v11 = vsub.f32 %v5036_v6, %v304_v4  ;;  %v5198_v15 = vsub.f32 %v5041_v7, %v302_v5 }
  0x87   :  { %v5201_v16 = vsub.f32 %v5046_v8, %v300_v2 }
  0x88   :  { %v430_v21 = vmul.f32 %v5198_v15, %v5198_v15  ;;  %v432_v22 = vmul.f32 %v5195_v11, %v5195_v11 }
  0x89   :  { %v428_v6 = vmul.f32 %v5201_v16, %v5201_v16 }
  0x8a   :  { %v500_v7 = vsel %vm99_vm0, %v430_v21, 0.0  ;;  %v506_v27 = vsel %vm99_vm0, %v432_v22, 0.0 }
  0x8b   :  { %v120_v28 = vpop.xlane.xlu2 %119  ;;  %501 = vadd.xlane.f32.xlu2 %v500_v7  ;;  %v494_v0 = vsel %vm99_vm0, %v428_v6, 0.0  ;;  %v129_v29 = vpop.xlane.xlu1 %128 }
  0x8c   :  { %v305_v33 = vmul.f32 %v5180_v54, %v120_v28  ;;  %507 = vadd.xlane.f32.xlu0 %v506_v27  ;;  %495 = vadd.xlane.f32.xlu1 %v494_v0  ;;  %v123_v34 = vpop.xlane.xlu0 %122  ;;  %v308_v35 = vmul.f32 %v5180_v54, %v129_v29 }
  0x8d   :  { %v306_v38 = vmul.f32 %v5180_v54, %v123_v34 }
  0x8e   :  { %v5226_v42 = vsub.f32 %v5057_v12, %v305_v33  ;;  %v5230_v45 = vsub.f32 %v5062_v13, %v308_v35 }
  0x8f   :  { %v5235_v48 = vsub.f32 %v5067_v14, %v306_v38 }
  0x90   :  { %v433_v47 = vmul.f32 %v5226_v42, %v5226_v42  ;;  %v436_v13 = vmul.f32 %v5230_v45, %v5230_v45 }
  0x91   :  { %10181 = vst [vmem:[#allocation6_spill] sm:$0xff] %v5235_v48  ;;  %v434_v14 = vmul.f32 %v5235_v48, %v5235_v48 }
  0x92   :  { %v509_v50 = vsel %vm99_vm0, %v433_v47, 0.0  ;;  %v518_v58 = vsel %vm99_vm0, %v436_v13, 0.0 }
  0x93   :  { %504 = vadd.xlane.f32.xlu2 %v503_v43  ;;  %v135_v51 = vpop.xlane.xlu2 %134  ;;  %v132_v52 = vpop.xlane.xlu1 %131  ;;  %v512_v61 = vsel %vm99_vm0, %v434_v14, 0.0 }
  0x94   :  { %510 = vadd.xlane.f32.xlu0 %v509_v50  ;;  %498 = vadd.xlane.f32.xlu1 %v497_v49  ;;  %v126_v53 = vpop.xlane.xlu0 %125  ;;  %v310_v55 = vmul.f32 %v5180_v54, %v135_v51  ;;  %v309_v4 = vmul.f32 %v5180_v54, %v132_v52 }
  0x95   :  { %v307_v56 = vmul.f32 %v5180_v54, %v126_v53 }
  0x96   :  { %v5246_v57 = vsub.f32 %v5078_v18, %v310_v55  ;;  %v5264_v10 = vsub.f32 %v5083_v19, %v309_v4 }
  0x97   :  { %v5250_v60 = vsub.f32 %v5088_v20, %v307_v56 }
  0x98   :  { %10182 = vst [vmem:[#allocation7_spill] sm:$0xff] %v5246_v57  ;;  %v438_v3 = vmul.f32 %v5246_v57, %v5246_v57  ;;  %v437_v28 = vmul.f32 %v5264_v10, %v5264_v10 }
  0x99   :  { %v435_v18 = vmul.f32 %v5250_v60, %v5250_v60  ;;  %10184 = vst [vmem:[#allocation9_spill] sm:$0xff] %v5264_v10 }
  0x9a   :  { %v524_v20 = vsel %vm99_vm0, %v438_v3, 0.0  ;;  %v521_v33 = vsel %vm99_vm0, %v437_v28, 0.0 }
  0x9b   :  { %519 = vadd.xlane.f32.xlu2 %v518_v58  ;;  %v147_v62 = vpop.xlane.xlu1 %146  ;;  %v515_v2 = vsel %vm99_vm0, %v435_v18, 0.0  ;;  %v138_v21 = vpop.xlane.xlu2 %137 }
  0x9c   :  { %513 = vadd.xlane.f32.xlu1 %v512_v61  ;;  %v141_v63 = vpop.xlane.xlu0 %140  ;;  %v314_v6 = vmul.f32 %v5180_v54, %v147_v62 }
  0x9d   :  { %v312_v5 = vmul.f32 %v5180_v54, %v141_v63 }
  0x9e   :  { %v5274_v19 = vsub.f32 %v5099_v24, %v314_v6 }
  0x9f   :  { %v5260_v9 = vsub.f32 %v5109_v26, %v312_v5  ;;  %v311_v26 = vmul.f32 %v5180_v54, %v138_v21 }
  0xa0   :  { %v442_v35 = vmul.f32 %v5274_v19, %v5274_v19 }
  0xa1   :  { %10183 = vst [vmem:[#allocation8_spill] sm:$0xff] %v5260_v9  ;;  %v440_v27 = vmul.f32 %v5260_v9, %v5260_v9  ;;  %v5278_v29 = vsub.f32 %v5104_v25, %v311_v26 }
  0xa2   :  { %v536_v47 = vsel %vm99_vm0, %v442_v35, 0.0 }
  0xa3   :  { %525 = vadd.xlane.f32.xlu2 %v524_v20  ;;  %v153_v22 = vpop.xlane.xlu1 %152  ;;  %v530_v0 = vsel %vm99_vm0, %v440_v27, 0.0  ;;  %v439_v43 = vmul.f32 %v5278_v29, %v5278_v29  ;;  %v168_v4 = vpop.xlane.xlu2 %167  ;;  %v5332_v20 = vld [vmem:[%s10071_s0 + $0xd0] sm:$0xff] }
  0xa4   :  { %516 = vadd.xlane.f32.xlu1 %v515_v2  ;;  %v144_v7 = vpop.xlane.xlu0 %143  ;;  %v316_v55 = vmul.f32 %v5180_v54, %v153_v22 }
  0xa5   :  { %v313_v38 = vmul.f32 %v5180_v54, %v144_v7  ;;  %v527_v51 = vsel %vm99_vm0, %v439_v43, 0.0  ;;  %v178_v7 = vsel %vm99_vm0, %v5332_v20, 0.0 }
  0xa6   :  { %v5319_v61 = vsub.f32 %v5120_v30, %v316_v55 }
  0xa7   :  { %v5293_v49 = vsub.f32 %v5130_v32, %v313_v38  ;;  %v5306_v32 = vld [vmem:[%s10071_s0 + $0xc8] sm:$0xff]  ;;  %v5366_v38 = vld [vmem:[%s10071_s0 + $0xe0] sm:$0xff] }
  0xa8   :  { %v175_v14 = vsel %vm99_vm0, %v5306_v32, 0.0  ;;  %10189 = vst [vmem:[#allocation14_spill] sm:$0xff] %v5319_v61  ;;  %v444_v30 = vmul.f32 %v5319_v61, %v5319_v61 }
  0xa9   :  { %10186 = vst [vmem:[#allocation11_spill] sm:$0xff] %v5293_v49 }
  0xaa   :  { %v542_v6 = vsel %vm99_vm0, %v444_v30, 0.0 }
  0xab   :  { %531 = vadd.xlane.f32.xlu2 %v530_v0  ;;  %v159_v34 = vpop.xlane.xlu1 %158 }
  0xac   :  { %522 = vadd.xlane.f32.xlu1 %v521_v33  ;;  %v150_v1 = vpop.xlane.xlu0 %149  ;;  %v318_v24 = vmul.f32 %v5180_v54, %v159_v34 }
  0xad   :  { %v315_v39 = vmul.f32 %v5180_v54, %v150_v1 }
  0xae   :  { %v5296_v50 = vsub.f32 %v5141_v36, %v318_v24  ;;  %v441_v36 = vmul.f32 %v5293_v49, %v5293_v49 }
  0xaf   :  { %v5289_v25 = vsub.f32 %v5146_v37, %v315_v39  ;;  %v5371_v39 = vld [vmem:[%s10071_s0 + $0xe8] sm:$0xff] }
  0xb0   :  { %10187 = vst [vmem:[#allocation12_spill] sm:$0xff] %v5296_v50  ;;  %v446_v13 = vmul.f32 %v5296_v50, %v5296_v50  ;;  %v533_v62 = vsel %vm99_vm0, %v441_v36, 0.0  ;;  %v187_v24 = vsel %vm99_vm0, %v5371_v39, 0.0 }
  0xb1   :  { %10185 = vst [vmem:[#allocation10_spill] sm:$0xff] %v5289_v25  ;;  %v443_v52 = vmul.f32 %v5289_v25, %v5289_v25 }
  0xb2   :  { %v548_v63 = vsel %vm99_vm0, %v446_v13, 0.0  ;;  %v5395_v13 = vld [vmem:[%s10071_s0 + $0xf0] sm:$0xff] }
  0xb3   :  { %537 = vadd.xlane.f32.xlu2 %v536_v47  ;;  %v539_v53 = vsel %vm99_vm0, %v443_v52, 0.0  ;;  %v165_v3 = vpop.xlane.xlu1 %164  ;;  %v5382_v52 = vld [vmem:[%s10071_s0 + $0xd8] sm:$0xff]  ;;  %10194 = vst [vmem:[#allocation19_spill] sm:$0xff] %v5395_v13 }
  0xb4   :  { %528 = vadd.xlane.f32.xlu1 %v527_v51  ;;  %540 = vadd.xlane.f32.xlu0 %v539_v53  ;;  %v156_v37 = vpop.xlane.xlu0 %155  ;;  %v320_v5 = vmul.f32 %v5180_v54, %v165_v3  ;;  %v181_v53 = vsel %vm99_vm0, %v5382_v52, 0.0 }
  0xb5   :  { %v317_v56 = vmul.f32 %v5180_v54, %v156_v37 }
  0xb6   :  { %v5335_v2 = vsub.f32 %v5155_v40, %v320_v5 }
  0xb7   :  { %v5316_v58 = vsub.f32 %v5160_v41, %v317_v56  ;;  %v321_v41 = vmul.f32 %v5180_v54, %v168_v4  ;;  %v190_v56 = vsel %vm99_vm0, %v5395_v13, 0.0 }
  0xb8   :  { %10190 = vst [vmem:[#allocation15_spill] sm:$0xff] %v5335_v2  ;;  %v448_v26 = vmul.f32 %v5335_v2, %v5335_v2 }
  0xb9   :  { %10188 = vst [vmem:[#allocation13_spill] sm:$0xff] %v5316_v58  ;;  %v445_v18 = vmul.f32 %v5316_v58, %v5316_v58  ;;  %v5339_v22 = vsub.f32 %v5125_v31, %v321_v41  ;;  %v5352_v31 = vld [vmem:[%s10071_s0 + $0xc0] sm:$0xff] }
  0xba   :  { %v554_v0 = vsel %vm99_vm0, %v448_v26, 0.0  ;;  %v172_v33 = vsel %vm99_vm0, %v5352_v31, 0.0 }
  0xbb   :  { %176 = vadd.xlane.f32.xlu2 %v175_v14  ;;  %v545_v21 = vsel %vm99_vm0, %v445_v18, 0.0  ;;  %10191 = vst [vmem:[#allocation16_spill] sm:$0xff] %v5339_v22  ;;  %v449_v40 = vmul.f32 %v5339_v22, %v5339_v22 }
  0xbc   :  { %534 = vadd.xlane.f32.xlu1 %v533_v62  ;;  %549 = vadd.xlane.f32.xlu0 %v548_v63  ;;  %v162_v27 = vpop.xlane.xlu0 %161 }
  0xbd   :  { %v319_v28 = vmul.f32 %v5180_v54, %v162_v27  ;;  %v557_v34 = vsel %vm99_vm0, %v449_v40, 0.0 }
  0xbf   :  { %v5359_v1 = vsub.f32 %v5169_v44, %v319_v28  ;;  %v184_v44 = vsel %vm99_vm0, %v5366_v38, 0.0 }
  0xc1   :  { %10192 = vst [vmem:[#allocation17_spill] sm:$0xff] %v5359_v1  ;;  %v447_v35 = vmul.f32 %v5359_v1, %v5359_v1 }
  0xc3   :  { %546 = vadd.xlane.f32.xlu2 %v545_v21  ;;  %v551_v43 = vsel %vm99_vm0, %v447_v35, 0.0 }
  0xc4   :  { %543 = vadd.xlane.f32.xlu1 %v542_v6  ;;  %179 = vadd.xlane.f32.xlu0 %v178_v7  ;;  %v171_v47 = vpop.xlane.xlu0 %170 }
  0xc5   :  { %v322_v51 = vmul.f32 %v5180_v54, %v171_v47 }
  0xc7   :  { %v5387_v37 = vsub.f32 %v5176_v46, %v322_v51 }
  0xc9   :  { %10193 = vst [vmem:[#allocation18_spill] sm:$0xff] %v5387_v37  ;;  %v450_v55 = vmul.f32 %v5387_v37, %v5387_v37 }
  0xcb   :  { %555 = vadd.xlane.f32.xlu2 %v554_v0  ;;  %v560_v36 = vsel %vm99_vm0, %v450_v55, 0.0 }
  0xcc   :  { %173 = vadd.xlane.f32.xlu1 %v172_v33  ;;  %558 = vadd.xlane.f32.xlu0 %v557_v34 }
  0xd3   :  { %185 = vadd.xlane.f32.xlu2 %v184_v44 }
  0xd4   :  { %188 = vadd.xlane.f32.xlu0 %v187_v24  ;;  %552 = vadd.xlane.f32.xlu1 %v551_v43 }
  0xdc   :  { %182 = vadd.xlane.f32.xlu1 %v181_v53 }
  0xe4   :  { %561 = vadd.xlane.f32.xlu1 %v560_v36 }
  0xec   :  { %191 = vadd.xlane.f32.xlu1 %v190_v56 }
  0xf7   :  { %v493_v3 = vpop.xlane.xlu0 %492 }
  0xf8   :  { %v683_v5 = vmul.f32 %v493_v3, %v5180_v54 }
  0xfa   :  { %v5400_v41 = vadd.f32 1e-05, %v683_v5 }
  0xfc   :  { %4636 = vrsqrt.f32 %v5400_v41  ;;  %vm817_vm3 = vweird.f32 %v5400_v41 }
  0xfe   :  { %v502_v14 = vpop.xlane.xlu2 %501 }
  0xff   :  { %v496_v62 = vpop.xlane.xlu1 %495  ;;  %v508_v21 = vpop.xlane.xlu0 %507  ;;  %v686_v26 = vmul.f32 %v502_v14, %v5180_v54 }
 0x100   :  { %v684_v30 = vmul.f32 %v496_v62, %v5180_v54  ;;  %v688_v34 = vmul.f32 %v508_v21, %v5180_v54 }
 0x101   :  { %v5416_v33 = vadd.f32 1e-05, %v686_v26 }
 0x102   :  { %v5406_v7 = vadd.f32 1e-05, %v684_v30  ;;  %v5412_v40 = vpop.eup %4636  ;;  %v5429_v53 = vadd.f32 1e-05, %v688_v34 }
 0x103   :  { %v812_v44 = vmul.f32 %v5412_v40, %v5400_v41  ;;  %vm818_vm2 = vweird.f32 %v5412_v40  ;;  %vm847_vm6 = vweird.f32 %v5416_v33 }
 0x104   :  { %4638 = vrsqrt.f32 %v5406_v7  ;;  %vm5498_vm4 = vmor %vm817_vm3, %vm818_vm2  ;;  %vm827_vm7 = vweird.f32 %v5406_v7  ;;  %vm867_vm8 = vweird.f32 %v5429_v53 }
 0x105   :  { %4640 = vrsqrt.f32 %v5416_v33  ;;  %v813_v55 = vmul.f32 %v5412_v40, %v812_v44 }
 0x106   :  { %v505_v46 = vpop.xlane.xlu2 %504  ;;  %4642 = vrsqrt.f32 %v5429_v53 }
 0x107   :  { %v499_v63 = vpop.xlane.xlu1 %498  ;;  %v511_v28 = vpop.xlane.xlu0 %510  ;;  %v687_v47 = vmul.f32 %v505_v46, %v5180_v54  ;;  %v814_v5 = vmul.f32 0.5, %v813_v55 }
 0x108   :  { %v689_v24 = vmul.f32 %v511_v28, %v5180_v54  ;;  %v685_v51 = vmul.f32 %v499_v63, %v5180_v54 }
 0x109   :  { %v5436_v14 = vadd.f32 1e-05, %v687_v47  ;;  %v815_v28 = vsub.f32 1.5, %v814_v5 }
 0x10a   :  { %v5424_v43 = vpop.eup %4638  ;;  %v5434_v56 = vadd.f32 1e-05, %v689_v24  ;;  %v5438_v62 = vadd.f32 1e-05, %v685_v51 }
 0x10b   :  { %v822_v36 = vmul.f32 %v5424_v43, %v5406_v7  ;;  %v5447_v21 = vpop.eup %4640  ;;  %vm828_vm5 = vweird.f32 %v5424_v43  ;;  %vm857_vm12 = vweird.f32 %v5436_v14 }
 0x10c   :  { %4644 = vrsqrt.f32 %v5434_v56  ;;  %v842_v34 = vmul.f32 %v5447_v21, %v5416_v33  ;;  %v5454_v24 = vpop.eup %4642  ;;  %vm848_vm9 = vweird.f32 %v5447_v21  ;;  %vm5520_vm10 = vmor %vm827_vm7, %vm828_vm5  ;;  %vm877_vm13 = vweird.f32 %v5434_v56 }
 0x10d   :  { %v823_v30 = vmul.f32 %v5424_v43, %v822_v36  ;;  %4646 = vrsqrt.f32 %v5436_v14  ;;  %v862_v25 = vmul.f32 %v5454_v24, %v5429_v53  ;;  %vm868_vm11 = vweird.f32 %v5454_v24  ;;  %vm5562_vm14 = vmor %vm847_vm6, %vm848_vm9 }
 0x10e   :  { %v520_v4 = vpop.xlane.xlu2 %519  ;;  %4648 = vrsqrt.f32 %v5438_v62  ;;  %v843_v1 = vmul.f32 %v5447_v21, %v842_v34  ;;  %vm837_vm15 = vweird.f32 %v5438_v62  ;;  %vm5598_vm3 = vmor %vm867_vm8, %vm868_vm11 }
 0x10f   :  { %v514_v18 = vpop.xlane.xlu1 %513  ;;  %v692_v26 = vmul.f32 %v520_v4, %v5180_v54  ;;  %v824_v44 = vmul.f32 0.5, %v823_v30  ;;  %v98_v30 = vld [vmem:[%s10072_s1] sm:$0xf]  ;;  %v863_v41 = vmul.f32 %v5454_v24, %v862_v25 }
 0x110   :  { %v5487_v34 = vperm.slane %v98_v30, 0  ;;  %v5494_v2 = vperm.slane %v98_v30, 1 }
 0x111   :  { %v5456_v47 = vadd.f32 1e-05, %v692_v26  ;;  %v816_v26 = vmul.f32 %v5412_v40, %v815_v28  ;;  %v825_v50 = vsub.f32 1.5, %v824_v44  ;;  %v690_v28 = vmul.f32 %v514_v18, %v5180_v54 }
 0x112   :  { %v5458_v51 = vpop.eup %4644 }
 0x113   :  { %v5460_v36 = vpop.eup %4646  ;;  %4650 = vrsqrt.f32 %v5456_v47  ;;  %v826_v18 = vmul.f32 %v5424_v43, %v825_v50  ;;  %vm878_vm2 = vweird.f32 %v5458_v51  ;;  %vm907_vm6 = vweird.f32 %v5456_v47 }
 0x114   :  { %v5471_v37 = vpop.eup %4648  ;;  %v852_v61 = vmul.f32 %v5460_v36, %v5436_v14  ;;  %vm858_vm1 = vweird.f32 %v5460_v36 }
 0x115   :  { %v832_v44 = vmul.f32 %v5471_v37, %v5438_v62  ;;  %vm838_vm5 = vweird.f32 %v5471_v37  ;;  %vm5654_vm7 = vmor %vm857_vm12, %vm858_vm1 }
 0x116   :  { %v5403_v6 = vpop.xlane.xlu2 %525  ;;  %v853_v50 = vmul.f32 %v5460_v36, %v852_v61  ;;  %vm5675_vm8 = vmor %vm837_vm15, %vm838_vm5 }
 0x117   :  { %v5408_v27 = vpop.xlane.xlu1 %516 }
 0x119   :  { %v5517_v49 = vpop.eup %4650 }
 0x11a   :  { %vm908_vm9 = vweird.f32 %v5517_v49 }
 0x11e   :  { %v5414_v0 = vpop.xlane.xlu2 %531 }
 0x11f   :  { %v5419_v35 = vpop.xlane.xlu1 %522 }
 0x126   :  { %v5440_v3 = vpop.xlane.xlu2 %537 }
 0x127   :  { %v529_v46 = vpop.xlane.xlu1 %528  ;;  %v5443_v63 = vpop.xlane.xlu0 %540 }
 0x128   :  { %v695_v13 = vmul.f32 %v529_v46, %v5180_v54  ;;  %v844_v46 = vmul.f32 0.5, %v843_v1  ;;  %v5515_v1 = vadd.f32 1e-05, %v690_v28  ;;  %v830_v28 = vsel %vm5520_vm10, %v5424_v43, %v826_v18  ;;  %vm5740_vm10 = vmor %vm907_vm6, %vm908_vm9 }
 0x129   :  { %v694_v18 = vmul.f32 %v5403_v6, %v5180_v54  ;;  %v1452_v25 = vmul.f32 %v830_v28, %v5201_v16 }
 0x12b   :  { %v5577_v28 = vadd.f32 1e-05, %v694_v18 }
 0x12e   :  { %v177_v55 = vpop.xlane.xlu2 %176 }
 0x12f   :  { %v324_v4 = vmul.f32 %v5180_v54, %v177_v55  ;;  %v5464_v22 = vpop.xlane.xlu1 %534  ;;  %v5466_v5 = vpop.xlane.xlu0 %549  ;;  %v872_v55 = vmul.f32 %v5458_v51, %v5434_v56 }
 0x130   :  { %v697_v62 = vmul.f32 %v5464_v22, %v5180_v54 }
 0x131   :  { %v5482_v9 = vsub.f32 %v5306_v32, %v324_v4  ;;  %v820_v4 = vsel %vm5498_vm4, %v5412_v40, %v816_v26  ;;  %v873_v30 = vmul.f32 %v5458_v51, %v872_v55  ;;  %v833_v40 = vmul.f32 %v5471_v37, %v832_v44  ;;  %vm5613_vm4 = vmor %vm877_vm13, %vm878_vm2 }
 0x132   :  { %v845_v55 = vsub.f32 1.5, %v844_v46  ;;  %v864_v32 = vmul.f32 0.5, %v863_v41  ;;  %v1451_v48 = vmul.f32 %v820_v4, %v5184_v59  ;;  %v902_v46 = vmul.f32 %v5517_v49, %v5456_v47  ;;  %v5545_v59 = vld [vmem:[%s10071_s0 + $0x100] sm:$0xff] }
 0x133   :  { %10195 = vst [vmem:[#allocation20_spill] sm:$0xff] %v5482_v9  ;;  %v452_v10 = vmul.f32 %v5482_v9, %v5482_v9  ;;  %v5510_v9 = vadd.f32 1e-05, %v695_v13  ;;  %v691_v13 = vmul.f32 %v5408_v27, %v5180_v54  ;;  %v874_v58 = vmul.f32 0.5, %v873_v30 }
 0x134   :  { %v698_v27 = vmul.f32 %v5440_v3, %v5180_v54  ;;  %10200 = vst [vmem:[#allocation21_spill] sm:$0xff] %v5545_v59  ;;  %v834_v43 = vmul.f32 0.5, %v833_v40  ;;  %v846_v4 = vmul.f32 %v5447_v21, %v845_v55  ;;  %v865_v30 = vsub.f32 1.5, %v864_v32 }
 0x135   :  { %v566_v26 = vsel %vm99_vm0, %v452_v10, 0.0  ;;  %4652 = vrsqrt.f32 %v5510_v9  ;;  %v854_v10 = vmul.f32 0.5, %v853_v50  ;;  %v5549_v3 = vadd.f32 1e-05, %v691_v13 }
 0x136   :  { %567 = vadd.xlane.f32.xlu0 %v566_v26  ;;  %4654 = vrsqrt.f32 %v5515_v1  ;;  %v547_v50 = vpop.xlane.xlu2 %546  ;;  %v5567_v40 = vadd.f32 1e-05, %v698_v27  ;;  %v196_v13 = vsel %vm99_vm0, %v5545_v59, 0.0  ;;  %v1516_v26 = vmul.f32 %v5487_v34, %v1451_v48 }
 0x137   :  { %v5527_v7 = vpop.xlane.xlu1 %543  ;;  %v180_v61 = vpop.xlane.xlu0 %179  ;;  %v903_v16 = vmul.f32 %v5517_v49, %v902_v46  ;;  %v835_v55 = vsub.f32 1.5, %v834_v43  ;;  %4656 = vrsqrt.f32 %v5549_v3  ;;  %v1517_v43 = vmul.f32 %v5487_v34, %v1452_v25 }
 0x138   :  { %v325_v44 = vmul.f32 %v5180_v54, %v180_v61  ;;  %v855_v61 = vsub.f32 1.5, %v854_v10  ;;  %v5590_v10 = vmul.f32 %v5454_v24, %v865_v30  ;;  %4658 = vrsqrt.f32 %v5567_v40 }
 0x139   :  { %v904_v25 = vmul.f32 0.5, %v903_v16  ;;  %4660 = vrsqrt.f32 %v5577_v28  ;;  %v1582_v53 = vadd.f32 %v5494_v2, %v1517_v43  ;;  %vm897_vm12 = vweird.f32 %v5549_v3 }
 0x13a   :  { %v5552_v41 = vsub.f32 %v5332_v20, %v325_v44  ;;  %v875_v20 = vsub.f32 1.5, %v874_v58  ;;  %v850_v44 = vsel %vm5562_vm14, %v5447_v21, %v846_v4  ;;  %v701_v21 = vmul.f32 %v547_v50, %v5180_v54  ;;  %v5625_v50 = vld [vmem:[%s10071_s0 + $0x110] sm:$0xff] }
 0x13b   :  { %v5575_v33 = vpop.eup %4652  ;;  %v5607_v30 = vmul.f32 %v5460_v36, %v855_v61  ;;  %10210 = vst [vmem:[#allocation25_spill] sm:$0xff] %v5625_v50  ;;  %v5642_v61 = vld [vmem:[%s10071_s0 + $0x108] sm:$0xff]  ;;  %v1454_v16 = vmul.f32 %v850_v44, %v5198_v15  ;;  %v202_v15 = vsel %vm99_vm0, %v5625_v50, 0.0  ;;  %vm927_vm13 = vweird.f32 %v5577_v28 }
 0x13c   :  { %10201 = vst [vmem:[#allocation22_spill] sm:$0xff] %v5552_v41  ;;  %v453_v32 = vmul.f32 %v5552_v41, %v5552_v41  ;;  %v5584_v48 = vpop.eup %4654  ;;  %v876_v41 = vmul.f32 %v5458_v51, %v875_v20  ;;  %v932_v6 = vmul.f32 %v5575_v33, %v5510_v9  ;;  %vm938_vm11 = vweird.f32 %v5575_v33 }
 0x13d   :  { %v882_v56 = vmul.f32 %v5584_v48, %v5515_v1  ;;  %10211 = vst [vmem:[#allocation26_spill] sm:$0xff] %v5642_v61  ;;  %vm937_vm15 = vweird.f32 %v5510_v9  ;;  %vm888_vm9 = vweird.f32 %v5584_v48 }
 0x13e   :  { %197 = vadd.xlane.f32.xlu0 %v196_v13  ;;  %v569_v4 = vsel %vm99_vm0, %v453_v32, 0.0  ;;  %v5628_v13 = vmul.f32 %v5471_v37, %v835_v55  ;;  %v5646_v55 = vadd.f32 %v5494_v2, %v1516_v26  ;;  %vm5797_vm1 = vmor %vm937_vm15, %vm938_vm11  ;;  %vm887_vm11 = vweird.f32 %v5515_v1  ;;  %v10244_v32 = vld [vmem:[#allocation13_spill] sm:$0xff] }
 0x13f   :  { %v174_v58 = vpop.xlane.xlu1 %173  ;;  %v5582_v27 = vpop.xlane.xlu0 %558  ;;  %570 = vadd.xlane.f32.xlu1 %v569_v4  ;;  %v5661_v4 = vadd.f32 1e-05, %v701_v21  ;;  %v883_v43 = vmul.f32 %v5584_v48, %v882_v56 }
 0x140   :  { %10204 = vst [vmem:[#allocation23_spill] sm:$0xff] %v5582_v27  ;;  %v323_v46 = vmul.f32 %v5180_v54, %v174_v58  ;;  %v5648_v58 = vpop.eup %4656  ;;  %v556_v21 = vpop.xlane.xlu2 %555 }
 0x141   :  { %v892_v59 = vmul.f32 %v5648_v58, %v5549_v3  ;;  %4662 = vrsqrt.f32 %v5661_v4  ;;  %vm898_vm2 = vweird.f32 %v5648_v58 }
 0x142   :  { %v5620_v20 = vsub.f32 %v5352_v31, %v323_v46  ;;  %v880_v46 = vsel %vm5613_vm4, %v5458_v51, %v876_v41  ;;  %v905_v51 = vsub.f32 1.5, %v904_v25  ;;  %v933_v41 = vmul.f32 %v5575_v33, %v932_v6  ;;  %v5681_v31 = vpop.eup %4658  ;;  %vm5848_vm5 = vmor %vm897_vm12, %vm898_vm2 }
 0x143   :  { %v199_v25 = vsel %vm99_vm0, %v5642_v61, 0.0  ;;  %v1457_v14 = vmul.f32 %v880_v46, %v5226_v42  ;;  %v5699_v22 = vpop.eup %4660  ;;  %v704_v61 = vmul.f32 %v556_v21, %v5180_v54  ;;  %v962_v42 = vmul.f32 %v5681_v31, %v5567_v40 }
 0x144   :  { %10209 = vst [vmem:[#allocation24_spill] sm:$0xff] %v5620_v20  ;;  %v451_v26 = vmul.f32 %v5620_v20, %v5620_v20  ;;  %v906_v56 = vmul.f32 %v5517_v49, %v905_v51  ;;  %v5722_v51 = vadd.f32 %v1582_v53, %v5046_v8  ;;  %v922_v21 = vmul.f32 %v5699_v22, %v5577_v28 }
 0x145   :  { %vm928_vm14 = vweird.f32 %v5699_v22  ;;  %vm967_vm4 = vweird.f32 %v5567_v40 }
 0x146   :  { %v563_v50 = vsel %vm99_vm0, %v451_v26, 0.0  ;;  %203 = vadd.xlane.f32.xlu0 %v202_v15  ;;  %v696_v26 = vmul.f32 %v5414_v0, %v5180_v54  ;;  %v934_v15 = vmul.f32 0.5, %v933_v41  ;;  %v5714_v0 = vld [vmem:[%s10071_s0 + $0xf8] sm:$0xff]  ;;  %10219 = vst [vmem:[#allocation30_spill] sm:$0xff] %v5722_v51  ;;  %v5725_v41 = vmul.f32 0.5, %v883_v43 }
 0x147   :  { %v5690_v20 = vpop.xlane.xlu1 %552  ;;  %v189_v6 = vpop.xlane.xlu0 %188  ;;  %564 = vadd.xlane.f32.xlu2 %v563_v50  ;;  %200 = vadd.xlane.f32.xlu1 %v199_v25  ;;  %10217 = vst [vmem:[#allocation28_spill] sm:$0xff] %v5714_v0  ;;  %v5716_v50 = vadd.f32 1e-05, %v697_v62  ;;  %v893_v25 = vmul.f32 %v5648_v58, %v892_v59  ;;  %v5733_v62 = vld [vmem:[%s10071_s0 + $0x118] sm:$0xff]  ;;  %v193_v59 = vsel %vm99_vm0, %v5714_v0, 0.0  ;;  %v963_v43 = vmul.f32 %v5681_v31, %v962_v42 }
 0x148   :  { %10216 = vst [vmem:[#allocation27_spill] sm:$0xff] %v5690_v20  ;;  %v328_v27 = vmul.f32 %v5180_v54, %v189_v6  ;;  %v693_v20 = vmul.f32 %v5419_v35, %v5180_v54  ;;  %v1519_v35 = vmul.f32 %v5487_v34, %v1454_v16  ;;  %v5746_v16 = vadd.f32 1e-05, %v704_v61  ;;  %v186_v57 = vpop.xlane.xlu2 %185 }
 0x149   :  { %v935_v47 = vsub.f32 1.5, %v934_v15  ;;  %4664 = vrsqrt.f32 %v5716_v50  ;;  %v700_v61 = vmul.f32 %v5527_v7, %v5180_v54  ;;  %v327_v7 = vmul.f32 %v5180_v54, %v186_v57 }
 0x14a   :  { %v5719_v46 = vsub.f32 %v5371_v39, %v328_v27  ;;  %v1522_v39 = vmul.f32 %v5487_v34, %v1457_v14  ;;  %v5744_v27 = vadd.f32 1e-05, %v696_v26  ;;  %v910_v14 = vsel %vm5740_vm10, %v5517_v49, %v906_v56  ;;  %v5758_v26 = vpop.eup %4662  ;;  %vm5901_vm10 = vmor %vm927_vm13, %vm928_vm14 }
 0x14b   :  { %v5755_v6 = vadd.f32 1e-05, %v693_v20  ;;  %v923_v49 = vmul.f32 %v5699_v22, %v922_v21  ;;  %v894_v20 = vmul.f32 0.5, %v893_v25  ;;  %4666 = vrsqrt.f32 %v5746_v16 }
 0x14c   :  { %10218 = vst [vmem:[#allocation29_spill] sm:$0xff] %v5719_v46  ;;  %v456_v53 = vmul.f32 %v5719_v46, %v5719_v46  ;;  %v205_v46 = vsel %vm99_vm0, %v5733_v62, 0.0  ;;  %v1587_v15 = vadd.f32 %v5494_v2, %v1522_v39  ;;  %v1460_v42 = vmul.f32 %v910_v14, %v5230_v45 }
 0x14d   :  { %v964_v21 = vmul.f32 0.5, %v963_v43  ;;  %v992_v25 = vmul.f32 %v5758_v26, %v5661_v4  ;;  %4668 = vrsqrt.f32 %v5755_v6  ;;  %v5781_v39 = vadd.f32 1e-05, %v700_v61 }
 0x14e   :  { %v578_v8 = vsel %vm99_vm0, %v456_v53, 0.0  ;;  %v936_v53 = vmul.f32 %v5575_v33, %v935_v47  ;;  %v1712_v57 = vsel %vm99_vm0, %v5722_v51, 0.0  ;;  %v1584_v45 = vadd.f32 %v5494_v2, %v1519_v35 }
 0x14f   :  { %v183_v0 = vpop.xlane.xlu1 %182  ;;  %194 = vadd.xlane.f32.xlu2 %v193_v59  ;;  %579 = vadd.xlane.f32.xlu0 %v578_v8  ;;  %v924_v59 = vmul.f32 0.5, %v923_v49  ;;  %v895_v14 = vsub.f32 1.5, %v894_v20  ;;  %4670 = vrsqrt.f32 %v5744_v27  ;;  %v5802_v35 = vsub.f32 %v5366_v38, %v327_v7 }
 0x150   :  { %v326_v56 = vmul.f32 %v5180_v54, %v183_v0  ;;  %206 = vadd.xlane.f32.xlu1 %v205_v46  ;;  %v5792_v46 = vpop.eup %4664  ;;  %v1525_v9 = vmul.f32 %v5487_v34, %v1460_v42  ;;  %v940_v61 = vsel %vm5797_vm1, %v5575_v33, %v936_v53  ;;  %v965_v8 = vsub.f32 1.5, %v964_v21 }
 0x151   :  { %v993_v49 = vmul.f32 %v5758_v26, %v992_v25  ;;  %v5812_v20 = vpop.eup %4666  ;;  %4672 = vrsqrt.f32 %v5781_v39  ;;  %v896_v33 = vmul.f32 %v5648_v58, %v895_v14  ;;  %v952_v7 = vmul.f32 %v5792_v46, %v5716_v50  ;;  %v4892_v14 = vld [vmem:[%s10071_s0 + $0x18] sm:$0xff] }
 0x152   :  { %v5778_v0 = vsub.f32 %v5382_v52, %v326_v56  ;;  %v5790_v52 = vadd.f32 %v1587_v15, %v5057_v12  ;;  %v885_v12 = vsub.f32 1.5, %v5725_v41  ;;  %v10225_v41 = vsel %vm5598_vm3, %v5454_v24, %v5590_v10 }
 0x153   :  { %v1456_v56 = vmul.f32 %v10225_v41, %v5195_v11  ;;  %v925_v15 = vsub.f32 1.5, %v924_v59  ;;  %v5828_v53 = vpop.eup %4668  ;;  %v455_v18 = vmul.f32 %v5802_v35, %v5802_v35  ;;  %v1590_v11 = vadd.f32 %v5494_v2, %v1525_v9 }
 0x154   :  { %10222 = vst [vmem:[#allocation31_spill] sm:$0xff] %v5790_v52  ;;  %v454_v43 = vmul.f32 %v5778_v0, %v5778_v0  ;;  %v1727_v42 = vsel %vm99_vm0, %v5790_v52, 0.0  ;;  %v1463_v24 = vmul.f32 %v940_v61, %v5278_v29  ;;  %v966_v10 = vmul.f32 %v5681_v31, %v965_v8 }
 0x155   :  { %vm968_vm3 = vweird.f32 %v5681_v31  ;;  %v994_v21 = vmul.f32 0.5, %v993_v49  ;;  %v1022_v25 = vmul.f32 %v5812_v20, %v5746_v16  ;;  %v5842_v59 = vmul.f32 %v5584_v48, %v885_v12 }
 0x156   :  { %v572_v38 = vsel %vm99_vm0, %v454_v43, 0.0  ;;  %v5855_v47 = vadd.f32 %v4892_v14, %v1584_v45  ;;  %v4893_v43 = vld [vmem:[%s10071_s0] sm:$0xff]  ;;  %v1521_v12 = vmul.f32 %v5487_v34, %v1456_v56  ;;  %v926_v3 = vmul.f32 %v5699_v22, %v925_v15  ;;  %vm5879_vm6 = vmor %vm967_vm4, %vm968_vm3 }
 0x157   :  { %573 = vadd.xlane.f32.xlu2 %v572_v38  ;;  %1713 = vadd.xlane.f32.xlu0 %v1712_v57  ;;  %v5839_v57 = vpop.eup %4670  ;;  %v5861_v9 = vadd.f32 %v4893_v43, %v5646_v55  ;;  %v900_v61 = vsel %vm5848_vm5, %v5648_v58, %v896_v33  ;;  %v699_v8 = vmul.f32 %v5443_v63, %v5180_v54  ;;  %v575_v58 = vsel %vm99_vm0, %v455_v18, 0.0  ;;  %v4894_v63 = vld [vmem:[%s10071_s0 + $0x48] sm:$0xff] }
 0x158   :  { %1728 = vadd.xlane.f32.xlu1 %v1727_v42  ;;  %10228 = vst [vmem:[#allocation32_spill] sm:$0xff] %v5855_v47  ;;  %v953_v45 = vmul.f32 %v5792_v46, %v952_v7  ;;  %v5871_v49 = vpop.eup %4672  ;;  %v912_v38 = vmul.f32 %v5828_v53, %v5755_v6  ;;  %v5887_v41 = vadd.f32 %v4894_v63, %v1590_v11  ;;  %v995_v33 = vsub.f32 1.5, %v994_v21  ;;  %v4895_v43 = vld [vmem:[%s10071_s0 + $0x28] sm:$0xff]  ;;  %v4896_v63 = vld [vmem:[%s10071_s0 + $0x60] sm:$0xff] }
 0x159   :  { %10229 = vst [vmem:[#allocation33_spill] sm:$0xff] %v5861_v9  ;;  %v1528_v56 = vmul.f32 %v5487_v34, %v1463_v24  ;;  %v942_v15 = vmul.f32 %v5839_v57, %v5744_v27  ;;  %v970_v40 = vsel %vm5879_vm6, %v5681_v31, %v966_v10  ;;  %v1023_v7 = vmul.f32 %v5812_v20, %v1022_v25 }
 0x15a   :  { %10232 = vst [vmem:[#allocation34_spill] sm:$0xff] %v5887_v41  ;;  %v1718_v18 = vsel %vm99_vm0, %v5855_v47, 0.0  ;;  %v1586_v11 = vadd.f32 %v5494_v2, %v1521_v12  ;;  %v10235_v31 = vsel %vm5675_vm8, %v5471_v37, %v5628_v13  ;;  %v1459_v10 = vmul.f32 %v900_v61, %v5250_v60 }
 0x15b   :  { %v1453_v24 = vmul.f32 %v10235_v31, %v5211_v23  ;;  %v930_v28 = vsel %vm5901_vm10, %v5699_v22, %v926_v3  ;;  %v5919_v21 = vadd.f32 1e-05, %v699_v8  ;;  %v954_v25 = vmul.f32 0.5, %v953_v45 }
 0x15c   :  { %v982_v29 = vmul.f32 %v5871_v49, %v5781_v39  ;;  %v913_v44 = vmul.f32 %v5828_v53, %v912_v38  ;;  %v1736_v23 = vsel %vm99_vm0, %v5887_v41, 0.0  ;;  %v1593_v60 = vadd.f32 %v5494_v2, %v1528_v56 }
 0x15d   :  { %v1466_v37 = vmul.f32 %v970_v40, %v5274_v19  ;;  %v996_v13 = vmul.f32 %v5758_v26, %v995_v33  ;;  %vm997_vm8 = vweird.f32 %v5661_v4  ;;  %vm998_vm12 = vweird.f32 %v5758_v26 }
 0x15e   :  { %v1024_v22 = vmul.f32 0.5, %v1023_v7  ;;  %v943_v14 = vmul.f32 %v5839_v57, %v942_v15  ;;  %v5935_v12 = vadd.f32 %v4895_v43, %v1586_v11  ;;  %v1518_v3 = vmul.f32 %v5487_v34, %v1453_v24  ;;  %vm5947_vm13 = vmor %vm997_vm8, %vm998_vm12  ;;  %v10241_v11 = vld [vmem:[#allocation7_spill] sm:$0xff] }
 0x15f   :  { %576 = vadd.xlane.f32.xlu2 %v575_v58  ;;  %1719 = vadd.xlane.f32.xlu0 %v1718_v18  ;;  %v1524_v19 = vmul.f32 %v5487_v34, %v1459_v10  ;;  %4674 = vrsqrt.f32 %v5919_v21  ;;  %v955_v61 = vsub.f32 1.5, %v954_v25  ;;  %v983_v8 = vmul.f32 %v5871_v49, %v982_v29 }
 0x160   :  { %1737 = vadd.xlane.f32.xlu1 %v1736_v23  ;;  %10236 = vst [vmem:[#allocation35_spill] sm:$0xff] %v5935_v12  ;;  %v1709_v45 = vsel %vm99_vm0, %v5861_v9, 0.0  ;;  %v914_v38 = vmul.f32 0.5, %v913_v44  ;;  %v702_v55 = vmul.f32 %v5466_v5, %v5180_v54  ;;  %v5954_v56 = vadd.f32 %v4896_v63, %v1593_v60  ;;  %v4897_v60 = vld [vmem:[%s10071_s0 + $0x10] sm:$0xff] }
 0x161   :  { %v1531_v15 = vmul.f32 %v5487_v34, %v1466_v37  ;;  %vm958_vm14 = vweird.f32 %v5792_v46  ;;  %v1000_v5 = vsel %vm5947_vm13, %v5758_v26, %v996_v13  ;;  %v1025_v40 = vsub.f32 1.5, %v1024_v22  ;;  %v4898_v13 = vld [vmem:[%s10071_s0 + $0x40] sm:$0xff] }
 0x162   :  { %10239 = vst [vmem:[#allocation36_spill] sm:$0xff] %v5954_v56  ;;  %v10240_v4 = vsel %vm5654_vm7, %v5460_v36, %v5607_v30  ;;  %v1724_v7 = vsel %vm99_vm0, %v5935_v12, 0.0  ;;  %v1583_v42 = vadd.f32 %v5494_v2, %v1518_v3  ;;  %v1589_v18 = vadd.f32 %v5494_v2, %v1524_v19  ;;  %vm5979_vm7 = vmor %vm887_vm11, %vm888_vm9 }
 0x163   :  { %v1455_v33 = vmul.f32 %v10240_v4, %v5204_v17  ;;  %v1462_v31 = vmul.f32 %v930_v28, %v10241_v11  ;;  %v956_v24 = vmul.f32 %v5792_v46, %v955_v61  ;;  %v984_v26 = vmul.f32 0.5, %v983_v8  ;;  %v4899_v61 = vld [vmem:[%s10071_s0 + $0x78] sm:$0xff]  ;;  %v10254_v11 = vld [vmem:[#allocation15_spill] sm:$0xff] }
 0x164   :  { %vm1027_vm15 = vweird.f32 %v5746_v16  ;;  %vm1028_vm1 = vweird.f32 %v5812_v20  ;;  %vm957_vm2 = vweird.f32 %v5716_v50  ;;  %v1745_v36 = vsel %vm99_vm0, %v5954_v56, 0.0 }
 0x165   :  { %v1596_v30 = vadd.f32 %v5494_v2, %v1531_v15  ;;  %v1469_v10 = vmul.f32 %v1000_v5, %v10244_v32  ;;  %v5988_v28 = vpop.eup %4674  ;;  %vm5992_vm4 = vmor %vm957_vm2, %vm958_vm14  ;;  %v5996_v1 = vadd.f32 1e-05, %v702_v55  ;;  %v1026_v29 = vmul.f32 %v5812_v20, %v1025_v40  ;;  %v10253_v5 = vld [vmem:[#allocation11_spill] sm:$0xff]  ;;  %v4901_v32 = vld [vmem:[%s10071_s0 + $0x58] sm:$0xff] }
 0x166   :  { %v1520_v50 = vmul.f32 %v5487_v34, %v1455_v33  ;;  %v890_v44 = vsel %vm5979_vm7, %v5584_v48, %v5842_v59  ;;  %vm6008_vm3 = vmor %vm1027_vm15, %vm1028_vm1  ;;  %v6015_v37 = vadd.f32 %v4897_v60, %v1583_v42  ;;  %v6020_v22 = vadd.f32 %v4898_v13, %v1589_v18  ;;  %v6051_v33 = vpop.xlane.xlu1 %561 }
 0x167   :  { %1710 = vadd.xlane.f32.xlu2 %v1709_v45  ;;  %1725 = vadd.xlane.f32.xlu0 %v1724_v7  ;;  %v1527_v48 = vmul.f32 %v5487_v34, %v1462_v31  ;;  %v915_v59 = vsub.f32 1.5, %v914_v38  ;;  %vm918_vm5 = vweird.f32 %v5828_v53  ;;  %v960_v16 = vsel %vm5992_vm4, %v5792_v46, %v956_v24 }
 0x168   :  { %1746 = vadd.xlane.f32.xlu1 %v1745_v36  ;;  %10249 = vst [vmem:[#allocation7_spill] sm:$0xff] %v6015_v37  ;;  %v985_v43 = vsub.f32 1.5, %v984_v26  ;;  %v944_v3 = vmul.f32 0.5, %v943_v14  ;;  %v972_v19 = vmul.f32 %v5988_v28, %v5919_v21  ;;  %v6032_v8 = vadd.f32 %v4899_v61, %v1596_v30  ;;  %v10252_v14 = vld [vmem:[#allocation6_spill] sm:$0xff] }
 0x169   :  { %10250 = vst [vmem:[#allocation13_spill] sm:$0xff] %v6020_v22  ;;  %v1534_v45 = vmul.f32 %v5487_v34, %v1469_v10  ;;  %4676 = vrsqrt.f32 %v5996_v1  ;;  %v1030_v38 = vsel %vm6008_vm3, %v5812_v20, %v1026_v29  ;;  %v1585_v46 = vadd.f32 %v5494_v2, %v1520_v50  ;;  %v4900_v26 = vld [vmem:[%s10071_s0 + $0x20] sm:$0xff] }
 0x16a   :  { %10251 = vst [vmem:[#allocation37_spill] sm:$0xff] %v6032_v8  ;;  %v1458_v55 = vmul.f32 %v890_v44, %v10252_v14  ;;  %v1715_v58 = vsel %vm99_vm0, %v6015_v37, 0.0  ;;  %v1733_v63 = vsel %vm99_vm0, %v6020_v22, 0.0  ;;  %v1592_v15 = vadd.f32 %v5494_v2, %v1527_v48  ;;  %v4902_v44 = vld [vmem:[%s10071_s0 + $0x90] sm:$0xff] }
 0x16b   :  { %v1465_v40 = vmul.f32 %v960_v16, %v10253_v5  ;;  %v916_v4 = vmul.f32 %v5828_v53, %v915_v59  ;;  %vm917_vm6 = vweird.f32 %v5755_v6  ;;  %v986_v20 = vmul.f32 %v5871_v49, %v985_v43  ;;  %v10262_v43 = vld [vmem:[#allocation9_spill] sm:$0xff]  ;;  %v10269_v6 = vld [vmem:[#allocation8_spill] sm:$0xff] }
 0x16c   :  { %vm988_vm9 = vweird.f32 %v5871_v49  ;;  %v945_v7 = vsub.f32 1.5, %v944_v3  ;;  %v1754_v42 = vsel %vm99_vm0, %v6032_v8, 0.0  ;;  %v1599_v18 = vadd.f32 %v5494_v2, %v1534_v45  ;;  %vm6059_vm10 = vmor %vm917_vm6, %vm918_vm5 }
 0x16d   :  { %v1472_v31 = vmul.f32 %v1030_v38, %v10254_v11  ;;  %v973_v24 = vmul.f32 %v5988_v28, %v972_v19  ;;  %vm987_vm11 = vweird.f32 %v5781_v39  ;;  %v6068_v17 = vadd.f32 %v4900_v26, %v1585_v46  ;;  %v10263_v19 = vld [vmem:[#allocation14_spill] sm:$0xff] }
 0x16e   :  { %v1523_v36 = vmul.f32 %v5487_v34, %v1458_v55  ;;  %vm6073_vm8 = vmor %vm987_vm11, %vm988_vm9  ;;  %v6080_v39 = vadd.f32 %v4901_v32, %v1592_v15  ;;  %v1530_v10 = vmul.f32 %v5487_v34, %v1465_v40  ;;  %v920_v29 = vsel %vm6059_vm10, %v5828_v53, %v916_v4  ;;  %v192_v38 = vpop.xlane.xlu1 %191  ;;  %v4903_v15 = vld [vmem:[%s10071_s0 + $0x38] sm:$0xff]  ;;  %v4904_v40 = vld [vmem:[%s10071_s0 + $0x70] sm:$0xff] }
 0x16f   :  { %1716 = vadd.xlane.f32.xlu2 %v1715_v58  ;;  %1734 = vadd.xlane.f32.xlu0 %v1733_v63  ;;  %10257 = vst [vmem:[#allocation6_spill] sm:$0xff] %v6068_v17  ;;  %v6083_v25 = vpop.eup %4676  ;;  %v990_v50 = vsel %vm6073_vm8, %v5871_v49, %v986_v20  ;;  %vm947_vm12 = vweird.f32 %v5744_v27  ;;  %vm948_vm13 = vweird.f32 %v5839_v57  ;;  %v6096_v23 = vadd.f32 %v4902_v44, %v1599_v18 }
 0x170   :  { %1755 = vadd.xlane.f32.xlu1 %v1754_v42  ;;  %10260 = vst [vmem:[#allocation11_spill] sm:$0xff] %v6080_v39  ;;  %v1537_v60 = vmul.f32 %v5487_v34, %v1472_v31  ;;  %v946_v13 = vmul.f32 %v5839_v57, %v945_v7  ;;  %v974_v48 = vmul.f32 0.5, %v973_v24  ;;  %v1721_v53 = vsel %vm99_vm0, %v6068_v17, 0.0  ;;  %vm6114_vm14 = vmor %vm947_vm12, %vm948_vm13  ;;  %v4905_v42 = vld [vmem:[%s10071_s0 + $0xa8] sm:$0xff] }
 0x171   :  { %10261 = vst [vmem:[#allocation15_spill] sm:$0xff] %v6096_v23  ;;  %v1588_v49 = vadd.f32 %v5494_v2, %v1523_v36  ;;  %v1742_v59 = vsel %vm99_vm0, %v6080_v39, 0.0  ;;  %v1595_v16 = vadd.f32 %v5494_v2, %v1530_v10  ;;  %v1461_v3 = vmul.f32 %v920_v29, %v10262_v43 }
 0x172   :  { %v1468_v61 = vmul.f32 %v990_v50, %v10263_v19  ;;  %v1002_v45 = vmul.f32 %v6083_v25, %v5996_v1  ;;  %v1763_v14 = vsel %vm99_vm0, %v6096_v23, 0.0  ;;  %v1602_v55 = vadd.f32 %v5494_v2, %v1537_v60  ;;  %v4906_v60 = vld [vmem:[%s10071_s0 + $0x50] sm:$0xff] }
 0x173   :  { %v950_v58 = vsel %vm6114_vm14, %v5839_v57, %v946_v13  ;;  %v975_v63 = vsub.f32 1.5, %v974_v48  ;;  %v6127_v27 = vadd.f32 %v4903_v15, %v1588_v49  ;;  %v329_v5 = vmul.f32 %v5180_v54, %v192_v38  ;;  %v10277_v15 = vld [vmem:[#allocation12_spill] sm:$0xff] }
 0x174   :  { %v6133_v4 = vadd.f32 %v4904_v40, %v1595_v16  ;;  %v1526_v20 = vmul.f32 %v5487_v34, %v1461_v3  ;;  %v1533_v57 = vmul.f32 %v5487_v34, %v1468_v61  ;;  %vm977_vm15 = vweird.f32 %v5919_v21  ;;  %v10272_v21 = vld [vmem:[#allocation19_spill] sm:$0xff]  ;;  %v4909_v40 = vld [vmem:[%s10071_s0 + $0x80] sm:$0xff] }
 0x175   :  { %10266 = vst [vmem:[#allocation9_spill] sm:$0xff] %v6127_v27  ;;  %vm978_vm1 = vweird.f32 %v5988_v28  ;;  %v1003_v7 = vmul.f32 %v6083_v25, %v1002_v45  ;;  %v6143_v18 = vadd.f32 %v4905_v42, %v1602_v55  ;;  %v976_v11 = vmul.f32 %v5988_v28, %v975_v63  ;;  %v4910_v42 = vld [vmem:[%s10071_s0 + $0x98] sm:$0xff] }
 0x176   :  { %10267 = vst [vmem:[#allocation14_spill] sm:$0xff] %v6133_v4  ;;  %v1730_v31 = vsel %vm99_vm0, %v6127_v27, 0.0  ;;  %v1464_v24 = vmul.f32 %v950_v58, %v10269_v6  ;;  %vm6149_vm7 = vmor %vm977_vm15, %vm978_vm1  ;;  %v6154_v36 = vsub.f32 %v10272_v21, %v329_v5  ;;  %v1751_v30 = vsel %vm99_vm0, %v6133_v4, 0.0  ;;  %v10280_v6 = vld [vmem:[#allocation27_spill] sm:$0xff] }
 0x177   :  { %1722 = vadd.xlane.f32.xlu2 %v1721_v53  ;;  %1743 = vadd.xlane.f32.xlu0 %v1742_v59  ;;  %10268 = vst [vmem:[#allocation38_spill] sm:$0xff] %v6143_v18  ;;  %v1591_v32 = vadd.f32 %v5494_v2, %v1526_v20  ;;  %v1598_v10 = vadd.f32 %v5494_v2, %v1533_v57  ;;  %v1004_v29 = vmul.f32 0.5, %v1003_v7  ;;  %v1772_v50 = vsel %vm99_vm0, %v6143_v18, 0.0  ;;  %v4907_v53 = vld [vmem:[%s10071_s0 + $0x88] sm:$0xff] }
 0x178   :  { %1764 = vadd.xlane.f32.xlu1 %v1763_v14  ;;  %v980_v44 = vsel %vm6149_vm7, %v5988_v28, %v976_v11  ;;  %v457_v48 = vmul.f32 %v6154_v36, %v6154_v36  ;;  %v1529_v59 = vmul.f32 %v5487_v34, %v1464_v24  ;;  %vm1007_vm2 = vweird.f32 %v5996_v1  ;;  %v10275_v28 = vld [vmem:[#allocation10_spill] sm:$0xff]  ;;  %v4908_v1 = vld [vmem:[%s10071_s0 + $0x68] sm:$0xff] }
 0x179   :  { %v6168_v13 = vadd.f32 %v4906_v60, %v1591_v32  ;;  %v6175_v49 = vadd.f32 %v4907_v53, %v1598_v10  ;;  %v1005_v16 = vsub.f32 1.5, %v1004_v29  ;;  %vm1008_vm4 = vweird.f32 %v6083_v25 }
 0x17a   :  { %v1467_v43 = vmul.f32 %v980_v44, %v10275_v28  ;;  %v581_v19 = vsel %vm99_vm0, %v457_v48, 0.0  ;;  %v1594_v45 = vadd.f32 %v5494_v2, %v1529_v59  ;;  %vm1009_vm3 = vmor %vm1007_vm2, %vm1008_vm4  ;;  %v703_v24 = vmul.f32 %v10280_v6, %v5180_v54 }
 0x17b   :  { %10273 = vst [vmem:[#allocation8_spill] sm:$0xff] %v6168_v13  ;;  %v1739_v3 = vsel %vm99_vm0, %v6168_v13, 0.0  ;;  %v1760_v61 = vsel %vm99_vm0, %v6175_v49, 0.0  ;;  %v1006_v38 = vmul.f32 %v6083_v25, %v1005_v16  ;;  %v706_v10 = vmul.f32 %v6051_v33, %v5180_v54 }
 0x17c   :  { %10274 = vst [vmem:[#allocation19_spill] sm:$0xff] %v6175_v49  ;;  %v6191_v46 = vadd.f32 %v4908_v1, %v1594_v45  ;;  %v1532_v14 = vmul.f32 %v5487_v34, %v1467_v43  ;;  %v767_v26 = vadd.f32 1e-05, %v703_v24  ;;  %v10282_v1 = vld [vmem:[#allocation17_spill] sm:$0xff] }
 0x17d   :  { %v1010_v55 = vsel %vm1009_vm3, %v6083_v25, %v1006_v38  ;;  %v770_v44 = vadd.f32 1e-05, %v706_v10  ;;  %v4911_v10 = vld [vmem:[%s10071_s0 + $0xa0] sm:$0xff] }
 0x17e   :  { %10276 = vst [vmem:[#allocation10_spill] sm:$0xff] %v6191_v46  ;;  %v1748_v58 = vsel %vm99_vm0, %v6191_v46, 0.0  ;;  %v1597_v63 = vadd.f32 %v5494_v2, %v1532_v14  ;;  %v1470_v5 = vmul.f32 %v1010_v55, %v10277_v15  ;;  %4678 = vrsqrt.f32 %v767_v26 }
 0x17f   :  { %1731 = vadd.xlane.f32.xlu2 %v1730_v31  ;;  %1752 = vadd.xlane.f32.xlu0 %v1751_v30  ;;  %4680 = vrsqrt.f32 %v770_v44  ;;  %vm1017_vm6 = vweird.f32 %v767_v26  ;;  %vm1047_vm10 = vweird.f32 %v770_v44 }
 0x180   :  { %1773 = vadd.xlane.f32.xlu1 %v1772_v50  ;;  %v6202_v20 = vadd.f32 %v4909_v40, %v1597_v63  ;;  %v1535_v57 = vmul.f32 %v5487_v34, %v1470_v5 }
 0x182   :  { %10278 = vst [vmem:[#allocation12_spill] sm:$0xff] %v6202_v20  ;;  %v1757_v7 = vsel %vm99_vm0, %v6202_v20, 0.0  ;;  %v1600_v25 = vadd.f32 %v5494_v2, %v1535_v57 }
 0x184   :  { %v6211_v11 = vadd.f32 %v4910_v42, %v1600_v25  ;;  %v4679_v30 = vpop.eup %4678 }
 0x185   :  { %v1012_v32 = vmul.f32 %v4679_v30, %v767_v26  ;;  %v4681_v16 = vpop.eup %4680  ;;  %vm1018_vm5 = vweird.f32 %v4679_v30 }
 0x186   :  { %10279 = vst [vmem:[#allocation39_spill] sm:$0xff] %v6211_v11  ;;  %v1766_v31 = vsel %vm99_vm0, %v6211_v11, 0.0  ;;  %vm1019_vm9 = vmor %vm1017_vm6, %vm1018_vm5  ;;  %vm1048_vm11 = vweird.f32 %v4681_v16 }
 0x187   :  { %1740 = vadd.xlane.f32.xlu2 %v1739_v3  ;;  %1761 = vadd.xlane.f32.xlu0 %v1760_v61  ;;  %v1013_v50 = vmul.f32 %v4679_v30, %v1012_v32  ;;  %v10281_v61 = vld [vmem:[#allocation23_spill] sm:$0xff]  ;;  %vm1049_vm8 = vmor %vm1047_vm10, %vm1048_vm11 }
 0x188   :  { %582 = vadd.xlane.f32.xlu1 %v581_v19  ;;  %v1042_v19 = vmul.f32 %v4681_v16, %v770_v44  ;;  %v705_v45 = vmul.f32 %v10281_v61, %v5180_v54 }
 0x189   :  { %v1014_v60 = vmul.f32 0.5, %v1013_v50 }
 0x18a   :  { %v1043_v38 = vmul.f32 %v4681_v16, %v1042_v19  ;;  %v6232_v63 = vadd.f32 1e-05, %v705_v45  ;;  %v10284_v19 = vld [vmem:[#allocation18_spill] sm:$0xff] }
 0x18b   :  { %v1015_v59 = vsub.f32 1.5, %v1014_v60 }
 0x18c   :  { %v1044_v15 = vmul.f32 0.5, %v1043_v38  ;;  %4682 = vrsqrt.f32 %v6232_v63  ;;  %vm1037_vm12 = vweird.f32 %v6232_v63 }
 0x18d   :  { %v1016_v28 = vmul.f32 %v4679_v30, %v1015_v59 }
 0x18f   :  { %1749 = vadd.xlane.f32.xlu2 %v1748_v58  ;;  %v1020_v33 = vsel %vm1019_vm9, %v4679_v30, %v1016_v28 }
 0x190   :  { %v1471_v14 = vmul.f32 %v1020_v33, %v10282_v1 }
 0x192   :  { %v1536_v57 = vmul.f32 %v5487_v34, %v1471_v14  ;;  %v6247_v30 = vpop.eup %4682 }
 0x193   :  { %v1032_v60 = vmul.f32 %v6247_v30, %v6232_v63  ;;  %vm1038_vm13 = vweird.f32 %v6247_v30 }
 0x194   :  { %v1601_v6 = vadd.f32 %v5494_v2, %v1536_v57  ;;  %vm6318_vm14 = vmor %vm1037_vm12, %vm1038_vm13 }
 0x195   :  { %v1033_v45 = vmul.f32 %v6247_v30, %v1032_v60  ;;  %v6292_v60 = vld [vmem:[%s10071_s0 + $0x120] sm:$0xff] }
 0x196   :  { %v6254_v50 = vadd.f32 %v4911_v10, %v1601_v6 }
 0x197   :  { %1758 = vadd.xlane.f32.xlu2 %v1757_v7  ;;  %v1045_v7 = vsub.f32 1.5, %v1044_v15  ;;  %v1034_v57 = vmul.f32 0.5, %v1033_v45 }
 0x198   :  { %10283 = vst [vmem:[#allocation27_spill] sm:$0xff] %v6254_v50  ;;  %v1769_v59 = vsel %vm99_vm0, %v6254_v50, 0.0 }
 0x199   :  { %v1046_v26 = vmul.f32 %v4681_v16, %v1045_v7 }
 0x19b   :  { %v1050_v44 = vsel %vm1049_vm8, %v4681_v16, %v1046_v26  ;;  %v6268_v16 = vld [vmem:[%s10071_s0 + $0x128] sm:$0xff] }
 0x19c   :  { %v1474_v33 = vmul.f32 %v1050_v44, %v10284_v19  ;;  %v1035_v44 = vsub.f32 1.5, %v1034_v57 }
 0x19e   :  { %v1539_v1 = vmul.f32 %v5487_v34, %v1474_v33  ;;  %v4912_v33 = vld [vmem:[%s10071_s0 + $0xb8] sm:$0xff] }
 0x19f   :  { %1767 = vadd.xlane.f32.xlu2 %v1766_v31 }
 0x1a0   :  { %v1604_v26 = vadd.f32 %v5494_v2, %v1539_v1  ;;  %v1036_v1 = vmul.f32 %v6247_v30, %v1035_v44 }
 0x1a2   :  { %v1040_v44 = vsel %vm6318_vm14, %v6247_v30, %v1036_v1 }
 0x1a9   :  { %v568_v21 = vpop.xlane.xlu0 %567 }
 0x1b1   :  { %v6219_v29 = vpop.xlane.xlu0 %197 }
 0x1b2   :  { %v331_v30 = vmul.f32 %v5180_v54, %v6219_v29 }
 0x1b9   :  { %v6221_v53 = vpop.xlane.xlu0 %203 }
 0x1ba   :  { %v565_v48 = vpop.xlane.xlu2 %564 }
 0x1bb   :  { %v707_v42 = vmul.f32 %v565_v48, %v5180_v54  ;;  %v708_v48 = vmul.f32 %v568_v21, %v5180_v54 }
 0x1bd   :  { %v6249_v32 = vadd.f32 1e-05, %v707_v42  ;;  %v6270_v38 = vadd.f32 1e-05, %v708_v48 }
 0x1bf   :  { %4684 = vrsqrt.f32 %v6249_v32  ;;  %vm1057_vm1 = vweird.f32 %v6249_v32  ;;  %vm1067_vm2 = vweird.f32 %v6270_v38 }
 0x1c0   :  { %4686 = vrsqrt.f32 %v6270_v38 }
 0x1c2   :  { %v6223_v43 = vpop.xlane.xlu2 %194  ;;  %v6225_v3 = vpop.xlane.xlu0 %579 }
 0x1c3   :  { %v330_v48 = vmul.f32 %v5180_v54, %v6223_v43  ;;  %v208_v43 = vsel %vm99_vm0, %v6292_v60, 0.0 }
 0x1c5   :  { %v6276_v14 = vpop.eup %4684 }
 0x1c6   :  { %v6309_v45 = vpop.eup %4686  ;;  %vm1058_vm15 = vweird.f32 %v6276_v14 }
 0x1c7   :  { %vm1059_vm7 = vmor %vm1057_vm1, %vm1058_vm15  ;;  %vm1068_vm4 = vweird.f32 %v6309_v45 }
 0x1c8   :  { %vm6405_vm3 = vmor %vm1067_vm2, %vm1068_vm4 }
 0x1ca   :  { %v6230_v55 = vpop.xlane.xlu2 %573  ;;  %v1714_v58 = vpop.xlane.xlu0 %1713 }
 0x1cb   :  { %v1902_v5 = vmul.f32 %v1714_v58, %v5180_v54  ;;  %v571_v58 = vpop.xlane.xlu1 %570 }
 0x1cc   :  { %v709_v42 = vmul.f32 %v571_v58, %v5180_v54  ;;  %v710_v58 = vmul.f32 %v6230_v55, %v5180_v54 }
 0x1cd   :  { %v6236_v40 = vsub.f32 %v5722_v51, %v1902_v5  ;;  %v211_v5 = vsel %vm99_vm0, %v6268_v16, 0.0 }
 0x1cf   :  { %v2030_v25 = vmul.f32 %v6236_v40, %v6236_v40 }
 0x1d1   :  { %v2096_v31 = vsel %vm99_vm0, %v2030_v25, 0.0 }
 0x1d2   :  { %v6245_v24 = vpop.xlane.xlu2 %576  ;;  %2097 = vadd.xlane.f32.xlu0 %v2096_v31  ;;  %v1720_v7 = vpop.xlane.xlu0 %1719  ;;  %v1052_v31 = vmul.f32 %v6276_v14, %v6249_v32 }
 0x1d4   :  { %v1053_v19 = vmul.f32 %v6276_v14, %v1052_v31 }
 0x1d6   :  { %v1054_v31 = vmul.f32 0.5, %v1053_v19  ;;  %v6340_v19 = vld [vmem:[%s10071_s0 + $0x130] sm:$0xff] }
 0x1d8   :  { %v1055_v1 = vsub.f32 1.5, %v1054_v31 }
 0x1da   :  { %v1711_v28 = vpop.xlane.xlu2 %1710  ;;  %1770 = vadd.xlane.f32.xlu0 %v1769_v59  ;;  %v1056_v51 = vmul.f32 %v6276_v14, %v1055_v1 }
 0x1db   :  { %v1901_v61 = vmul.f32 %v1711_v28, %v5180_v54  ;;  %v6301_v28 = vadd.f32 1e-05, %v709_v42  ;;  %v1062_v42 = vmul.f32 %v6309_v45, %v6270_v38 }
 0x1dd   :  { %v6273_v21 = vsub.f32 %v5861_v9, %v1901_v61  ;;  %v6307_v61 = vadd.f32 %v4912_v33, %v1604_v26  ;;  %4688 = vrsqrt.f32 %v6301_v28  ;;  %v1904_v33 = vmul.f32 %v1720_v7, %v5180_v54  ;;  %v201_v9 = vpop.xlane.xlu1 %200 }
 0x1de   :  { %vm1077_vm5 = vweird.f32 %v6301_v28 }
 0x1df   :  { %v2029_v15 = vmul.f32 %v6273_v21, %v6273_v21  ;;  %10285 = vst [vmem:[#allocation23_spill] sm:$0xff] %v6307_v61  ;;  %v1778_v55 = vsel %vm99_vm0, %v6307_v61, 0.0 }
 0x1e1   :  { %v2093_v25 = vsel %vm99_vm0, %v2029_v15, 0.0  ;;  %v1063_v15 = vmul.f32 %v6309_v45, %v1062_v42 }
 0x1e2   :  { %v1717_v6 = vpop.xlane.xlu2 %1716  ;;  %2094 = vadd.xlane.f32.xlu2 %v2093_v25  ;;  %212 = vadd.xlane.f32.xlu0 %v211_v5  ;;  %v10288_v5 = vld [vmem:[#allocation28_spill] sm:$0xff] }
 0x1e3   :  { %v1903_v10 = vmul.f32 %v1717_v6, %v5180_v54  ;;  %v6323_v57 = vsub.f32 %v10288_v5, %v330_v48  ;;  %v1726_v6 = vpop.xlane.xlu0 %1725  ;;  %v6335_v48 = vadd.f32 1e-05, %v710_v58  ;;  %v214_v58 = vsel %vm99_vm0, %v6340_v19, 0.0 }
 0x1e5   :  { %v6298_v59 = vsub.f32 %v6015_v37, %v1903_v10  ;;  %v458_v5 = vmul.f32 %v6323_v57, %v6323_v57  ;;  %4690 = vrsqrt.f32 %v6335_v48  ;;  %vm1087_vm11 = vweird.f32 %v6335_v48 }
 0x1e7   :  { %v2031_v63 = vmul.f32 %v6298_v59, %v6298_v59  ;;  %v584_v29 = vsel %vm99_vm0, %v458_v5, 0.0 }
 0x1e9   :  { %v2099_v25 = vsel %vm99_vm0, %v2031_v63, 0.0 }
 0x1ea   :  { %v1723_v26 = vpop.xlane.xlu2 %1722  ;;  %209 = vadd.xlane.f32.xlu2 %v208_v43  ;;  %2100 = vadd.xlane.f32.xlu1 %v2099_v25  ;;  %v1906_v43 = vmul.f32 %v1726_v6, %v5180_v54  ;;  %v6356_v25 = vpop.eup %4688  ;;  %v10289_v6 = vld [vmem:[#allocation16_spill] sm:$0xff] }
 0x1eb   :  { %v1905_v10 = vmul.f32 %v1723_v26, %v5180_v54  ;;  %1779 = vadd.xlane.f32.xlu0 %v1778_v55  ;;  %v1473_v26 = vmul.f32 %v1040_v44, %v10289_v6  ;;  %v6361_v55 = vsub.f32 %v5855_v47, %v1904_v33  ;;  %v1072_v44 = vmul.f32 %v6356_v25, %v6301_v28  ;;  %v10292_v6 = vld [vmem:[#allocation26_spill] sm:$0xff] }
 0x1ec   :  { %v6364_v42 = vsub.f32 %v5935_v12, %v1906_v43  ;;  %v332_v33 = vmul.f32 %v5180_v54, %v201_v9  ;;  %vm1078_vm6 = vweird.f32 %v6356_v25 }
 0x1ed   :  { %v6345_v63 = vsub.f32 %v6068_v17, %v1905_v10  ;;  %v1064_v10 = vmul.f32 0.5, %v1063_v15  ;;  %v10290_v17 = vld [vmem:[#allocation21_spill] sm:$0xff]  ;;  %v1538_v5 = vmul.f32 %v5487_v34, %v1473_v26  ;;  %v1073_v32 = vmul.f32 %v6356_v25, %v1072_v44  ;;  %vm6438_vm9 = vmor %vm1077_vm5, %vm1078_vm6 }
 0x1ee   :  { %v6369_v37 = vsub.f32 %v10290_v17, %v331_v30  ;;  %v2032_v17 = vmul.f32 %v6361_v55, %v6361_v55  ;;  %v2034_v15 = vmul.f32 %v6364_v42, %v6364_v42  ;;  %v6382_v30 = vpop.eup %4690  ;;  %v6390_v26 = vsub.f32 %v10292_v6, %v332_v33 }
 0x1ef   :  { %v2033_v7 = vmul.f32 %v6345_v63, %v6345_v63  ;;  %v1065_v1 = vsub.f32 1.5, %v1064_v10  ;;  %v1082_v44 = vmul.f32 %v6382_v30, %v6335_v48  ;;  %v333_v6 = vmul.f32 %v5180_v54, %v6221_v53 }
 0x1f0   :  { %10291 = vst [vmem:[#allocation17_spill] sm:$0xff] %v6369_v37  ;;  %vm1088_vm10 = vweird.f32 %v6382_v30 }
 0x1f1   :  { %v2105_v31 = vsel %vm99_vm0, %v2033_v7, 0.0  ;;  %v459_v7 = vmul.f32 %v6369_v37, %v6369_v37  ;;  %vm1089_vm8 = vmor %vm1087_vm11, %vm1088_vm10 }
 0x1f2   :  { %585 = vadd.xlane.f32.xlu2 %v584_v29  ;;  %215 = vadd.xlane.f32.xlu1 %v214_v58  ;;  %v1732_v43 = vpop.xlane.xlu2 %1731  ;;  %v1060_v58 = vsel %vm1059_vm7, %v6276_v14, %v1056_v51  ;;  %v1603_v29 = vadd.f32 %v5494_v2, %v1538_v5  ;;  %v2108_v51 = vsel %vm99_vm0, %v2034_v15, 0.0  ;;  %v10293_v14 = vld [vmem:[#allocation24_spill] sm:$0xff]  ;;  %v460_v15 = vmul.f32 %v6390_v26, %v6390_v26 }
 0x1f3   :  { %2106 = vadd.xlane.f32.xlu0 %v2105_v31  ;;  %v1908_v9 = vmul.f32 %v1732_v43, %v5180_v54  ;;  %v2102_v31 = vsel %vm99_vm0, %v2032_v17, 0.0  ;;  %v1475_v10 = vmul.f32 %v1060_v58, %v10293_v14  ;;  %v1066_v43 = vmul.f32 %v6309_v45, %v1065_v1  ;;  %v4913_v1 = vld [vmem:[%s10071_s0 + $0xb0] sm:$0xff] }
 0x1f4   :  { %v587_v38 = vsel %vm99_vm0, %v459_v7, 0.0  ;;  %v1074_v17 = vmul.f32 0.5, %v1073_v32  ;;  %v6414_v58 = vadd.f32 %v4913_v1, %v1603_v29  ;;  %v1083_v32 = vmul.f32 %v6382_v30, %v1082_v44 }
 0x1f5   :  { %v6402_v33 = vsub.f32 %v6127_v27, %v1908_v9  ;;  %v1540_v9 = vmul.f32 %v5487_v34, %v1475_v10  ;;  %v1070_v7 = vsel %vm6405_vm3, %v6309_v45, %v1066_v43  ;;  %v590_v14 = vsel %vm99_vm0, %v460_v15, 0.0  ;;  %v10297_v10 = vld [vmem:[#allocation20_spill] sm:$0xff]  ;;  %v10298_v43 = vld [vmem:[#allocation25_spill] sm:$0xff] }
 0x1f6   :  { %10296 = vst [vmem:[#allocation18_spill] sm:$0xff] %v6414_v58  ;;  %v1775_v29 = vsel %vm99_vm0, %v6414_v58, 0.0  ;;  %v1476_v53 = vmul.f32 %v1070_v7, %v10297_v10  ;;  %v6433_v44 = vsub.f32 %v10298_v43, %v333_v6  ;;  %v1084_v5 = vmul.f32 0.5, %v1083_v32  ;;  %v4914_v7 = vld [vmem:[%s10071_s0 + $0xc0] sm:$0xff] }
 0x1f7   :  { %v1605_v45 = vadd.f32 %v5494_v2, %v1540_v9  ;;  %v6445_v9 = vld [vmem:[%s10071_s0 + $0x138] sm:$0xff] }
 0x1f8   :  { %10299 = vst [vmem:[#allocation28_spill] sm:$0xff] %v6433_v44  ;;  %v1541_v32 = vmul.f32 %v5487_v34, %v1476_v53 }
 0x1f9   :  { %v6450_v6 = vadd.f32 %v4914_v7, %v1605_v45  ;;  %v6478_v7 = vld [vmem:[%s10071_s0 + $0x148] sm:$0xff] }
 0x1fa   :  { %2103 = vadd.xlane.f32.xlu2 %v2102_v31  ;;  %2109 = vadd.xlane.f32.xlu1 %v2108_v51  ;;  %v2036_v31 = vmul.f32 %v6402_v33, %v6402_v33  ;;  %v1075_v51 = vsub.f32 1.5, %v1074_v17  ;;  %v1606_v10 = vadd.f32 %v5494_v2, %v1541_v32  ;;  %v4915_v32 = vld [vmem:[%s10071_s0 + $0xc8] sm:$0xff] }
 0x1fb   :  { %588 = vadd.xlane.f32.xlu0 %v587_v38  ;;  %v207_v38 = vpop.xlane.xlu1 %206  ;;  %10302 = vst [vmem:[#allocation16_spill] sm:$0xff] %v6450_v6  ;;  %v1781_v45 = vsel %vm99_vm0, %v6450_v6, 0.0 }
 0x1fc   :  { %v2114_v17 = vsel %vm99_vm0, %v2036_v31, 0.0  ;;  %v1076_v15 = vmul.f32 %v6356_v25, %v1075_v51  ;;  %v334_v1 = vmul.f32 %v5180_v54, %v207_v38  ;;  %v1085_v31 = vsub.f32 1.5, %v1084_v5  ;;  %v1735_v5 = vpop.xlane.xlu0 %1734 }
 0x1fd   :  { %v461_v51 = vmul.f32 %v6433_v44, %v6433_v44  ;;  %v1909_v28 = vmul.f32 %v1735_v5, %v5180_v54 }
 0x1fe   :  { %v6459_v38 = vsub.f32 %v5733_v62, %v334_v1  ;;  %v1086_v53 = vmul.f32 %v6382_v30, %v1085_v31  ;;  %v10304_v62 = vld [vmem:[#allocation22_spill] sm:$0xff]  ;;  %v6483_v31 = vadd.f32 %v4915_v32, %v1606_v10 }
 0x200   :  { %10303 = vst [vmem:[#allocation21_spill] sm:$0xff] %v6459_v38  ;;  %v1784_v5 = vsel %vm99_vm0, %v6483_v31, 0.0 }
 0x201   :  { %10305 = vst [vmem:[#allocation26_spill] sm:$0xff] %v6483_v31 }
 0x202   :  { %1776 = vadd.xlane.f32.xlu2 %v1775_v29  ;;  %591 = vadd.xlane.f32.xlu1 %v590_v14  ;;  %v1080_v14 = vsel %vm6438_vm9, %v6356_v25, %v1076_v15  ;;  %v217_v29 = vsel %vm99_vm0, %v6445_v9, 0.0  ;;  %v462_v15 = vmul.f32 %v6459_v38, %v6459_v38 }
 0x203   :  { %2115 = vadd.xlane.f32.xlu0 %v2114_v17  ;;  %v1729_v43 = vpop.xlane.xlu1 %1728  ;;  %v593_v17 = vsel %vm99_vm0, %v461_v51, 0.0  ;;  %v1477_v25 = vmul.f32 %v1080_v14, %v10304_v62  ;;  %v1090_v51 = vsel %vm1089_vm8, %v6382_v30, %v1086_v53  ;;  %v1741_v53 = vpop.xlane.xlu2 %1740 }
 0x204   :  { %v1907_v1 = vmul.f32 %v1729_v43, %v5180_v54  ;;  %v596_v14 = vsel %vm99_vm0, %v462_v15, 0.0  ;;  %v6494_v43 = vsub.f32 %v6020_v22, %v1909_v28  ;;  %v1478_v10 = vmul.f32 %v1090_v51, %v5778_v0  ;;  %v4916_v0 = vld [vmem:[%s10071_s0 + $0xd0] sm:$0xff] }
 0x205   :  { %v1542_v48 = vmul.f32 %v5487_v34, %v1477_v25 }
 0x206   :  { %10306 = vst [vmem:[#allocation24_spill] sm:$0xff] %v6494_v43  ;;  %v2037_v62 = vmul.f32 %v6494_v43, %v6494_v43  ;;  %v1543_v25 = vmul.f32 %v5487_v34, %v1478_v10  ;;  %v6522_v10 = vld [vmem:[%s10071_s0 + $0x140] sm:$0xff] }
 0x207   :  { %v1607_v30 = vadd.f32 %v5494_v2, %v1542_v48 }
 0x208   :  { %v2117_v51 = vsel %vm99_vm0, %v2037_v62, 0.0  ;;  %v1608_v48 = vadd.f32 %v5494_v2, %v1543_v25 }
 0x209   :  { %v6509_v28 = vadd.f32 %v4916_v0, %v1607_v30 }
 0x20a   :  { %218 = vadd.xlane.f32.xlu2 %v217_v29  ;;  %1782 = vadd.xlane.f32.xlu1 %v1781_v45  ;;  %v223_v29 = vsel %vm99_vm0, %v6478_v7, 0.0  ;;  %v6491_v45 = vsub.f32 %v5790_v52, %v1907_v1  ;;  %v1911_v1 = vmul.f32 %v1741_v53, %v5180_v54 }
 0x20b   :  { %594 = vadd.xlane.f32.xlu0 %v593_v17  ;;  %v1738_v15 = vpop.xlane.xlu1 %1737  ;;  %10307 = vst [vmem:[#allocation20_spill] sm:$0xff] %v6509_v28 }
 0x20c   :  { %v2035_v17 = vmul.f32 %v6491_v45, %v6491_v45  ;;  %v1910_v30 = vmul.f32 %v1738_v15, %v5180_v54 }
 0x20e   :  { %v2111_v32 = vsel %vm99_vm0, %v2035_v17, 0.0  ;;  %v4917_v17 = vld [vmem:[%s10071_s0 + $0xd8] sm:$0xff] }
 0x20f   :  { %v6529_v62 = vadd.f32 %v4917_v17, %v1608_v48 }
 0x211   :  { %10309 = vst [vmem:[#allocation22_spill] sm:$0xff] %v6529_v62 }
 0x212   :  { %1785 = vadd.xlane.f32.xlu2 %v1784_v5  ;;  %597 = vadd.xlane.f32.xlu1 %v596_v14  ;;  %v1744_v14 = vpop.xlane.xlu0 %1743  ;;  %v1787_v5 = vsel %vm99_vm0, %v6509_v28, 0.0 }
 0x213   :  { %224 = vadd.xlane.f32.xlu0 %v223_v29  ;;  %v6515_v29 = vsub.f32 %v6168_v13, %v1911_v1  ;;  %v1912_v53 = vmul.f32 %v1744_v14, %v5180_v54  ;;  %v220_v1 = vsel %vm99_vm0, %v6522_v10, 0.0  ;;  %v6535_v0 = vpop.xlane.xlu1 %1746 }
 0x215   :  { %10308 = vst [vmem:[#allocation25_spill] sm:$0xff] %v6515_v29  ;;  %v2039_v25 = vmul.f32 %v6515_v29, %v6515_v29  ;;  %v6541_v15 = vsub.f32 %v6080_v39, %v1912_v53  ;;  %v1750_v39 = vpop.xlane.xlu2 %1749 }
 0x216   :  { %v1914_v58 = vmul.f32 %v1750_v39, %v5180_v54 }
 0x217   :  { %10311 = vst [vmem:[#allocation41_spill] sm:$0xff] %v6541_v15  ;;  %v2123_v48 = vsel %vm99_vm0, %v2039_v25, 0.0  ;;  %v712_v25 = vmul.f32 %v6225_v3, %v5180_v54 }
 0x218   :  { %v6619_v39 = vsub.f32 %v6191_v46, %v1914_v58 }
 0x21a   :  { %2112 = vadd.xlane.f32.xlu2 %v2111_v32  ;;  %2118 = vadd.xlane.f32.xlu1 %v2117_v51  ;;  %v6538_v32 = vsub.f32 %v5887_v41, %v1910_v30  ;;  %v1790_v51 = vsel %vm99_vm0, %v6529_v62, 0.0 }
 0x21b   :  { %1788 = vadd.xlane.f32.xlu0 %v1787_v5  ;;  %v2040_v5 = vmul.f32 %v6541_v15, %v6541_v15  ;;  %v6552_v53 = vpop.xlane.xlu1 %1755 }
 0x21c   :  { %10310 = vst [vmem:[#allocation40_spill] sm:$0xff] %v6538_v32  ;;  %v2038_v14 = vmul.f32 %v6538_v32, %v6538_v32 }
 0x21d   :  { %v2126_v17 = vsel %vm99_vm0, %v2040_v5, 0.0  ;;  %v711_v5 = vmul.f32 %v6245_v24, %v5180_v54  ;;  %v6573_v41 = vpop.xlane.xlu2 %1758 }
 0x21e   :  { %v2120_v30 = vsel %vm99_vm0, %v2038_v14, 0.0  ;;  %v6563_v14 = vld [vmem:[%s10071_s0 + $0x150] sm:$0xff] }
 0x21f   :  { %10312 = vst [vmem:[#allocation42_spill] sm:$0xff] %v6563_v14  ;;  %v775_v13 = vadd.f32 1e-05, %v711_v5 }
 0x221   :  { %vm1097_vm1 = vweird.f32 %v775_v13 }
 0x222   :  { %221 = vadd.xlane.f32.xlu2 %v220_v1  ;;  %1791 = vadd.xlane.f32.xlu1 %v1790_v51  ;;  %v6556_v1 = vpop.xlane.xlu0 %1752 }
 0x223   :  { %2124 = vadd.xlane.f32.xlu0 %v2123_v48  ;;  %v6558_v51 = vpop.xlane.xlu1 %1764  ;;  %v776_v48 = vadd.f32 1e-05, %v712_v25 }
 0x225   :  { %4692 = vrsqrt.f32 %v776_v48  ;;  %v6583_v15 = vpop.xlane.xlu2 %1767  ;;  %vm1107_vm12 = vweird.f32 %v776_v48 }
 0x226   :  { %4694 = vrsqrt.f32 %v775_v13 }
 0x22a   :  { %2121 = vadd.xlane.f32.xlu2 %v2120_v30  ;;  %2127 = vadd.xlane.f32.xlu1 %v2126_v17  ;;  %v226_v30 = vsel %vm99_vm0, %v6563_v14, 0.0  ;;  %v6569_v17 = vpop.xlane.xlu0 %1761 }
 0x22b   :  { %v6571_v3 = vpop.xlane.xlu1 %1773  ;;  %v4693_v25 = vpop.eup %4692 }
 0x22c   :  { %v1102_v22 = vmul.f32 %v4693_v25, %v776_v48  ;;  %v6578_v44 = vpop.eup %4694  ;;  %vm1108_vm13 = vweird.f32 %v4693_v25 }
 0x22d   :  { %v1092_v5 = vmul.f32 %v6578_v44, %v775_v13  ;;  %vm6595_vm14 = vmor %vm1107_vm12, %vm1108_vm13  ;;  %vm1098_vm15 = vweird.f32 %v6578_v44 }
 0x22e   :  { %v1103_v12 = vmul.f32 %v4693_v25, %v1102_v22  ;;  %vm6632_vm7 = vmor %vm1097_vm1, %vm1098_vm15 }
 0x230   :  { %v1104_v29 = vmul.f32 0.5, %v1103_v12 }
 0x232   :  { %227 = vadd.xlane.f32.xlu1 %v226_v30  ;;  %v1105_v22 = vsub.f32 1.5, %v1104_v29 }
 0x233   :  { %v583_v47 = vpop.xlane.xlu1 %582 }
 0x234   :  { %v713_v30 = vmul.f32 %v583_v47, %v5180_v54  ;;  %v1106_v12 = vmul.f32 %v4693_v25, %v1105_v22 }
 0x236   :  { %v6587_v37 = vadd.f32 1e-05, %v713_v30 }
 0x238   :  { %vm1117_vm10 = vweird.f32 %v6587_v37 }
 0x245   :  { %v2098_v27 = vpop.xlane.xlu0 %2097 }
 0x246   :  { %v2286_v52 = vmul.f32 %v2098_v27, %v5180_v54 }
 0x248   :  { %v6576_v24 = vadd.f32 1e-05, %v2286_v52  ;;  %v1093_v52 = vmul.f32 %v6578_v44, %v1092_v5  ;;  %v1110_v5 = vsel %vm6595_vm14, %v4693_v25, %v1106_v12 }
 0x24a   :  { %4696 = vrsqrt.f32 %v6576_v24  ;;  %v1094_v62 = vmul.f32 0.5, %v1093_v52  ;;  %vm2429_vm4 = vweird.f32 %v6576_v24 }
 0x24b   :  { %4698 = vrsqrt.f32 %v6587_v37 }
 0x24c   :  { %v1095_v52 = vsub.f32 1.5, %v1094_v62 }
 0x24d   :  { %v6585_v31 = vpop.xlane.xlu0 %1770 }
 0x24e   :  { %v1096_v62 = vmul.f32 %v6578_v44, %v1095_v52 }
 0x250   :  { %v6589_v27 = vpop.eup %4696  ;;  %v1100_v13 = vsel %vm6632_vm7, %v6578_v44, %v1096_v62 }
 0x251   :  { %v2424_v47 = vmul.f32 %v6589_v27, %v6576_v24  ;;  %v6610_v6 = vpop.eup %4698  ;;  %vm2430_vm2 = vweird.f32 %v6589_v27  ;;  %v1479_v44 = vmul.f32 %v1100_v13, %v5802_v35  ;;  %v6667_v35 = vld [vmem:[%s10071_s0 + $0x158] sm:$0xff]  ;;  %v4611_v24 = vld [vmem:[%s10073_s2] sm:$0xff] }
 0x252   :  { %v1112_v14 = vmul.f32 %v6610_v6, %v6587_v37  ;;  %vm6658_vm3 = vmor %vm2429_vm4, %vm2430_vm2  ;;  %10323 = vst [vmem:[#allocation45_spill] sm:$0xff] %v6667_v35  ;;  %vm1118_vm11 = vweird.f32 %v6610_v6 }
 0x253   :  { %v2425_v48 = vmul.f32 %v6589_v27, %v2424_v47  ;;  %v10316_v47 = vld [vmem:[#allocation29_spill] sm:$0xff]  ;;  %vm6721_vm8 = vmor %vm1117_vm10, %vm1118_vm11 }
 0x254   :  { %v1480_v11 = vmul.f32 %v1110_v5, %v10316_v47  ;;  %10317 = vst [vmem:[#allocation29_spill] sm:$0xff] %v6619_v39  ;;  %v1113_v46 = vmul.f32 %v6610_v6, %v1112_v14 }
 0x255   :  { %v2095_v30 = vpop.xlane.xlu2 %2094  ;;  %v213_v32 = vpop.xlane.xlu0 %212 }
 0x256   :  { %v2285_v38 = vmul.f32 %v2095_v30, %v5180_v54  ;;  %v336_v29 = vmul.f32 %v5180_v54, %v213_v32  ;;  %v2426_v30 = vmul.f32 0.5, %v2425_v48 }
 0x258   :  { %v6605_v43 = vadd.f32 1e-05, %v2285_v38  ;;  %v6608_v22 = vsub.f32 %v6268_v16, %v336_v29  ;;  %v4612_v38 = vld [vmem:[%s10073_s2 + $0x8] sm:$0xff]  ;;  %v2427_v58 = vsub.f32 1.5, %v2426_v30 }
 0x259   :  { %3463 = vmatpush.bf16.msra.mxu0 %v4612_v38  ;;  %4621 = vmatpush.bf16.msra.mxu3 %v4612_v38 }
 0x25a   :  { %10315 = vst [vmem:[#allocation43_spill] sm:$0xff] %v6608_v22  ;;  %4700 = vrsqrt.f32 %v6605_v43  ;;  %v464_v32 = vmul.f32 %v6608_v22, %v6608_v22  ;;  %v2428_v14 = vmul.f32 %v6589_v27, %v2427_v58  ;;  %v1544_v58 = vmul.f32 %v5487_v34, %v1479_v44  ;;  %v4919_v44 = vld [vmem:[%s10072_s1] sm:$0xf] }
 0x25b   :  { %vm2419_vm6 = vweird.f32 %v6605_v43 }
 0x25c   :  { %v602_v16 = vsel %vm99_vm0, %v464_v32, 0.0  ;;  %v1545_v32 = vmul.f32 %v5487_v34, %v1480_v11 }
 0x25d   :  { %v210_v25 = vpop.xlane.xlu2 %209  ;;  %v2101_v12 = vpop.xlane.xlu1 %2100  ;;  %603 = vadd.xlane.f32.xlu0 %v602_v16  ;;  %3464 = vmatpush.bf16.msra.mxu0 %v4611_v24 }
 0x25e   :  { %v335_v29 = vmul.f32 %v5180_v54, %v210_v25  ;;  %v2287_v48 = vmul.f32 %v2101_v12, %v5180_v54  ;;  %v6629_v5 = vpop.xlane.xlu0 %1779  ;;  %v2042_v12 = vmul.f32 %v6619_v39, %v6619_v39  ;;  %v1610_v38 = vadd.f32 %v5494_v2, %v1545_v32  ;;  %4622 = vmatpush.bf16.msra.mxu3 %v4611_v24 }
 0x25f   :  { %v1609_v24 = vadd.f32 %v5494_v2, %v1544_v58 }
 0x260   :  { %v4701_v47 = vpop.eup %4700  ;;  %v6638_v16 = vsub.f32 %v6292_v60, %v335_v29  ;;  %v6640_v25 = vadd.f32 1e-05, %v2287_v48  ;;  %v1114_v29 = vmul.f32 0.5, %v1113_v46  ;;  %v2132_v52 = vsel %vm99_vm0, %v2042_v12, 0.0 }
 0x261   :  { %v2414_v11 = vmul.f32 %v4701_v47, %v6605_v43  ;;  %v2432_v12 = vsel %vm6658_vm3, %v6589_v27, %v2428_v14  ;;  %vm2420_vm5 = vweird.f32 %v4701_v47 }
 0x262   :  { %10320 = vst [vmem:[#allocation44_spill] sm:$0xff] %v6638_v16  ;;  %4702 = vrsqrt.f32 %v6640_v25  ;;  %v463_v30 = vmul.f32 %v6638_v16, %v6638_v16  ;;  %vm2421_vm9 = vmor %vm2419_vm6, %vm2420_vm5  ;;  %vm2439_vm13 = vweird.f32 %v6640_v25 }
 0x263   :  { %v2415_v60 = vmul.f32 %v4701_v47, %v2414_v11 }
 0x264   :  { %v599_v48 = vsel %vm99_vm0, %v463_v30, 0.0 }
 0x265   :  { %v2416_v62 = vmul.f32 0.5, %v2415_v60  ;;  %v586_v39 = vpop.xlane.xlu2 %585  ;;  %v216_v22 = vpop.xlane.xlu1 %215  ;;  %600 = vadd.xlane.f32.xlu2 %v599_v48  ;;  %2133 = vadd.xlane.f32.xlu0 %v2132_v52  ;;  %v1115_v60 = vsub.f32 1.5, %v1114_v29 }
 0x266   :  { %v714_v32 = vmul.f32 %v586_v39, %v5180_v54  ;;  %v337_v46 = vmul.f32 %v5180_v54, %v216_v22  ;;  %v2107_v11 = vpop.xlane.xlu0 %2106  ;;  %v4918_v22 = vld [vmem:[%s10071_s0 + $0xe8] sm:$0xff] }
 0x267   :  { %v2417_v13 = vsub.f32 1.5, %v2416_v62  ;;  %v6678_v39 = vadd.f32 %v4918_v22, %v1610_v38  ;;  %v2289_v14 = vmul.f32 %v2107_v11, %v5180_v54  ;;  %v229_v38 = vsel %vm99_vm0, %v6667_v35, 0.0 }
 0x268   :  { %v6680_v30 = vpop.eup %4702  ;;  %v6682_v48 = vadd.f32 1e-05, %v714_v32  ;;  %v6685_v52 = vsub.f32 %v6340_v19, %v337_v46  ;;  %v3054_v19 = vmul.f32 %v2432_v12, %v6236_v40  ;;  %v6699_v62 = vperm.slane %v4919_v44, 2 }
 0x269   :  { %10324 = vst [vmem:[#allocation46_spill] sm:$0xff] %v6678_v39  ;;  %v2418_v27 = vmul.f32 %v4701_v47, %v2417_v13  ;;  %v2434_v32 = vmul.f32 %v6680_v30, %v6640_v25  ;;  %v1913_v46 = vmul.f32 %v6535_v0, %v5180_v54  ;;  %v1116_v12 = vmul.f32 %v6610_v6, %v1115_v60 }
 0x26a   :  { %10325 = vst [vmem:[#allocation47_spill] sm:$0xff] %v6685_v52  ;;  %4704 = vrsqrt.f32 %v6682_v48  ;;  %v465_v29 = vmul.f32 %v6685_v52, %v6685_v52  ;;  %v6711_v13 = vadd.f32 1e-05, %v2289_v14  ;;  %vm2440_vm12 = vweird.f32 %v6680_v30 }
 0x26b   :  { %v2422_v43 = vsel %vm2421_vm9, %v4701_v47, %v2418_v27  ;;  %v1796_v47 = vsel %vm99_vm0, %v6678_v39, 0.0  ;;  %v6715_v27 = vperm.slane %v4919_v44, 3  ;;  %v2435_v37 = vmul.f32 %v6680_v30, %v2434_v32  ;;  %v6737_v44 = vld [vmem:[%s10071_s0 + $0x168] sm:$0xff]  ;;  %v6754_v32 = vld [vmem:[%s10071_s0 + $0x160] sm:$0xff]  ;;  %vm6819_vm14 = vmor %vm2439_vm13, %vm2440_vm12 }
 0x26c   :  { %v605_v11 = vsel %vm99_vm0, %v465_v29, 0.0  ;;  %v3053_v40 = vmul.f32 %v2422_v43, %v6273_v21  ;;  %v1915_v29 = vmul.f32 %v6556_v1, %v5180_v54  ;;  %10328 = vst [vmem:[#allocation48_spill] sm:$0xff] %v6737_v44  ;;  %4706 = vrsqrt.f32 %v6711_v13 }
 0x26d   :  { %230 = vadd.xlane.f32.xlu2 %v229_v38  ;;  %v2104_v22 = vpop.xlane.xlu2 %2103  ;;  %v2110_v52 = vpop.xlane.xlu1 %2109  ;;  %606 = vadd.xlane.f32.xlu1 %v605_v11  ;;  %v3119_v38 = vmul.f32 %v6699_v62, %v3054_v19  ;;  %v4920_v19 = vld [vmem:[%s10071_s0 + $0xe0] sm:$0xff]  ;;  %10330 = vst [vmem:[#allocation50_spill] sm:$0xff] %v6754_v32  ;;  %v2436_v21 = vmul.f32 0.5, %v2435_v37  ;;  %vm1127_vm2 = vweird.f32 %v6682_v48  ;;  %vm2459_vm11 = vweird.f32 %v6711_v13 }
 0x26e   :  { %v2288_v0 = vmul.f32 %v2104_v22, %v5180_v54  ;;  %v2290_v60 = vmul.f32 %v2110_v52, %v5180_v54  ;;  %1797 = vadd.xlane.f32.xlu0 %v1796_v47  ;;  %v6727_v58 = vpop.xlane.xlu0 %588  ;;  %v3118_v14 = vmul.f32 %v6699_v62, %v3053_v40  ;;  %v6749_v1 = vadd.f32 %v4920_v19, %v1609_v24 }
 0x26f   :  { %v1120_v22 = vsel %vm6721_vm8, %v6610_v6, %v1116_v12  ;;  %v3184_v24 = vadd.f32 %v6715_v27, %v3119_v38  ;;  %v232_v6 = vsel %vm99_vm0, %v6754_v32, 0.0 }
 0x270   :  { %v6739_v43 = vpop.eup %4704  ;;  %v6741_v52 = vadd.f32 1e-05, %v2288_v0  ;;  %v6743_v11 = vadd.f32 1e-05, %v2290_v60  ;;  %v3183_v40 = vadd.f32 %v6715_v27, %v3118_v14  ;;  %10329 = vst [vmem:[#allocation49_spill] sm:$0xff] %v6749_v1  ;;  %v6763_v0 = vsub.f32 %v5954_v56, %v1913_v46 }
 0x271   :  { %v1122_v47 = vmul.f32 %v6739_v43, %v6682_v48  ;;  %v235_v60 = vsel %vm99_vm0, %v6737_v44, 0.0  ;;  %v6770_v14 = vsub.f32 %v6133_v4, %v1915_v29  ;;  %v1793_v19 = vsel %vm99_vm0, %v6749_v1, 0.0 }
 0x272   :  { %10331 = vst [vmem:[#allocation51_spill] sm:$0xff] %v6763_v0  ;;  %4708 = vrsqrt.f32 %v6741_v52  ;;  %v3247_v46 = vpack.c.bf16 %v3184_v24, %v3183_v40  ;;  %v1481_v38 = vmul.f32 %v1120_v22, %v6154_v36  ;;  %v6782_v37 = vpop.eup %4706  ;;  %v2437_v4 = vsub.f32 1.5, %v2436_v21 }
 0x273   :  { %10332 = vst [vmem:[#allocation52_spill] sm:$0xff] %v6770_v14  ;;  %4710 = vrsqrt.f32 %v6743_v11  ;;  %v1123_v12 = vmul.f32 %v6739_v43, %v1122_v47  ;;  %v2041_v36 = vmul.f32 %v6763_v0, %v6763_v0  ;;  %v2043_v22 = vmul.f32 %v6770_v14, %v6770_v14 }
 0x274   :  { %4547 = vmatmul.msk.bf16.vlgmr.msra.gmra.mxu0 %vm99_vm0, %v3247_v46  ;;  %v2454_v14 = vmul.f32 %v6782_v37, %v6711_v13  ;;  %vm1128_vm1 = vweird.f32 %v6739_v43  ;;  %vm2449_vm7 = vweird.f32 %v6741_v52  ;;  %vm2460_vm6 = vweird.f32 %v6782_v37 }
 0x275   :  { %1794 = vadd.xlane.f32.xlu2 %v1793_v19  ;;  %v6779_v56 = vpop.xlane.xlu2 %1776  ;;  %v592_v16 = vpop.xlane.xlu1 %591  ;;  %236 = vadd.xlane.f32.xlu1 %v235_v60  ;;  %v1124_v24 = vmul.f32 0.5, %v1123_v12  ;;  %v1546_v60 = vmul.f32 %v5487_v34, %v1481_v38  ;;  %v2438_v12 = vmul.f32 %v6680_v30, %v2437_v4  ;;  %v2129_v39 = vsel %vm99_vm0, %v2041_v36, 0.0  ;;  %vm6858_vm3 = vmor %vm1127_vm2, %vm1128_vm1 }
 0x276   :  { %233 = vadd.xlane.f32.xlu0 %v232_v6  ;;  %v2116_v29 = vpop.xlane.xlu0 %2115  ;;  %v716_v46 = vmul.f32 %v592_v16, %v5180_v54  ;;  %v2135_v44 = vsel %vm99_vm0, %v2043_v22, 0.0  ;;  %v1916_v16 = vmul.f32 %v6552_v53, %v5180_v54  ;;  %vm2469_vm9 = vweird.f32 %v6743_v11  ;;  %vm6925_vm8 = vmor %vm2459_vm11, %vm2460_vm6 }
 0x277   :  { %v2292_v47 = vmul.f32 %v2116_v29, %v5180_v54  ;;  %v1125_v0 = vsub.f32 1.5, %v1124_v24  ;;  %v1611_v32 = vadd.f32 %v5494_v2, %v1546_v60  ;;  %v1918_v24 = vmul.f32 %v6569_v17, %v5180_v54 }
 0x278   :  { %v6785_v40 = vpop.eup %4708  ;;  %v6823_v53 = vadd.f32 1e-05, %v716_v46  ;;  %v2455_v17 = vmul.f32 %v6782_v37, %v2454_v14 }
 0x279   :  { %v6792_v19 = vpop.eup %4710  ;;  %v2444_v6 = vmul.f32 %v6785_v40, %v6741_v52  ;;  %v6799_v29 = vadd.f32 1e-05, %v2292_v47  ;;  %vm2450_vm15 = vweird.f32 %v6785_v40  ;;  %v1126_v60 = vmul.f32 %v6739_v43, %v1125_v0 }
 0x27a   :  { %v2464_v21 = vmul.f32 %v6792_v19, %v6743_v11  ;;  %vm6850_vm4 = vmor %vm2449_vm7, %vm2450_vm15  ;;  %v1919_v0 = vmul.f32 %v6558_v51, %v5180_v54  ;;  %vm2470_vm5 = vweird.f32 %v6792_v19  ;;  %vm1147_vm13 = vweird.f32 %v6823_v53 }
 0x27b   :  { %v2445_v38 = vmul.f32 %v6785_v40, %v2444_v6  ;;  %4712 = vrsqrt.f32 %v6799_v29  ;;  %vm6910_vm10 = vmor %vm2469_vm9, %vm2470_vm5  ;;  %vm2489_vm15 = vweird.f32 %v6799_v29 }
 0x27c   :  { %v2465_v47 = vmul.f32 %v6792_v19, %v2464_v21  ;;  %4714 = vrsqrt.f32 %v6823_v53 }
 0x27d   :  { %v2446_v4 = vmul.f32 0.5, %v2445_v38  ;;  %2130 = vadd.xlane.f32.xlu2 %v2129_v39  ;;  %v219_v1 = vpop.xlane.xlu2 %218  ;;  %v6813_v35 = vpop.xlane.xlu1 %1782  ;;  %2136 = vadd.xlane.f32.xlu1 %v2135_v44  ;;  %v2442_v44 = vsel %vm6819_vm14, %v6680_v30, %v2438_v12  ;;  %v6845_v30 = vsub.f32 %v6032_v8, %v1916_v16  ;;  %v2456_v38 = vmul.f32 0.5, %v2455_v17 }
 0x27e   :  { %v338_v25 = vmul.f32 %v5180_v54, %v219_v1  ;;  %v6827_v39 = vpop.xlane.xlu0 %594  ;;  %v4921_v1 = vld [vmem:[%s10071_s0 + $0xf0] sm:$0xff]  ;;  %v2466_v46 = vmul.f32 0.5, %v2465_v47  ;;  %v6868_v16 = vsub.f32 %v6175_v49, %v1918_v24 }
 0x27f   :  { %v2447_v22 = vsub.f32 1.5, %v2446_v4  ;;  %v6842_v21 = vadd.f32 %v4921_v1, %v1611_v32  ;;  %v3055_v32 = vmul.f32 %v2442_v44, %v6298_v59  ;;  %v1130_v4 = vsel %vm6858_vm3, %v6739_v43, %v1126_v60 }
 0x280   :  { %v6837_v6 = vsub.f32 %v6445_v9, %v338_v25  ;;  %v2467_v47 = vsub.f32 1.5, %v2466_v46  ;;  %v2457_v43 = vsub.f32 1.5, %v2456_v38 }
 0x281   :  { %10335 = vst [vmem:[#allocation53_spill] sm:$0xff] %v6842_v21  ;;  %v2448_v14 = vmul.f32 %v6785_v40, %v2447_v22  ;;  %v6865_v52 = vpop.eup %4712  ;;  %v1799_v59 = vsel %vm99_vm0, %v6842_v21, 0.0  ;;  %v3120_v22 = vmul.f32 %v6699_v62, %v3055_v32 }
 0x282   :  { %v466_v9 = vmul.f32 %v6837_v6, %v6837_v6  ;;  %v2484_v60 = vmul.f32 %v6865_v52, %v6799_v29  ;;  %v6886_v46 = vpop.eup %4714  ;;  %v2468_v32 = vmul.f32 %v6792_v19, %v2467_v47  ;;  %vm2490_vm12 = vweird.f32 %v6865_v52 }
 0x283   :  { %v2452_v48 = vsel %vm6850_vm4, %v6785_v40, %v2448_v14  ;;  %v2044_v40 = vmul.f32 %v6845_v30, %v6845_v30  ;;  %v1482_v14 = vmul.f32 %v1130_v4, %v6323_v57  ;;  %v3185_v51 = vadd.f32 %v6715_v27, %v3120_v22  ;;  %vm7026_vm1 = vmor %vm2489_vm15, %vm2490_vm12 }
 0x284   :  { %v608_v36 = vsel %vm99_vm0, %v466_v9, 0.0  ;;  %v3056_v17 = vmul.f32 %v2452_v48, %v6361_v55  ;;  %v2046_v55 = vmul.f32 %v6868_v16, %v6868_v16  ;;  %v2458_v4 = vmul.f32 %v6782_v37, %v2457_v43 }
 0x285   :  { %v6876_v25 = vpop.xlane.xlu2 %1785  ;;  %v598_v44 = vpop.xlane.xlu1 %597  ;;  %1800 = vadd.xlane.f32.xlu1 %v1799_v59  ;;  %609 = vadd.xlane.f32.xlu2 %v608_v36  ;;  %v2138_v12 = vsel %vm99_vm0, %v2044_v40, 0.0  ;;  %v1547_v38 = vmul.f32 %v5487_v34, %v1482_v14  ;;  %v1142_v59 = vmul.f32 %v6886_v46, %v6823_v53  ;;  %v2485_v47 = vmul.f32 %v6865_v52, %v2484_v60 }
 0x286   :  { %v225_v24 = vpop.xlane.xlu0 %224  ;;  %v3121_v9 = vmul.f32 %v6699_v62, %v3056_v17  ;;  %v1917_v36 = vmul.f32 %v6573_v41, %v5180_v54  ;;  %v2144_v17 = vsel %vm99_vm0, %v2046_v55, 0.0  ;;  %v2472_v11 = vsel %vm6910_vm10, %v6792_v19, %v2468_v32 }
 0x287   :  { %v340_v1 = vmul.f32 %v5180_v54, %v225_v24  ;;  %v715_v22 = vmul.f32 %v6727_v58, %v5180_v54  ;;  %v1612_v60 = vadd.f32 %v5494_v2, %v1547_v38  ;;  %v1921_v14 = vmul.f32 %v6585_v31, %v5180_v54  ;;  %v4922_v31 = vld [vmem:[%s10071_s0 + $0xf8] sm:$0xff] }
 0x288   :  { %v3186_v48 = vadd.f32 %v6715_v27, %v3121_v9  ;;  %v2462_v9 = vsel %vm6925_vm8, %v6782_v37, %v2458_v4  ;;  %v1143_v55 = vmul.f32 %v6886_v46, %v1142_v59  ;;  %v2486_v32 = vmul.f32 0.5, %v2485_v47 }
 0x289   :  { %v6899_v57 = vsub.f32 %v6478_v7, %v340_v1  ;;  %v718_v7 = vmul.f32 %v598_v44, %v5180_v54  ;;  %v6950_v40 = vsub.f32 %v6096_v23, %v1919_v0  ;;  %v6957_v37 = vadd.f32 %v4922_v31, %v1612_v60 }
 0x28a   :  { %v3248_v24 = vpack.c.bf16 %v3186_v48, %v3185_v51  ;;  %v3058_v48 = vmul.f32 %v2472_v11, %v6364_v42  ;;  %v6960_v4 = vsub.f32 %v6202_v20, %v1917_v36  ;;  %v3057_v42 = vmul.f32 %v2462_v9, %v6345_v63 }
 0x28b   :  { %v468_v58 = vmul.f32 %v6899_v57, %v6899_v57  ;;  %10344 = vst [vmem:[#allocation54_spill] sm:$0xff] %v6957_v37  ;;  %v6966_v0 = vsub.f32 %v6254_v50, %v1921_v14  ;;  %v1924_v47 = vmul.f32 %v6629_v5, %v5180_v54  ;;  %v1802_v11 = vsel %vm99_vm0, %v6957_v37, 0.0 }
 0x28c   :  { %4548 = vmatmul.msk.bf16.gmra.mxu0 %vm99_vm0, %v3248_v24  ;;  %v6952_v24 = vadd.f32 1e-05, %v715_v22  ;;  %v3123_v36 = vmul.f32 %v6699_v62, %v3058_v48  ;;  %v1922_v5 = vmul.f32 %v6571_v3, %v5180_v54  ;;  %v3122_v60 = vmul.f32 %v6699_v62, %v3057_v42  ;;  %v7004_v48 = vld [vmem:[%s10071_s0 + $0x170] sm:$0xff] }
 0x28d   :  { %v2113_v43 = vpop.xlane.xlu2 %2112  ;;  %v2119_v41 = vpop.xlane.xlu1 %2118  ;;  %2145 = vadd.xlane.f32.xlu1 %v2144_v17  ;;  %2139 = vadd.xlane.f32.xlu2 %v2138_v12  ;;  %v6942_v12 = vadd.f32 1e-05, %v718_v7  ;;  %v614_v59 = vsel %vm99_vm0, %v468_v58, 0.0  ;;  %v1144_v7 = vmul.f32 0.5, %v1143_v55  ;;  %v2487_v17 = vsub.f32 1.5, %v2486_v32 }
 0x28e   :  { %v2291_v13 = vmul.f32 %v2113_v43, %v5180_v54  ;;  %v2293_v19 = vmul.f32 %v2119_v41, %v5180_v54  ;;  %v6932_v1 = vpop.xlane.xlu0 %1788  ;;  %v6984_v44 = vmul.f32 %v6950_v40, %v6950_v40  ;;  %v2049_v58 = vmul.f32 %v6966_v0, %v6966_v0 }
 0x28f   :  { %v2045_v3 = vmul.f32 %v6960_v4, %v6960_v4  ;;  %v2488_v9 = vmul.f32 %v6865_v52, %v2487_v17  ;;  %v3188_v32 = vadd.f32 %v6715_v27, %v3123_v36  ;;  %vm1148_vm14 = vweird.f32 %v6886_v46 }
 0x290   :  { %v6944_v38 = vadd.f32 1e-05, %v2291_v13  ;;  %v6946_v51 = vadd.f32 1e-05, %v2293_v19  ;;  %v6987_v13 = vsub.f32 %v6307_v61, %v1924_v47  ;;  %v1145_v19 = vsub.f32 1.5, %v1144_v7  ;;  %vm7036_vm7 = vmor %vm1147_vm13, %vm1148_vm14 }
 0x291   :  { %v3187_v7 = vadd.f32 %v6715_v27, %v3122_v60  ;;  %vm1167_vm6 = vweird.f32 %v6942_v12 }
 0x292   :  { %4716 = vrsqrt.f32 %v6944_v38  ;;  %vm2479_vm4 = vweird.f32 %v6944_v38  ;;  %vm2499_vm10 = vweird.f32 %v6946_v51 }
 0x293   :  { %4718 = vrsqrt.f32 %v6946_v51  ;;  %v3249_v61 = vpack.c.bf16 %v3188_v32, %v3187_v7 }
 0x294   :  { %4720 = vrsqrt.f32 %v6942_v12 }
 0x295   :  { %4722 = vrsqrt.f32 %v6952_v24  ;;  %v222_v63 = vpop.xlane.xlu2 %221  ;;  %v6976_v22 = vpop.xlane.xlu1 %1791  ;;  %615 = vadd.xlane.f32.xlu1 %v614_v59  ;;  %1803 = vadd.xlane.f32.xlu2 %v1802_v11  ;;  %v1146_v11 = vmul.f32 %v6886_v46, %v1145_v19  ;;  %v2492_v19 = vsel %vm7026_vm1, %v6865_v52, %v2488_v9  ;;  %vm1137_vm1 = vweird.f32 %v6952_v24 }
 0x296   :  { %v339_v43 = vmul.f32 %v5180_v54, %v222_v63  ;;  %v2125_v41 = vpop.xlane.xlu0 %2124 }
 0x297   :  { %v2295_v42 = vmul.f32 %v2125_v41, %v5180_v54  ;;  %v2153_v41 = vsel %vm99_vm0, %v2049_v58, 0.0 }
 0x298   :  { %v6993_v14 = vpop.eup %4716  ;;  %v6998_v55 = vsub.f32 %v6522_v10, %v339_v43  ;;  %v238_v43 = vsel %vm99_vm0, %v7004_v48, 0.0 }
 0x299   :  { %v7006_v31 = vpop.eup %4718  ;;  %v2474_v59 = vmul.f32 %v6993_v14, %v6944_v38  ;;  %v7049_v49 = vadd.f32 1e-05, %v2295_v42  ;;  %vm2480_vm2 = vweird.f32 %v6993_v14  ;;  %v2141_v38 = vsel %vm99_vm0, %v2045_v3, 0.0 }
 0x29a   :  { %v7013_v10 = vpop.eup %4720  ;;  %v2494_v47 = vmul.f32 %v7006_v31, %v6946_v51  ;;  %v467_v17 = vmul.f32 %v6998_v55, %v6998_v55  ;;  %vm2481_vm3 = vmor %vm2479_vm4, %vm2480_vm2  ;;  %v2147_v3 = vsel %vm99_vm0, %v6984_v44, 0.0  ;;  %v7105_v44 = vld [vmem:[%s10071_s0 + $0x178] sm:$0xff]  ;;  %vm2500_vm5 = vweird.f32 %v7006_v31 }
 0x29b   :  { %v7021_v36 = vpop.eup %4722  ;;  %v2475_v29 = vmul.f32 %v6993_v14, %v2474_v59  ;;  %v2052_v59 = vmul.f32 %v6987_v13, %v6987_v13  ;;  %v1162_v23 = vmul.f32 %v7013_v10, %v6942_v12  ;;  %4724 = vrsqrt.f32 %v7049_v49  ;;  %vm7129_vm11 = vmor %vm2499_vm10, %vm2500_vm5 }
 0x29c   :  { %v611_v50 = vsel %vm99_vm0, %v467_v17, 0.0  ;;  %v2495_v53 = vmul.f32 %v7006_v31, %v2494_v47  ;;  %v1132_v52 = vmul.f32 %v7021_v36, %v6952_v24  ;;  %4549 = vmatmul.msk.bf16.gmra.mxu0 %vm99_vm0, %v3249_v61  ;;  %v1150_v47 = vsel %vm7036_vm7, %v6886_v46, %v1146_v11 }
 0x29d   :  { %v2476_v58 = vmul.f32 0.5, %v2475_v29  ;;  %v2122_v20 = vpop.xlane.xlu2 %2121  ;;  %v2128_v8 = vpop.xlane.xlu1 %2127  ;;  %612 = vadd.xlane.f32.xlu0 %v611_v50  ;;  %2154 = vadd.xlane.f32.xlu1 %v2153_v41  ;;  %v1927_v50 = vmul.f32 %v6932_v1, %v5180_v54  ;;  %v7072_v46 = vsub.f32 %v6143_v18, %v1922_v5  ;;  %v1920_v1 = vmul.f32 %v6583_v15, %v5180_v54 }
 0x29e   :  { %239 = vadd.xlane.f32.xlu2 %v238_v43  ;;  %v2294_v9 = vmul.f32 %v2122_v20, %v5180_v54  ;;  %v2296_v32 = vmul.f32 %v2128_v8, %v5180_v54  ;;  %v3060_v20 = vmul.f32 %v2492_v19, %v6402_v33  ;;  %v1163_v8 = vmul.f32 %v7013_v10, %v1162_v23 }
 0x29f   :  { %v2477_v42 = vsub.f32 1.5, %v2476_v58  ;;  %v2496_v63 = vmul.f32 0.5, %v2495_v53  ;;  %v1133_v33 = vmul.f32 %v7021_v36, %v1132_v52  ;;  %v2162_v11 = vsel %vm99_vm0, %v2052_v59, 0.0 }
 0x2a0   :  { %v7063_v7 = vadd.f32 1e-05, %v2294_v9  ;;  %v7065_v61 = vadd.f32 1e-05, %v2296_v32  ;;  %v1484_v29 = vmul.f32 %v1150_v47, %v6390_v26  ;;  %v7084_v5 = vsub.f32 %v6509_v28, %v1927_v50  ;;  %v10349_v26 = vld [vmem:[#allocation39_spill] sm:$0xff] }
 0x2a1   :  { %v2478_v17 = vmul.f32 %v6993_v14, %v2477_v42  ;;  %v3125_v43 = vmul.f32 %v6699_v62, %v3060_v20  ;;  %v1164_v41 = vmul.f32 0.5, %v1163_v8  ;;  %v2497_v60 = vsub.f32 1.5, %v2496_v63  ;;  %v7091_v19 = vpop.eup %4724 }
 0x2a2   :  { %4726 = vrsqrt.f32 %v7063_v7  ;;  %v7094_v59 = vsub.f32 %v10349_v26, %v1920_v1  ;;  %v7096_v58 = vmul.f32 0.5, %v1133_v33  ;;  %v2050_v53 = vmul.f32 %v7072_v46, %v7072_v46 }
 0x2a3   :  { %v2482_v23 = vsel %vm2481_vm3, %v6993_v14, %v2478_v17  ;;  %4728 = vrsqrt.f32 %v7065_v61  ;;  %v3190_v32 = vadd.f32 %v6715_v27, %v3125_v43  ;;  %v2055_v47 = vmul.f32 %v7084_v5, %v7084_v5 }
 0x2a4   :  { %v3059_v15 = vmul.f32 %v2482_v23, %v6491_v45  ;;  %v1925_v45 = vmul.f32 %v6813_v35, %v5180_v54  ;;  %v1549_v42 = vmul.f32 %v5487_v34, %v1484_v29  ;;  %v1165_v35 = vsub.f32 1.5, %v1164_v41  ;;  %v10350_v23 = vld [vmem:[#allocation16_spill] sm:$0xff] }
 0x2a5   :  { %2142 = vadd.xlane.f32.xlu0 %v2141_v38  ;;  %2163 = vadd.xlane.f32.xlu1 %v2162_v11  ;;  %v2498_v20 = vmul.f32 %v7006_v31, %v2497_v60  ;;  %v241_v1 = vsel %vm99_vm0, %v7105_v44, 0.0  ;;  %vm1168_vm9 = vweird.f32 %v7013_v10  ;;  %v2514_v38 = vmul.f32 %v7091_v19, %v7049_v49 }
 0x2a6   :  { %2148 = vadd.xlane.f32.xlu2 %v2147_v3  ;;  %v3124_v14 = vmul.f32 %v6699_v62, %v3059_v15  ;;  %v7127_v11 = vsub.f32 %v10350_v23, %v1925_v45  ;;  %v2156_v15 = vsel %vm99_vm0, %v2050_v53, 0.0  ;;  %v2171_v43 = vsel %vm99_vm0, %v2055_v47, 0.0  ;;  %vm7147_vm8 = vmor %vm1167_vm6, %vm1168_vm9 }
 0x2a7   :  { %v1614_v41 = vadd.f32 %v5494_v2, %v1549_v42  ;;  %v1166_v60 = vmul.f32 %v7013_v10, %v1165_v35  ;;  %v2502_v51 = vsel %vm7129_vm11, %v7006_v31, %v2498_v20  ;;  %v1923_v45 = vmul.f32 %v6779_v56, %v5180_v54  ;;  %v10355_v56 = vld [vmem:[#allocation24_spill] sm:$0xff]  ;;  %v4923_v20 = vld [vmem:[%s10071_s0 + $0x108] sm:$0xff] }
 0x2a8   :  { %v4727_v52 = vpop.eup %4726  ;;  %v3189_v9 = vadd.f32 %v6715_v27, %v3124_v14  ;;  %v2048_v31 = vmul.f32 %v7094_v59, %v7094_v59  ;;  %v3061_v42 = vmul.f32 %v2502_v51, %v10355_v56  ;;  %v1928_v12 = vmul.f32 %v6976_v22, %v5180_v54 }
 0x2a9   :  { %v7112_v50 = vpop.eup %4728  ;;  %v2504_v8 = vmul.f32 %v4727_v52, %v7063_v7  ;;  %vm2510_vm12 = vweird.f32 %v4727_v52  ;;  %v2053_v35 = vmul.f32 %v7127_v11, %v7127_v11  ;;  %vm2509_vm13 = vweird.f32 %v7063_v7 }
 0x2aa   :  { %v2524_v17 = vmul.f32 %v7112_v50, %v7065_v61  ;;  %v3250_v63 = vpack.c.bf16 %v3190_v32, %v3189_v9  ;;  %v1135_v9 = vsub.f32 1.5, %v7096_v58  ;;  %v2515_v32 = vmul.f32 %v7091_v19, %v2514_v38  ;;  %vm2511_vm14 = vmor %vm2509_vm13, %vm2510_vm12 }
 0x2ab   :  { %v2505_v33 = vmul.f32 %v4727_v52, %v2504_v8  ;;  %v7164_v8 = vadd.f32 %v4923_v20, %v1614_v41  ;;  %v1170_v58 = vsel %vm7147_vm8, %v7013_v10, %v1166_v60  ;;  %v2150_v22 = vsel %vm99_vm0, %v2048_v31, 0.0  ;;  %v10359_v41 = vld [vmem:[#allocation40_spill] sm:$0xff]  ;;  %v228_v60 = vpop.xlane.xlu1 %227 }
 0x2ac   :  { %v2525_v14 = vmul.f32 %v7112_v50, %v2524_v17  ;;  %4550 = vmatmul.msk.bf16.gmra.mxu0 %vm99_vm0, %v3250_v63  ;;  %vm1138_vm15 = vweird.f32 %v7021_v36  ;;  %v3126_v7 = vmul.f32 %v6699_v62, %v3061_v42  ;;  %v341_v56 = vmul.f32 %v5180_v54, %v228_v60  ;;  %v7195_v42 = vld [vmem:[%s10071_s0 + $0x180] sm:$0xff] }
 0x2ad   :  { %v2506_v3 = vmul.f32 0.5, %v2505_v33  ;;  %242 = vadd.xlane.f32.xlu0 %v241_v1  ;;  %2172 = vadd.xlane.f32.xlu1 %v2171_v43  ;;  %10356 = vst [vmem:[#allocation24_spill] sm:$0xff] %v7164_v8  ;;  %v10357_v1 = vld [vmem:[#allocation18_spill] sm:$0xff]  ;;  %v2516_v33 = vmul.f32 0.5, %v2515_v32  ;;  %v1808_v10 = vsel %vm99_vm0, %v7164_v8, 0.0  ;;  %vm7199_vm7 = vmor %vm1137_vm1, %vm1138_vm15  ;;  %vm2530_vm2 = vweird.f32 %v7112_v50 }
 0x2ae   :  { %2157 = vadd.xlane.f32.xlu2 %v2156_v15  ;;  %v2526_v63 = vmul.f32 0.5, %v2525_v14  ;;  %v7173_v38 = vsub.f32 %v10357_v1, %v1923_v45  ;;  %v10358_v15 = vld [vmem:[#allocation21_spill] sm:$0xff]  ;;  %v10360_v14 = vld [vmem:[#allocation22_spill] sm:$0xff]  ;;  %v2165_v45 = vsel %vm99_vm0, %v2053_v35, 0.0  ;;  %vm2520_vm4 = vweird.f32 %v7091_v19 }
 0x2af   :  { %v2507_v47 = vsub.f32 1.5, %v2506_v3  ;;  %v1486_v43 = vmul.f32 %v1170_v58, %v10358_v15  ;;  %v1136_v3 = vmul.f32 %v7021_v36, %v1135_v9  ;;  %v7182_v53 = vsub.f32 %v10360_v14, %v1928_v12 }
 0x2b0   :  { %v2527_v31 = vsub.f32 1.5, %v2526_v63  ;;  %v2517_v9 = vsub.f32 1.5, %v2516_v33  ;;  %v3191_v12 = vadd.f32 %v6715_v27, %v3126_v7  ;;  %v244_v33 = vsel %vm99_vm0, %v7195_v42, 0.0 }
 0x2b1   :  { %v2508_v17 = vmul.f32 %v4727_v52, %v2507_v47  ;;  %v1926_v47 = vmul.f32 %v6876_v25, %v5180_v54  ;;  %v2051_v25 = vmul.f32 %v7173_v38, %v7173_v38  ;;  %v1551_v35 = vmul.f32 %v5487_v34, %v1486_v43  ;;  %v10365_v43 = vld [vmem:[#allocation17_spill] sm:$0xff] }
 0x2b2   :  { %v1140_v20 = vsel %vm7199_vm7, %v7021_v36, %v1136_v3  ;;  %v2528_v58 = vmul.f32 %v7112_v50, %v2527_v31  ;;  %vm2529_vm3 = vweird.f32 %v7065_v61  ;;  %v10363_v36 = vld [vmem:[#allocation42_spill] sm:$0xff]  ;;  %vm2519_vm6 = vweird.f32 %v7049_v49 }
 0x2b3   :  { %v2512_v29 = vsel %vm2511_vm14, %v4727_v52, %v2508_v17  ;;  %v717_v52 = vmul.f32 %v6827_v39, %v5180_v54  ;;  %v2056_v17 = vmul.f32 %v7182_v53, %v7182_v53  ;;  %v7223_v15 = vsub.f32 %v10363_v36, %v341_v56  ;;  %vm2531_vm5 = vmor %vm2529_vm3, %vm2530_vm2  ;;  %v10368_v56 = vld [vmem:[#allocation25_spill] sm:$0xff]  ;;  %v7266_v36 = vld [vmem:[%s10071_s0 + $0x188] sm:$0xff] }
 0x2b4   :  { %v3062_v51 = vmul.f32 %v2512_v29, %v10359_v41  ;;  %v2518_v29 = vmul.f32 %v7091_v19, %v2517_v9  ;;  %v1483_v41 = vmul.f32 %v1140_v20, %v10365_v43  ;;  %v2159_v7 = vsel %vm99_vm0, %v2051_v25, 0.0  ;;  %vm2521_vm9 = vmor %vm2519_vm6, %vm2520_vm4 }
 0x2b5   :  { %2151 = vadd.xlane.f32.xlu0 %v2150_v22  ;;  %1809 = vadd.xlane.f32.xlu1 %v1808_v10  ;;  %v7215_v63 = vadd.f32 1e-05, %v717_v52  ;;  %10364 = vst [vmem:[#allocation21_spill] sm:$0xff] %v7223_v15  ;;  %v1616_v60 = vadd.f32 %v5494_v2, %v1551_v35  ;;  %v2532_v3 = vsel %vm2531_vm5, %v7112_v50, %v2528_v58  ;;  %v2174_v31 = vsel %vm99_vm0, %v2056_v17, 0.0  ;;  %v10367_v52 = vld [vmem:[#allocation41_spill] sm:$0xff] }
 0x2b6   :  { %2166 = vadd.xlane.f32.xlu2 %v2165_v45  ;;  %v3127_v32 = vmul.f32 %v6699_v62, %v3062_v51  ;;  %v10366_v51 = vld [vmem:[#allocation26_spill] sm:$0xff]  ;;  %v2522_v61 = vsel %vm2521_vm9, %v7091_v19, %v2518_v29  ;;  %v469_v45 = vmul.f32 %v7223_v15, %v7223_v15  ;;  %v4924_v50 = vld [vmem:[%s10071_s0 + $0x118] sm:$0xff]  ;;  %v1548_v9 = vmul.f32 %v5487_v34, %v1483_v41 }
 0x2b7   :  { %v7227_v10 = vsub.f32 %v10366_v51, %v1926_v47  ;;  %4730 = vrsqrt.f32 %v7215_v63  ;;  %v7245_v47 = vadd.f32 %v4924_v50, %v1616_v60  ;;  %v3063_v39 = vmul.f32 %v2522_v61, %v10368_v56  ;;  %v4620_v50 = vld [vmem:[%s10074_s3 + $0x38] sm:$0xff] }
 0x2b8   :  { %v3192_v24 = vadd.f32 %v6715_v27, %v3127_v32  ;;  %v3064_v32 = vmul.f32 %v2532_v3, %v10367_v52  ;;  %v617_v19 = vsel %vm99_vm0, %v469_v45, 0.0  ;;  %v1613_v20 = vadd.f32 %v5494_v2, %v1548_v9  ;;  %4044 = vmatpush.bf16.msra.mxu1 %v4620_v50  ;;  %4623 = vmatpush.bf16.msra.mxu2 %v4620_v50 }
 0x2b9   :  { %v2054_v49 = vmul.f32 %v7227_v10, %v7227_v10  ;;  %v1814_v25 = vsel %vm99_vm0, %v7245_v47, 0.0  ;;  %v3128_v58 = vmul.f32 %v6699_v62, %v3063_v39  ;;  %vm1157_vm11 = vweird.f32 %v7215_v63 }
 0x2ba   :  { %v3251_v22 = vpack.c.bf16 %v3192_v24, %v3191_v12  ;;  %v3129_v35 = vmul.f32 %v6699_v62, %v3064_v32 }
 0x2bb   :  { %v2168_v24 = vsel %vm99_vm0, %v2054_v49, 0.0  ;;  %v3193_v43 = vadd.f32 %v6715_v27, %v3128_v58  ;;  %v10369_v58 = vld [vmem:[#allocation28_spill] sm:$0xff] }
 0x2bc   :  { %4551 = vmatmul.msk.bf16.gmra.mxu0 %vm99_vm0, %v3251_v22  ;;  %v3194_v22 = vadd.f32 %v6715_v27, %v3129_v35 }
 0x2bd   :  { %2160 = vadd.xlane.f32.xlu0 %v2159_v7  ;;  %245 = vadd.xlane.f32.xlu1 %v244_v33  ;;  %v4731_v12 = vpop.eup %4730  ;;  %v4925_v33 = vld [vmem:[%s10071_s0 + $0x100] sm:$0xff]  ;;  %v247_v7 = vsel %vm99_vm0, %v7266_v36, 0.0 }
 0x2be   :  { %2175 = vadd.xlane.f32.xlu2 %v2174_v31  ;;  %v1152_v17 = vmul.f32 %v4731_v12, %v7215_v63  ;;  %v7261_v29 = vadd.f32 %v4925_v33, %v1613_v20  ;;  %v3252_v60 = vpack.c.bf16 %v3194_v22, %v3193_v43  ;;  %vm1158_vm10 = vweird.f32 %v4731_v12  ;;  %v4618_v63 = vld [vmem:[%s10074_s3 + $0x28] sm:$0xff] }
 0x2bf   :  { %vm1159_vm8 = vmor %vm1157_vm11, %vm1158_vm10 }
 0x2c0   :  { %v1153_v41 = vmul.f32 %v4731_v12, %v1152_v17  ;;  %v1805_v3 = vsel %vm99_vm0, %v7261_v29, 0.0 }
 0x2c2   :  { %v1154_v31 = vmul.f32 0.5, %v1153_v41 }
 0x2c4   :  { %v1155_v52 = vsub.f32 1.5, %v1154_v31 }
 0x2c5   :  { %2169 = vadd.xlane.f32.xlu0 %v2168_v24  ;;  %1815 = vadd.xlane.f32.xlu1 %v1814_v25 }
 0x2c6   :  { %618 = vadd.xlane.f32.xlu2 %v617_v19  ;;  %v1156_v49 = vmul.f32 %v4731_v12, %v1155_v52  ;;  %v4619_v19 = vld [vmem:[%s10074_s3 + $0x30] sm:$0xff] }
 0x2c7   :  { %4045 = vmatpush.bf16.msra.mxu1 %v4619_v19  ;;  %4624 = vmatpush.bf16.msra.mxu2 %v4619_v19 }
 0x2c8   :  { %v1160_v25 = vsel %vm1159_vm8, %v4731_v12, %v1156_v49 }
 0x2c9   :  { %v1485_v17 = vmul.f32 %v1160_v25, %v10369_v58  ;;  %v4617_v58 = vld [vmem:[%s10074_s3 + $0x20] sm:$0xff] }
 0x2cb   :  { %4046 = vmatpush.bf16.msra.mxu1 %v4618_v63  ;;  %4625 = vmatpush.bf16.msra.mxu2 %v4618_v63 }
 0x2cc   :  { %4552 = vmatmul.msk.bf16.gmra.mxu0 %vm99_vm0, %v3252_v60  ;;  %v1550_v60 = vmul.f32 %v5487_v34, %v1485_v17 }
 0x2cd   :  { %1806 = vadd.xlane.f32.xlu0 %v1805_v3 }
 0x2ce   :  { %248 = vadd.xlane.f32.xlu2 %v247_v7 }
 0x2cf   :  { %4047 = vmatpush.bf16.msra.mxu1 %v4617_v58  ;;  %4626 = vmatpush.bf16.msra.mxu2 %v4617_v58 }
 0x2d0   :  { %v604_v61 = vpop.xlane.xlu0 %603 }
 0x2d1   :  { %v720_v45 = vmul.f32 %v604_v61, %v5180_v54  ;;  %v10370_v61 = vld [vmem:[#allocation45_spill] sm:$0xff] }
 0x2d3   :  { %v7275_v32 = vadd.f32 1e-05, %v720_v45 }
 0x2d5   :  { %4732 = vrsqrt.f32 %v7275_v32  ;;  %vm1187_vm14 = vweird.f32 %v7275_v32 }
 0x2d8   :  { %v601_v9 = vpop.xlane.xlu2 %600  ;;  %v2134_v56 = vpop.xlane.xlu0 %2133 }
 0x2d9   :  { %v719_v39 = vmul.f32 %v601_v9, %v5180_v54  ;;  %v2298_v24 = vmul.f32 %v2134_v56, %v5180_v54  ;;  %v1615_v9 = vadd.f32 %v5494_v2, %v1550_v60 }
 0x2db   :  { %v783_v35 = vadd.f32 1e-05, %v719_v39  ;;  %v7287_v20 = vpop.eup %4732  ;;  %v7293_v22 = vadd.f32 1e-05, %v2298_v24 }
 0x2dc   :  { %v1182_v33 = vmul.f32 %v7287_v20, %v7275_v32  ;;  %vm1188_vm15 = vweird.f32 %v7287_v20  ;;  %v10384_v32 = vld [vmem:[#allocation44_spill] sm:$0xff] }
 0x2dd   :  { %4734 = vrsqrt.f32 %v783_v35  ;;  %vm1177_vm13 = vweird.f32 %v783_v35  ;;  %vm7379_vm7 = vmor %vm1187_vm14, %vm1188_vm15  ;;  %vm2549_vm2 = vweird.f32 %v7293_v22 }
 0x2de   :  { %4736 = vrsqrt.f32 %v7293_v22  ;;  %v1183_v31 = vmul.f32 %v7287_v20, %v1182_v33 }
 0x2e0   :  { %v231_v43 = vpop.xlane.xlu2 %230  ;;  %v7297_v41 = vpop.xlane.xlu1 %606  ;;  %v1184_v56 = vmul.f32 0.5, %v1183_v31  ;;  %v4926_v31 = vld [vmem:[%s10071_s0 + $0x110] sm:$0xff] }
 0x2e1   :  { %v342_v12 = vmul.f32 %v5180_v54, %v231_v43  ;;  %v1798_v7 = vpop.xlane.xlu0 %1797 }
 0x2e3   :  { %v7302_v3 = vpop.eup %4734  ;;  %v7306_v45 = vsub.f32 %v10370_v61, %v342_v12  ;;  %v7325_v61 = vadd.f32 %v4926_v31, %v1615_v9  ;;  %v1930_v9 = vmul.f32 %v1798_v7, %v5180_v54  ;;  %v10376_v31 = vld [vmem:[#allocation48_spill] sm:$0xff] }
 0x2e4   :  { %v1172_v52 = vmul.f32 %v7302_v3, %v783_v35  ;;  %v7313_v39 = vpop.eup %4736  ;;  %vm1178_vm12 = vweird.f32 %v7302_v3 }
 0x2e5   :  { %10371 = vst [vmem:[#allocation40_spill] sm:$0xff] %v7306_v45  ;;  %v470_v50 = vmul.f32 %v7306_v45, %v7306_v45  ;;  %v1811_v58 = vsel %vm99_vm0, %v7325_v61, 0.0  ;;  %vm7354_vm1 = vmor %vm1177_vm13, %vm1178_vm12  ;;  %vm2550_vm4 = vweird.f32 %v7313_v39 }
 0x2e6   :  { %v1173_v49 = vmul.f32 %v7302_v3, %v1172_v52  ;;  %v4616_v52 = vld [vmem:[%s10074_s3 + $0x18] sm:$0xff]  ;;  %vm7450_vm3 = vmor %vm2549_vm2, %vm2550_vm4 }
 0x2e7   :  { %v620_v63 = vsel %vm99_vm0, %v470_v50, 0.0  ;;  %v2544_v50 = vmul.f32 %v7313_v39, %v7293_v22  ;;  %4048 = vmatpush.bf16.msra.mxu1 %v4616_v52  ;;  %4627 = vmatpush.bf16.msra.mxu2 %v4616_v52  ;;  %v721_v22 = vmul.f32 %v7297_v41, %v5180_v54 }
 0x2e8   :  { %v1174_v19 = vmul.f32 0.5, %v1173_v49  ;;  %v1795_v24 = vpop.xlane.xlu2 %1794  ;;  %v237_v25 = vpop.xlane.xlu1 %236  ;;  %621 = vadd.xlane.f32.xlu0 %v620_v63  ;;  %v1185_v49 = vsub.f32 1.5, %v1184_v56  ;;  %v10374_v63 = vld [vmem:[#allocation50_spill] sm:$0xff] }
 0x2e9   :  { %v1929_v17 = vmul.f32 %v1795_v24, %v5180_v54  ;;  %v344_v33 = vmul.f32 %v5180_v54, %v237_v25  ;;  %v234_v43 = vpop.xlane.xlu0 %233  ;;  %v10372_v24 = vld [vmem:[#allocation49_spill] sm:$0xff]  ;;  %v2545_v35 = vmul.f32 %v7313_v39, %v2544_v50  ;;  %v4615_v50 = vld [vmem:[%s10074_s3 + $0x10] sm:$0xff] }
 0x2ea   :  { %v1175_v12 = vsub.f32 1.5, %v1174_v19  ;;  %v343_v60 = vmul.f32 %v5180_v54, %v234_v43 }
 0x2eb   :  { %v7333_v19 = vsub.f32 %v10372_v24, %v1929_v17  ;;  %v7342_v14 = vsub.f32 %v10376_v31, %v344_v33  ;;  %4049 = vmatpush.bf16.msra.mxu1 %v4615_v50  ;;  %4628 = vmatpush.bf16.msra.mxu2 %v4615_v50 }
 0x2ec   :  { %v1176_v25 = vmul.f32 %v7302_v3, %v1175_v12  ;;  %v7339_v43 = vsub.f32 %v10374_v63, %v343_v60  ;;  %v1186_v12 = vmul.f32 %v7287_v20, %v1185_v49  ;;  %v10380_v63 = vld [vmem:[#allocation46_spill] sm:$0xff] }
 0x2ed   :  { %10373 = vst [vmem:[#allocation42_spill] sm:$0xff] %v7333_v19  ;;  %v2057_v56 = vmul.f32 %v7333_v19, %v7333_v19  ;;  %v7365_v52 = vsub.f32 %v10380_v63, %v1930_v9  ;;  %v4614_v9 = vld [vmem:[%s10074_s3 + $0x8] sm:$0xff] }
 0x2ee   :  { %10375 = vst [vmem:[#allocation17_spill] sm:$0xff] %v7339_v43  ;;  %v471_v17 = vmul.f32 %v7339_v43, %v7339_v43  ;;  %v1180_v60 = vsel %vm7354_vm1, %v7302_v3, %v1176_v25  ;;  %v472_v3 = vmul.f32 %v7342_v14, %v7342_v14  ;;  %v1190_v63 = vsel %vm7379_vm7, %v7287_v20, %v1186_v12 }
 0x2ef   :  { %10377 = vst [vmem:[#allocation41_spill] sm:$0xff] %v7342_v14  ;;  %v2177_v33 = vsel %vm99_vm0, %v2057_v56, 0.0  ;;  %v1487_v7 = vmul.f32 %v1180_v60, %v10384_v32  ;;  %4050 = vmatpush.bf16.msra.mxu1 %v4614_v9  ;;  %4629 = vmatpush.bf16.msra.mxu2 %v4614_v9  ;;  %v10385_v32 = vld [vmem:[#allocation43_spill] sm:$0xff] }
 0x2f0   :  { %10381 = vst [vmem:[#allocation25_spill] sm:$0xff] %v7365_v52  ;;  %v2131_v31 = vpop.xlane.xlu2 %2130  ;;  %2178 = vadd.xlane.f32.xlu2 %v2177_v33  ;;  %v2137_v24 = vpop.xlane.xlu1 %2136  ;;  %v623_v28 = vsel %vm99_vm0, %v471_v17, 0.0  ;;  %1812 = vadd.xlane.f32.xlu0 %v1811_v58  ;;  %v85_v17 = vld [vmem:[%s10071_s0 + $0x198] sm:$0xff]  ;;  %v626_v50 = vsel %vm99_vm0, %v472_v3, 0.0  ;;  %v1488_v51 = vmul.f32 %v1190_v63, %v10385_v32  ;;  %v4613_v3 = vld [vmem:[%s10074_s3] sm:$0xff] }
 0x2f1   :  { %v2297_v56 = vmul.f32 %v2131_v31, %v5180_v54  ;;  %v2299_v49 = vmul.f32 %v2137_v24, %v5180_v54  ;;  %624 = vadd.xlane.f32.xlu1 %v623_v28  ;;  %v2546_v24 = vmul.f32 0.5, %v2545_v35  ;;  %v3466_v58 = vpop.f32.mrf.mxu0  ;;  %v2058_v31 = vmul.f32 %v7365_v52, %v7365_v52 }
 0x2f2   :  { %v3626_v35 = vmax.f32 %v3466_v58, 0.0  ;;  %v253_v60 = vsel %vm99_vm0, %v85_v17, 0.0  ;;  %v1552_v25 = vmul.f32 %v5487_v34, %v1487_v7 }
 0x2f3   :  { %v7386_v28 = vadd.f32 1e-05, %v2297_v56  ;;  %v7392_v33 = vadd.f32 1e-05, %v2299_v49  ;;  %v7404_v56 = vstv %s7350_s22  ;;  %v2547_v49 = vsub.f32 1.5, %v2546_v24  ;;  %4051 = vmatpush.bf16.msra.mxu1 %v4613_v3  ;;  %4630 = vmatpush.bf16.msra.mxu2 %v4613_v3 }
 0x2f4   :  { %v2180_v12 = vsel %vm99_vm0, %v2058_v31, 0.0  ;;  %v3691_v58 = vmul.f32 %v7404_v56, %v3626_v35  ;;  %v1617_v24 = vadd.f32 %v5494_v2, %v1552_v25  ;;  %v1553_v3 = vmul.f32 %v5487_v34, %v1488_v51 }
 0x2f5   :  { %4738 = vrsqrt.f32 %v7386_v28  ;;  %v2548_v7 = vmul.f32 %v7313_v39, %v2547_v49  ;;  %vm2539_vm6 = vweird.f32 %v7386_v28  ;;  %vm2559_vm13 = vweird.f32 %v7392_v33 }
 0x2f6   :  { %4740 = vrsqrt.f32 %v7392_v33  ;;  %v3755_v49 = vmul.f32 %v3691_v58, %v3626_v35  ;;  %v1618_v26 = vadd.f32 %v5494_v2, %v1553_v3 }
 0x2f8   :  { %627 = vadd.xlane.f32.xlu2 %v626_v50  ;;  %v1801_v20 = vpop.xlane.xlu1 %1800  ;;  %v610_v17 = vpop.xlane.xlu2 %609  ;;  %2181 = vadd.xlane.f32.xlu0 %v2180_v12 }
 0x2f9   :  { %v1931_v9 = vmul.f32 %v1801_v20, %v5180_v54  ;;  %254 = vadd.xlane.f32.xlu1 %v253_v60  ;;  %v722_v63 = vmul.f32 %v610_v17, %v5180_v54  ;;  %v3468_v32 = vpop.f32.mrf.mxu0  ;;  %v84_v60 = vld [vmem:[%s10071_s0 + $0x190] sm:$0xff]  ;;  %v4927_v17 = vld [vmem:[%s10071_s0 + $0x120] sm:$0xff] }
 0x2fa   :  { %v3627_v25 = vmax.f32 %v3468_v32, 0.0  ;;  %v7434_v23 = vadd.f32 %v4927_v17, %v1617_v24  ;;  %v250_v51 = vsel %vm99_vm0, %v84_v60, 0.0  ;;  %v2552_v32 = vsel %vm7450_vm3, %v7313_v39, %v2548_v7  ;;  %v10390_v7 = vld [vmem:[#allocation29_spill] sm:$0xff] }
 0x2fb   :  { %v4739_v31 = vpop.eup %4738  ;;  %v7422_v50 = vsub.f32 %v6842_v21, %v1931_v9  ;;  %v7428_v12 = vadd.f32 1e-05, %v722_v63  ;;  %v7439_v21 = vstv %s7401_s28 }
 0x2fc   :  { %v2534_v20 = vmul.f32 %v4739_v31, %v7386_v28  ;;  %10387 = vst [vmem:[#allocation45_spill] sm:$0xff] %v7434_v23  ;;  %v7441_v1 = vpop.eup %4740  ;;  %v3692_v63 = vmul.f32 %v7404_v56, %v3627_v25  ;;  %v1817_v58 = vsel %vm99_vm0, %v7434_v23, 0.0  ;;  %vm2540_vm5 = vweird.f32 %v4739_v31 }
 0x2fd   :  { %10386 = vst [vmem:[#allocation28_spill] sm:$0xff] %v7422_v50  ;;  %v2059_v9 = vmul.f32 %v7422_v50, %v7422_v50  ;;  %4742 = vrsqrt.f32 %v7428_v12  ;;  %v2554_v14 = vmul.f32 %v7441_v1, %v7392_v33  ;;  %vm2541_vm9 = vmor %vm2539_vm6, %vm2540_vm5  ;;  %vm1207_vm10 = vweird.f32 %v7428_v12 }
 0x2fe   :  { %v2535_v18 = vmul.f32 %v4739_v31, %v2534_v20  ;;  %v3756_v17 = vmul.f32 %v3692_v63, %v3627_v25  ;;  %v3066_v25 = vmul.f32 %v2552_v32, %v10390_v7  ;;  %vm2560_vm12 = vweird.f32 %v7441_v1 }
 0x2ff   :  { %v2183_v24 = vsel %vm99_vm0, %v2059_v9, 0.0  ;;  %v3820_v9 = vadd.f32 %v7439_v21, %v3755_v49  ;;  %v4928_v49 = vld [vmem:[%s10071_s0 + $0x128] sm:$0xff]  ;;  %vm2561_vm15 = vmor %vm2559_vm13, %vm2560_vm12 }
 0x300   :  { %v2536_v20 = vmul.f32 0.5, %v2535_v18  ;;  %1818 = vadd.xlane.f32.xlu2 %v1817_v58  ;;  %v2146_v60 = vpop.xlane.xlu1 %2145  ;;  %v2140_v50 = vpop.xlane.xlu2 %2139  ;;  %251 = vadd.xlane.f32.xlu0 %v250_v51  ;;  %v3821_v39 = vadd.f32 %v7439_v21, %v3756_v17  ;;  %v7477_v51 = vadd.f32 %v4928_v49, %v1618_v26  ;;  %v7479_v58 = vadd.f32 1e-05, %v721_v22 }
 0x301   :  { %2184 = vadd.xlane.f32.xlu1 %v2183_v24  ;;  %v2300_v18 = vmul.f32 %v2140_v50, %v5180_v54  ;;  %v2555_v50 = vmul.f32 %v7441_v1, %v2554_v14  ;;  %v3131_v22 = vmul.f32 %v6699_v62, %v3066_v25 }
 0x302   :  { %v2537_v43 = vsub.f32 1.5, %v2536_v20  ;;  %v3948_v35 = vpack.c.bf16 %v3821_v39, %v3820_v9  ;;  %10391 = vst [vmem:[#allocation50_spill] sm:$0xff] %v7477_v51  ;;  %v1820_v26 = vsel %vm99_vm0, %v7477_v51, 0.0  ;;  %vm1197_vm2 = vweird.f32 %v7479_v58 }
 0x303   :  { %v7470_v3 = vpop.eup %4742  ;;  %v7472_v63 = vadd.f32 1e-05, %v2300_v18  ;;  %v2556_v14 = vmul.f32 0.5, %v2555_v50  ;;  %v3196_v50 = vadd.f32 %v6715_v27, %v3131_v22 }
 0x304   :  { %v2538_v41 = vmul.f32 %v4739_v31, %v2537_v43  ;;  %v1202_v28 = vmul.f32 %v7470_v3, %v7428_v12  ;;  %4052 = vmatmul.bf16.vlgmr.msra.gmra.mxu1 %v3948_v35  ;;  %v10392_v43 = vld [vmem:[#allocation51_spill] sm:$0xff]  ;;  %vm1208_vm11 = vweird.f32 %v7470_v3 }
 0x305   :  { %4744 = vrsqrt.f32 %v7472_v63  ;;  %vm7508_vm8 = vmor %vm1207_vm10, %vm1208_vm11  ;;  %vm2569_vm1 = vweird.f32 %v7472_v63 }
 0x306   :  { %v2542_v24 = vsel %vm2541_vm9, %v4739_v31, %v2538_v41  ;;  %v1203_v20 = vmul.f32 %v7470_v3, %v1202_v28  ;;  %4746 = vrsqrt.f32 %v7479_v58  ;;  %v2557_v28 = vsub.f32 1.5, %v2556_v14 }
 0x307   :  { %v3065_v32 = vmul.f32 %v2542_v24, %v10392_v43 }
 0x308   :  { %v7487_v17 = vpop.xlane.xlu1 %615  ;;  %v1204_v9 = vmul.f32 0.5, %v1203_v20  ;;  %v1804_v18 = vpop.xlane.xlu2 %1803  ;;  %1821 = vadd.xlane.f32.xlu0 %v1820_v26 }
 0x309   :  { %v3130_v31 = vmul.f32 %v6699_v62, %v3065_v32  ;;  %v1932_v39 = vmul.f32 %v1804_v18, %v5180_v54  ;;  %v7495_v41 = vpop.f32.mrf.mxu0 }
 0x30a   :  { %v1205_v7 = vsub.f32 1.5, %v1204_v9  ;;  %v2302_v9 = vmul.f32 %v2146_v60, %v5180_v54 }
 0x30b   :  { %v3195_v35 = vadd.f32 %v6715_v27, %v3130_v31  ;;  %v4745_v49 = vpop.eup %4744  ;;  %v7501_v25 = vsub.f32 %v6957_v37, %v1932_v39  ;;  %v2558_v31 = vmul.f32 %v7441_v1, %v2557_v28 }
 0x30c   :  { %v2564_v24 = vmul.f32 %v4745_v49, %v7472_v63  ;;  %v1206_v43 = vmul.f32 %v7470_v3, %v1205_v7  ;;  %v7506_v20 = vpop.eup %4746  ;;  %vm2570_vm14 = vweird.f32 %v4745_v49  ;;  %v7528_v28 = vadd.f32 1e-05, %v2302_v9 }
 0x30d   :  { %10393 = vst [vmem:[#allocation48_spill] sm:$0xff] %v7501_v25  ;;  %v3253_v32 = vpack.c.bf16 %v3196_v50, %v3195_v35  ;;  %v2060_v18 = vmul.f32 %v7501_v25, %v7501_v25  ;;  %v1192_v50 = vmul.f32 %v7506_v20, %v7479_v58  ;;  %vm2571_vm7 = vmor %vm2569_vm1, %vm2570_vm14  ;;  %vm1198_vm4 = vweird.f32 %v7506_v20 }
 0x30e   :  { %v2565_v12 = vmul.f32 %v4745_v49, %v2564_v24  ;;  %v1210_v60 = vsel %vm7508_vm8, %v7470_v3, %v1206_v43  ;;  %v86_v3 = vld [vmem:[%s10071_s0 + $0x1a0] sm:$0xff]  ;;  %v2562_v43 = vsel %vm2561_vm15, %v7441_v1, %v2558_v31  ;;  %4748 = vrsqrt.f32 %v7528_v28  ;;  %vm7595_vm3 = vmor %vm1197_vm2, %vm1198_vm4 }
 0x30f   :  { %4553 = vmatmul.msk.bf16.gmra.mxu0 %vm99_vm0, %v3253_v32  ;;  %v2186_v35 = vsel %vm99_vm0, %v2060_v18, 0.0  ;;  %v3628_v18 = vmax.f32 %v7495_v41, 0.0  ;;  %v1490_v26 = vmul.f32 %v1210_v60, %v6837_v6  ;;  %v1193_v9 = vmul.f32 %v7506_v20, %v1192_v50 }
 0x310   :  { %v7516_v22 = vpop.xlane.xlu1 %2154  ;;  %v613_v14 = vpop.xlane.xlu0 %612  ;;  %v2566_v39 = vmul.f32 0.5, %v2565_v12  ;;  %2187 = vadd.xlane.f32.xlu2 %v2186_v35  ;;  %v10397_v35 = vld [vmem:[#allocation52_spill] sm:$0xff]  ;;  %vm2589_vm5 = vweird.f32 %v7528_v28 }
 0x311   :  { %v240_v7 = vpop.xlane.xlu2 %239  ;;  %v3473_v12 = vpop.f32.mrf.mxu0  ;;  %v3693_v6 = vmul.f32 %v7404_v56, %v3628_v18 }
 0x312   :  { %v345_v24 = vmul.f32 %v5180_v54, %v240_v7  ;;  %v2567_v32 = vsub.f32 1.5, %v2566_v39  ;;  %v3629_v39 = vmax.f32 %v3473_v12, 0.0  ;;  %v1555_v12 = vmul.f32 %v5487_v34, %v1490_v26 }
 0x314   :  { %v7532_v37 = vsub.f32 %v7004_v48, %v345_v24  ;;  %v2568_v33 = vmul.f32 %v4745_v49, %v2567_v32  ;;  %v256_v48 = vsel %vm99_vm0, %v86_v3, 0.0  ;;  %v3067_v24 = vmul.f32 %v2562_v43, %v10397_v35 }
 0x315   :  { %v3694_v63 = vmul.f32 %v7404_v56, %v3629_v39  ;;  %v1194_v3 = vmul.f32 0.5, %v1193_v9  ;;  %v1620_v26 = vadd.f32 %v5494_v2, %v1555_v12 }
 0x316   :  { %10396 = vst [vmem:[#allocation44_spill] sm:$0xff] %v7532_v37  ;;  %v2572_v7 = vsel %vm2571_vm7, %v4745_v49, %v2568_v33  ;;  %v473_v41 = vmul.f32 %v7532_v37, %v7532_v37  ;;  %v3132_v37 = vmul.f32 %v6699_v62, %v3067_v24 }
 0x317   :  { %v3068_v1 = vmul.f32 %v2572_v7, %v6845_v30  ;;  %v3757_v7 = vmul.f32 %v3693_v6, %v3628_v18  ;;  %v3758_v35 = vmul.f32 %v3694_v63, %v3629_v39  ;;  %v1195_v9 = vsub.f32 1.5, %v1194_v3 }
 0x318   :  { %v7549_v31 = vpop.xlane.xlu1 %2163  ;;  %v2143_v50 = vpop.xlane.xlu0 %2142  ;;  %v629_v49 = vsel %vm99_vm0, %v473_v41, 0.0  ;;  %257 = vadd.xlane.f32.xlu2 %v256_v48  ;;  %v87_v48 = vld [vmem:[%s10071_s0 + $0x1a8] sm:$0xff] }
 0x319   :  { %v2149_v60 = vpop.xlane.xlu2 %2148  ;;  %v2301_v32 = vmul.f32 %v2143_v50, %v5180_v54  ;;  %630 = vadd.xlane.f32.xlu0 %v629_v49  ;;  %v7557_v43 = vpop.f32.mrf.mxu0  ;;  %v3133_v25 = vmul.f32 %v6699_v62, %v3068_v1  ;;  %v723_v50 = vmul.f32 %v613_v14, %v5180_v54  ;;  %v3822_v18 = vadd.f32 %v7439_v21, %v3757_v7 }
 0x31a   :  { %v2303_v33 = vmul.f32 %v2149_v60, %v5180_v54  ;;  %v7561_v41 = vpop.eup %4748  ;;  %v3823_v39 = vadd.f32 %v7439_v21, %v3758_v35  ;;  %v3197_v14 = vadd.f32 %v6715_v27, %v3132_v37  ;;  %v259_v3 = vsel %vm99_vm0, %v87_v48, 0.0 }
 0x31b   :  { %v7555_v30 = vadd.f32 1e-05, %v2301_v32  ;;  %v3198_v24 = vadd.f32 %v6715_v27, %v3133_v25  ;;  %v2584_v63 = vmul.f32 %v7561_v41, %v7528_v28  ;;  %v7581_v49 = vadd.f32 1e-05, %v723_v50  ;;  %v4929_v32 = vld [vmem:[%s10071_s0 + $0x138] sm:$0xff]  ;;  %v4930_v28 = vld [vmem:[%s10071_s0 + $0x130] sm:$0xff] }
 0x31c   :  { %v7565_v60 = vadd.f32 1e-05, %v2303_v33  ;;  %v7586_v12 = vadd.f32 %v4929_v32, %v1620_v26  ;;  %v1196_v37 = vmul.f32 %v7506_v20, %v1195_v9  ;;  %v3949_v25 = vpack.c.bf16 %v3823_v39, %v3822_v18 }
 0x31d   :  { %4750 = vrsqrt.f32 %v7555_v30  ;;  %v3254_v33 = vpack.c.bf16 %v3198_v24, %v3197_v14  ;;  %v2585_v48 = vmul.f32 %v7561_v41, %v2584_v63  ;;  %v3630_v39 = vmax.f32 %v7557_v43, 0.0 }
 0x31e   :  { %10398 = vst [vmem:[#allocation43_spill] sm:$0xff] %v7586_v12  ;;  %4752 = vrsqrt.f32 %v7565_v60  ;;  %4057 = vmatmul.bf16.gmra.mxu1 %v3949_v25  ;;  %v1826_v26 = vsel %vm99_vm0, %v7586_v12, 0.0  ;;  %v1200_v58 = vsel %vm7595_vm3, %v7506_v20, %v1196_v37  ;;  %v10401_v25 = vld [vmem:[#allocation47_spill] sm:$0xff]  ;;  %v2305_v35 = vmul.f32 %v7516_v22, %v5180_v54 }
 0x31f   :  { %4554 = vmatmul.msk.bf16.gmra.mxu0 %vm99_vm0, %v3254_v33  ;;  %4754 = vrsqrt.f32 %v7581_v49  ;;  %v1489_v63 = vmul.f32 %v1200_v58, %v10401_v25  ;;  %v2586_v33 = vmul.f32 0.5, %v2585_v48  ;;  %v3695_v19 = vmul.f32 %v7404_v56, %v3630_v39 }
 0x320   :  { %v7577_v1 = vpop.xlane.xlu1 %2172  ;;  %v243_v6 = vpop.xlane.xlu0 %242  ;;  %1827 = vadd.xlane.f32.xlu2 %v1826_v26  ;;  %vm2590_vm9 = vweird.f32 %v7561_v41  ;;  %vm2579_vm10 = vweird.f32 %v7555_v30  ;;  %vm1217_vm12 = vweird.f32 %v7581_v49  ;;  %vm2599_vm14 = vweird.f32 %v7565_v60 }
 0x321   :  { %v2158_v7 = vpop.xlane.xlu2 %2157  ;;  %260 = vadd.xlane.f32.xlu0 %v259_v3  ;;  %v3478_v50 = vpop.f32.mrf.mxu0  ;;  %v346_v26 = vmul.f32 %v5180_v54, %v243_v6  ;;  %v1554_v51 = vmul.f32 %v5487_v34, %v1489_v63  ;;  %v3759_v45 = vmul.f32 %v3695_v19, %v3630_v39  ;;  %vm7673_vm8 = vmor %vm2589_vm5, %vm2590_vm9 }
 0x322   :  { %v3631_v37 = vmax.f32 %v3478_v50, 0.0  ;;  %v2306_v25 = vmul.f32 %v2158_v7, %v5180_v54 }
 0x323   :  { %v7602_v9 = vpop.eup %4750 }
 0x324   :  { %v2574_v18 = vmul.f32 %v7602_v9, %v7555_v30  ;;  %v7612_v14 = vpop.eup %4752  ;;  %v3696_v22 = vmul.f32 %v7404_v56, %v3631_v37  ;;  %vm2580_vm6 = vweird.f32 %v7602_v9  ;;  %v7649_v63 = vadd.f32 1e-05, %v2306_v25 }
 0x325   :  { %v7619_v12 = vpop.eup %4754  ;;  %v2594_v43 = vmul.f32 %v7612_v14, %v7565_v60  ;;  %vm7663_vm11 = vmor %vm2579_vm10, %vm2580_vm6  ;;  %vm2600_vm15 = vweird.f32 %v7612_v14 }
 0x326   :  { %v2575_v24 = vmul.f32 %v7602_v9, %v2574_v18  ;;  %v7625_v18 = vsub.f32 %v7105_v44, %v346_v26  ;;  %v724_v44 = vmul.f32 %v7487_v17, %v5180_v54  ;;  %v3760_v15 = vmul.f32 %v3696_v22, %v3631_v37  ;;  %vm7744_vm1 = vmor %vm2599_vm14, %vm2600_vm15 }
 0x327   :  { %v2595_v7 = vmul.f32 %v7612_v14, %v2594_v43  ;;  %v1619_v43 = vadd.f32 %v5494_v2, %v1554_v51  ;;  %vm1218_vm13 = vweird.f32 %v7619_v12  ;;  %vm2629_vm10 = vweird.f32 %v7649_v63 }
 0x328   :  { %v1810_v32 = vpop.xlane.xlu1 %1809  ;;  %v2152_v3 = vpop.xlane.xlu0 %2151  ;;  %v2576_v20 = vmul.f32 0.5, %v2575_v24  ;;  %10402 = vst [vmem:[#allocation29_spill] sm:$0xff] %v7625_v18  ;;  %v2587_v24 = vsub.f32 1.5, %v2586_v33  ;;  %v474_v52 = vmul.f32 %v7625_v18, %v7625_v18  ;;  %v7655_v19 = vadd.f32 1e-05, %v724_v44  ;;  %vm7760_vm2 = vmor %vm1217_vm12, %vm1218_vm13 }
 0x329   :  { %v2304_v58 = vmul.f32 %v2152_v3, %v5180_v54  ;;  %v7628_v48 = vpop.f32.mrf.mxu0  ;;  %v7632_v50 = vpop.xlane.xlu2 %2166  ;;  %v1212_v3 = vmul.f32 %v7619_v12, %v7581_v49  ;;  %v2596_v37 = vmul.f32 0.5, %v2595_v7  ;;  %v3825_v51 = vadd.f32 %v7439_v21, %v3760_v15 }
 0x32a   :  { %v2577_v6 = vsub.f32 1.5, %v2576_v20  ;;  %v7643_v20 = vadd.f32 1e-05, %v2305_v35  ;;  %v2588_v18 = vmul.f32 %v7561_v41, %v2587_v24  ;;  %v632_v35 = vsel %vm99_vm0, %v474_v52, 0.0 }
 0x32b   :  { %v7641_v26 = vadd.f32 1e-05, %v2304_v58  ;;  %v1213_v39 = vmul.f32 %v7619_v12, %v1212_v3  ;;  %633 = vadd.xlane.f32.xlu1 %v632_v35  ;;  %v3824_v52 = vadd.f32 %v7439_v21, %v3759_v45  ;;  %v1934_v45 = vmul.f32 %v1810_v32, %v5180_v54 }
 0x32c   :  { %v2578_v33 = vmul.f32 %v7602_v9, %v2577_v6  ;;  %v2592_v15 = vsel %vm7673_vm8, %v7561_v41, %v2588_v18  ;;  %v7689_v3 = vadd.f32 %v4930_v28, %v1619_v43  ;;  %v3632_v32 = vmax.f32 %v7628_v48, 0.0 }
 0x32d   :  { %4756 = vrsqrt.f32 %v7641_v26  ;;  %v3950_v44 = vpack.c.bf16 %v3825_v51, %v3824_v52  ;;  %v1214_v7 = vmul.f32 0.5, %v1213_v39  ;;  %v3070_v41 = vmul.f32 %v2592_v15, %v6868_v16 }
 0x32e   :  { %4758 = vrsqrt.f32 %v7643_v20  ;;  %v2582_v22 = vsel %vm7663_vm11, %v7602_v9, %v2578_v33  ;;  %10407 = vst [vmem:[#allocation51_spill] sm:$0xff] %v7689_v3  ;;  %v2597_v9 = vsub.f32 1.5, %v2596_v37  ;;  %v7706_v39 = vsub.f32 %v7164_v8, %v1934_v45 }
 0x32f   :  { %4760 = vrsqrt.f32 %v7649_v63  ;;  %v3069_v33 = vmul.f32 %v2582_v22, %v6960_v4  ;;  %4062 = vmatmul.bf16.gmra.mxu1 %v3950_v44  ;;  %v1823_v37 = vsel %vm99_vm0, %v7689_v3, 0.0  ;;  %v1215_v48 = vsub.f32 1.5, %v1214_v7 }
 0x330   :  { %v2161_v17 = vpop.xlane.xlu0 %2160  ;;  %v246_v58 = vpop.xlane.xlu1 %245  ;;  %4762 = vrsqrt.f32 %v7655_v19  ;;  %10409 = vst [vmem:[#allocation47_spill] sm:$0xff] %v7706_v39  ;;  %v2598_v52 = vmul.f32 %v7612_v14, %v2597_v9  ;;  %v3135_v45 = vmul.f32 %v6699_v62, %v3070_v41  ;;  %vm2609_vm4 = vweird.f32 %v7641_v26 }
 0x331   :  { %v3483_v25 = vpop.f32.mrf.mxu0  ;;  %v347_v24 = vmul.f32 %v5180_v54, %v246_v58  ;;  %v7691_v35 = vpop.xlane.xlu2 %2175  ;;  %v3134_v30 = vmul.f32 %v6699_v62, %v3069_v33  ;;  %v2062_v33 = vmul.f32 %v7706_v39, %v7706_v39  ;;  %vm2619_vm5 = vweird.f32 %v7643_v20 }
 0x332   :  { %v3633_v43 = vmax.f32 %v3483_v25, 0.0  ;;  %v2307_v25 = vmul.f32 %v2161_v17, %v5180_v54  ;;  %v2602_v8 = vsel %vm7744_vm1, %v7612_v14, %v2598_v52  ;;  %vm1227_vm12 = vweird.f32 %v7655_v19 }
 0x333   :  { %v7695_v58 = vpop.eup %4756  ;;  %v7700_v18 = vsub.f32 %v7195_v42, %v347_v24  ;;  %1824 = vadd.xlane.f32.xlu1 %v1823_v37  ;;  %v3697_v24 = vmul.f32 %v7404_v56, %v3632_v32  ;;  %v3199_v17 = vadd.f32 %v6715_v27, %v3134_v30  ;;  %v1216_v37 = vmul.f32 %v7619_v12, %v1215_v48 }
 0x334   :  { %v7702_v6 = vpop.eup %4758  ;;  %v2604_v4 = vmul.f32 %v7695_v58, %v7641_v26  ;;  %v3698_v15 = vmul.f32 %v7404_v56, %v3633_v43  ;;  %v3200_v30 = vadd.f32 %v6715_v27, %v3135_v45  ;;  %vm2610_vm7 = vweird.f32 %v7695_v58 }
 0x335   :  { %10408 = vst [vmem:[#allocation52_spill] sm:$0xff] %v7700_v18  ;;  %v7712_v16 = vpop.eup %4760  ;;  %v475_v44 = vmul.f32 %v7700_v18, %v7700_v18  ;;  %v7764_v39 = vadd.f32 1e-05, %v2307_v25  ;;  %v2192_v49 = vsel %vm99_vm0, %v2062_v33, 0.0  ;;  %vm2611_vm3 = vmor %vm2609_vm4, %vm2610_vm7  ;;  %v1220_v26 = vsel %vm7760_vm2, %v7619_v12, %v1216_v37 }
 0x336   :  { %v2605_v51 = vmul.f32 %v7695_v58, %v2604_v4  ;;  %v7730_v28 = vpop.eup %4762  ;;  %v2624_v7 = vmul.f32 %v7712_v16, %v7649_v63  ;;  %v2614_v4 = vmul.f32 %v7702_v6, %v7643_v20  ;;  %v3762_v45 = vmul.f32 %v3698_v15, %v3633_v43  ;;  %v89_v43 = vld [vmem:[%s10071_s0 + $0x1b8] sm:$0xff] }
 0x337   :  { %v635_v48 = vsel %vm99_vm0, %v475_v44, 0.0  ;;  %v3255_v3 = vpack.c.bf16 %v3200_v30, %v3199_v17  ;;  %4764 = vrsqrt.f32 %v7764_v39  ;;  %v88_v17 = vld [vmem:[%s10071_s0 + $0x1b0] sm:$0xff]  ;;  %vm2630_vm6 = vweird.f32 %v7712_v16 }
 0x338   :  { %v7717_v42 = vpop.xlane.xlu0 %2169  ;;  %v2606_v9 = vmul.f32 0.5, %v2605_v51  ;;  %v2308_v51 = vmul.f32 %v7549_v31, %v5180_v54  ;;  %v3761_v31 = vmul.f32 %v3697_v24, %v3632_v32  ;;  %636 = vadd.xlane.f32.xlu2 %v635_v48  ;;  %v2625_v14 = vmul.f32 %v7712_v16, %v2624_v7  ;;  %v1816_v32 = vpop.xlane.xlu1 %1815  ;;  %vm7847_vm11 = vmor %vm2629_vm10, %vm2630_vm6 }
 0x339   :  { %v7723_v22 = vpop.f32.mrf.mxu0  ;;  %v7766_v41 = vpop.xlane.xlu2 %618  ;;  %v2615_v44 = vmul.f32 %v7702_v6, %v2614_v4  ;;  %4555 = vmatmul.msk.bf16.gmra.mxu0 %vm99_vm0, %v3255_v3  ;;  %v3827_v7 = vadd.f32 %v7439_v21, %v3762_v45  ;;  %v1936_v12 = vmul.f32 %v1816_v32, %v5180_v54  ;;  %v262_v30 = vsel %vm99_vm0, %v88_v17, 0.0 }
 0x33a   :  { %v2607_v18 = vsub.f32 1.5, %v2606_v9  ;;  %v7773_v9 = vadd.f32 1e-05, %v2308_v51  ;;  %v3826_v3 = vadd.f32 %v7439_v21, %v3761_v31  ;;  %v2626_v4 = vmul.f32 0.5, %v2625_v14 }
 0x33b   :  { %2193 = vadd.xlane.f32.xlu1 %v2192_v49  ;;  %v1491_v51 = vmul.f32 %v1220_v26, %v6998_v55  ;;  %v2310_v17 = vmul.f32 %v7717_v42, %v5180_v54  ;;  %vm2620_vm9 = vweird.f32 %v7702_v6  ;;  %vm1228_vm13 = vweird.f32 %v7730_v28 }
 0x33c   :  { %v2608_v52 = vmul.f32 %v7695_v58, %v2607_v18  ;;  %v3071_v18 = vmul.f32 %v2602_v8, %v6950_v40  ;;  %v3634_v40 = vmax.f32 %v7723_v22, 0.0  ;;  %v265_v8 = vsel %vm99_vm0, %v89_v43, 0.0  ;;  %vm7869_vm8 = vmor %vm2619_vm5, %vm2620_vm9 }
 0x33d   :  { %4766 = vrsqrt.f32 %v7773_v9  ;;  %v3951_v37 = vpack.c.bf16 %v3827_v7, %v3826_v3  ;;  %v2627_v14 = vsub.f32 1.5, %v2626_v4  ;;  %v7809_v49 = vpop.eup %4764  ;;  %vm7913_vm14 = vmor %vm1227_vm12, %vm1228_vm13  ;;  %vm2639_vm7 = vweird.f32 %v7764_v39 }
 0x33e   :  { %v2612_v25 = vsel %vm2611_vm3, %v7695_v58, %v2608_v52  ;;  %v2616_v58 = vmul.f32 0.5, %v2615_v44  ;;  %v3136_v22 = vmul.f32 %v6699_v62, %v3071_v18  ;;  %v7806_v52 = vsub.f32 %v7245_v47, %v1936_v12 }
 0x33f   :  { %v3072_v15 = vmul.f32 %v2612_v25, %v7094_v59  ;;  %v1222_v59 = vmul.f32 %v7730_v28, %v7655_v19  ;;  %4067 = vmatmul.bf16.gmra.mxu1 %v3951_v37  ;;  %v3699_v55 = vmul.f32 %v7404_v56, %v3634_v40  ;;  %v2309_v25 = vmul.f32 %v7632_v50, %v5180_v54 }
 0x340   :  { %v1807_v33 = vpop.xlane.xlu0 %1806  ;;  %266 = vadd.xlane.f32.xlu2 %v265_v8  ;;  %v2617_v18 = vsub.f32 1.5, %v2616_v58  ;;  %v3201_v4 = vadd.f32 %v6715_v27, %v3136_v22  ;;  %v2628_v12 = vmul.f32 %v7712_v16, %v2627_v14  ;;  %v2634_v50 = vmul.f32 %v7809_v49, %v7764_v39 }
 0x341   :  { %v3488_v24 = vpop.f32.mrf.mxu0  ;;  %v1933_v48 = vmul.f32 %v1807_v33, %v5180_v54  ;;  %v3137_v31 = vmul.f32 %v6699_v62, %v3072_v15  ;;  %v249_v45 = vpop.xlane.xlu2 %248  ;;  %v1223_v44 = vmul.f32 %v7730_v28, %v1222_v59  ;;  %v1556_v15 = vmul.f32 %v5487_v34, %v1491_v51 }
 0x342   :  { %v3635_v60 = vmax.f32 %v3488_v24, 0.0  ;;  %v348_v24 = vmul.f32 %v5180_v54, %v249_v45  ;;  %v3763_v8 = vmul.f32 %v3699_v55, %v3634_v40  ;;  %v2064_v59 = vmul.f32 %v7806_v52, %v7806_v52 }
 0x343   :  { %263 = vadd.xlane.f32.xlu1 %v262_v30  ;;  %v7813_v32 = vsub.f32 %v7261_v29, %v1933_v48  ;;  %v3202_v26 = vadd.f32 %v6715_v27, %v3137_v31  ;;  %v7823_v7 = vpop.eup %4766  ;;  %v1621_v51 = vadd.f32 %v5494_v2, %v1556_v15  ;;  %v2618_v30 = vmul.f32 %v7702_v6, %v2617_v18 }
 0x344   :  { %v3700_v43 = vmul.f32 %v7404_v56, %v3635_v60  ;;  %v7835_v37 = vsub.f32 %v7266_v36, %v348_v24  ;;  %v2644_v48 = vmul.f32 %v7823_v7, %v7773_v9  ;;  %v7851_v36 = vadd.f32 1e-05, %v2310_v17 }
 0x345   :  { %v3256_v58 = vpack.c.bf16 %v3202_v26, %v3201_v4  ;;  %v2061_v42 = vmul.f32 %v7813_v32, %v7813_v32  ;;  %v2632_v63 = vsel %vm7847_vm11, %v7712_v16, %v2628_v12  ;;  %v7863_v14 = vadd.f32 1e-05, %v2309_v25 }
 0x346   :  { %v3764_v33 = vmul.f32 %v3700_v43, %v3635_v60  ;;  %v4931_v60 = vld [vmem:[%s10071_s0 + $0x140] sm:$0xff]  ;;  %v2635_v55 = vmul.f32 %v7809_v49, %v2634_v50  ;;  %v2198_v43 = vsel %vm99_vm0, %v2064_v59, 0.0  ;;  %v3828_v16 = vadd.f32 %v7439_v21, %v3763_v8 }
 0x347   :  { %v7856_v22 = vadd.f32 %v4931_v60, %v1621_v51  ;;  %v2189_v31 = vsel %vm99_vm0, %v2061_v42, 0.0  ;;  %v476_v25 = vmul.f32 %v7835_v37, %v7835_v37  ;;  %v1224_v24 = vmul.f32 0.5, %v1223_v44 }
 0x348   :  { %v3829_v45 = vadd.f32 %v7439_v21, %v3764_v33  ;;  %2190 = vadd.xlane.f32.xlu0 %v2189_v31  ;;  %v2622_v20 = vsel %vm7869_vm8, %v7702_v6, %v2618_v30  ;;  %v2645_v15 = vmul.f32 %v7823_v7, %v2644_v48  ;;  %v3074_v33 = vmul.f32 %v2632_v63, %v7072_v46 }
 0x349   :  { %v7821_v3 = vpop.f32.mrf.mxu0  ;;  %10416 = vst [vmem:[#allocation55_spill] sm:$0xff] %v7856_v22  ;;  %4556 = vmatmul.msk.bf16.gmra.mxu0 %vm99_vm0, %v3256_v58  ;;  %v1829_v18 = vsel %vm99_vm0, %v7856_v22, 0.0  ;;  %4768 = vrsqrt.f32 %v7851_v36  ;;  %v2636_v50 = vmul.f32 0.5, %v2635_v55  ;;  %v3073_v8 = vmul.f32 %v2622_v20, %v6966_v0 }
 0x34a   :  { %1830 = vadd.xlane.f32.xlu2 %v1829_v18  ;;  %v3952_v4 = vpack.c.bf16 %v3829_v45, %v3828_v16  ;;  %4770 = vrsqrt.f32 %v7863_v14  ;;  %v3636_v44 = vmax.f32 %v7821_v3, 0.0  ;;  %v638_v59 = vsel %vm99_vm0, %v476_v25, 0.0 }
 0x34b   :  { %2199 = vadd.xlane.f32.xlu1 %v2198_v43  ;;  %v2646_v6 = vmul.f32 0.5, %v2645_v15  ;;  %v2311_v58 = vmul.f32 %v7577_v1, %v5180_v54  ;;  %v1225_v51 = vsub.f32 1.5, %v1224_v24  ;;  %v2312_v46 = vmul.f32 %v7691_v35, %v5180_v54 }
 0x34c   :  { %v3139_v30 = vmul.f32 %v6699_v62, %v3074_v33  ;;  %v2637_v0 = vsub.f32 1.5, %v2636_v50  ;;  %v725_v1 = vmul.f32 %v7766_v41, %v5180_v54  ;;  %v3701_v48 = vmul.f32 %v7404_v56, %v3636_v44 }
 0x34d   :  { %v3138_v35 = vmul.f32 %v6699_v62, %v3073_v8  ;;  %v2647_v60 = vsub.f32 1.5, %v2646_v6  ;;  %v7905_v31 = vadd.f32 1e-05, %v2311_v58  ;;  %v1226_v45 = vmul.f32 %v7730_v28, %v1225_v51 }
 0x34e   :  { %v7908_v63 = vadd.f32 1e-05, %v2312_v46  ;;  %v3204_v43 = vadd.f32 %v6715_v27, %v3139_v30  ;;  %v2638_v18 = vmul.f32 %v7809_v49, %v2637_v0  ;;  %vm2640_vm15 = vweird.f32 %v7809_v49 }
 0x34f   :  { %4072 = vmatmul.bf16.gmra.mxu1 %v3952_v4  ;;  %v7896_v3 = vpop.eup %4768  ;;  %v7924_v20 = vadd.f32 1e-05, %v725_v1  ;;  %v3765_v15 = vmul.f32 %v3701_v48, %v3636_v44  ;;  %v3203_v19 = vadd.f32 %v6715_v27, %v3138_v35  ;;  %vm2650_vm1 = vweird.f32 %v7823_v7  ;;  %vm7934_vm2 = vmor %vm2639_vm7, %vm2640_vm15 }
 0x350   :  { %639 = vadd.xlane.f32.xlu0 %v638_v59  ;;  %v7903_v40 = vpop.eup %4770  ;;  %v2664_v16 = vmul.f32 %v7896_v3, %v7851_v36  ;;  %4772 = vrsqrt.f32 %v7905_v31  ;;  %v1230_v33 = vsel %vm7913_vm14, %v7730_v28, %v1226_v45  ;;  %vm2649_vm4 = vweird.f32 %v7773_v9 }
 0x351   :  { %v3493_v17 = vpop.f32.mrf.mxu0  ;;  %v2654_v24 = vmul.f32 %v7903_v40, %v7863_v14  ;;  %4774 = vrsqrt.f32 %v7908_v63  ;;  %v2642_v39 = vsel %vm7934_vm2, %v7809_v49, %v2638_v18  ;;  %vm7947_vm3 = vmor %vm2649_vm4, %vm2650_vm1  ;;  %v3830_v9 = vadd.f32 %v7439_v21, %v3765_v15 }
 0x352   :  { %v3637_v12 = vmax.f32 %v3493_v17, 0.0  ;;  %v2648_v17 = vmul.f32 %v7823_v7, %v2647_v60  ;;  %v2665_v44 = vmul.f32 %v7896_v3, %v2664_v16  ;;  %4776 = vrsqrt.f32 %v7924_v20 }
 0x353   :  { %v2655_v59 = vmul.f32 %v7903_v40, %v2654_v24  ;;  %v1492_v6 = vmul.f32 %v1230_v33, %v6899_v57  ;;  %v3075_v51 = vmul.f32 %v2642_v39, %v7173_v38  ;;  %vm2660_vm5 = vweird.f32 %v7903_v40 }
 0x354   :  { %v3702_v42 = vmul.f32 %v7404_v56, %v3637_v12  ;;  %v2652_v49 = vsel %vm7947_vm3, %v7823_v7, %v2648_v17  ;;  %v2666_v1 = vmul.f32 0.5, %v2665_v44  ;;  %vm2670_vm6 = vweird.f32 %v7896_v3 }
 0x355   :  { %v3076_v57 = vmul.f32 %v2652_v49, %v6987_v13  ;;  %v2656_v35 = vmul.f32 0.5, %v2655_v59  ;;  %v1557_v38 = vmul.f32 %v5487_v34, %v1492_v6  ;;  %v4978_v39 = vmov 0.0  }
 0x356   :  { %v3766_v55 = vmul.f32 %v3702_v42, %v3637_v12  ;;  %v3257_v12 = vpack.c.bf16 %v3204_v43, %v3203_v19  ;;  %v7963_v0 = vpop.eup %4772  ;;  %v3140_v43 = vmul.f32 %v6699_v62, %v3075_v51  ;;  %3281 = vst.msk [vmem:[#allocation2] sm:$0xff] %vm99_vm0, %v4978_v39  ;;  %vm2669_vm9 = vweird.f32 %v7851_v36 }
 0x357   :  { %v7967_v60 = vpop.eup %4774  ;;  %v2657_v18 = vsub.f32 1.5, %v2656_v35  ;;  %v1622_v17 = vadd.f32 %v5494_v2, %v1557_v38  ;;  %3282 = vst.msk [vmem:[#allocation2 + $0x8] sm:$0xff] %vm99_vm0, %v4978_v39  ;;  %vm8026_vm10 = vmor %vm2669_vm9, %vm2670_vm6  ;;  %vm2659_vm11 = vweird.f32 %v7863_v14  ;;  %vm2679_vm12 = vweird.f32 %v7905_v31 }
 0x358   :  { %v3831_v8 = vadd.f32 %v7439_v21, %v3766_v55  ;;  %v7973_v45 = vpop.eup %4776  ;;  %v2674_v55 = vmul.f32 %v7963_v0, %v7905_v31  ;;  %v2684_v16 = vmul.f32 %v7967_v60, %v7908_v63  ;;  %v3205_v4 = vadd.f32 %v6715_v27, %v3140_v43  ;;  %3283 = vst.msk [vmem:[#allocation2 + $0x10] sm:$0xff] %vm99_vm0, %v4978_v39  ;;  %vm8043_vm8 = vmor %vm2659_vm11, %vm2660_vm5 }
 0x359   :  { %4557 = vmatmul.msk.bf16.gmra.mxu0 %vm99_vm0, %v3257_v12  ;;  %v1232_v24 = vmul.f32 %v7973_v45, %v7924_v20  ;;  %v2658_v6 = vmul.f32 %v7903_v40, %v2657_v18  ;;  %3284 = vst.msk [vmem:[#allocation2 + $0x18] sm:$0xff] %vm99_vm0, %v4978_v39  ;;  %vm2680_vm13 = vweird.f32 %v7963_v0  ;;  %vm2690_vm14 = vweird.f32 %v7967_v60 }
 0x35a   :  { %v3953_v46 = vpack.c.bf16 %v3831_v8, %v3830_v9  ;;  %v2675_v33 = vmul.f32 %v7963_v0, %v2674_v55  ;;  %v2685_v49 = vmul.f32 %v7967_v60, %v2684_v16  ;;  %3285 = vst.msk [vmem:[#allocation2 + $0x20] sm:$0xff] %vm99_vm0, %v4978_v39  ;;  %vm1237_vm15 = vweird.f32 %v7924_v20  ;;  %vm8127_vm7 = vmor %vm2679_vm12, %vm2680_vm13 }
 0x35b   :  { %v622_v26 = vpop.xlane.xlu0 %621  ;;  %3286 = vst.msk [vmem:[#allocation2 + $0x28] sm:$0xff] %vm99_vm0, %v4978_v39  ;;  %vm1238_vm1 = vweird.f32 %v7973_v45  ;;  %vm2689_vm4 = vweird.f32 %v7908_v63 }
 0x35c   :  { %v726_v25 = vmul.f32 %v622_v26, %v5180_v54  ;;  %v2667_v26 = vsub.f32 1.5, %v2666_v1  ;;  %v4932_v1 = vld [vmem:[%s10071_s0 + $0x198] sm:$0xff]  ;;  %v2676_v55 = vmul.f32 0.5, %v2675_v33  ;;  %3287 = vst.msk [vmem:[#allocation2 + $0x30] sm:$0xff] %vm99_vm0, %v4978_v39  ;;  %v2686_v16 = vmul.f32 0.5, %v2685_v49  ;;  %vm8143_vm3 = vmor %vm1237_vm15, %vm1238_vm1 }
 0x35d   :  { %3288 = vst.msk [vmem:[#allocation2 + $0x38] sm:$0xff] %vm99_vm0, %v4978_v39  ;;  %vm8153_vm5 = vmor %vm2689_vm4, %vm2690_vm14 }
 0x35e   :  { %v7938_v50 = vadd.f32 1e-05, %v726_v25  ;;  %v3141_v25 = vmul.f32 %v6699_v62, %v3076_v57  ;;  %v2668_v44 = vmul.f32 %v7896_v3, %v2667_v26  ;;  %v4933_v57 = vld [vmem:[%s10071_s0 + $0x148] sm:$0xff]  ;;  %3289 = vst.msk [vmem:[#allocation2 + $0x40] sm:$0xff] %vm99_vm0, %v4978_v39 }
 0x35f   :  { %4077 = vmatmul.bf16.gmra.mxu1 %v3953_v46  ;;  %3290 = vst.msk [vmem:[#allocation2 + $0x48] sm:$0xff] %vm99_vm0, %v4978_v39 }
 0x360   :  { %4778 = vrsqrt.f32 %v7938_v50  ;;  %v3206_v46 = vadd.f32 %v6715_v27, %v3141_v25  ;;  %v2672_v43 = vsel %vm8026_vm10, %v7896_v3, %v2668_v44  ;;  %v2662_v3 = vsel %vm8043_vm8, %v7903_v40, %v2658_v6  ;;  %3291 = vst.msk [vmem:[#allocation2 + $0x50] sm:$0xff] %vm99_vm0, %v4978_v39 }
 0x361   :  { %v2677_v40 = vsub.f32 1.5, %v2676_v55  ;;  %v2687_v6 = vsub.f32 1.5, %v2686_v16  ;;  %3292 = vst.msk [vmem:[#allocation2 + $0x58] sm:$0xff] %vm99_vm0, %v4978_v39  ;;  %vm1247_vm6 = vweird.f32 %v7938_v50 }
 0x362   :  { %v3258_v36 = vpack.c.bf16 %v3206_v46, %v3205_v4  ;;  %3293 = vst.msk [vmem:[#allocation2 + $0x60] sm:$0xff] %vm99_vm0, %v4978_v39 }
 0x363   :  { %v2179_v58 = vpop.xlane.xlu2 %2178  ;;  %v1813_v30 = vpop.xlane.xlu0 %1812  ;;  %v2678_v46 = vmul.f32 %v7963_v0, %v2677_v40  ;;  %3294 = vst.msk [vmem:[#allocation2 + $0x68] sm:$0xff] %vm99_vm0, %v4978_v39 }
 0x364   :  { %v7961_v42 = vpop.xlane.xlu1 %624  ;;  %v1935_v48 = vmul.f32 %v1813_v30, %v5180_v54  ;;  %v2313_v51 = vmul.f32 %v2179_v58, %v5180_v54  ;;  %v1233_v30 = vmul.f32 %v7973_v45, %v1232_v24  ;;  %v8020_v58 = vadd.f32 %v4933_v57, %v1622_v17  ;;  %3295 = vst.msk [vmem:[#allocation2 + $0x70] sm:$0xff] %vm99_vm0, %v4978_v39 }
 0x365   :  { %v3078_v17 = vmul.f32 %v2672_v43, %v7227_v10  ;;  %v3077_v10 = vmul.f32 %v2662_v3, %v7127_v11  ;;  %3296 = vst.msk [vmem:[#allocation2 + $0x78] sm:$0xff] %vm99_vm0, %v4978_v39  ;;  %v2682_v40 = vsel %vm8127_vm7, %v7963_v0, %v2678_v46 }
 0x366   :  { %v7970_v7 = vsub.f32 %v7325_v61, %v1935_v48  ;;  %v7980_v41 = vpop.eup %4778  ;;  %10425 = vst [vmem:[#allocation56_spill] sm:$0xff] %v8020_v58  ;;  %v8047_v18 = vadd.f32 1e-05, %v2313_v51  ;;  %v1234_v25 = vmul.f32 0.5, %v1233_v30 }
 0x367   :  { %v1242_v28 = vmul.f32 %v7980_v41, %v7938_v50  ;;  %v3143_v51 = vmul.f32 %v6699_v62, %v3078_v17  ;;  %v3142_v55 = vmul.f32 %v6699_v62, %v3077_v10  ;;  %3297 = vst.msk [vmem:[#allocation2 + $0x80] sm:$0xff] %vm99_vm0, %v4978_v39  ;;  %vm1248_vm2 = vweird.f32 %v7980_v41 }
 0x368   :  { %v2063_v13 = vmul.f32 %v7970_v7, %v7970_v7  ;;  %v1235_v11 = vsub.f32 1.5, %v1234_v25  ;;  %3298 = vst.msk [vmem:[#allocation2 + $0x88] sm:$0xff] %vm99_vm0, %v4978_v39  ;;  %vm8170_vm9 = vmor %vm1247_vm6, %vm1248_vm2  ;;  %vm2699_vm13 = vweird.f32 %v8047_v18 }
 0x369   :  { %v1243_v26 = vmul.f32 %v7980_v41, %v1242_v28  ;;  %4558 = vmatmul.msk.bf16.gmra.mxu0 %vm99_vm0, %v3258_v36  ;;  %v727_v28 = vmul.f32 %v7961_v42, %v5180_v54  ;;  %v4934_v42 = vld [vmem:[%s10071_s0 + $0x190] sm:$0xff]  ;;  %v3208_v25 = vadd.f32 %v6715_v27, %v3143_v51  ;;  %3299 = vst.msk [vmem:[#allocation2 + $0x90] sm:$0xff] %vm99_vm0, %v4978_v39 }
 0x36a   :  { %v2195_v19 = vsel %vm99_vm0, %v2063_v13, 0.0  ;;  %v1236_v3 = vmul.f32 %v7973_v45, %v1235_v11  ;;  %3300 = vst.msk [vmem:[#allocation2 + $0x98] sm:$0xff] %vm99_vm0, %v4978_v39  ;;  %v3079_v11 = vmul.f32 %v2682_v40, %v7084_v5  ;;  %v4935_v40 = vld [vmem:[%s10071_s0 + $0x158] sm:$0xff] }
 0x36b   :  { %v7987_v15 = vpop.xlane.xlu2 %627  ;;  %2196 = vadd.xlane.f32.xlu0 %v2195_v19  ;;  %v2182_v8 = vpop.xlane.xlu0 %2181  ;;  %v1832_v19 = vsel %vm99_vm0, %v8020_v58, 0.0  ;;  %v8101_v36 = vadd.f32 1e-05, %v727_v28  ;;  %3301 = vst.msk [vmem:[#allocation2 + $0xa0] sm:$0xff] %vm99_vm0, %v4978_v39 }
 0x36c   :  { %v255_v12 = vpop.xlane.xlu1 %254  ;;  %v2314_v9 = vmul.f32 %v2182_v8, %v5180_v54  ;;  %v1244_v8 = vmul.f32 0.5, %v1243_v26  ;;  %v2688_v26 = vmul.f32 %v7967_v60, %v2687_v6  ;;  %v1240_v0 = vsel %vm8143_vm3, %v7973_v45, %v1236_v3  ;;  %3302 = vst.msk [vmem:[#allocation2 + $0xa8] sm:$0xff] %vm99_vm0, %v4978_v39 }
 0x36d   :  { %v350_v59 = vmul.f32 %v5180_v54, %v255_v12  ;;  %3303 = vst.msk [vmem:[#allocation2 + $0xb0] sm:$0xff] %vm99_vm0, %v4978_v39  ;;  %v3144_v3 = vmul.f32 %v6699_v62, %v3079_v11  ;;  %vm1257_vm15 = vweird.f32 %v8101_v36 }
 0x36e   :  { %v8030_v38 = vadd.f32 1e-05, %v2314_v9  ;;  %v90_v9 = vld [vmem:[%s10071_s0 + $0x1c0] sm:$0xff]  ;;  %v1245_v30 = vsub.f32 1.5, %v1244_v8  ;;  %v2692_v8 = vsel %vm8153_vm5, %v7967_v60, %v2688_v26  ;;  %3304 = vst.msk [vmem:[#allocation2 + $0xb8] sm:$0xff] %vm99_vm0, %v4978_v39 }
 0x36f   :  { %v8015_v48 = vsub.f32 %v4932_v1, %v350_v59  ;;  %v268_v57 = vsel %vm99_vm0, %v90_v9, 0.0  ;;  %v3884_v9 = vld [vmem:[#allocation2] sm:$0xff]  ;;  %v3080_v45 = vmul.f32 %v2692_v8, %v7182_v53  ;;  %3305 = vst.msk [vmem:[#allocation2 + $0xc0] sm:$0xff] %vm99_vm0, %v4978_v39 }
 0x370   :  { %4780 = vrsqrt.f32 %v8030_v38  ;;  %v1246_v17 = vmul.f32 %v7980_v41, %v1245_v30  ;;  %v10438_v30 = vld [vmem:[#allocation21_spill] sm:$0xff]  ;;  %3306 = vst.msk [vmem:[#allocation2 + $0xc8] sm:$0xff] %vm99_vm0, %v4978_v39  ;;  %vm2709_vm8 = vweird.f32 %v8030_v38 }
 0x371   :  { %v478_v14 = vmul.f32 %v8015_v48, %v8015_v48  ;;  %4782 = vrsqrt.f32 %v8047_v18  ;;  %3307 = vst.msk [vmem:[#allocation2 + $0xd0] sm:$0xff] %vm99_vm0, %v4978_v39 }
 0x372   :  { %4784 = vrsqrt.f32 %v8101_v36  ;;  %v1250_v60 = vsel %vm8170_vm9, %v7980_v41, %v1246_v17  ;;  %v728_v41 = vmul.f32 %v7987_v15, %v5180_v54  ;;  %3308 = vst.msk [vmem:[#allocation2 + $0xd8] sm:$0xff] %vm99_vm0, %v4978_v39  ;;  %v10440_v17 = vld [vmem:[#allocation50_spill] sm:$0xff] }
 0x373   :  { %v1819_v24 = vpop.xlane.xlu2 %1818  ;;  %v644_v4 = vsel %vm99_vm0, %v478_v14, 0.0  ;;  %1833 = vadd.xlane.f32.xlu0 %v1832_v19  ;;  %v252_v12 = vpop.xlane.xlu0 %251  ;;  %3309 = vst.msk [vmem:[#allocation2 + $0xe0] sm:$0xff] %vm99_vm0, %v4978_v39 }
 0x374   :  { %v1937_v33 = vmul.f32 %v1819_v24, %v5180_v54  ;;  %645 = vadd.xlane.f32.xlu2 %v644_v4  ;;  %v349_v44 = vmul.f32 %v5180_v54, %v252_v12  ;;  %v2185_v1 = vpop.xlane.xlu1 %2184  ;;  %v3207_v12 = vadd.f32 %v6715_v27, %v3142_v55  ;;  %3310 = vst.msk [vmem:[#allocation2 + $0xe8] sm:$0xff] %vm99_vm0, %v4978_v39 }
 0x375   :  { %v2315_v16 = vmul.f32 %v2185_v1, %v5180_v54  ;;  %v1493_v1 = vmul.f32 %v1240_v0, %v10438_v30  ;;  %3311 = vst.msk [vmem:[#allocation2 + $0xf0] sm:$0xff] %vm99_vm0, %v4978_v39 }
 0x376   :  { %v8075_v59 = vsub.f32 %v7434_v23, %v1937_v33  ;;  %v8088_v49 = vsub.f32 %v4934_v42, %v349_v44  ;;  %v8098_v35 = vpop.eup %4780  ;;  %v3259_v10 = vpack.c.bf16 %v3208_v25, %v3207_v12  ;;  %v3145_v25 = vmul.f32 %v6699_v62, %v3080_v45  ;;  %3312 = vst.msk [vmem:[#allocation2 + $0xf8] sm:$0xff] %vm99_vm0, %v4978_v39  ;;  %v10442_v45 = vld [vmem:[#allocation33_spill] sm:$0xff] }
 0x377   :  { %v8115_v14 = vpop.eup %4782  ;;  %v2704_v33 = vmul.f32 %v8098_v35, %v8030_v38  ;;  %v8174_v50 = vadd.f32 1e-05, %v2315_v16  ;;  %vm2710_vm11 = vweird.f32 %v8098_v35  ;;  %3313 = vst.msk [vmem:[#allocation2 + $0x100] sm:$0xff] %vm99_vm0, %v4978_v39 }
 0x378   :  { %v2065_v43 = vmul.f32 %v8075_v59, %v8075_v59  ;;  %v477_v13 = vmul.f32 %v8088_v49, %v8088_v49  ;;  %v2694_v20 = vmul.f32 %v8115_v14, %v8047_v18  ;;  %v8197_v46 = vpop.eup %4784  ;;  %vm2700_vm10 = vweird.f32 %v8115_v14  ;;  %3314 = vst.msk [vmem:[#allocation2 + $0x108] sm:$0xff] %vm99_vm0, %v4978_v39  ;;  %vm8273_vm12 = vmor %vm2709_vm8, %vm2710_vm11  ;;  %v4936_v18 = vld [vmem:[%s10071_s0 + $0x150] sm:$0xff] }
 0x379   :  { %v2705_v28 = vmul.f32 %v8098_v35, %v2704_v33  ;;  %4559 = vmatmul.msk.bf16.gmra.mxu0 %vm99_vm0, %v3259_v10  ;;  %4786 = vrsqrt.f32 %v8174_v50  ;;  %v1252_v26 = vmul.f32 %v8197_v46, %v8101_v36  ;;  %v3210_v44 = vadd.f32 %v6715_v27, %v3145_v25  ;;  %3315 = vst.msk [vmem:[#allocation2 + $0x110] sm:$0xff] %vm99_vm0, %v4978_v39  ;;  %vm8293_vm14 = vmor %vm2699_vm13, %vm2700_vm10 }
 0x37a   :  { %v2201_v24 = vsel %vm99_vm0, %v2065_v43, 0.0  ;;  %v641_v4 = vsel %vm99_vm0, %v477_v13, 0.0  ;;  %v2695_v42 = vmul.f32 %v8115_v14, %v2694_v20  ;;  %v8210_v13 = vadd.f32 1e-05, %v728_v41  ;;  %3316 = vst.msk [vmem:[#allocation2 + $0x118] sm:$0xff] %vm99_vm0, %v4978_v39 }
 0x37b   :  { %269 = vadd.xlane.f32.xlu0 %v268_v57  ;;  %642 = vadd.xlane.f32.xlu1 %v641_v4  ;;  %v1822_v6 = vpop.xlane.xlu0 %1821  ;;  %v10439_v57 = vld [vmem:[#allocation40_spill] sm:$0xff]  ;;  %v2706_v53 = vmul.f32 0.5, %v2705_v28  ;;  %v1253_v63 = vmul.f32 %v8197_v46, %v1252_v26  ;;  %v3209_v20 = vadd.f32 %v6715_v27, %v3144_v3  ;;  %3317 = vst.msk [vmem:[#allocation2 + $0x120] sm:$0xff] %vm99_vm0, %v4978_v39  ;;  %vm1258_vm1 = vweird.f32 %v8197_v46 }
 0x37c   :  { %2202 = vadd.xlane.f32.xlu2 %v2201_v24  ;;  %v1494_v55 = vmul.f32 %v1250_v60, %v10439_v57  ;;  %v1938_v43 = vmul.f32 %v1822_v6, %v5180_v54  ;;  %v2696_v15 = vmul.f32 0.5, %v2695_v42  ;;  %v1558_v24 = vmul.f32 %v5487_v34, %v1493_v1  ;;  %v8254_v6 = vld [vmem:[%s10071_s0 + $0x1c8] sm:$0xff]  ;;  %3318 = vst.msk [vmem:[#allocation2 + $0x128] sm:$0xff] %vm99_vm0, %v4978_v39  ;;  %vm8331_vm7 = vmor %vm1257_vm15, %vm1258_vm1 }
 0x37d   :  { %v2707_v19 = vsub.f32 1.5, %v2706_v53  ;;  %4788 = vrsqrt.f32 %v8210_v13  ;;  %v271_v30 = vsel %vm99_vm0, %v8254_v6, 0.0  ;;  %v1254_v57 = vmul.f32 0.5, %v1253_v63  ;;  %3319 = vst.msk [vmem:[#allocation2 + $0x130] sm:$0xff] %vm99_vm0, %v4978_v39 }
 0x37e   :  { %v1559_v16 = vmul.f32 %v5487_v34, %v1494_v55  ;;  %v8221_v33 = vsub.f32 %v10440_v17, %v1938_v43  ;;  %v2697_v12 = vsub.f32 1.5, %v2696_v15  ;;  %v1623_v10 = vadd.f32 %v5494_v2, %v1558_v24  ;;  %3320 = vst.msk [vmem:[#allocation2 + $0x138] sm:$0xff] %vm99_vm0, %v4978_v39 }
 0x37f   :  { %v8225_v4 = vpop.eup %4786  ;;  %v2708_v0 = vmul.f32 %v8098_v35, %v2707_v19  ;;  %v3260_v38 = vpack.c.bf16 %v3210_v44, %v3209_v20  ;;  %v1255_v25 = vsub.f32 1.5, %v1254_v57  ;;  %v10448_v19 = vld [vmem:[#allocation25_spill] sm:$0xff]  ;;  %3321 = vst.msk [vmem:[#allocation2 + $0x140] sm:$0xff] %vm99_vm0, %v4978_v39  ;;  %vm1267_vm2 = vweird.f32 %v8210_v13 }
 0x380   :  { %v1624_v31 = vadd.f32 %v5494_v2, %v1559_v16  ;;  %v2714_v60 = vmul.f32 %v8225_v4, %v8174_v50  ;;  %v2066_v11 = vmul.f32 %v8221_v33, %v8221_v33  ;;  %v2698_v1 = vmul.f32 %v8115_v14, %v2697_v12  ;;  %3322 = vst.msk [vmem:[#allocation2 + $0x148] sm:$0xff] %vm99_vm0, %v4978_v39 }
 0x381   :  { %v4053_v51 = vpop.f32.mrf.mxu1  ;;  %v2712_v15 = vsel %vm8273_vm12, %v8098_v35, %v2708_v0  ;;  %v8305_v35 = vadd.f32 %v4936_v18, %v1623_v10  ;;  %3323 = vst.msk [vmem:[#allocation2 + $0x150] sm:$0xff] %vm99_vm0, %v4978_v39  ;;  %vm2720_vm4 = vweird.f32 %v8225_v4  ;;  %vm2719_vm5 = vweird.f32 %v8174_v50 }
 0x382   :  { %v4213_v5 = vadd.f32 %v4053_v51, %v3884_v9  ;;  %v8241_v8 = vadd.f32 %v4935_v40, %v1624_v31  ;;  %v2204_v55 = vsel %vm99_vm0, %v2066_v11, 0.0  ;;  %v2715_v3 = vmul.f32 %v8225_v4, %v2714_v60  ;;  %v8341_v60 = vld [vmem:[%s10071_s0 + $0x1d0] sm:$0xff]  ;;  %3324 = vst.msk [vmem:[#allocation2 + $0x158] sm:$0xff] %vm99_vm0, %v4978_v39  ;;  %vm8394_vm6 = vmor %vm2719_vm5, %vm2720_vm4 }
 0x383   :  { %v2188_v9 = vpop.xlane.xlu2 %2187  ;;  %272 = vadd.xlane.f32.xlu1 %v271_v30  ;;  %2205 = vadd.xlane.f32.xlu0 %v2204_v55  ;;  %v8283_v43 = vpop.eup %4788  ;;  %10447 = vst [vmem:[#allocation40_spill] sm:$0xff] %v8305_v35  ;;  %v2702_v16 = vsel %vm8293_vm14, %v8115_v14, %v2698_v1  ;;  %v3082_v31 = vmul.f32 %v2712_v15, %v10448_v19  ;;  %v10449_v14 = vld [vmem:[#allocation42_spill] sm:$0xff]  ;;  %v1835_v20 = vsel %vm99_vm0, %v8305_v35, 0.0 }
 0x384   :  { %4277 = vst.msk [vmem:[#allocation2] sm:$0xff] %vm99_vm0, %v4213_v5  ;;  %v2316_v41 = vmul.f32 %v2188_v9, %v5180_v54  ;;  %v1838_v51 = vsel %vm99_vm0, %v8241_v8, 0.0  ;;  %v1262_v24 = vmul.f32 %v8283_v43, %v8210_v13  ;;  %v3081_v12 = vmul.f32 %v2702_v16, %v10449_v14  ;;  %v4937_v5 = vld [vmem:[%s10071_s0 + $0x1a0] sm:$0xff] }
 0x385   :  { %10441 = vst [vmem:[#allocation21_spill] sm:$0xff] %v8241_v8  ;;  %1839 = vadd.xlane.f32.xlu2 %v1838_v51  ;;  %v2716_v63 = vmul.f32 0.5, %v2715_v3  ;;  %v1256_v40 = vmul.f32 %v8197_v46, %v1255_v25  ;;  %v3147_v9 = vmul.f32 %v6699_v62, %v3082_v31  ;;  %v10452_v25 = vld [vmem:[#allocation17_spill] sm:$0xff]  ;;  %vm1268_vm10 = vweird.f32 %v8283_v43 }
 0x386   :  { %v8281_v53 = vadd.f32 1e-05, %v2316_v41  ;;  %v1263_v10 = vmul.f32 %v8283_v43, %v1262_v24  ;;  %v274_v41 = vsel %vm99_vm0, %v8341_v60, 0.0  ;;  %3325 = vst.msk [vmem:[#allocation2 + $0x160] sm:$0xff] %vm99_vm0, %v4978_v39  ;;  %v3146_v1 = vmul.f32 %v6699_v62, %v3081_v12  ;;  %vm8448_vm8 = vmor %vm1267_vm2, %vm1268_vm10 }
 0x387   :  { %v2717_v30 = vsub.f32 1.5, %v2716_v63  ;;  %v1260_v57 = vsel %vm8331_vm7, %v8197_v46, %v1256_v40  ;;  %3326 = vst.msk [vmem:[#allocation2 + $0x168] sm:$0xff] %vm99_vm0, %v4978_v39  ;;  %v3212_v46 = vadd.f32 %v6715_v27, %v3147_v9 }
 0x388   :  { %4790 = vrsqrt.f32 %v8281_v53  ;;  %v1264_v26 = vmul.f32 0.5, %v1263_v10  ;;  %3327 = vst.msk [vmem:[#allocation2 + $0x170] sm:$0xff] %vm99_vm0, %v4978_v39  ;;  %v1495_v24 = vmul.f32 %v1260_v57, %v10452_v25  ;;  %v3211_v31 = vadd.f32 %v6715_v27, %v3146_v1 }
 0x389   :  { %4560 = vmatmul.msk.bf16.gmra.mxu0 %vm99_vm0, %v3260_v38  ;;  %3328 = vst.msk [vmem:[#allocation2 + $0x178] sm:$0xff] %vm99_vm0, %v4978_v39  ;;  %v2718_v19 = vmul.f32 %v8225_v4, %v2717_v30  ;;  %vm2729_vm9 = vweird.f32 %v8281_v53 }
 0x38a   :  { %3329 = vst.msk [vmem:[#allocation2 + $0x180] sm:$0xff] %vm99_vm0, %v4978_v39  ;;  %v1560_v1 = vmul.f32 %v5487_v34, %v1495_v24 }
 0x38b   :  { %v4341_v28 = vld [vmem:[#allocation2] sm:$0xff]  ;;  %1836 = vadd.xlane.f32.xlu1 %v1835_v20  ;;  %v258_v0 = vpop.xlane.xlu2 %257  ;;  %3330 = vst.msk [vmem:[#allocation2 + $0x188] sm:$0xff] %vm99_vm0, %v4978_v39  ;;  %v1265_v20 = vsub.f32 1.5, %v1264_v26  ;;  %v4938_v26 = vld [vmem:[%s10071_s0 + $0x1a8] sm:$0xff] }
 0x38c   :  { %v4405_v42 = vadd.f32 %v4341_v28, %v10442_v45  ;;  %v631_v28 = vpop.xlane.xlu0 %630  ;;  %v8348_v45 = vpop.f32.mrf.mxu1  ;;  %3331 = vst.msk [vmem:[#allocation2 + $0x190] sm:$0xff] %vm99_vm0, %v4978_v39 }
 0x38d   :  { %v3496_v51 = vpop.f32.mrf.mxu0  ;;  %275 = vadd.xlane.f32.xlu2 %v274_v41  ;;  %v729_v3 = vmul.f32 %v631_v28, %v5180_v54  ;;  %3332 = vst.msk [vmem:[#allocation2 + $0x198] sm:$0xff] %vm99_vm0, %v4978_v39  ;;  %v1625_v28 = vadd.f32 %v5494_v2, %v1560_v1  ;;  %v3887_v1 = vld [vmem:[#allocation2 + $0x18] sm:$0xff] }
 0x38e   :  { %4469 = vst.msk [vmem:[%s10076_s5] sm:$0xff] %vm99_vm0, %v4405_v42  ;;  %v8329_v36 = vpop.eup %4790  ;;  %v351_v42 = vmul.f32 %v5180_v54, %v258_v0  ;;  %v3638_v15 = vmax.f32 %v3496_v51, 0.0  ;;  %v3261_v0 = vpack.c.bf16 %v3212_v46, %v3211_v31  ;;  %v2722_v51 = vsel %vm8394_vm6, %v8225_v4, %v2718_v19  ;;  %v10456_v46 = vld [vmem:[#allocation48_spill] sm:$0xff] }
 0x38f   :  { %v2724_v11 = vmul.f32 %v8329_v36, %v8281_v53  ;;  %vm2730_vm3 = vweird.f32 %v8329_v36  ;;  %v8390_v40 = vadd.f32 1e-05, %v729_v3  ;;  %3333 = vst.msk [vmem:[#allocation2 + $0x1a0] sm:$0xff] %vm99_vm0, %v4978_v39  ;;  %v8416_v53 = vld [vmem:[%s10071_s0 + $0x1d8] sm:$0xff] }
 0x390   :  { %v8365_v38 = vsub.f32 %v4937_v5, %v351_v42  ;;  %v3703_v12 = vmul.f32 %v7404_v56, %v3638_v15  ;;  %vm2731_vm11 = vmor %vm2729_vm9, %vm2730_vm3  ;;  %3334 = vst.msk [vmem:[#allocation2 + $0x1a8] sm:$0xff] %vm99_vm0, %v4978_v39  ;;  %v277_v24 = vsel %vm99_vm0, %v8416_v53, 0.0 }
 0x391   :  { %v2725_v55 = vmul.f32 %v8329_v36, %v2724_v11  ;;  %3335 = vst.msk [vmem:[#allocation2 + $0x1b0] sm:$0xff] %vm99_vm0, %v4978_v39  ;;  %4792 = vrsqrt.f32 %v8390_v40  ;;  %vm1277_vm12 = vweird.f32 %v8390_v40 }
 0x392   :  { %v479_v16 = vmul.f32 %v8365_v38, %v8365_v38  ;;  %v3767_v57 = vmul.f32 %v3703_v12, %v3638_v15  ;;  %3336 = vst.msk [vmem:[#allocation2 + $0x1b8] sm:$0xff] %vm99_vm0, %v4978_v39 }
 0x393   :  { %v2726_v18 = vmul.f32 0.5, %v2725_v55  ;;  %v1828_v44 = vpop.xlane.xlu2 %1827  ;;  %v10455_v55 = vld [vmem:[#allocation43_spill] sm:$0xff]  ;;  %3337 = vst.msk [vmem:[#allocation2 + $0x1c0] sm:$0xff] %vm99_vm0, %v4978_v39 }
 0x394   :  { %v647_v63 = vsel %vm99_vm0, %v479_v16, 0.0  ;;  %v261_v10 = vpop.xlane.xlu0 %260  ;;  %v1940_v9 = vmul.f32 %v1828_v44, %v5180_v54  ;;  %3338 = vst.msk [vmem:[#allocation2 + $0x1c8] sm:$0xff] %vm99_vm0, %v4978_v39  ;;  %v3885_v44 = vld [vmem:[#allocation2 + $0x8] sm:$0xff] }
 0x395   :  { %v2727_v14 = vsub.f32 1.5, %v2726_v18  ;;  %648 = vadd.xlane.f32.xlu0 %v647_v63  ;;  %v352_v11 = vmul.f32 %v5180_v54, %v261_v10  ;;  %v3498_v42 = vpop.f32.mrf.mxu0  ;;  %3339 = vst.msk [vmem:[#allocation2 + $0x1d0] sm:$0xff] %vm99_vm0, %v4978_v39 }
 0x396   :  { %v3639_v30 = vmax.f32 %v3498_v42, 0.0  ;;  %v8423_v5 = vsub.f32 %v10455_v55, %v1940_v9  ;;  %3340 = vst.msk [vmem:[#allocation2 + $0x1d8] sm:$0xff] %vm99_vm0, %v4978_v39 }
 0x397   :  { %v2728_v50 = vmul.f32 %v8329_v36, %v2727_v14  ;;  %v8428_v3 = vsub.f32 %v4938_v26, %v352_v11  ;;  %v10459_v14 = vld [vmem:[#allocation28_spill] sm:$0xff]  ;;  %3341 = vst.msk [vmem:[#allocation2 + $0x1e0] sm:$0xff] %vm99_vm0, %v4978_v39  ;;  %v4214_v26 = vadd.f32 %v8348_v45, %v3885_v44 }
 0x398   :  { %v3704_v16 = vmul.f32 %v7404_v56, %v3639_v30  ;;  %v2068_v25 = vmul.f32 %v8423_v5, %v8423_v5  ;;  %v3083_v12 = vmul.f32 %v2722_v51, %v10459_v14  ;;  %3342 = vst.msk [vmem:[#allocation2 + $0x1e8] sm:$0xff] %vm99_vm0, %v4978_v39 }
 0x399   :  { %4561 = vmatmul.msk.bf16.gmra.mxu0 %vm99_vm0, %v3261_v0  ;;  %v2732_v4 = vsel %vm2731_vm11, %v8329_v36, %v2728_v50  ;;  %v1266_v36 = vmul.f32 %v8283_v43, %v1265_v20  ;;  %v480_v19 = vmul.f32 %v8428_v3, %v8428_v3  ;;  %v3832_v0 = vadd.f32 %v7439_v21, %v3767_v57  ;;  %v3886_v50 = vld [vmem:[#allocation2 + $0x10] sm:$0xff]  ;;  %v8473_v57 = vpop.eup %4792 }
 0x39a   :  { %v3084_v18 = vmul.f32 %v2732_v4, %v10456_v46  ;;  %v3768_v63 = vmul.f32 %v3704_v16, %v3639_v30  ;;  %v2210_v10 = vsel %vm99_vm0, %v2068_v25, 0.0  ;;  %v4939_v16 = vld [vmem:[%s10071_s0 + $0x160] sm:$0xff]  ;;  %3343 = vst.msk [vmem:[#allocation2 + $0x1f0] sm:$0xff] %vm99_vm0, %v4978_v39  ;;  %vm1278_vm13 = vweird.f32 %v8473_v57 }
 0x39b   :  { %v4058_v41 = vpop.f32.mrf.mxu1  ;;  %v650_v13 = vsel %vm99_vm0, %v480_v19, 0.0  ;;  %2211 = vadd.xlane.f32.xlu2 %v2210_v10  ;;  %v1270_v51 = vsel %vm8448_vm8, %v8283_v43, %v1266_v36  ;;  %v8485_v36 = vadd.f32 %v4939_v16, %v1625_v28  ;;  %3344 = vst.msk [vmem:[#allocation2 + $0x1f8] sm:$0xff] %vm99_vm0, %v4978_v39  ;;  %v10462_v39 = vld [vmem:[#allocation51_spill] sm:$0xff]  ;;  %vm8556_vm1 = vmor %vm1277_vm12, %vm1278_vm13 }
 0x39c   :  { %v3833_v11 = vadd.f32 %v7439_v21, %v3768_v63  ;;  %v3149_v42 = vmul.f32 %v6699_v62, %v3084_v18  ;;  %651 = vadd.xlane.f32.xlu1 %v650_v13  ;;  %v3148_v18 = vmul.f32 %v6699_v62, %v3083_v12  ;;  %v4215_v43 = vadd.f32 %v4058_v41, %v3886_v50 }
 0x39d   :  { %278 = vadd.xlane.f32.xlu0 %v277_v24  ;;  %v3501_v30 = vpop.f32.mrf.mxu0  ;;  %10460 = vst [vmem:[#allocation33_spill] sm:$0xff] %v8485_v36  ;;  %v1272_v41 = vmul.f32 %v8473_v57, %v8390_v40  ;;  %v1841_v63 = vsel %vm99_vm0, %v8485_v36, 0.0 }
 0x39e   :  { %v634_v15 = vpop.xlane.xlu1 %633  ;;  %v3954_v46 = vpack.c.bf16 %v3833_v11, %v3832_v0  ;;  %v3214_v24 = vadd.f32 %v6715_v27, %v3149_v42  ;;  %v3640_v19 = vmax.f32 %v3501_v30, 0.0  ;;  %4278 = vst.msk [vmem:[#allocation2 + $0x8] sm:$0xff] %vm99_vm0, %v4214_v26  ;;  %v3213_v12 = vadd.f32 %v6715_v27, %v3148_v18 }
 0x39f   :  { %v730_v20 = vmul.f32 %v634_v15, %v5180_v54  ;;  %v10461_v15 = vld [vmem:[#allocation41_spill] sm:$0xff]  ;;  %4279 = vst.msk [vmem:[#allocation2 + $0x10] sm:$0xff] %vm99_vm0, %v4215_v43  ;;  %v1273_v0 = vmul.f32 %v8473_v57, %v1272_v41 }
 0x3a0   :  { %v1496_v25 = vmul.f32 %v1270_v51, %v10461_v15  ;;  %4082 = vmatmul.bf16.gmra.mxu1 %v3954_v46  ;;  %v3262_v10 = vpack.c.bf16 %v3214_v24, %v3213_v12  ;;  %v3705_v50 = vmul.f32 %v7404_v56, %v3640_v19  ;;  %v3888_v51 = vld [vmem:[#allocation2 + $0x20] sm:$0xff] }
 0x3a1   :  { %v8464_v9 = vadd.f32 1e-05, %v730_v20  ;;  %v1274_v15 = vmul.f32 0.5, %v1273_v0 }
 0x3a2   :  { %v1561_v13 = vmul.f32 %v5487_v34, %v1496_v25 }
 0x3a3   :  { %v4060_v4 = vpop.f32.mrf.mxu1  ;;  %4794 = vrsqrt.f32 %v8464_v9  ;;  %vm1287_vm14 = vweird.f32 %v8464_v9 }
 0x3a4   :  { %v4216_v45 = vadd.f32 %v4060_v4, %v3887_v1  ;;  %v1626_v43 = vadd.f32 %v5494_v2, %v1561_v13 }
 0x3a5   :  { %1842 = vadd.xlane.f32.xlu0 %v1841_v63  ;;  %v3503_v11 = vpop.f32.mrf.mxu0  ;;  %v4342_v16 = vld [vmem:[#allocation2 + $0x8] sm:$0xff] }
 0x3a6   :  { %v1825_v31 = vpop.xlane.xlu1 %1824  ;;  %4280 = vst.msk [vmem:[#allocation2 + $0x18] sm:$0xff] %vm99_vm0, %v4216_v45  ;;  %v3641_v42 = vmax.f32 %v3503_v11, 0.0  ;;  %v3769_v45 = vmul.f32 %v3705_v50, %v3640_v19  ;;  %v4343_v12 = vld [vmem:[#allocation2 + $0x10] sm:$0xff]  ;;  %v4940_v50 = vld [vmem:[%s10071_s0 + $0x168] sm:$0xff] }
 0x3a7   :  { %v1939_v14 = vmul.f32 %v1825_v31, %v5180_v54  ;;  %v10463_v31 = vld [vmem:[#allocation30_spill] sm:$0xff]  ;;  %v10465_v19 = vld [vmem:[#allocation32_spill] sm:$0xff] }
 0x3a8   :  { %v3706_v26 = vmul.f32 %v7404_v56, %v3641_v42 }
 0x3a9   :  { %v8501_v20 = vpop.eup %4794  ;;  %v8505_v44 = vsub.f32 %v10462_v39, %v1939_v14  ;;  %4562 = vmatmul.msk.bf16.gmra.mxu0 %vm99_vm0, %v3262_v10  ;;  %v4406_v14 = vadd.f32 %v4342_v16, %v10463_v31 }
 0x3aa   :  { %v1282_v28 = vmul.f32 %v8501_v20, %v8464_v9  ;;  %v3770_v63 = vmul.f32 %v3706_v26, %v3641_v42  ;;  %v8535_v42 = vadd.f32 %v4940_v50, %v1626_v43  ;;  %vm1288_vm15 = vweird.f32 %v8501_v20  ;;  %v4942_v50 = vld [vmem:[%s10071_s0 + $0x1b0] sm:$0xff] }
 0x3ab   :  { %v2067_v30 = vmul.f32 %v8505_v44, %v8505_v44  ;;  %v8516_v4 = vpop.xlane.xlu2 %636  ;;  %4470 = vst.msk [vmem:[%s10076_s5 + $0x8] sm:$0xff] %vm99_vm0, %v4406_v14  ;;  %vm8561_vm7 = vmor %vm1287_vm14, %vm1288_vm15  ;;  %v4941_v14 = vld [vmem:[%s10071_s0 + $0x1b8] sm:$0xff] }
 0x3ac   :  { %v1283_v1 = vmul.f32 %v8501_v20, %v1282_v28  ;;  %v4063_v46 = vpop.f32.mrf.mxu1  ;;  %v10464_v28 = vld [vmem:[#allocation7_spill] sm:$0xff]  ;;  %10466 = vst [vmem:[#allocation25_spill] sm:$0xff] %v8535_v42  ;;  %v3835_v26 = vadd.f32 %v7439_v21, %v3770_v63  ;;  %v1844_v40 = vsel %vm99_vm0, %v8535_v42, 0.0 }
 0x3ad   :  { %v2207_v18 = vsel %vm99_vm0, %v2067_v30, 0.0  ;;  %v4217_v24 = vadd.f32 %v4063_v46, %v3888_v51  ;;  %v4407_v11 = vadd.f32 %v4343_v12, %v10464_v28  ;;  %v4344_v55 = vld [vmem:[#allocation2 + $0x18] sm:$0xff]  ;;  %v1275_v51 = vsub.f32 1.5, %v1274_v15 }
 0x3ae   :  { %v1284_v25 = vmul.f32 0.5, %v1283_v1  ;;  %v2194_v41 = vpop.xlane.xlu1 %2193  ;;  %2208 = vadd.xlane.f32.xlu1 %v2207_v18  ;;  %v4408_v13 = vadd.f32 %v4344_v55, %v10465_v19  ;;  %v3834_v1 = vadd.f32 %v7439_v21, %v3769_v45  ;;  %v3889_v55 = vld [vmem:[#allocation2 + $0x28] sm:$0xff]  ;;  %v8576_v19 = vld [vmem:[%s10071_s0 + $0x1e0] sm:$0xff] }
 0x3af   :  { %v2318_v10 = vmul.f32 %v2194_v41, %v5180_v54  ;;  %4281 = vst.msk [vmem:[#allocation2 + $0x20] sm:$0xff] %vm99_vm0, %v4217_v24  ;;  %v1276_v15 = vmul.f32 %v8473_v57, %v1275_v51 }
 0x3b0   :  { %4471 = vst.msk [vmem:[%s10076_s5 + $0x10] sm:$0xff] %vm99_vm0, %v4407_v11  ;;  %v1285_v30 = vsub.f32 1.5, %v1284_v25  ;;  %v3955_v46 = vpack.c.bf16 %v3835_v26, %v3834_v1 }
 0x3b1   :  { %v8530_v0 = vadd.f32 1e-05, %v2318_v10  ;;  %4472 = vst.msk [vmem:[%s10076_s5 + $0x18] sm:$0xff] %vm99_vm0, %v4408_v13  ;;  %v10471_v10 = vld [vmem:[#allocation6_spill] sm:$0xff]  ;;  %v1280_v1 = vsel %vm8556_vm1, %v8473_v57, %v1276_v15  ;;  %v280_v57 = vsel %vm99_vm0, %v8576_v19, 0.0 }
 0x3b2   :  { %v1286_v45 = vmul.f32 %v8501_v20, %v1285_v30  ;;  %4087 = vmatmul.bf16.gmra.mxu1 %v3955_v46 }
 0x3b3   :  { %4796 = vrsqrt.f32 %v8530_v0  ;;  %v267_v18 = vpop.xlane.xlu2 %266  ;;  %vm2749_vm4 = vweird.f32 %v8530_v0 }
 0x3b4   :  { %v4065_v43 = vpop.f32.mrf.mxu1  ;;  %v354_v16 = vmul.f32 %v5180_v54, %v267_v18  ;;  %v1290_v26 = vsel %vm8561_vm7, %v8501_v20, %v1286_v45  ;;  %v10473_v45 = vld [vmem:[#allocation29_spill] sm:$0xff] }
 0x3b5   :  { %v4218_v9 = vadd.f32 %v4065_v43, %v3889_v55  ;;  %v3890_v43 = vld [vmem:[#allocation2 + $0x30] sm:$0xff] }
 0x3b6   :  { %v264_v24 = vpop.xlane.xlu1 %263  ;;  %1845 = vadd.xlane.f32.xlu1 %v1844_v40  ;;  %v4345_v31 = vld [vmem:[#allocation2 + $0x20] sm:$0xff]  ;;  %v8568_v12 = vsub.f32 %v4941_v14, %v354_v16  ;;  %v3506_v11 = vpop.f32.mrf.mxu0  ;;  %v10472_v16 = vld [vmem:[#allocation44_spill] sm:$0xff] }
 0x3b7   :  { %v353_v63 = vmul.f32 %v5180_v54, %v264_v24  ;;  %v4409_v28 = vadd.f32 %v4345_v31, %v10471_v10  ;;  %4282 = vst.msk [vmem:[#allocation2 + $0x28] sm:$0xff] %vm99_vm0, %v4218_v9  ;;  %v1497_v20 = vmul.f32 %v1280_v1, %v10472_v16  ;;  %v3642_v40 = vmax.f32 %v3506_v11, 0.0  ;;  %v8614_v1 = vld [vmem:[%s10071_s0 + $0x1e8] sm:$0xff] }
 0x3b8   :  { %v482_v30 = vmul.f32 %v8568_v12, %v8568_v12  ;;  %v1498_v9 = vmul.f32 %v1290_v26, %v10473_v45 }
 0x3b9   :  { %v8578_v13 = vpop.eup %4796  ;;  %v8583_v51 = vsub.f32 %v4942_v50, %v353_v63  ;;  %4473 = vst.msk [vmem:[%s10076_s5 + $0x20] sm:$0xff] %vm99_vm0, %v4409_v28  ;;  %v10474_v28 = vld [vmem:[#allocation35_spill] sm:$0xff]  ;;  %v3707_v26 = vmul.f32 %v7404_v56, %v3642_v40 }
 0x3ba   :  { %v2744_v55 = vmul.f32 %v8578_v13, %v8530_v0  ;;  %v656_v18 = vsel %vm99_vm0, %v482_v30, 0.0  ;;  %v1563_v16 = vmul.f32 %v5487_v34, %v1498_v9  ;;  %v731_v9 = vmul.f32 %v8516_v4, %v5180_v54 }
 0x3bb   :  { %v481_v46 = vmul.f32 %v8583_v51, %v8583_v51  ;;  %657 = vadd.xlane.f32.xlu0 %v656_v18  ;;  %v2191_v25 = vpop.xlane.xlu0 %2190  ;;  %v1562_v18 = vmul.f32 %v5487_v34, %v1497_v20  ;;  %v3891_v20 = vld [vmem:[#allocation2 + $0x38] sm:$0xff]  ;;  %vm2750_vm2 = vweird.f32 %v8578_v13 }
 0x3bc   :  { %v4068_v24 = vpop.f32.mrf.mxu1  ;;  %v2317_v41 = vmul.f32 %v2191_v25, %v5180_v54  ;;  %v2745_v31 = vmul.f32 %v8578_v13, %v2744_v55  ;;  %v283_v25 = vsel %vm99_vm0, %v8614_v1, 0.0  ;;  %vm8670_vm3 = vmor %vm2749_vm4, %vm2750_vm2 }
 0x3bd   :  { %v653_v15 = vsel %vm99_vm0, %v481_v46, 0.0  ;;  %v4219_v63 = vadd.f32 %v4068_v24, %v3890_v43  ;;  %v1831_v10 = vpop.xlane.xlu2 %1830 }
 0x3be   :  { %654 = vadd.xlane.f32.xlu2 %v653_v15  ;;  %281 = vadd.xlane.f32.xlu1 %v280_v57  ;;  %v4346_v14 = vld [vmem:[#allocation2 + $0x28] sm:$0xff]  ;;  %v1941_v30 = vmul.f32 %v1831_v10, %v5180_v54  ;;  %v3508_v11 = vpop.f32.mrf.mxu0  ;;  %v8618_v46 = vadd.f32 1e-05, %v2317_v41  ;;  %v2200_v43 = vpop.xlane.xlu1 %2199  ;;  %v2746_v15 = vmul.f32 0.5, %v2745_v31  ;;  %v3771_v41 = vmul.f32 %v3707_v26, %v3642_v40 }
 0x3bf   :  { %v4410_v50 = vadd.f32 %v4346_v14, %v10474_v28  ;;  %4283 = vst.msk [vmem:[#allocation2 + $0x30] sm:$0xff] %vm99_vm0, %v4219_v63  ;;  %v3643_v55 = vmax.f32 %v3508_v11, 0.0  ;;  %v2320_v14 = vmul.f32 %v2200_v43, %v5180_v54  ;;  %v1627_v63 = vadd.f32 %v5494_v2, %v1562_v18  ;;  %v10475_v26 = vld [vmem:[#allocation31_spill] sm:$0xff] }
 0x3c0   :  { %v8626_v57 = vsub.f32 %v7856_v22, %v1941_v30  ;;  %4798 = vrsqrt.f32 %v8618_v46  ;;  %v2747_v30 = vsub.f32 1.5, %v2746_v15  ;;  %v3836_v4 = vadd.f32 %v7439_v21, %v3771_v41 }
 0x3c1   :  { %4474 = vst.msk [vmem:[%s10076_s5 + $0x28] sm:$0xff] %vm99_vm0, %v4410_v50  ;;  %v3708_v45 = vmul.f32 %v7404_v56, %v3643_v55  ;;  %v1628_v50 = vadd.f32 %v5494_v2, %v1563_v16  ;;  %v8643_v18 = vadd.f32 1e-05, %v2320_v14  ;;  %vm2739_vm6 = vweird.f32 %v8618_v46 }
 0x3c2   :  { %v2069_v24 = vmul.f32 %v8626_v57, %v8626_v57 }
 0x3c3   :  { %v3772_v31 = vmul.f32 %v3708_v45, %v3643_v55  ;;  %v4943_v55 = vld [vmem:[%s10071_s0 + $0x170] sm:$0xff]  ;;  %v4944_v45 = vld [vmem:[%s10071_s0 + $0x178] sm:$0xff]  ;;  %4800 = vrsqrt.f32 %v8643_v18  ;;  %vm2769_vm13 = vweird.f32 %v8643_v18 }
 0x3c4   :  { %v4070_v10 = vpop.f32.mrf.mxu1  ;;  %v2213_v28 = vsel %vm99_vm0, %v2069_v24, 0.0  ;;  %v8650_v16 = vadd.f32 %v4943_v55, %v1627_v63  ;;  %v3892_v63 = vld [vmem:[#allocation2 + $0x40] sm:$0xff]  ;;  %v10478_v55 = vld [vmem:[#allocation9_spill] sm:$0xff] }
 0x3c5   :  { %v4220_v11 = vadd.f32 %v4070_v10, %v3891_v20  ;;  %2214 = vadd.xlane.f32.xlu0 %v2213_v28  ;;  %v3837_v40 = vadd.f32 %v7439_v21, %v3772_v31  ;;  %v2748_v20 = vmul.f32 %v8578_v13, %v2747_v30 }
 0x3c6   :  { %284 = vadd.xlane.f32.xlu2 %v283_v25  ;;  %v4347_v22 = vld [vmem:[#allocation2 + $0x30] sm:$0xff]  ;;  %v3511_v39 = vpop.f32.mrf.mxu0  ;;  %v4799_v15 = vpop.eup %4798  ;;  %v8652_v25 = vadd.f32 1e-05, %v731_v9  ;;  %v1847_v31 = vsel %vm99_vm0, %v8650_v16, 0.0 }
 0x3c7   :  { %v4411_v43 = vadd.f32 %v4347_v22, %v10475_v26  ;;  %4284 = vst.msk [vmem:[#allocation2 + $0x38] sm:$0xff] %vm99_vm0, %v4220_v11  ;;  %v8657_v22 = vadd.f32 %v4944_v45, %v1628_v50  ;;  %v2734_v24 = vmul.f32 %v4799_v15, %v8618_v46  ;;  %v3956_v41 = vpack.c.bf16 %v3837_v40, %v3836_v4  ;;  %v640_v40 = vpop.xlane.xlu0 %639 }
 0x3c8   :  { %v3644_v14 = vmax.f32 %v3511_v39, 0.0  ;;  %4802 = vrsqrt.f32 %v8652_v25  ;;  %v2752_v39 = vsel %vm8670_vm3, %v8578_v13, %v2748_v20  ;;  %vm2740_vm5 = vweird.f32 %v4799_v15  ;;  %v10479_v13 = vld [vmem:[#allocation47_spill] sm:$0xff] }
 0x3c9   :  { %4475 = vst.msk [vmem:[%s10076_s5 + $0x30] sm:$0xff] %vm99_vm0, %v4411_v43  ;;  %v2735_v9 = vmul.f32 %v4799_v15, %v2734_v24  ;;  %4092 = vmatmul.bf16.gmra.mxu1 %v3956_v41  ;;  %v1850_v50 = vsel %vm99_vm0, %v8657_v22, 0.0  ;;  %v8686_v24 = vld [vmem:[%s10071_s0 + $0x1f0] sm:$0xff]  ;;  %v3086_v20 = vmul.f32 %v2752_v39, %v10479_v13  ;;  %vm2741_vm9 = vmor %vm2739_vm6, %vm2740_vm5  ;;  %vm1297_vm10 = vweird.f32 %v8652_v25 }
 0x3ca   :  { %v3709_v26 = vmul.f32 %v7404_v56, %v3644_v14 }
 0x3cb   :  { %v2736_v0 = vmul.f32 0.5, %v2735_v9 }
 0x3cc   :  { %v4073_v28 = vpop.f32.mrf.mxu1 }
 0x3cd   :  { %v4221_v30 = vadd.f32 %v4073_v28, %v3892_v63  ;;  %1851 = vadd.xlane.f32.xlu0 %v1850_v50  ;;  %v2737_v4 = vsub.f32 1.5, %v2736_v0  ;;  %v8689_v63 = vpop.eup %4800  ;;  %v3893_v28 = vld [vmem:[#allocation2 + $0x48] sm:$0xff]  ;;  %v286_v50 = vsel %vm99_vm0, %v8686_v24, 0.0 }
 0x3ce   :  { %1848 = vadd.xlane.f32.xlu2 %v1847_v31  ;;  %v4348_v11 = vld [vmem:[#allocation2 + $0x38] sm:$0xff]  ;;  %v3513_v43 = vpop.f32.mrf.mxu0  ;;  %v3773_v31 = vmul.f32 %v3709_v26, %v3644_v14  ;;  %v8699_v39 = vpop.eup %4802  ;;  %vm2770_vm8 = vweird.f32 %v8689_v63 }
 0x3cf   :  { %v4412_v45 = vadd.f32 %v4348_v11, %v10478_v55  ;;  %4285 = vst.msk [vmem:[#allocation2 + $0x40] sm:$0xff] %vm99_vm0, %v4221_v30  ;;  %v3645_v41 = vmax.f32 %v3513_v43, 0.0  ;;  %v2738_v9 = vmul.f32 %v4799_v15, %v2737_v4  ;;  %v2764_v30 = vmul.f32 %v8689_v63, %v8643_v18  ;;  %vm8770_vm14 = vmor %vm2769_vm13, %vm2770_vm8 }
 0x3d0   :  { %v3151_v4 = vmul.f32 %v6699_v62, %v3086_v20  ;;  %v1292_v14 = vmul.f32 %v8699_v39, %v8652_v25  ;;  %v3838_v13 = vadd.f32 %v7439_v21, %v3773_v31  ;;  %vm1298_vm11 = vweird.f32 %v8699_v39 }
 0x3d1   :  { %4476 = vst.msk [vmem:[%s10076_s5 + $0x38] sm:$0xff] %vm99_vm0, %v4412_v45  ;;  %v3710_v10 = vmul.f32 %v7404_v56, %v3645_v41  ;;  %v2742_v0 = vsel %vm2741_vm9, %v4799_v15, %v2738_v9  ;;  %vm8760_vm12 = vmor %vm1297_vm10, %vm1298_vm11 }
 0x3d2   :  { %v3085_v46 = vmul.f32 %v2742_v0, %v7813_v32  ;;  %v732_v32 = vmul.f32 %v640_v40, %v5180_v54  ;;  %v3216_v31 = vadd.f32 %v6715_v27, %v3151_v4 }
 0x3d3   :  { %v3774_v11 = vmul.f32 %v3710_v10, %v3645_v41  ;;  %v10480_v41 = vld [vmem:[#allocation13_spill] sm:$0xff] }
 0x3d4   :  { %v4075_v43 = vpop.f32.mrf.mxu1  ;;  %v3150_v9 = vmul.f32 %v6699_v62, %v3085_v46 }
 0x3d5   :  { %v4222_v55 = vadd.f32 %v4075_v43, %v3893_v28  ;;  %287 = vadd.xlane.f32.xlu0 %v286_v50  ;;  %v3839_v15 = vadd.f32 %v7439_v21, %v3774_v11  ;;  %v2765_v28 = vmul.f32 %v8689_v63, %v2764_v30  ;;  %v1293_v11 = vmul.f32 %v8699_v39, %v1292_v14  ;;  %v3894_v43 = vld [vmem:[#allocation2 + $0x50] sm:$0xff] }
 0x3d6   :  { %v4349_v26 = vld [vmem:[#allocation2 + $0x40] sm:$0xff]  ;;  %v3516_v45 = vpop.f32.mrf.mxu0  ;;  %v3215_v0 = vadd.f32 %v6715_v27, %v3150_v9  ;;  %v8725_v30 = vadd.f32 1e-05, %v732_v32 }
 0x3d7   :  { %v4413_v10 = vadd.f32 %v4349_v26, %v10480_v41  ;;  %4286 = vst.msk [vmem:[#allocation2 + $0x48] sm:$0xff] %vm99_vm0, %v4222_v55  ;;  %v3957_v50 = vpack.c.bf16 %v3839_v15, %v3838_v13  ;;  %v3646_v46 = vmax.f32 %v3516_v45, 0.0  ;;  %v1294_v15 = vmul.f32 0.5, %v1293_v11 }
 0x3d8   :  { %v3263_v55 = vpack.c.bf16 %v3216_v31, %v3215_v0  ;;  %vm1307_vm2 = vweird.f32 %v8725_v30 }
 0x3d9   :  { %4477 = vst.msk [vmem:[%s10076_s5 + $0x40] sm:$0xff] %vm99_vm0, %v4413_v10  ;;  %4097 = vmatmul.bf16.gmra.mxu1 %v3957_v50  ;;  %v3711_v4 = vmul.f32 %v7404_v56, %v3646_v46  ;;  %v10481_v10 = vld [vmem:[#allocation34_spill] sm:$0xff] }
 0x3da   :  { %4563 = vmatmul.msk.bf16.gmra.mxu0 %vm99_vm0, %v3263_v55  ;;  %v1295_v55 = vsub.f32 1.5, %v1294_v15 }
 0x3db   :  { %v3775_v31 = vmul.f32 %v3711_v4, %v3646_v46 }
 0x3dc   :  { %v4078_v26 = vpop.f32.mrf.mxu1 }
 0x3dd   :  { %v4223_v13 = vadd.f32 %v4078_v26, %v3894_v43  ;;  %v3840_v15 = vadd.f32 %v7439_v21, %v3775_v31  ;;  %v10484_v31 = vld [vmem:[#allocation8_spill] sm:$0xff] }
 0x3de   :  { %v2197_v17 = vpop.xlane.xlu0 %2196  ;;  %v4350_v45 = vld [vmem:[#allocation2 + $0x48] sm:$0xff]  ;;  %v3518_v9 = vpop.f32.mrf.mxu0 }
 0x3df   :  { %v2319_v20 = vmul.f32 %v2197_v17, %v5180_v54  ;;  %v2766_v17 = vmul.f32 0.5, %v2765_v28  ;;  %v4414_v14 = vadd.f32 %v4350_v45, %v10481_v10  ;;  %4287 = vst.msk [vmem:[#allocation2 + $0x50] sm:$0xff] %vm99_vm0, %v4223_v13  ;;  %v3895_v13 = vld [vmem:[#allocation2 + $0x58] sm:$0xff] }
 0x3e1   :  { %v8721_v40 = vadd.f32 1e-05, %v2319_v20  ;;  %v3647_v20 = vmax.f32 %v3518_v9, 0.0  ;;  %v2767_v28 = vsub.f32 1.5, %v2766_v17  ;;  %4478 = vst.msk [vmem:[%s10076_s5 + $0x48] sm:$0xff] %vm99_vm0, %v4414_v14 }
 0x3e3   :  { %4804 = vrsqrt.f32 %v8721_v40  ;;  %v3712_v11 = vmul.f32 %v7404_v56, %v3647_v20  ;;  %v2768_v9 = vmul.f32 %v8689_v63, %v2767_v28  ;;  %vm2759_vm1 = vweird.f32 %v8721_v40 }
 0x3e4   :  { %4806 = vrsqrt.f32 %v8725_v30  ;;  %v4080_v4 = vpop.f32.mrf.mxu1 }
 0x3e5   :  { %v3776_v17 = vmul.f32 %v3712_v11, %v3647_v20  ;;  %v1296_v20 = vmul.f32 %v8699_v39, %v1295_v55  ;;  %v2772_v18 = vsel %vm8770_vm14, %v8689_v63, %v2768_v9 }
 0x3e6   :  { %v1834_v41 = vpop.xlane.xlu0 %1833  ;;  %v4351_v11 = vld [vmem:[#allocation2 + $0x50] sm:$0xff]  ;;  %v3521_v23 = vpop.f32.mrf.mxu0 }
 0x3e7   :  { %v8731_v50 = vpop.xlane.xlu2 %645  ;;  %v1942_v32 = vmul.f32 %v1834_v41, %v5180_v54  ;;  %v4224_v41 = vadd.f32 %v4080_v4, %v3895_v13  ;;  %v3841_v10 = vadd.f32 %v7439_v21, %v3776_v17  ;;  %v4415_v13 = vadd.f32 %v4351_v11, %v10484_v31 }
 0x3e8   :  { %v1300_v9 = vsel %vm8760_vm12, %v8699_v39, %v1296_v20 }
 0x3e9   :  { %v4805_v0 = vpop.eup %4804  ;;  %v8741_v43 = vsub.f32 %v8020_v58, %v1942_v32  ;;  %4288 = vst.msk [vmem:[#allocation2 + $0x58] sm:$0xff] %vm99_vm0, %v4224_v41  ;;  %v3958_v55 = vpack.c.bf16 %v3841_v10, %v3840_v15  ;;  %v3648_v15 = vmax.f32 %v3521_v23, 0.0  ;;  %v3088_v23 = vmul.f32 %v2772_v18, %v7806_v52 }
 0x3ea   :  { %v2754_v26 = vmul.f32 %v4805_v0, %v8721_v40  ;;  %v8753_v32 = vpop.eup %4806  ;;  %vm2760_vm15 = vweird.f32 %v4805_v0  ;;  %4479 = vst.msk [vmem:[%s10076_s5 + $0x50] sm:$0xff] %vm99_vm0, %v4415_v13 }
 0x3eb   :  { %v2070_v45 = vmul.f32 %v8741_v43, %v8741_v43  ;;  %v1302_v41 = vmul.f32 %v8753_v32, %v8725_v30  ;;  %vm2761_vm7 = vmor %vm2759_vm1, %vm2760_vm15  ;;  %4102 = vmatmul.bf16.gmra.mxu1 %v3958_v55  ;;  %v3153_v18 = vmul.f32 %v6699_v62, %v3088_v23  ;;  %vm1308_vm4 = vweird.f32 %v8753_v32 }
 0x3ec   :  { %v2755_v46 = vmul.f32 %v4805_v0, %v2754_v26  ;;  %vm8845_vm3 = vmor %vm1307_vm2, %vm1308_vm4 }
 0x3ed   :  { %v2216_v14 = vsel %vm99_vm0, %v2070_v45, 0.0  ;;  %v1303_v40 = vmul.f32 %v8753_v32, %v1302_v41 }
 0x3ee   :  { %v2756_v58 = vmul.f32 0.5, %v2755_v46  ;;  %2217 = vadd.xlane.f32.xlu1 %v2216_v14  ;;  %v270_v28 = vpop.xlane.xlu0 %269  ;;  %v643_v14 = vpop.xlane.xlu1 %642  ;;  %v10487_v46 = vld [vmem:[#allocation52_spill] sm:$0xff] }
 0x3ef   :  { %v2203_v17 = vpop.xlane.xlu2 %2202  ;;  %v355_v45 = vmul.f32 %v5180_v54, %v270_v28  ;;  %v733_v63 = vmul.f32 %v643_v14, %v5180_v54  ;;  %v3523_v39 = vpop.f32.mrf.mxu0 }
 0x3f0   :  { %v2757_v25 = vsub.f32 1.5, %v2756_v58  ;;  %v2321_v4 = vmul.f32 %v2203_v17, %v5180_v54  ;;  %v4945_v58 = vld [vmem:[%s10071_s0 + $0x1c0] sm:$0xff]  ;;  %v4352_v26 = vld [vmem:[#allocation2 + $0x58] sm:$0xff]  ;;  %v3649_v14 = vmax.f32 %v3523_v39, 0.0 }
 0x3f1   :  { %v8787_v10 = vsub.f32 %v4945_v58, %v355_v45  ;;  %v3713_v45 = vmul.f32 %v7404_v56, %v3648_v15  ;;  %v8804_v20 = vadd.f32 1e-05, %v733_v63  ;;  %v8820_v63 = vld [vmem:[%s10071_s0 + $0x1f8] sm:$0xff] }
 0x3f2   :  { %v2758_v11 = vmul.f32 %v4805_v0, %v2757_v25  ;;  %v8790_v28 = vadd.f32 1e-05, %v2321_v4  ;;  %v1499_v25 = vmul.f32 %v1300_v9, %v10487_v46  ;;  %v734_v4 = vmul.f32 %v8731_v50, %v5180_v54 }
 0x3f3   :  { %v483_v13 = vmul.f32 %v8787_v10, %v8787_v10  ;;  %v3777_v41 = vmul.f32 %v3713_v45, %v3648_v15  ;;  %v3714_v58 = vmul.f32 %v7404_v56, %v3649_v14  ;;  %vm1317_vm10 = vweird.f32 %v8804_v20 }
 0x3f4   :  { %v2762_v31 = vsel %vm2761_vm7, %v4805_v0, %v2758_v11  ;;  %4808 = vrsqrt.f32 %v8790_v28  ;;  %v10488_v0 = vld [vmem:[#allocation11_spill] sm:$0xff]  ;;  %v1564_v9 = vmul.f32 %v5487_v34, %v1499_v25  ;;  %v8826_v23 = vadd.f32 1e-05, %v734_v4 }
 0x3f5   :  { %v3087_v17 = vmul.f32 %v2762_v31, %v7970_v7  ;;  %v659_v52 = vsel %vm99_vm0, %v483_v13, 0.0  ;;  %v4416_v55 = vadd.f32 %v4352_v26, %v10488_v0  ;;  %v1304_v7 = vmul.f32 0.5, %v1303_v40 }
 0x3f6   :  { %660 = vadd.xlane.f32.xlu1 %v659_v52  ;;  %4810 = vrsqrt.f32 %v8804_v20  ;;  %v3778_v31 = vmul.f32 %v3714_v58, %v3649_v14  ;;  %v3218_v13 = vadd.f32 %v6715_v27, %v3153_v18  ;;  %v289_v40 = vsel %vm99_vm0, %v8820_v63, 0.0 }
 0x3f7   :  { %4480 = vst.msk [vmem:[%s10076_s5 + $0x58] sm:$0xff] %vm99_vm0, %v4416_v55  ;;  %v3152_v11 = vmul.f32 %v6699_v62, %v3087_v17  ;;  %v1305_v17 = vsub.f32 1.5, %v1304_v7  ;;  %v3842_v46 = vadd.f32 %v7439_v21, %v3777_v41  ;;  %v3526_v39 = vpop.f32.mrf.mxu0  ;;  %v1629_v52 = vadd.f32 %v5494_v2, %v1564_v9  ;;  %v273_v41 = vpop.xlane.xlu1 %272 }
 0x3f8   :  { %v3843_v26 = vadd.f32 %v7439_v21, %v3778_v31  ;;  %4812 = vrsqrt.f32 %v8826_v23  ;;  %v3650_v18 = vmax.f32 %v3526_v39, 0.0  ;;  %v1840_v7 = vpop.xlane.xlu2 %1839  ;;  %v2206_v9 = vpop.xlane.xlu0 %2205  ;;  %v4946_v31 = vld [vmem:[%s10071_s0 + $0x180] sm:$0xff]  ;;  %vm2779_vm6 = vweird.f32 %v8790_v28 }
 0x3f9   :  { %v3217_v15 = vadd.f32 %v6715_v27, %v3152_v11  ;;  %v1306_v4 = vmul.f32 %v8753_v32, %v1305_v17  ;;  %v1944_v30 = vmul.f32 %v1840_v7, %v5180_v54  ;;  %v356_v11 = vmul.f32 %v5180_v54, %v273_v41 }
 0x3fa   :  { %v8822_v50 = vpop.eup %4808  ;;  %v3959_v0 = vpack.c.bf16 %v3843_v26, %v3842_v46  ;;  %vm1327_vm14 = vweird.f32 %v8826_v23 }
 0x3fb   :  { %v2774_v45 = vmul.f32 %v8822_v50, %v8790_v28  ;;  %v3264_v25 = vpack.c.bf16 %v3218_v13, %v3217_v15  ;;  %v8854_v15 = vadd.f32 %v4946_v31, %v1629_v52  ;;  %v8860_v17 = vsub.f32 %v8241_v8, %v1944_v30 }
 0x3fc   :  { %v8840_v55 = vpop.eup %4810  ;;  %4107 = vmatmul.bf16.gmra.mxu1 %v3959_v0  ;;  %v1310_v26 = vsel %vm8845_vm3, %v8753_v32, %v1306_v4  ;;  %vm2780_vm5 = vweird.f32 %v8822_v50 }
 0x3fd   :  { %4564 = vmatmul.msk.bf16.vlgmr.msra.gmra.mxu3 %vm99_vm0, %v3264_v25  ;;  %v2775_v14 = vmul.f32 %v8822_v50, %v2774_v45  ;;  %v1312_v13 = vmul.f32 %v8840_v55, %v8804_v20  ;;  %v8863_v45 = vsub.f32 %v8254_v6, %v356_v11  ;;  %v3715_v25 = vmul.f32 %v7404_v56, %v3650_v18  ;;  %vm8907_vm9 = vmor %vm2779_vm6, %vm2780_vm5 }
 0x3fe   :  { %290 = vadd.xlane.f32.xlu1 %v289_v40  ;;  %v2322_v40 = vmul.f32 %v2206_v9, %v5180_v54  ;;  %v8865_v46 = vpop.eup %4812  ;;  %v2072_v0 = vmul.f32 %v8860_v17, %v8860_v17  ;;  %v1853_v6 = vsel %vm99_vm0, %v8854_v15, 0.0  ;;  %v1500_v4 = vmul.f32 %v1310_v26, %v7835_v37 }
 0x3ff   :  { %v2776_v39 = vmul.f32 0.5, %v2775_v14  ;;  %v3528_v7 = vpop.f32.mrf.mxu0  ;;  %v484_v41 = vmul.f32 %v8863_v45, %v8863_v45  ;;  %v1313_v30 = vmul.f32 %v8840_v55, %v1312_v13  ;;  %v1322_v14 = vmul.f32 %v8865_v46, %v8826_v23  ;;  %v1837_v8 = vpop.xlane.xlu1 %1836 }
 0x400   :  { %v8871_v52 = vadd.f32 1e-05, %v2322_v40  ;;  %v3651_v32 = vmax.f32 %v3528_v7, 0.0  ;;  %v2222_v58 = vsel %vm99_vm0, %v2072_v0, 0.0  ;;  %v3779_v31 = vmul.f32 %v3715_v25, %v3650_v18  ;;  %v276_v26 = vpop.xlane.xlu2 %275 }
 0x401   :  { %v662_v11 = vsel %vm99_vm0, %v484_v41, 0.0  ;;  %v2777_v9 = vsub.f32 1.5, %v2776_v39  ;;  %2223 = vadd.xlane.f32.xlu0 %v2222_v58  ;;  %v1943_v13 = vmul.f32 %v1837_v8, %v5180_v54  ;;  %v1314_v7 = vmul.f32 0.5, %v1313_v30 }
 0x402   :  { %4814 = vrsqrt.f32 %v8871_v52  ;;  %v3716_v40 = vmul.f32 %v7404_v56, %v3651_v32  ;;  %663 = vadd.xlane.f32.xlu2 %v662_v11  ;;  %v1323_v37 = vmul.f32 %v8865_v46, %v1322_v14  ;;  %v1565_v39 = vmul.f32 %v5487_v34, %v1500_v4 }
 0x403   :  { %v8891_v0 = vsub.f32 %v8305_v35, %v1943_v13  ;;  %v2778_v25 = vmul.f32 %v8822_v50, %v2777_v9  ;;  %v3844_v41 = vadd.f32 %v7439_v21, %v3779_v31  ;;  %v357_v8 = vmul.f32 %v5180_v54, %v276_v26 }
 0x404   :  { %v1315_v11 = vsub.f32 1.5, %v1314_v7  ;;  %v1324_v26 = vmul.f32 0.5, %v1323_v37  ;;  %vm1318_vm11 = vweird.f32 %v8840_v55  ;;  %vm2789_vm13 = vweird.f32 %v8871_v52 }
 0x405   :  { %v2071_v14 = vmul.f32 %v8891_v0, %v8891_v0  ;;  %v8903_v4 = vsub.f32 %v8341_v60, %v357_v8  ;;  %v2782_v60 = vsel %vm8907_vm9, %v8822_v50, %v2778_v25  ;;  %vm8926_vm8 = vmor %vm1317_vm10, %vm1318_vm11  ;;  %vm1328_vm1 = vweird.f32 %v8865_v46 }
 0x406   :  { %1854 = vadd.xlane.f32.xlu1 %v1853_v6  ;;  %v3780_v6 = vmul.f32 %v3716_v40, %v3651_v32  ;;  %v1316_v8 = vmul.f32 %v8840_v55, %v1315_v11  ;;  %v3089_v37 = vmul.f32 %v2782_v60, %v8075_v59  ;;  %v1325_v11 = vsub.f32 1.5, %v1324_v26  ;;  %vm8954_vm7 = vmor %vm1327_vm14, %vm1328_vm1 }
 0x407   :  { %v3531_v32 = vpop.f32.mrf.mxu0  ;;  %v2219_v13 = vsel %vm99_vm0, %v2071_v14, 0.0  ;;  %v485_v28 = vmul.f32 %v8903_v4, %v8903_v4 }
 0x408   :  { %v4815_v18 = vpop.eup %4814  ;;  %v3845_v58 = vadd.f32 %v7439_v21, %v3780_v6  ;;  %v1630_v6 = vadd.f32 %v5494_v2, %v1565_v39 }
 0x409   :  { %v2784_v30 = vmul.f32 %v4815_v18, %v8871_v52  ;;  %vm2790_vm12 = vweird.f32 %v4815_v18  ;;  %v3154_v52 = vmul.f32 %v6699_v62, %v3089_v37 }
 0x40a   :  { %v3960_v40 = vpack.c.bf16 %v3845_v58, %v3844_v41  ;;  %2220 = vadd.xlane.f32.xlu2 %v2219_v13  ;;  %v3652_v41 = vmax.f32 %v3531_v32, 0.0  ;;  %v649_v58 = vpop.xlane.xlu0 %648  ;;  %v4947_v32 = vld [vmem:[%s10071_s0 + $0x188] sm:$0xff]  ;;  %vm2791_vm15 = vmor %vm2789_vm13, %vm2790_vm12 }
 0x40b   :  { %v2785_v31 = vmul.f32 %v4815_v18, %v2784_v30  ;;  %v665_v30 = vsel %vm99_vm0, %v485_v28, 0.0  ;;  %v735_v39 = vmul.f32 %v649_v58, %v5180_v54  ;;  %v8933_v14 = vadd.f32 %v4947_v32, %v1630_v6 }
 0x40c   :  { %4112 = vmatmul.bf16.gmra.mxu1 %v3960_v40  ;;  %666 = vadd.xlane.f32.xlu0 %v665_v30  ;;  %v3717_v59 = vmul.f32 %v7404_v56, %v3652_v41 }
 0x40d   :  { %v2786_v7 = vmul.f32 0.5, %v2785_v31  ;;  %v8937_v20 = vadd.f32 1e-05, %v735_v39  ;;  %v1320_v31 = vsel %vm8926_vm8, %v8840_v55, %v1316_v8  ;;  %v1856_v26 = vsel %vm99_vm0, %v8933_v14, 0.0 }
 0x40e   :  { %v1501_v58 = vmul.f32 %v1320_v31, %v8088_v49  ;;  %v3781_v55 = vmul.f32 %v3717_v59, %v3652_v41  ;;  %v2212_v8 = vpop.xlane.xlu2 %2211  ;;  %v3219_v41 = vadd.f32 %v6715_v27, %v3154_v52 }
 0x40f   :  { %v2787_v25 = vsub.f32 1.5, %v2786_v7  ;;  %v3533_v40 = vpop.f32.mrf.mxu0  ;;  %v1326_v7 = vmul.f32 %v8865_v46, %v1325_v11  ;;  %4816 = vrsqrt.f32 %v8937_v20  ;;  %v652_v37 = vpop.xlane.xlu1 %651  ;;  %vm1337_vm2 = vweird.f32 %v8937_v20 }
 0x410   :  { %v3653_v13 = vmax.f32 %v3533_v40, 0.0  ;;  %v736_v49 = vmul.f32 %v652_v37, %v5180_v54  ;;  %v1566_v31 = vmul.f32 %v5487_v34, %v1501_v58 }
 0x411   :  { %v2788_v9 = vmul.f32 %v4815_v18, %v2787_v25  ;;  %v1330_v59 = vsel %vm8954_vm7, %v8865_v46, %v1326_v7 }
 0x412   :  { %v3718_v28 = vmul.f32 %v7404_v56, %v3653_v13  ;;  %1857 = vadd.xlane.f32.xlu2 %v1856_v26  ;;  %v279_v30 = vpop.xlane.xlu0 %278  ;;  %v1502_v52 = vmul.f32 %v1330_v59, %v8015_v48 }
 0x413   :  { %v2792_v6 = vsel %vm2791_vm15, %v4815_v18, %v2788_v9  ;;  %v358_v50 = vmul.f32 %v5180_v54, %v279_v30 }
 0x414   :  { %v3090_v60 = vmul.f32 %v2792_v6, %v8221_v33  ;;  %v3782_v39 = vmul.f32 %v3718_v28, %v3653_v13  ;;  %v2324_v33 = vmul.f32 %v2212_v8, %v5180_v54  ;;  %v3846_v13 = vadd.f32 %v7439_v21, %v3781_v55 }
 0x415   :  { %v8967_v23 = vsub.f32 %v8416_v53, %v358_v50  ;;  %v8976_v26 = vpop.eup %4816  ;;  %v1631_v55 = vadd.f32 %v5494_v2, %v1566_v31 }
 0x416   :  { %v3155_v25 = vmul.f32 %v6699_v62, %v3090_v60  ;;  %v3847_v32 = vadd.f32 %v7439_v21, %v3782_v39  ;;  %v8964_v11 = vadd.f32 1e-05, %v2324_v33  ;;  %v8981_v60 = vadd.f32 1e-05, %v736_v49  ;;  %v4948_v49 = vld [vmem:[%s10071_s0 + $0x190] sm:$0xff] }
 0x417   :  { %v3536_v40 = vpop.f32.mrf.mxu0  ;;  %v486_v53 = vmul.f32 %v8967_v23, %v8967_v23  ;;  %v1332_v30 = vmul.f32 %v8976_v26, %v8937_v20  ;;  %v1567_v39 = vmul.f32 %v5487_v34, %v1502_v52  ;;  %vm1338_vm4 = vweird.f32 %v8976_v26 }
 0x418   :  { %v3220_v9 = vadd.f32 %v6715_v27, %v3155_v25  ;;  %4818 = vrsqrt.f32 %v8964_v11  ;;  %v3961_v46 = vpack.c.bf16 %v3847_v32, %v3846_v13  ;;  %v3654_v28 = vmax.f32 %v3536_v40, 0.0  ;;  %v3896_v25 = vld [vmem:[#allocation2 + $0x60] sm:$0xff]  ;;  %vm9048_vm5 = vmor %vm1337_vm2, %vm1338_vm4 }
 0x419   :  { %v668_v7 = vsel %vm99_vm0, %v486_v53, 0.0  ;;  %4820 = vrsqrt.f32 %v8981_v60  ;;  %v1333_v40 = vmul.f32 %v8976_v26, %v1332_v30  ;;  %vm2809_vm6 = vweird.f32 %v8964_v11 }
 0x41a   :  { %v3265_v6 = vpack.c.bf16 %v3220_v9, %v3219_v41  ;;  %v1843_v58 = vpop.xlane.xlu0 %1842  ;;  %669 = vadd.xlane.f32.xlu1 %v668_v7  ;;  %v3719_v37 = vmul.f32 %v7404_v56, %v3654_v28  ;;  %v9002_v41 = vadd.f32 %v4948_v49, %v1631_v55  ;;  %vm1347_vm8 = vweird.f32 %v8981_v60 }
 0x41b   :  { %v1945_v8 = vmul.f32 %v1843_v58, %v5180_v54  ;;  %v1334_v49 = vmul.f32 0.5, %v1333_v40 }
 0x41c   :  { %4565 = vmatmul.msk.bf16.gmra.mxu3 %vm99_vm0, %v3265_v6  ;;  %4117 = vmatmul.bf16.gmra.mxu1 %v3961_v46  ;;  %v1632_v46 = vadd.f32 %v5494_v2, %v1567_v39  ;;  %v3783_v7 = vmul.f32 %v3719_v37, %v3654_v28  ;;  %v1859_v55 = vsel %vm99_vm0, %v9002_v41, 0.0  ;;  %v4949_v39 = vld [vmem:[%s10071_s0 + $0x198] sm:$0xff] }
 0x41d   :  { %v8993_v48 = vsub.f32 %v8485_v36, %v1945_v8  ;;  %v4083_v13 = vpop.f32.mrf.mxu1  ;;  %v1335_v40 = vsub.f32 1.5, %v1334_v49 }
 0x41e   :  { %v8989_v18 = vpop.eup %4818  ;;  %v4225_v52 = vadd.f32 %v4083_v13, %v3896_v25  ;;  %v9024_v37 = vadd.f32 %v4949_v39, %v1632_v46 }
 0x41f   :  { %v2804_v33 = vmul.f32 %v8989_v18, %v8964_v11  ;;  %v3538_v50 = vpop.f32.mrf.mxu0  ;;  %v2073_v59 = vmul.f32 %v8993_v48, %v8993_v48  ;;  %vm2810_vm3 = vweird.f32 %v8989_v18 }
 0x420   :  { %v3655_v32 = vmax.f32 %v3538_v50, 0.0  ;;  %v9016_v50 = vpop.eup %4820  ;;  %4289 = vst.msk [vmem:[#allocation2 + $0x60] sm:$0xff] %vm99_vm0, %v4225_v52  ;;  %v1862_v46 = vsel %vm99_vm0, %v9024_v37, 0.0  ;;  %vm9057_vm9 = vmor %vm2809_vm6, %vm2810_vm3 }
 0x421   :  { %v2209_v9 = vpop.xlane.xlu1 %2208  ;;  %v2805_v31 = vmul.f32 %v8989_v18, %v2804_v33  ;;  %v2225_v8 = vsel %vm99_vm0, %v2073_v59, 0.0  ;;  %v1342_v25 = vmul.f32 %v9016_v50, %v8981_v60  ;;  %v3897_v59 = vld [vmem:[#allocation2 + $0x68] sm:$0xff]  ;;  %vm1348_vm13 = vweird.f32 %v9016_v50 }
 0x422   :  { %v2323_v6 = vmul.f32 %v2209_v9, %v5180_v54  ;;  %v3720_v53 = vmul.f32 %v7404_v56, %v3655_v32  ;;  %1860 = vadd.xlane.f32.xlu1 %v1859_v55  ;;  %2226 = vadd.xlane.f32.xlu2 %v2225_v8  ;;  %vm9099_vm14 = vmor %vm1347_vm8, %vm1348_vm13 }
 0x423   :  { %v2806_v30 = vmul.f32 0.5, %v2805_v31 }
 0x424   :  { %v9011_v58 = vadd.f32 1e-05, %v2323_v6  ;;  %v3784_v33 = vmul.f32 %v3720_v53, %v3655_v32  ;;  %v3848_v32 = vadd.f32 %v7439_v21, %v3783_v7  ;;  %v1343_v7 = vmul.f32 %v9016_v50, %v1342_v25 }
 0x425   :  { %v2807_v31 = vsub.f32 1.5, %v2806_v30  ;;  %v4085_v6 = vpop.f32.mrf.mxu1 }
 0x426   :  { %4822 = vrsqrt.f32 %v9011_v58  ;;  %v3849_v28 = vadd.f32 %v7439_v21, %v3784_v33  ;;  %v4226_v55 = vadd.f32 %v4085_v6, %v3897_v59  ;;  %vm2799_vm10 = vweird.f32 %v9011_v58 }
 0x427   :  { %v3541_v9 = vpop.f32.mrf.mxu0  ;;  %v4353_v33 = vld [vmem:[#allocation2 + $0x60] sm:$0xff]  ;;  %v2808_v49 = vmul.f32 %v8989_v18, %v2807_v31 }
 0x428   :  { %v3962_v52 = vpack.c.bf16 %v3849_v28, %v3848_v32  ;;  %v3656_v39 = vmax.f32 %v3541_v9, 0.0  ;;  %v10497_v28 = vld [vmem:[#allocation36_spill] sm:$0xff]  ;;  %4290 = vst.msk [vmem:[#allocation2 + $0x68] sm:$0xff] %vm99_vm0, %v4226_v55  ;;  %v1344_v55 = vmul.f32 0.5, %v1343_v7 }
 0x429   :  { %v1846_v13 = vpop.xlane.xlu1 %1845  ;;  %v4417_v32 = vadd.f32 %v4353_v33, %v10497_v28  ;;  %v2812_v11 = vsel %vm9057_vm9, %v8989_v18, %v2808_v49  ;;  %v3898_v28 = vld [vmem:[#allocation2 + $0x70] sm:$0xff] }
 0x42a   :  { %v1946_v53 = vmul.f32 %v1846_v13, %v5180_v54  ;;  %1863 = vadd.xlane.f32.xlu2 %v1862_v46  ;;  %v1336_v13 = vmul.f32 %v8976_v26, %v1335_v40  ;;  %v3721_v6 = vmul.f32 %v7404_v56, %v3656_v39  ;;  %v3092_v49 = vmul.f32 %v2812_v11, %v8423_v5 }
 0x42b   :  { %4481 = vst.msk [vmem:[%s10076_s5 + $0x60] sm:$0xff] %vm99_vm0, %v4417_v32  ;;  %v1345_v35 = vsub.f32 1.5, %v1344_v55 }
 0x42c   :  { %v4823_v8 = vpop.eup %4822  ;;  %v9036_v30 = vsub.f32 %v8535_v42, %v1946_v53  ;;  %4122 = vmatmul.bf16.gmra.mxu1 %v3962_v52  ;;  %v1340_v42 = vsel %vm9048_vm5, %v8976_v26, %v1336_v13  ;;  %v10502_v26 = vld [vmem:[#allocation10_spill] sm:$0xff]  ;;  %v3157_v55 = vmul.f32 %v6699_v62, %v3092_v49 }
 0x42d   :  { %v2794_v59 = vmul.f32 %v4823_v8, %v9011_v58  ;;  %vm2800_vm11 = vweird.f32 %v4823_v8  ;;  %v1503_v5 = vmul.f32 %v1340_v42, %v8365_v38  ;;  %v1346_v38 = vmul.f32 %v9016_v50, %v1345_v35  ;;  %v3899_v42 = vld [vmem:[#allocation2 + $0x78] sm:$0xff] }
 0x42e   :  { %v2074_v25 = vmul.f32 %v9036_v30, %v9036_v30  ;;  %v9063_v52 = vpop.xlane.xlu0 %657  ;;  %vm2801_vm12 = vmor %vm2799_vm10, %vm2800_vm11  ;;  %v3222_v60 = vadd.f32 %v6715_v27, %v3157_v55 }
 0x42f   :  { %v2795_v31 = vmul.f32 %v4823_v8, %v2794_v59  ;;  %v3543_v53 = vpop.f32.mrf.mxu0  ;;  %v4088_v7 = vpop.f32.mrf.mxu1  ;;  %v4354_v40 = vld [vmem:[#allocation2 + $0x68] sm:$0xff] }
 0x430   :  { %v2228_v20 = vsel %vm99_vm0, %v2074_v25, 0.0  ;;  %v3657_v33 = vmax.f32 %v3543_v53, 0.0  ;;  %v4227_v53 = vadd.f32 %v4088_v7, %v3898_v28  ;;  %v4418_v13 = vadd.f32 %v4354_v40, %v10502_v26 }
 0x431   :  { %v2796_v46 = vmul.f32 0.5, %v2795_v31  ;;  %v9068_v32 = vpop.xlane.xlu2 %654  ;;  %2229 = vadd.xlane.f32.xlu0 %v2228_v20  ;;  %v282_v59 = vpop.xlane.xlu1 %281  ;;  %v3785_v31 = vmul.f32 %v3721_v6, %v3656_v39  ;;  %v1568_v7 = vmul.f32 %v5487_v34, %v1503_v5  ;;  %v1350_v40 = vsel %vm9099_vm14, %v9016_v50, %v1346_v38 }
 0x432   :  { %v359_v25 = vmul.f32 %v5180_v54, %v282_v59  ;;  %v3722_v18 = vmul.f32 %v7404_v56, %v3657_v33  ;;  %4291 = vst.msk [vmem:[#allocation2 + $0x70] sm:$0xff] %vm99_vm0, %v4227_v53 }
 0x433   :  { %v2797_v36 = vsub.f32 1.5, %v2796_v46  ;;  %4482 = vst.msk [vmem:[%s10076_s5 + $0x68] sm:$0xff] %vm99_vm0, %v4418_v13  ;;  %v3850_v6 = vadd.f32 %v7439_v21, %v3785_v31  ;;  %v1633_v50 = vadd.f32 %v5494_v2, %v1568_v7  ;;  %v3900_v7 = vld [vmem:[#allocation2 + $0x80] sm:$0xff] }
 0x434   :  { %v9078_v20 = vsub.f32 %v8576_v19, %v359_v25  ;;  %v3786_v59 = vmul.f32 %v3722_v18, %v3657_v33 }
 0x435   :  { %v2798_v9 = vmul.f32 %v4823_v8, %v2797_v36 }
 0x436   :  { %v487_v58 = vmul.f32 %v9078_v20, %v9078_v20  ;;  %v3851_v36 = vadd.f32 %v7439_v21, %v3786_v59 }
 0x437   :  { %v2802_v39 = vsel %vm2801_vm12, %v4823_v8, %v2798_v9  ;;  %v4090_v18 = vpop.f32.mrf.mxu1  ;;  %v10505_v9 = vld [vmem:[#allocation14_spill] sm:$0xff]  ;;  %v10506_v8 = vld [vmem:[#allocation37_spill] sm:$0xff] }
 0x438   :  { %v3091_v19 = vmul.f32 %v2802_v39, %v8505_v44  ;;  %v671_v11 = vsel %vm99_vm0, %v487_v58, 0.0  ;;  %v2215_v44 = vpop.xlane.xlu0 %2214  ;;  %v3963_v28 = vpack.c.bf16 %v3851_v36, %v3850_v6  ;;  %v4228_v49 = vadd.f32 %v4090_v18, %v3899_v42 }
 0x439   :  { %v285_v46 = vpop.xlane.xlu2 %284  ;;  %672 = vadd.xlane.f32.xlu0 %v671_v11  ;;  %v4355_v53 = vld [vmem:[#allocation2 + $0x70] sm:$0xff]  ;;  %v1504_v58 = vmul.f32 %v1350_v40, %v8428_v3  ;;  %v4950_v11 = vld [vmem:[%s10071_s0 + $0x1a0] sm:$0xff]  ;;  %v738_v18 = vmul.f32 %v9063_v52, %v5180_v54  ;;  %v2325_v52 = vmul.f32 %v2215_v44, %v5180_v54 }
 0x43a   :  { %v360_v33 = vmul.f32 %v5180_v54, %v285_v46  ;;  %v3156_v25 = vmul.f32 %v6699_v62, %v3091_v19  ;;  %v4419_v26 = vadd.f32 %v4355_v53, %v10505_v9  ;;  %4292 = vst.msk [vmem:[#allocation2 + $0x78] sm:$0xff] %vm99_vm0, %v4228_v49  ;;  %v9134_v55 = vadd.f32 %v4950_v11, %v1633_v50  ;;  %v4951_v50 = vld [vmem:[%s10071_s0 + $0x1a8] sm:$0xff] }
 0x43b   :  { %v1569_v3 = vmul.f32 %v5487_v34, %v1504_v58  ;;  %v737_v46 = vmul.f32 %v9068_v32, %v5180_v54  ;;  %v9174_v44 = vadd.f32 1e-05, %v2325_v52 }
 0x43c   :  { %v9107_v35 = vsub.f32 %v8614_v1, %v360_v33  ;;  %v3221_v31 = vadd.f32 %v6715_v27, %v3156_v25  ;;  %4127 = vmatmul.bf16.gmra.mxu1 %v3963_v28  ;;  %4483 = vst.msk [vmem:[%s10076_s5 + $0x70] sm:$0xff] %vm99_vm0, %v4419_v26  ;;  %v1865_v32 = vsel %vm99_vm0, %v9134_v55, 0.0 }
 0x43d   :  { %v9158_v40 = vadd.f32 1e-05, %v737_v46  ;;  %v10507_v46 = vld [vmem:[#allocation12_spill] sm:$0xff]  ;;  %vm2819_vm6 = vweird.f32 %v9174_v44 }
 0x43e   :  { %v3266_v13 = vpack.c.bf16 %v3222_v60, %v3221_v31  ;;  %v488_v59 = vmul.f32 %v9107_v35, %v9107_v35  ;;  %v1634_v60 = vadd.f32 %v5494_v2, %v1569_v3 }
 0x43f   :  { %4824 = vrsqrt.f32 %v9158_v40  ;;  %vm1357_vm15 = vweird.f32 %v9158_v40 }
 0x440   :  { %4566 = vmatmul.msk.bf16.gmra.mxu3 %vm99_vm0, %v3266_v13  ;;  %v674_v1 = vsel %vm99_vm0, %v488_v59, 0.0  ;;  %v1852_v36 = vpop.xlane.xlu0 %1851  ;;  %v9162_v59 = vadd.f32 1e-05, %v738_v18  ;;  %v9171_v58 = vadd.f32 %v4951_v50, %v1634_v60  ;;  %v3902_v18 = vld [vmem:[#allocation2 + $0x90] sm:$0xff]  ;;  %v10508_v50 = vld [vmem:[#allocation19_spill] sm:$0xff] }
 0x441   :  { %v1849_v5 = vpop.xlane.xlu2 %1848  ;;  %675 = vadd.xlane.f32.xlu1 %v674_v1  ;;  %v1948_v19 = vmul.f32 %v1852_v36, %v5180_v54  ;;  %v4356_v38 = vld [vmem:[#allocation2 + $0x78] sm:$0xff] }
 0x442   :  { %v1947_v39 = vmul.f32 %v1849_v5, %v5180_v54  ;;  %v4420_v33 = vadd.f32 %v4356_v38, %v10506_v8  ;;  %4826 = vrsqrt.f32 %v9162_v59  ;;  %vm1367_vm2 = vweird.f32 %v9162_v59 }
 0x443   :  { %v9137_v42 = vsub.f32 %v8657_v22, %v1948_v19  ;;  %4828 = vrsqrt.f32 %v9174_v44 }
 0x444   :  { %v9129_v6 = vsub.f32 %v8650_v16, %v1947_v39  ;;  %4484 = vst.msk [vmem:[%s10076_s5 + $0x78] sm:$0xff] %vm99_vm0, %v4420_v33  ;;  %v3901_v39 = vld [vmem:[#allocation2 + $0x88] sm:$0xff] }
 0x445   :  { %v2076_v25 = vmul.f32 %v9137_v42, %v9137_v42  ;;  %v9183_v38 = vpop.eup %4824 }
 0x446   :  { %v2075_v28 = vmul.f32 %v9129_v6, %v9129_v6  ;;  %v4093_v53 = vpop.f32.mrf.mxu1  ;;  %vm1358_vm1 = vweird.f32 %v9183_v38 }
 0x447   :  { %v2234_v31 = vsel %vm99_vm0, %v2076_v25, 0.0  ;;  %v4229_v26 = vadd.f32 %v4093_v53, %v3900_v7  ;;  %vm9231_vm7 = vmor %vm1357_vm15, %vm1358_vm1 }
 0x448   :  { %v2231_v49 = vsel %vm99_vm0, %v2075_v28, 0.0  ;;  %2235 = vadd.xlane.f32.xlu0 %v2234_v31  ;;  %v288_v9 = vpop.xlane.xlu0 %287  ;;  %v9187_v33 = vpop.eup %4826  ;;  %v1352_v28 = vmul.f32 %v9183_v38, %v9158_v40 }
 0x449   :  { %1866 = vadd.xlane.f32.xlu1 %v1865_v32  ;;  %2232 = vadd.xlane.f32.xlu2 %v2231_v49  ;;  %v361_v13 = vmul.f32 %v5180_v54, %v288_v9  ;;  %4293 = vst.msk [vmem:[#allocation2 + $0x80] sm:$0xff] %vm99_vm0, %v4229_v26  ;;  %v9195_v25 = vpop.eup %4828  ;;  %v1362_v7 = vmul.f32 %v9187_v33, %v9162_v59  ;;  %vm1368_vm4 = vweird.f32 %v9187_v33 }
 0x44a   :  { %v1353_v49 = vmul.f32 %v9183_v38, %v1352_v28  ;;  %v2814_v31 = vmul.f32 %v9195_v25, %v9174_v44  ;;  %vm2820_vm3 = vweird.f32 %v9195_v25  ;;  %vm9246_vm5 = vmor %vm1367_vm2, %vm1368_vm4 }
 0x44b   :  { %v9166_v1 = vsub.f32 %v8686_v24, %v361_v13  ;;  %v1868_v24 = vsel %vm99_vm0, %v9171_v58, 0.0  ;;  %v1363_v13 = vmul.f32 %v9187_v33, %v1362_v7  ;;  %vm2821_vm10 = vmor %vm2819_vm6, %vm2820_vm3 }
 0x44d   :  { %v489_v5 = vmul.f32 %v9166_v1, %v9166_v1 }
 0x44e   :  { %v4095_v19 = vpop.f32.mrf.mxu1 }
 0x44f   :  { %v677_v36 = vsel %vm99_vm0, %v489_v5, 0.0  ;;  %v4230_v11 = vadd.f32 %v4095_v19, %v3901_v39  ;;  %v2815_v19 = vmul.f32 %v9195_v25, %v2814_v31 }
 0x450   :  { %678 = vadd.xlane.f32.xlu0 %v677_v36  ;;  %v4357_v3 = vld [vmem:[#allocation2 + $0x80] sm:$0xff]  ;;  %v1354_v36 = vmul.f32 0.5, %v1353_v49 }
 0x451   :  { %1869 = vadd.xlane.f32.xlu2 %v1868_v24  ;;  %v4421_v8 = vadd.f32 %v4357_v3, %v10507_v46  ;;  %4294 = vst.msk [vmem:[#allocation2 + $0x88] sm:$0xff] %vm99_vm0, %v4230_v11  ;;  %v3903_v11 = vld [vmem:[#allocation2 + $0x98] sm:$0xff]  ;;  %v1364_v3 = vmul.f32 0.5, %v1363_v13 }
 0x452   :  { %v1355_v28 = vsub.f32 1.5, %v1354_v36 }
 0x453   :  { %4485 = vst.msk [vmem:[%s10076_s5 + $0x80] sm:$0xff] %vm99_vm0, %v4421_v8 }
 0x454   :  { %v1356_v36 = vmul.f32 %v9183_v38, %v1355_v28 }
 0x456   :  { %v4098_v32 = vpop.f32.mrf.mxu1 }
 0x457   :  { %v4231_v60 = vadd.f32 %v4098_v32, %v3902_v18  ;;  %v3546_v52 = vpop.f32.mrf.mxu0  ;;  %v2816_v18 = vmul.f32 0.5, %v2815_v19 }
 0x458   :  { %v4358_v9 = vld [vmem:[#allocation2 + $0x88] sm:$0xff]  ;;  %v3658_v39 = vmax.f32 %v3546_v52, 0.0  ;;  %v1365_v52 = vsub.f32 1.5, %v1364_v3 }
 0x459   :  { %v4422_v5 = vadd.f32 %v4358_v9, %v10508_v50  ;;  %4295 = vst.msk [vmem:[#allocation2 + $0x90] sm:$0xff] %vm99_vm0, %v4231_v60  ;;  %v2817_v19 = vsub.f32 1.5, %v2816_v18 }
 0x45a   :  { %v3723_v46 = vmul.f32 %v7404_v56, %v3658_v39  ;;  %v1366_v28 = vmul.f32 %v9187_v33, %v1365_v52 }
 0x45b   :  { %4486 = vst.msk [vmem:[%s10076_s5 + $0x88] sm:$0xff] %vm99_vm0, %v4422_v5 }
 0x45c   :  { %v3787_v50 = vmul.f32 %v3723_v46, %v3658_v39  ;;  %v3904_v46 = vld [vmem:[#allocation2 + $0xa0] sm:$0xff] }
 0x45e   :  { %v4100_v8 = vpop.f32.mrf.mxu1  ;;  %v3852_v40 = vadd.f32 %v7439_v21, %v3787_v50 }
 0x45f   :  { %v4232_v7 = vadd.f32 %v4100_v8, %v3903_v11  ;;  %v3548_v32 = vpop.f32.mrf.mxu0 }
 0x460   :  { %v4359_v49 = vld [vmem:[#allocation2 + $0x90] sm:$0xff]  ;;  %v3659_v31 = vmax.f32 %v3548_v32, 0.0 }
 0x461   :  { %v2218_v53 = vpop.xlane.xlu1 %2217  ;;  %4296 = vst.msk [vmem:[#allocation2 + $0x98] sm:$0xff] %vm99_vm0, %v4232_v7 }
 0x462   :  { %v2326_v26 = vmul.f32 %v2218_v53, %v5180_v54  ;;  %v10509_v53 = vld [vmem:[#allocation15_spill] sm:$0xff]  ;;  %v3724_v5 = vmul.f32 %v7404_v56, %v3659_v31 }
 0x463   :  { %v4423_v9 = vadd.f32 %v4359_v49, %v10509_v53  ;;  %v1360_v49 = vsel %vm9231_vm7, %v9183_v38, %v1356_v36 }
 0x464   :  { %v9206_v24 = vadd.f32 1e-05, %v2326_v26  ;;  %v3788_v39 = vmul.f32 %v3724_v5, %v3659_v31  ;;  %v2818_v31 = vmul.f32 %v9195_v25, %v2817_v19  ;;  %v1505_v38 = vmul.f32 %v1360_v49, %v8583_v51 }
 0x465   :  { %4487 = vst.msk [vmem:[%s10076_s5 + $0x90] sm:$0xff] %vm99_vm0, %v4423_v9  ;;  %v1370_v19 = vsel %vm9246_vm5, %v9187_v33, %v1366_v28 }
 0x466   :  { %4830 = vrsqrt.f32 %v9206_v24  ;;  %v3853_v32 = vadd.f32 %v7439_v21, %v3788_v39  ;;  %v2822_v44 = vsel %vm2821_vm10, %v9195_v25, %v2818_v31  ;;  %vm2829_vm11 = vweird.f32 %v9206_v24  ;;  %v3905_v39 = vld [vmem:[#allocation2 + $0xa8] sm:$0xff] }
 0x467   :  { %v1506_v33 = vmul.f32 %v1370_v19, %v8568_v12  ;;  %v3093_v25 = vmul.f32 %v2822_v44, %v8626_v57  ;;  %v10515_v31 = vld [vmem:[#allocation27_spill] sm:$0xff]  ;;  %v3906_v44 = vld [vmem:[#allocation2 + $0xb0] sm:$0xff] }
 0x468   :  { %v4103_v7 = vpop.f32.mrf.mxu1  ;;  %v4360_v53 = vld [vmem:[#allocation2 + $0x98] sm:$0xff]  ;;  %v3964_v9 = vpack.c.bf16 %v3853_v32, %v3852_v40 }
 0x469   :  { %v661_v60 = vpop.xlane.xlu1 %660  ;;  %v4233_v59 = vadd.f32 %v4103_v7, %v3904_v46  ;;  %v1570_v7 = vmul.f32 %v5487_v34, %v1505_v38  ;;  %v3158_v52 = vmul.f32 %v6699_v62, %v3093_v25 }
 0x46a   :  { %v739_v26 = vmul.f32 %v661_v60, %v5180_v54  ;;  %4132 = vmatmul.bf16.vlgmr.msra.gmra.mxu2 %v3964_v9  ;;  %v1571_v9 = vmul.f32 %v5487_v34, %v1506_v33 }
 0x46b   :  { %4297 = vst.msk [vmem:[#allocation2 + $0xa0] sm:$0xff] %vm99_vm0, %v4233_v59 }
 0x46c   :  { %v4831_v13 = vpop.eup %4830  ;;  %v9227_v3 = vadd.f32 1e-05, %v739_v26  ;;  %v10514_v26 = vld [vmem:[#allocation39_spill] sm:$0xff] }
 0x46d   :  { %v2824_v11 = vmul.f32 %v4831_v13, %v9206_v24  ;;  %v4424_v50 = vadd.f32 %v4360_v53, %v10514_v26  ;;  %vm2830_vm9 = vweird.f32 %v4831_v13  ;;  %v1635_v53 = vadd.f32 %v5494_v2, %v1570_v7 }
 0x46e   :  { %4832 = vrsqrt.f32 %v9227_v3  ;;  %vm2831_vm8 = vmor %vm2829_vm11, %vm2830_vm9  ;;  %vm1377_vm13 = vweird.f32 %v9227_v3 }
 0x46f   :  { %v2825_v18 = vmul.f32 %v4831_v13, %v2824_v11  ;;  %4488 = vst.msk [vmem:[%s10076_s5 + $0x98] sm:$0xff] %vm99_vm0, %v4424_v50 }
 0x470   :  { %v4105_v28 = vpop.f32.mrf.mxu1 }
 0x471   :  { %v2826_v60 = vmul.f32 0.5, %v2825_v18  ;;  %v291_v11 = vpop.xlane.xlu1 %290  ;;  %v4234_v32 = vadd.f32 %v4105_v28, %v3905_v39  ;;  %v3223_v39 = vadd.f32 %v6715_v27, %v3158_v52  ;;  %v4952_v28 = vld [vmem:[%s10071_s0 + $0x1b0] sm:$0xff] }
 0x472   :  { %v362_v36 = vmul.f32 %v5180_v54, %v291_v11  ;;  %v4361_v49 = vld [vmem:[#allocation2 + $0xa0] sm:$0xff]  ;;  %v9309_v7 = vadd.f32 %v4952_v28, %v1635_v53  ;;  %v4953_v53 = vld [vmem:[%s10071_s0 + $0x1b8] sm:$0xff] }
 0x473   :  { %v2827_v5 = vsub.f32 1.5, %v2826_v60  ;;  %v4425_v60 = vadd.f32 %v4361_v49, %v10515_v31  ;;  %4298 = vst.msk [vmem:[#allocation2 + $0xa8] sm:$0xff] %vm99_vm0, %v4234_v32 }
 0x474   :  { %v9266_v51 = vpop.eup %4832  ;;  %v9269_v18 = vsub.f32 %v8820_v63, %v362_v36  ;;  %v2224_v57 = vpop.xlane.xlu0 %2223  ;;  %v1871_v52 = vsel %vm99_vm0, %v9309_v7, 0.0 }
 0x475   :  { %v2828_v8 = vmul.f32 %v4831_v13, %v2827_v5  ;;  %v1372_v40 = vmul.f32 %v9266_v51, %v9227_v3  ;;  %4489 = vst.msk [vmem:[%s10076_s5 + $0xa0] sm:$0xff] %vm99_vm0, %v4425_v60  ;;  %v2328_v50 = vmul.f32 %v2224_v57, %v5180_v54  ;;  %v10516_v60 = vld [vmem:[#allocation38_spill] sm:$0xff]  ;;  %vm1378_vm12 = vweird.f32 %v9266_v51 }
 0x476   :  { %v490_v12 = vmul.f32 %v9269_v18, %v9269_v18  ;;  %vm9350_vm14 = vmor %vm1377_vm13, %vm1378_vm12 }
 0x477   :  { %v2832_v46 = vsel %vm2831_vm8, %v4831_v13, %v2828_v8  ;;  %v664_v13 = vpop.xlane.xlu2 %663  ;;  %v9299_v19 = vadd.f32 1e-05, %v2328_v50 }
 0x478   :  { %v3094_v24 = vmul.f32 %v2832_v46, %v8741_v43  ;;  %v1373_v43 = vmul.f32 %v9266_v51, %v1372_v40  ;;  %v740_v26 = vmul.f32 %v664_v13, %v5180_v54  ;;  %v680_v5 = vsel %vm99_vm0, %v490_v12, 0.0 }
 0x479   :  { %v1855_v63 = vpop.xlane.xlu1 %1854  ;;  %681 = vadd.xlane.f32.xlu1 %v680_v5  ;;  %v4108_v8 = vpop.f32.mrf.mxu1  ;;  %v1636_v40 = vadd.f32 %v5494_v2, %v1571_v9  ;;  %v3907_v5 = vld [vmem:[#allocation2 + $0xb8] sm:$0xff]  ;;  %vm2849_vm1 = vweird.f32 %v9299_v19 }
 0x47a   :  { %v1949_v59 = vmul.f32 %v1855_v63, %v5180_v54  ;;  %v3159_v38 = vmul.f32 %v6699_v62, %v3094_v24  ;;  %v9297_v36 = vadd.f32 1e-05, %v740_v26  ;;  %v1374_v25 = vmul.f32 0.5, %v1373_v43  ;;  %v4362_v32 = vld [vmem:[#allocation2 + $0xa8] sm:$0xff] }
 0x47b   :  { %v4235_v24 = vadd.f32 %v4108_v8, %v3906_v44  ;;  %v4426_v63 = vadd.f32 %v4362_v32, %v10516_v60  ;;  %v9327_v9 = vadd.f32 %v4953_v53, %v1636_v40 }
 0x47c   :  { %v9294_v11 = vsub.f32 %v8854_v15, %v1949_v59  ;;  %v3224_v46 = vadd.f32 %v6715_v27, %v3159_v38  ;;  %4834 = vrsqrt.f32 %v9297_v36  ;;  %v1375_v57 = vsub.f32 1.5, %v1374_v25 }
 0x47d   :  { %4836 = vrsqrt.f32 %v9299_v19  ;;  %4299 = vst.msk [vmem:[#allocation2 + $0xb0] sm:$0xff] %vm99_vm0, %v4235_v24  ;;  %v1874_v24 = vsel %vm99_vm0, %v9327_v9, 0.0  ;;  %vm1387_vm7 = vweird.f32 %v9297_v36 }
 0x47e   :  { %v2077_v33 = vmul.f32 %v9294_v11, %v9294_v11  ;;  %v3267_v49 = vpack.c.bf16 %v3224_v46, %v3223_v39  ;;  %4490 = vst.msk [vmem:[%s10076_s5 + $0xa8] sm:$0xff] %vm99_vm0, %v4426_v63 }
 0x47f   :  { %v2221_v13 = vpop.xlane.xlu2 %2220  ;;  %v667_v50 = vpop.xlane.xlu0 %666 }
 0x480   :  { %v2237_v31 = vsel %vm99_vm0, %v2077_v33, 0.0  ;;  %v3551_v12 = vpop.f32.mrf.mxu3  ;;  %4567 = vmatmul.msk.bf16.gmra.mxu3 %vm99_vm0, %v3267_v49  ;;  %v2327_v59 = vmul.f32 %v2221_v13, %v5180_v54  ;;  %v741_v8 = vmul.f32 %v667_v50, %v5180_v54  ;;  %v1376_v33 = vmul.f32 %v9266_v51, %v1375_v57  ;;  %v10519_v13 = vld [vmem:[#allocation18_spill] sm:$0xff] }
 0x481   :  { %2238 = vadd.xlane.f32.xlu2 %v2237_v31  ;;  %1872 = vadd.xlane.f32.xlu1 %v1871_v52  ;;  %v4110_v39 = vpop.f32.mrf.mxu1  ;;  %v3660_v46 = vmax.f32 %v3551_v12, 0.0 }
 0x482   :  { %v9329_v43 = vpop.eup %4834  ;;  %v9331_v26 = vadd.f32 1e-05, %v2327_v59  ;;  %v9344_v40 = vadd.f32 1e-05, %v741_v8  ;;  %v4236_v32 = vadd.f32 %v4110_v39, %v3907_v5  ;;  %v1380_v3 = vsel %vm9350_vm14, %v9266_v51, %v1376_v33 }
 0x483   :  { %v9333_v38 = vpop.eup %4836  ;;  %v1382_v44 = vmul.f32 %v9329_v43, %v9297_v36  ;;  %v3725_v59 = vmul.f32 %v7404_v56, %v3660_v46  ;;  %v1507_v51 = vmul.f32 %v1380_v3, %v8787_v10  ;;  %vm1388_vm2 = vweird.f32 %v9329_v43 }
 0x484   :  { %v2844_v25 = vmul.f32 %v9333_v38, %v9299_v19  ;;  %4838 = vrsqrt.f32 %v9331_v26  ;;  %v4363_v31 = vld [vmem:[#allocation2 + $0xb0] sm:$0xff]  ;;  %4300 = vst.msk [vmem:[#allocation2 + $0xb8] sm:$0xff] %vm99_vm0, %v4236_v32  ;;  %vm2850_vm15 = vweird.f32 %v9333_v38  ;;  %vm9400_vm3 = vmor %vm1387_vm7, %vm1388_vm2  ;;  %vm2839_vm6 = vweird.f32 %v9331_v26 }
 0x485   :  { %v1383_v28 = vmul.f32 %v9329_v43, %v1382_v44  ;;  %v4427_v57 = vadd.f32 %v4363_v31, %v10519_v13  ;;  %4840 = vrsqrt.f32 %v9344_v40  ;;  %v3908_v44 = vld [vmem:[#allocation2 + $0xc0] sm:$0xff]  ;;  %vm9382_vm4 = vmor %vm2849_vm1, %vm2850_vm15  ;;  %vm1397_vm10 = vweird.f32 %v9344_v40 }
 0x486   :  { %v2845_v49 = vmul.f32 %v9333_v38, %v2844_v25 }
 0x487   :  { %v1384_v12 = vmul.f32 0.5, %v1383_v28  ;;  %v1858_v52 = vpop.xlane.xlu2 %1857  ;;  %4491 = vst.msk [vmem:[%s10076_s5 + $0xb0] sm:$0xff] %vm99_vm0, %v4427_v57 }
 0x488   :  { %v3553_v60 = vpop.f32.mrf.mxu3  ;;  %v2846_v53 = vmul.f32 0.5, %v2845_v49  ;;  %v1950_v50 = vmul.f32 %v1858_v52, %v5180_v54 }
 0x489   :  { %1875 = vadd.xlane.f32.xlu2 %v1874_v24  ;;  %v3661_v5 = vmax.f32 %v3553_v60, 0.0  ;;  %v1385_v39 = vsub.f32 1.5, %v1384_v12  ;;  %v3789_v24 = vmul.f32 %v3725_v59, %v3660_v46  ;;  %v4113_v49 = vpop.f32.mrf.mxu1 }
 0x48a   :  { %v4839_v8 = vpop.eup %4838  ;;  %v2847_v25 = vsub.f32 1.5, %v2846_v53  ;;  %v9367_v28 = vsub.f32 %v8933_v14, %v1950_v50  ;;  %v4237_v60 = vadd.f32 %v4113_v49, %v3908_v44  ;;  %v10522_v53 = vld [vmem:[#allocation23_spill] sm:$0xff] }
 0x48b   :  { %v3726_v32 = vmul.f32 %v7404_v56, %v3661_v5  ;;  %v2834_v33 = vmul.f32 %v4839_v8, %v9331_v26  ;;  %v9376_v13 = vpop.eup %4840  ;;  %v1386_v10 = vmul.f32 %v9329_v43, %v1385_v39  ;;  %v4364_v52 = vld [vmem:[#allocation2 + $0xb8] sm:$0xff]  ;;  %v1572_v39 = vmul.f32 %v5487_v34, %v1507_v51 }
 0x48c   :  { %v2848_v31 = vmul.f32 %v9333_v38, %v2847_v25  ;;  %v2078_v12 = vmul.f32 %v9367_v28, %v9367_v28  ;;  %v1392_v59 = vmul.f32 %v9376_v13, %v9344_v40  ;;  %4301 = vst.msk [vmem:[#allocation2 + $0xc0] sm:$0xff] %vm99_vm0, %v4237_v60  ;;  %v4428_v50 = vadd.f32 %v4364_v52, %v10522_v53 }
 0x48d   :  { %v3790_v63 = vmul.f32 %v3726_v32, %v3661_v5  ;;  %v2835_v57 = vmul.f32 %v4839_v8, %v2834_v33  ;;  %v3854_v25 = vadd.f32 %v7439_v21, %v3789_v24  ;;  %vm2840_vm5 = vweird.f32 %v4839_v8  ;;  %v670_v49 = vpop.xlane.xlu1 %669 }
 0x48e   :  { %v2852_v19 = vsel %vm9382_vm4, %v9333_v38, %v2848_v31  ;;  %v2240_v5 = vsel %vm99_vm0, %v2078_v12, 0.0  ;;  %v1393_v44 = vmul.f32 %v9376_v13, %v1392_v59  ;;  %4492 = vst.msk [vmem:[%s10076_s5 + $0xb8] sm:$0xff] %vm99_vm0, %v4428_v50  ;;  %v3909_v31 = vld [vmem:[#allocation2 + $0xc8] sm:$0xff]  ;;  %v1637_v60 = vadd.f32 %v5494_v2, %v1572_v39  ;;  %vm2841_vm9 = vmor %vm2839_vm6, %vm2840_vm5  ;;  %v10525_v50 = vld [vmem:[#allocation16_spill] sm:$0xff] }
 0x48f   :  { %v2836_v3 = vmul.f32 0.5, %v2835_v57  ;;  %2241 = vadd.xlane.f32.xlu0 %v2240_v5  ;;  %v3855_v32 = vadd.f32 %v7439_v21, %v3790_v63  ;;  %v3096_v51 = vmul.f32 %v2852_v19, %v8860_v17  ;;  %v742_v12 = vmul.f32 %v670_v49, %v5180_v54  ;;  %v4954_v17 = vld [vmem:[%s10071_s0 + $0x1c0] sm:$0xff] }
 0x490   :  { %v1394_v24 = vmul.f32 0.5, %v1393_v44  ;;  %v1390_v46 = vsel %vm9400_vm3, %v9329_v43, %v1386_v10  ;;  %v9418_v52 = vadd.f32 %v4954_v17, %v1637_v60  ;;  %vm1398_vm11 = vweird.f32 %v9376_v13 }
 0x491   :  { %v2837_v38 = vsub.f32 1.5, %v2836_v3  ;;  %v3965_v63 = vpack.c.bf16 %v3855_v32, %v3854_v25  ;;  %v4115_v57 = vpop.f32.mrf.mxu1  ;;  %v3161_v43 = vmul.f32 %v6699_v62, %v3096_v51  ;;  %v1508_v10 = vmul.f32 %v1390_v46, %v8863_v45  ;;  %v3910_v45 = vld [vmem:[#allocation2 + $0xd0] sm:$0xff]  ;;  %vm9439_vm8 = vmor %vm1397_vm10, %vm1398_vm11 }
 0x492   :  { %v4238_v59 = vadd.f32 %v4115_v57, %v3909_v31  ;;  %v1395_v3 = vsub.f32 1.5, %v1394_v24  ;;  %v9427_v44 = vadd.f32 1e-05, %v742_v12 }
 0x493   :  { %v2838_v36 = vmul.f32 %v4839_v8, %v2837_v38  ;;  %4137 = vmatmul.bf16.gmra.mxu2 %v3965_v63  ;;  %v4365_v53 = vld [vmem:[#allocation2 + $0xc0] sm:$0xff]  ;;  %v3226_v51 = vadd.f32 %v6715_v27, %v3161_v43  ;;  %v1573_v60 = vmul.f32 %v5487_v34, %v1508_v10  ;;  %v3911_v43 = vld [vmem:[#allocation2 + $0xd8] sm:$0xff] }
 0x494   :  { %v4429_v5 = vadd.f32 %v4365_v53, %v10525_v50  ;;  %4302 = vst.msk [vmem:[#allocation2 + $0xc8] sm:$0xff] %vm99_vm0, %v4238_v59  ;;  %v1396_v39 = vmul.f32 %v9376_v13, %v1395_v3  ;;  %4842 = vrsqrt.f32 %v9427_v44  ;;  %v10528_v59 = vld [vmem:[#allocation26_spill] sm:$0xff]  ;;  %vm1407_vm13 = vweird.f32 %v9427_v44 }
 0x495   :  { %v2842_v19 = vsel %vm2841_vm9, %v4839_v8, %v2838_v36  ;;  %v1877_v8 = vsel %vm99_vm0, %v9418_v52, 0.0  ;;  %v1861_v25 = vpop.xlane.xlu1 %1860  ;;  %v2227_v32 = vpop.xlane.xlu2 %2226  ;;  %v1638_v53 = vadd.f32 %v5494_v2, %v1573_v60 }
 0x496   :  { %v3095_v26 = vmul.f32 %v2842_v19, %v8891_v0  ;;  %4493 = vst.msk [vmem:[%s10076_s5 + $0xc0] sm:$0xff] %vm99_vm0, %v4429_v5  ;;  %1878 = vadd.xlane.f32.xlu2 %v1877_v8  ;;  %v1951_v38 = vmul.f32 %v1861_v25, %v5180_v54  ;;  %v2329_v49 = vmul.f32 %v2227_v32, %v5180_v54 }
 0x497   :  { %v1400_v57 = vsel %vm9439_vm8, %v9376_v13, %v1396_v39 }
 0x498   :  { %v3160_v0 = vmul.f32 %v6699_v62, %v3095_v26  ;;  %v9450_v63 = vsub.f32 %v9002_v41, %v1951_v38  ;;  %v9452_v40 = vadd.f32 1e-05, %v2329_v49  ;;  %v1509_v26 = vmul.f32 %v1400_v57, %v8903_v4  ;;  %v4955_v4 = vld [vmem:[%s10071_s0 + $0x1c8] sm:$0xff] }
 0x499   :  { %v4118_v24 = vpop.f32.mrf.mxu1  ;;  %v9476_v39 = vadd.f32 %v4955_v4, %v1638_v53 }
 0x49a   :  { %v3225_v31 = vadd.f32 %v6715_v27, %v3160_v0  ;;  %v4239_v36 = vadd.f32 %v4118_v24, %v3910_v45  ;;  %4844 = vrsqrt.f32 %v9452_v40  ;;  %v2079_v19 = vmul.f32 %v9450_v63, %v9450_v63  ;;  %v9470_v50 = vpop.eup %4842  ;;  %v10529_v24 = vld [vmem:[#allocation20_spill] sm:$0xff] }
 0x49b   :  { %v4366_v46 = vld [vmem:[#allocation2 + $0xc8] sm:$0xff]  ;;  %v1574_v33 = vmul.f32 %v5487_v34, %v1509_v26  ;;  %v1402_v38 = vmul.f32 %v9470_v50, %v9427_v44  ;;  %vm1408_vm14 = vweird.f32 %v9470_v50  ;;  %vm2859_vm15 = vweird.f32 %v9452_v40 }
 0x49c   :  { %v3268_v12 = vpack.c.bf16 %v3226_v51, %v3225_v31  ;;  %v4430_v17 = vadd.f32 %v4366_v46, %v10528_v59  ;;  %4303 = vst.msk [vmem:[#allocation2 + $0xd0] sm:$0xff] %vm99_vm0, %v4239_v36  ;;  %v2243_v13 = vsel %vm99_vm0, %v2079_v19, 0.0  ;;  %vm9530_vm7 = vmor %vm1407_vm13, %vm1408_vm14 }
 0x49d   :  { %v1864_v5 = vpop.xlane.xlu2 %1863  ;;  %2244 = vadd.xlane.f32.xlu0 %v2243_v13  ;;  %v1639_v26 = vadd.f32 %v5494_v2, %v1574_v33  ;;  %v1403_v13 = vmul.f32 %v9470_v50, %v1402_v38 }
 0x49e   :  { %4568 = vmatmul.msk.bf16.gmra.mxu3 %vm99_vm0, %v3268_v12  ;;  %4494 = vst.msk [vmem:[%s10076_s5 + $0xc8] sm:$0xff] %vm99_vm0, %v4430_v17  ;;  %v1952_v8 = vmul.f32 %v1864_v5, %v5180_v54  ;;  %v1880_v17 = vsel %vm99_vm0, %v9476_v39, 0.0 }
 0x49f   :  { %v3556_v3 = vpop.f32.mrf.mxu3 }
 0x4a0   :  { %v3662_v10 = vmax.f32 %v3556_v3, 0.0  ;;  %v9478_v25 = vpop.eup %4844  ;;  %v9481_v32 = vsub.f32 %v9024_v37, %v1952_v8 }
 0x4a1   :  { %v4120_v0 = vpop.f32.mrf.mxu1  ;;  %v2854_v49 = vmul.f32 %v9478_v25, %v9452_v40  ;;  %vm2860_vm12 = vweird.f32 %v9478_v25 }
 0x4a2   :  { %v4240_v45 = vadd.f32 %v4120_v0, %v3911_v43  ;;  %v3727_v36 = vmul.f32 %v7404_v56, %v3662_v10  ;;  %v2080_v12 = vmul.f32 %v9481_v32, %v9481_v32  ;;  %v3912_v0 = vld [vmem:[#allocation2 + $0xe0] sm:$0xff]  ;;  %vm2861_vm1 = vmor %vm2859_vm15, %vm2860_vm12 }
 0x4a3   :  { %v4367_v31 = vld [vmem:[#allocation2 + $0xd0] sm:$0xff]  ;;  %v2855_v46 = vmul.f32 %v9478_v25, %v2854_v49 }
 0x4a4   :  { %v2230_v51 = vpop.xlane.xlu0 %2229  ;;  %v4431_v60 = vadd.f32 %v4367_v31, %v10529_v24  ;;  %4304 = vst.msk [vmem:[#allocation2 + $0xd8] sm:$0xff] %vm99_vm0, %v4240_v45  ;;  %v2246_v3 = vsel %vm99_vm0, %v2080_v12, 0.0  ;;  %v3791_v43 = vmul.f32 %v3727_v36, %v3662_v10  ;;  %v4956_v49 = vld [vmem:[%s10071_s0 + $0x1d0] sm:$0xff]  ;;  %v10530_v12 = vld [vmem:[#allocation22_spill] sm:$0xff] }
 0x4a5   :  { %v2330_v57 = vmul.f32 %v2230_v51, %v5180_v54  ;;  %v2856_v5 = vmul.f32 0.5, %v2855_v46  ;;  %2247 = vadd.xlane.f32.xlu1 %v2246_v3  ;;  %1881 = vadd.xlane.f32.xlu0 %v1880_v17  ;;  %v9508_v31 = vadd.f32 %v4956_v49, %v1639_v26  ;;  %v1404_v51 = vmul.f32 0.5, %v1403_v13 }
 0x4a6   :  { %4495 = vst.msk [vmem:[%s10076_s5 + $0xd0] sm:$0xff] %vm99_vm0, %v4431_v60  ;;  %v3856_v36 = vadd.f32 %v7439_v21, %v3791_v43  ;;  %v3913_v43 = vld [vmem:[#allocation2 + $0xe8] sm:$0xff] }
 0x4a7   :  { %v3558_v59 = vpop.f32.mrf.mxu3  ;;  %v2394_v53 = vadd.f32 1e-05, %v2330_v57  ;;  %v2857_v33 = vsub.f32 1.5, %v2856_v5  ;;  %v1883_v17 = vsel %vm99_vm0, %v9508_v31, 0.0  ;;  %v1405_v26 = vsub.f32 1.5, %v1404_v51 }
 0x4a8   :  { %v3663_v19 = vmax.f32 %v3558_v59, 0.0 }
 0x4a9   :  { %4846 = vrsqrt.f32 %v2394_v53  ;;  %v4123_v45 = vpop.f32.mrf.mxu1  ;;  %v2858_v13 = vmul.f32 %v9478_v25, %v2857_v33  ;;  %vm2869_vm4 = vweird.f32 %v2394_v53 }
 0x4aa   :  { %v3728_v8 = vmul.f32 %v7404_v56, %v3663_v19  ;;  %v4241_v38 = vadd.f32 %v4123_v45, %v3912_v0 }
 0x4ab   :  { %v4368_v24 = vld [vmem:[#allocation2 + $0xd8] sm:$0xff]  ;;  %v2862_v45 = vsel %vm2861_vm1, %v9478_v25, %v2858_v13 }
 0x4ac   :  { %v3792_v4 = vmul.f32 %v3728_v8, %v3663_v19  ;;  %v673_v60 = vpop.xlane.xlu0 %672  ;;  %v4432_v57 = vadd.f32 %v4368_v24, %v10530_v12  ;;  %4305 = vst.msk [vmem:[#allocation2 + $0xe0] sm:$0xff] %vm99_vm0, %v4241_v38 }
 0x4ad   :  { %v743_v10 = vmul.f32 %v673_v60, %v5180_v54  ;;  %1884 = vadd.xlane.f32.xlu0 %v1883_v17  ;;  %v10533_v60 = vld [vmem:[#allocation49_spill] sm:$0xff] }
 0x4ae   :  { %v3857_v46 = vadd.f32 %v7439_v21, %v3792_v4  ;;  %4496 = vst.msk [vmem:[%s10076_s5 + $0xd8] sm:$0xff] %vm99_vm0, %v4432_v57  ;;  %v1406_v4 = vmul.f32 %v9470_v50, %v1405_v26  ;;  %v3097_v57 = vmul.f32 %v2862_v45, %v8993_v48 }
 0x4af   :  { %v4847_v59 = vpop.eup %4846  ;;  %v807_v19 = vadd.f32 1e-05, %v743_v10 }
 0x4b0   :  { %v3966_v3 = vpack.c.bf16 %v3857_v46, %v3856_v36  ;;  %v2864_v5 = vmul.f32 %v4847_v59, %v2394_v53  ;;  %vm2870_vm2 = vweird.f32 %v4847_v59  ;;  %v1410_v25 = vsel %vm9530_vm7, %v9470_v50, %v1406_v4  ;;  %v3914_v46 = vld [vmem:[#allocation2 + $0xf0] sm:$0xff] }
 0x4b1   :  { %4848 = vrsqrt.f32 %v807_v19  ;;  %v4125_v0 = vpop.f32.mrf.mxu1  ;;  %vm2871_vm3 = vmor %vm2869_vm4, %vm2870_vm2  ;;  %v1510_v26 = vmul.f32 %v1410_v25, %v8967_v23  ;;  %vm1417_vm5 = vweird.f32 %v807_v19 }
 0x4b2   :  { %4142 = vmatmul.bf16.gmra.mxu2 %v3966_v3  ;;  %v2865_v8 = vmul.f32 %v4847_v59, %v2864_v5  ;;  %v4242_v51 = vadd.f32 %v4125_v0, %v3913_v43  ;;  %v3162_v5 = vmul.f32 %v6699_v62, %v3097_v57 }
 0x4b3   :  { %v4369_v44 = vld [vmem:[#allocation2 + $0xe0] sm:$0xff] }
 0x4b4   :  { %v2866_v49 = vmul.f32 0.5, %v2865_v8  ;;  %v9528_v33 = vpop.xlane.xlu1 %675  ;;  %v4433_v40 = vadd.f32 %v4369_v44, %v10533_v60  ;;  %4306 = vst.msk [vmem:[#allocation2 + $0xe8] sm:$0xff] %vm99_vm0, %v4242_v51  ;;  %v10534_v51 = vld [vmem:[#allocation46_spill] sm:$0xff]  ;;  %v3227_v44 = vadd.f32 %v6715_v27, %v3162_v5  ;;  %v1575_v60 = vmul.f32 %v5487_v34, %v1510_v26 }
 0x4b6   :  { %v2867_v38 = vsub.f32 1.5, %v2866_v49  ;;  %4497 = vst.msk [vmem:[%s10076_s5 + $0xe0] sm:$0xff] %vm99_vm0, %v4433_v40  ;;  %v1640_v5 = vadd.f32 %v5494_v2, %v1575_v60 }
 0x4b7   :  { %v4849_v12 = vpop.eup %4848 }
 0x4b8   :  { %v2868_v10 = vmul.f32 %v4847_v59, %v2867_v38  ;;  %v1412_v36 = vmul.f32 %v4849_v12, %v807_v19  ;;  %vm1418_vm6 = vweird.f32 %v4849_v12 }
 0x4b9   :  { %v4128_v13 = vpop.f32.mrf.mxu1  ;;  %vm1419_vm9 = vmor %vm1417_vm5, %vm1418_vm6 }
 0x4ba   :  { %v2872_v17 = vsel %vm2871_vm3, %v4847_v59, %v2868_v10  ;;  %v1413_v3 = vmul.f32 %v4849_v12, %v1412_v36  ;;  %v4243_v53 = vadd.f32 %v4128_v13, %v3914_v46  ;;  %v3915_v10 = vld [vmem:[#allocation2 + $0xf8] sm:$0xff] }
 0x4bb   :  { %v3098_v48 = vmul.f32 %v2872_v17, %v9036_v30  ;;  %v4370_v8 = vld [vmem:[#allocation2 + $0xe8] sm:$0xff]  ;;  %v2236_v45 = vpop.xlane.xlu0 %2235 }
 0x4bc   :  { %v1414_v50 = vmul.f32 0.5, %v1413_v3  ;;  %v1867_v43 = vpop.xlane.xlu1 %1866  ;;  %v2233_v4 = vpop.xlane.xlu2 %2232  ;;  %v4434_v23 = vadd.f32 %v4370_v8, %v10534_v51  ;;  %4307 = vst.msk [vmem:[#allocation2 + $0xf0] sm:$0xff] %vm99_vm0, %v4243_v53  ;;  %v2332_v24 = vmul.f32 %v2236_v45, %v5180_v54  ;;  %v10535_v8 = vld [vmem:[#allocation53_spill] sm:$0xff] }
 0x4bd   :  { %v1953_v0 = vmul.f32 %v1867_v43, %v5180_v54  ;;  %v3163_v59 = vmul.f32 %v6699_v62, %v3098_v48  ;;  %v2331_v30 = vmul.f32 %v2233_v4, %v5180_v54  ;;  %v4957_v4 = vld [vmem:[%s10071_s0 + $0x1d8] sm:$0xff] }
 0x4be   :  { %v1415_v49 = vsub.f32 1.5, %v1414_v50  ;;  %4498 = vst.msk [vmem:[%s10076_s5 + $0xe8] sm:$0xff] %vm99_vm0, %v4434_v23  ;;  %v9565_v25 = vadd.f32 1e-05, %v2332_v24  ;;  %v9581_v45 = vadd.f32 %v4957_v4, %v1640_v5  ;;  %v4958_v4 = vld [vmem:[%s10071_s0 + $0x1e0] sm:$0xff] }
 0x4bf   :  { %v9554_v19 = vsub.f32 %v9134_v55, %v1953_v0  ;;  %v3228_v38 = vadd.f32 %v6715_v27, %v3163_v59  ;;  %v9563_v57 = vadd.f32 1e-05, %v2331_v30  ;;  %v744_v30 = vmul.f32 %v9528_v33, %v5180_v54 }
 0x4c0   :  { %v1416_v40 = vmul.f32 %v4849_v12, %v1415_v49  ;;  %vm2889_vm12 = vweird.f32 %v9565_v25 }
 0x4c1   :  { %v3269_v36 = vpack.c.bf16 %v3228_v38, %v3227_v44  ;;  %v2081_v46 = vmul.f32 %v9554_v19, %v9554_v19  ;;  %4850 = vrsqrt.f32 %v9563_v57  ;;  %v4130_v26 = vpop.f32.mrf.mxu1  ;;  %vm2879_vm8 = vweird.f32 %v9563_v57 }
 0x4c2   :  { %v1420_v17 = vsel %vm1419_vm9, %v4849_v12, %v1416_v40  ;;  %4852 = vrsqrt.f32 %v9565_v25  ;;  %v4244_v50 = vadd.f32 %v4130_v26, %v3915_v10  ;;  %v808_v26 = vadd.f32 1e-05, %v744_v30 }
 0x4c3   :  { %v1511_v3 = vmul.f32 %v1420_v17, %v9078_v20  ;;  %v3561_v48 = vpop.f32.mrf.mxu3  ;;  %4569 = vmatmul.msk.bf16.gmra.mxu3 %vm99_vm0, %v3269_v36  ;;  %v2249_v13 = vsel %vm99_vm0, %v2081_v46, 0.0  ;;  %v4371_v53 = vld [vmem:[#allocation2 + $0xf0] sm:$0xff]  ;;  %v1886_v36 = vsel %vm99_vm0, %v9581_v45, 0.0 }
 0x4c4   :  { %2250 = vadd.xlane.f32.xlu1 %v2249_v13  ;;  %v1870_v43 = vpop.xlane.xlu2 %1869  ;;  %v4435_v12 = vadd.f32 %v4371_v53, %v10535_v8  ;;  %4308 = vst.msk [vmem:[#allocation2 + $0xf8] sm:$0xff] %vm99_vm0, %v4244_v50  ;;  %v3664_v0 = vmax.f32 %v3561_v48, 0.0  ;;  %v10536_v50 = vld [vmem:[#allocation54_spill] sm:$0xff]  ;;  %4854 = vrsqrt.f32 %v808_v26  ;;  %vm1427_vm15 = vweird.f32 %v808_v26 }
 0x4c5   :  { %v1954_v20 = vmul.f32 %v1870_v43, %v5180_v54  ;;  %v1576_v59 = vmul.f32 %v5487_v34, %v1511_v3 }
 0x4c6   :  { %4499 = vst.msk [vmem:[%s10076_s5 + $0xf0] sm:$0xff] %vm99_vm0, %v4435_v12  ;;  %v3729_v38 = vmul.f32 %v7404_v56, %v3664_v0 }
 0x4c7   :  { %v4851_v49 = vpop.eup %4850  ;;  %v9589_v51 = vsub.f32 %v9171_v58, %v1954_v20  ;;  %v1641_v46 = vadd.f32 %v5494_v2, %v1576_v59  ;;  %v679_v20 = vpop.xlane.xlu0 %678 }
 0x4c8   :  { %v4853_v23 = vpop.eup %4852  ;;  %v2874_v24 = vmul.f32 %v4851_v49, %v9563_v57  ;;  %v3793_v43 = vmul.f32 %v3729_v38, %v3664_v0  ;;  %vm2880_vm10 = vweird.f32 %v4851_v49  ;;  %v745_v38 = vmul.f32 %v679_v20, %v5180_v54 }
 0x4c9   :  { %v2884_v44 = vmul.f32 %v4853_v23, %v9565_v25  ;;  %v2082_v60 = vmul.f32 %v9589_v51, %v9589_v51  ;;  %v9607_v59 = vadd.f32 %v4958_v4, %v1641_v46  ;;  %vm2890_vm11 = vweird.f32 %v4853_v23  ;;  %vm2881_vm13 = vmor %vm2879_vm8, %vm2880_vm10 }
 0x4ca   :  { %v2875_v40 = vmul.f32 %v4851_v49, %v2874_v24  ;;  %vm2891_vm14 = vmor %vm2889_vm12, %vm2890_vm11 }
 0x4cb   :  { %v3563_v10 = vpop.f32.mrf.mxu3  ;;  %v2885_v17 = vmul.f32 %v4853_v23, %v2884_v44  ;;  %v2252_v33 = vsel %vm99_vm0, %v2082_v60, 0.0  ;;  %v4372_v13 = vld [vmem:[#allocation2 + $0xf8] sm:$0xff]  ;;  %v3858_v60 = vadd.f32 %v7439_v21, %v3793_v43 }
 0x4cc   :  { %v3665_v3 = vmax.f32 %v3563_v10, 0.0  ;;  %1887 = vadd.xlane.f32.xlu1 %v1886_v36  ;;  %v2876_v48 = vmul.f32 0.5, %v2875_v40  ;;  %2253 = vadd.xlane.f32.xlu2 %v2252_v33  ;;  %v4436_v53 = vadd.f32 %v4372_v13, %v10536_v50  ;;  %v1889_v36 = vsel %vm99_vm0, %v9607_v59, 0.0 }
 0x4cd   :  { %v2886_v5 = vmul.f32 0.5, %v2885_v17 }
 0x4ce   :  { %v3730_v8 = vmul.f32 %v7404_v56, %v3665_v3  ;;  %v2877_v12 = vsub.f32 1.5, %v2876_v48  ;;  %4500 = vst.msk [vmem:[%s10076_s5 + $0xf8] sm:$0xff] %vm99_vm0, %v4436_v53  ;;  %v4855_v48 = vpop.eup %4854 }
 0x4cf   :  { %v2887_v24 = vsub.f32 1.5, %v2886_v5  ;;  %v1422_v50 = vmul.f32 %v4855_v48, %v808_v26  ;;  %vm1428_vm1 = vweird.f32 %v4855_v48 }
 0x4d0   :  { %v3794_v30 = vmul.f32 %v3730_v8, %v3665_v3  ;;  %v2878_v0 = vmul.f32 %v4851_v49, %v2877_v12  ;;  %v809_v3 = vadd.f32 1e-05, %v745_v38  ;;  %vm1429_vm7 = vmor %vm1427_vm15, %vm1428_vm1 }
 0x4d1   :  { %v2888_v44 = vmul.f32 %v4853_v23, %v2887_v24 }
 0x4d2   :  { %v3859_v40 = vadd.f32 %v7439_v21, %v3794_v30  ;;  %v2882_v10 = vsel %vm2881_vm13, %v4851_v49, %v2878_v0  ;;  %4856 = vrsqrt.f32 %v809_v3  ;;  %vm1437_vm2 = vweird.f32 %v809_v3 }
 0x4d3   :  { %v3099_v46 = vmul.f32 %v2882_v10, %v9129_v6  ;;  %v2892_v17 = vsel %vm2891_vm14, %v4853_v23, %v2888_v44  ;;  %v1423_v6 = vmul.f32 %v4855_v48, %v1422_v50 }
 0x4d4   :  { %1890 = vadd.xlane.f32.xlu1 %v1889_v36  ;;  %v3967_v57 = vpack.c.bf16 %v3859_v40, %v3858_v60  ;;  %v3100_v25 = vmul.f32 %v2892_v17, %v9137_v42  ;;  %v3916_v60 = vld [vmem:[#allocation2 + $0x100] sm:$0xff] }
 0x4d5   :  { %v3164_v33 = vmul.f32 %v6699_v62, %v3099_v46  ;;  %v1424_v43 = vmul.f32 0.5, %v1423_v6 }
 0x4d6   :  { %4147 = vmatmul.bf16.gmra.mxu2 %v3967_v57  ;;  %v3165_v13 = vmul.f32 %v6699_v62, %v3100_v25 }
 0x4d7   :  { %v3229_v49 = vadd.f32 %v6715_v27, %v3164_v33  ;;  %v1425_v8 = vsub.f32 1.5, %v1424_v43 }
 0x4d8   :  { %v3230_v5 = vadd.f32 %v6715_v27, %v3165_v13  ;;  %v4857_v23 = vpop.eup %4856 }
 0x4d9   :  { %v1432_v42 = vmul.f32 %v4857_v23, %v809_v3  ;;  %v1426_v20 = vmul.f32 %v4855_v48, %v1425_v8  ;;  %vm1438_vm4 = vweird.f32 %v4857_v23 }
 0x4da   :  { %v3270_v53 = vpack.c.bf16 %v3230_v5, %v3229_v49  ;;  %vm1439_vm3 = vmor %vm1437_vm2, %vm1438_vm4  ;;  %v3917_v5 = vld [vmem:[#allocation2 + $0x108] sm:$0xff] }
 0x4db   :  { %v1433_v12 = vmul.f32 %v4857_v23, %v1432_v42  ;;  %v1430_v44 = vsel %vm1429_vm7, %v4855_v48, %v1426_v20 }
 0x4dc   :  { %4570 = vmatmul.msk.bf16.gmra.mxu3 %vm99_vm0, %v3270_v53  ;;  %v1512_v36 = vmul.f32 %v1430_v44, %v9107_v35 }
 0x4dd   :  { %v1434_v4 = vmul.f32 0.5, %v1433_v12 }
 0x4de   :  { %v1577_v13 = vmul.f32 %v5487_v34, %v1512_v36 }
 0x4df   :  { %v1435_v38 = vsub.f32 1.5, %v1434_v4 }
 0x4e0   :  { %v1642_v20 = vadd.f32 %v5494_v2, %v1577_v13 }
 0x4e1   :  { %v1436_v17 = vmul.f32 %v4857_v23, %v1435_v38 }
 0x4e3   :  { %v1440_v35 = vsel %vm1439_vm3, %v4857_v23, %v1436_v17 }
 0x4e4   :  { %v1513_v42 = vmul.f32 %v1440_v35, %v9166_v1 }
 0x4ec   :  { %v682_v24 = vpop.xlane.xlu1 %681 }
 0x4ed   :  { %v746_v30 = vmul.f32 %v682_v24, %v5180_v54  ;;  %v4133_v10 = vpop.f32.mrf.mxu2 }
 0x4ee   :  { %v4245_v46 = vadd.f32 %v4133_v10, %v3916_v60  ;;  %v4959_v60 = vld [vmem:[%s10071_s0 + $0x1e8] sm:$0xff] }
 0x4ef   :  { %v9628_v0 = vadd.f32 1e-05, %v746_v30 }
 0x4f0   :  { %4309 = vst.msk [vmem:[#allocation2 + $0x100] sm:$0xff] %vm99_vm0, %v4245_v46 }
 0x4f1   :  { %4858 = vrsqrt.f32 %v9628_v0  ;;  %vm1447_vm6 = vweird.f32 %v9628_v0 }
 0x4f4   :  { %v2239_v40 = vpop.xlane.xlu2 %2238  ;;  %v1873_v57 = vpop.xlane.xlu1 %1872 }
 0x4f5   :  { %v2333_v26 = vmul.f32 %v2239_v40, %v5180_v54  ;;  %v1955_v33 = vmul.f32 %v1873_v57, %v5180_v54  ;;  %v4135_v6 = vpop.f32.mrf.mxu2  ;;  %v9671_v40 = vadd.f32 %v4959_v60, %v1642_v20 }
 0x4f6   :  { %v4246_v8 = vadd.f32 %v4135_v6, %v3917_v5  ;;  %v10537_v5 = vld [vmem:[#allocation24_spill] sm:$0xff] }
 0x4f7   :  { %v9633_v25 = vadd.f32 1e-05, %v2333_v26  ;;  %v9638_v48 = vpop.eup %4858  ;;  %v9641_v3 = vsub.f32 %v9309_v7, %v1955_v33  ;;  %v4373_v24 = vld [vmem:[#allocation2 + $0x100] sm:$0xff]  ;;  %v1892_v57 = vsel %vm99_vm0, %v9671_v40, 0.0 }
 0x4f8   :  { %v1442_v49 = vmul.f32 %v9638_v48, %v9628_v0  ;;  %v4437_v44 = vadd.f32 %v4373_v24, %v7261_v29  ;;  %4310 = vst.msk [vmem:[#allocation2 + $0x108] sm:$0xff] %vm99_vm0, %v4246_v8  ;;  %v1578_v29 = vmul.f32 %v5487_v34, %v1513_v42  ;;  %v4960_v42 = vld [vmem:[%s10071_s0 + $0x1f0] sm:$0xff]  ;;  %vm1448_vm5 = vweird.f32 %v9638_v48 }
 0x4f9   :  { %4860 = vrsqrt.f32 %v9633_v25  ;;  %v2083_v50 = vmul.f32 %v9641_v3, %v9641_v3  ;;  %vm1449_vm9 = vmor %vm1447_vm6, %vm1448_vm5  ;;  %vm2899_vm11 = vweird.f32 %v9633_v25 }
 0x4fa   :  { %v1443_v23 = vmul.f32 %v9638_v48, %v1442_v49  ;;  %4501 = vst.msk [vmem:[%s10076_s5 + $0x100] sm:$0xff] %vm99_vm0, %v4437_v44  ;;  %v1643_v33 = vadd.f32 %v5494_v2, %v1578_v29 }
 0x4fb   :  { %v2255_v12 = vsel %vm99_vm0, %v2083_v50, 0.0 }
 0x4fc   :  { %v1876_v53 = vpop.xlane.xlu2 %1875  ;;  %2256 = vadd.xlane.f32.xlu2 %v2255_v12  ;;  %v1444_v10 = vmul.f32 0.5, %v1443_v23  ;;  %v9688_v8 = vadd.f32 %v4960_v42, %v1643_v33 }
 0x4fd   :  { %v1956_v43 = vmul.f32 %v1876_v53, %v5180_v54 }
 0x4fe   :  { %v1445_v13 = vsub.f32 1.5, %v1444_v10 }
 0x4ff   :  { %v9652_v4 = vpop.eup %4860  ;;  %v9656_v30 = vsub.f32 %v9327_v9, %v1956_v43  ;;  %v4374_v35 = vld [vmem:[#allocation2 + $0x108] sm:$0xff] }
 0x500   :  { %v2894_v1 = vmul.f32 %v9652_v4, %v9633_v25  ;;  %v4438_v50 = vadd.f32 %v4374_v35, %v10537_v5  ;;  %v1446_v12 = vmul.f32 %v9638_v48, %v1445_v13  ;;  %vm2900_vm10 = vweird.f32 %v9652_v4 }
 0x501   :  { %v2084_v38 = vmul.f32 %v9656_v30, %v9656_v30  ;;  %vm9708_vm8 = vmor %vm2899_vm11, %vm2900_vm10 }
 0x502   :  { %v2895_v36 = vmul.f32 %v9652_v4, %v2894_v1  ;;  %v2242_v17 = vpop.xlane.xlu0 %2241  ;;  %4502 = vst.msk [vmem:[%s10076_s5 + $0x108] sm:$0xff] %vm99_vm0, %v4438_v50  ;;  %v1450_v60 = vsel %vm1449_vm9, %v9638_v48, %v1446_v12 }
 0x503   :  { %v2258_v26 = vsel %vm99_vm0, %v2084_v38, 0.0  ;;  %v3566_v46 = vpop.f32.mrf.mxu3  ;;  %v2334_v49 = vmul.f32 %v2242_v17, %v5180_v54  ;;  %v1895_v38 = vsel %vm99_vm0, %v9688_v8, 0.0 }
 0x504   :  { %2259 = vadd.xlane.f32.xlu0 %v2258_v26  ;;  %1893 = vadd.xlane.f32.xlu2 %v1892_v57  ;;  %v2896_v53 = vmul.f32 0.5, %v2895_v36  ;;  %v3666_v43 = vmax.f32 %v3566_v46, 0.0  ;;  %v1514_v46 = vmul.f32 %v1450_v60, %v9269_v18 }
 0x505   :  { %v2398_v6 = vadd.f32 1e-05, %v2334_v49 }
 0x506   :  { %v2897_v20 = vsub.f32 1.5, %v2896_v53  ;;  %v3731_v24 = vmul.f32 %v7404_v56, %v3666_v43  ;;  %v1579_v50 = vmul.f32 %v5487_v34, %v1514_v46  ;;  %v4961_v34 = vld [vmem:[%s10071_s0 + $0x1f8] sm:$0xff] }
 0x507   :  { %4862 = vrsqrt.f32 %v2398_v6  ;;  %vm2909_vm13 = vweird.f32 %v2398_v6 }
 0x508   :  { %v2898_v0 = vmul.f32 %v9652_v4, %v2897_v20  ;;  %v3795_v57 = vmul.f32 %v3731_v24, %v3666_v43  ;;  %v1644_v20 = vadd.f32 %v5494_v2, %v1579_v50 }
 0x509   :  { %v1879_v44 = vpop.xlane.xlu2 %1878 }
 0x50a   :  { %v1957_v29 = vmul.f32 %v1879_v44, %v5180_v54  ;;  %v2902_v49 = vsel %vm9708_vm8, %v9652_v4, %v2898_v0  ;;  %v3860_v25 = vadd.f32 %v7439_v21, %v3795_v57 }
 0x50b   :  { %v3568_v23 = vpop.f32.mrf.mxu3  ;;  %v3101_v4 = vmul.f32 %v2902_v49, %v9294_v11 }
 0x50c   :  { %v3667_v1 = vmax.f32 %v3568_v23, 0.0  ;;  %1896 = vadd.xlane.f32.xlu2 %v1895_v38  ;;  %v9702_v36 = vsub.f32 %v9418_v52, %v1957_v29  ;;  %v3918_v23 = vld [vmem:[#allocation2 + $0x110] sm:$0xff]  ;;  %v9725_v38 = vadd.f32 %v4961_v34, %v1644_v20 }
 0x50d   :  { %v4863_v26 = vpop.eup %4862 }
 0x50e   :  { %v3732_v10 = vmul.f32 %v7404_v56, %v3667_v1  ;;  %v2904_v17 = vmul.f32 %v4863_v26, %v2398_v6  ;;  %v2085_v48 = vmul.f32 %v9702_v36, %v9702_v36  ;;  %vm2910_vm12 = vweird.f32 %v4863_v26 }
 0x50f   :  { %vm2911_vm14 = vmor %vm2909_vm13, %vm2910_vm12  ;;  %v1898_v11 = vsel %vm99_vm0, %v9725_v38, 0.0  ;;  %v3166_v6 = vmul.f32 %v6699_v62, %v3101_v4 }
 0x510   :  { %v3796_v33 = vmul.f32 %v3732_v10, %v3667_v1  ;;  %v2905_v35 = vmul.f32 %v4863_v26, %v2904_v17  ;;  %v2261_v5 = vsel %vm99_vm0, %v2085_v48, 0.0  ;;  %v2245_v43 = vpop.xlane.xlu0 %2244 }
 0x511   :  { %2262 = vadd.xlane.f32.xlu0 %v2261_v5  ;;  %v2335_v12 = vmul.f32 %v2245_v43, %v5180_v54  ;;  %v3231_v48 = vadd.f32 %v6715_v27, %v3166_v6 }
 0x512   :  { %v2906_v18 = vmul.f32 0.5, %v2905_v35  ;;  %v3861_v53 = vadd.f32 %v7439_v21, %v3796_v33 }
 0x513   :  { %v2399_v1 = vadd.f32 1e-05, %v2335_v12 }
 0x514   :  { %v2907_v42 = vsub.f32 1.5, %v2906_v18  ;;  %v3968_v24 = vpack.c.bf16 %v3861_v53, %v3860_v25 }
 0x515   :  { %4864 = vrsqrt.f32 %v2399_v1  ;;  %vm2919_vm1 = vweird.f32 %v2399_v1 }
 0x516   :  { %v2908_v44 = vmul.f32 %v4863_v26, %v2907_v42  ;;  %v4138_v60 = vpop.f32.mrf.mxu2  ;;  %4152 = vmatmul.bf16.gmra.mxu2 %v3968_v24 }
 0x517   :  { %v4247_v29 = vadd.f32 %v4138_v60, %v3918_v23 }
 0x518   :  { %v2912_v10 = vsel %vm2911_vm14, %v4863_v26, %v2908_v44  ;;  %v2248_v0 = vpop.xlane.xlu1 %2247  ;;  %v1882_v46 = vpop.xlane.xlu0 %1881  ;;  %v3919_v26 = vld [vmem:[#allocation2 + $0x118] sm:$0xff] }
 0x519   :  { %v3102_v2 = vmul.f32 %v2912_v10, %v9367_v28  ;;  %4311 = vst.msk [vmem:[#allocation2 + $0x110] sm:$0xff] %vm99_vm0, %v4247_v29  ;;  %1899 = vadd.xlane.f32.xlu0 %v1898_v11  ;;  %v2336_v57 = vmul.f32 %v2248_v0, %v5180_v54  ;;  %v1958_v33 = vmul.f32 %v1882_v46, %v5180_v54 }
 0x51b   :  { %v3167_v17 = vmul.f32 %v6699_v62, %v3102_v2  ;;  %v4865_v13 = vpop.eup %4864  ;;  %v2400_v35 = vadd.f32 1e-05, %v2336_v57  ;;  %v9739_v49 = vsub.f32 %v9476_v39, %v1958_v33 }
 0x51c   :  { %v2914_v18 = vmul.f32 %v4865_v13, %v2399_v1  ;;  %vm2920_vm15 = vweird.f32 %v4865_v13 }
 0x51d   :  { %v3232_v28 = vadd.f32 %v6715_v27, %v3167_v17  ;;  %4866 = vrsqrt.f32 %v2400_v35  ;;  %v2086_v42 = vmul.f32 %v9739_v49, %v9739_v49  ;;  %vm2921_vm7 = vmor %vm2919_vm1, %vm2920_vm15  ;;  %vm2929_vm4 = vweird.f32 %v2400_v35 }
 0x51e   :  { %v4140_v5 = vpop.f32.mrf.mxu2  ;;  %v2915_v12 = vmul.f32 %v4865_v13, %v2914_v18 }
 0x51f   :  { %v3271_v50 = vpack.c.bf16 %v3232_v28, %v3231_v48  ;;  %v4248_v25 = vadd.f32 %v4140_v5, %v3919_v26  ;;  %v2264_v23 = vsel %vm99_vm0, %v2086_v42, 0.0 }
 0x520   :  { %v4375_v53 = vld [vmem:[#allocation2 + $0x110] sm:$0xff]  ;;  %v2916_v24 = vmul.f32 0.5, %v2915_v12  ;;  %2265 = vadd.xlane.f32.xlu1 %v2264_v23  ;;  %v1885_v44 = vpop.xlane.xlu0 %1884 }
 0x521   :  { %v3571_v43 = vpop.f32.mrf.mxu3  ;;  %v4439_v20 = vadd.f32 %v4375_v53, %v7325_v61  ;;  %4571 = vmatmul.msk.bf16.gmra.mxu3 %vm99_vm0, %v3271_v50  ;;  %4312 = vst.msk [vmem:[#allocation2 + $0x118] sm:$0xff] %vm99_vm0, %v4248_v25  ;;  %v1959_v34 = vmul.f32 %v1885_v44, %v5180_v54 }
 0x522   :  { %v3668_v4 = vmax.f32 %v3571_v43, 0.0  ;;  %v2917_v60 = vsub.f32 1.5, %v2916_v24 }
 0x523   :  { %4503 = vst.msk [vmem:[%s10076_s5 + $0x110] sm:$0xff] %vm99_vm0, %v4439_v20  ;;  %v4867_v29 = vpop.eup %4866  ;;  %v9753_v61 = vsub.f32 %v9508_v31, %v1959_v34  ;;  %v3920_v20 = vld [vmem:[#allocation2 + $0x120] sm:$0xff] }
 0x524   :  { %v2918_v10 = vmul.f32 %v4865_v13, %v2917_v60  ;;  %v2924_v2 = vmul.f32 %v4867_v29, %v2400_v35  ;;  %v3733_v11 = vmul.f32 %v7404_v56, %v3668_v4  ;;  %vm2930_vm2 = vweird.f32 %v4867_v29 }
 0x525   :  { %v2087_v46 = vmul.f32 %v9753_v61, %v9753_v61  ;;  %vm2931_vm3 = vmor %vm2929_vm4, %vm2930_vm2 }
 0x526   :  { %v2925_v17 = vmul.f32 %v4867_v29, %v2924_v2  ;;  %v2922_v48 = vsel %vm2921_vm7, %v4865_v13, %v2918_v10  ;;  %v3797_v5 = vmul.f32 %v3733_v11, %v3668_v4  ;;  %v3921_v10 = vld [vmem:[#allocation2 + $0x128] sm:$0xff] }
 0x527   :  { %v2267_v26 = vsel %vm99_vm0, %v2087_v46, 0.0 }
 0x528   :  { %v4376_v6 = vld [vmem:[#allocation2 + $0x118] sm:$0xff]  ;;  %v2926_v28 = vmul.f32 0.5, %v2925_v17  ;;  %2268 = vadd.xlane.f32.xlu1 %v2267_v26  ;;  %v3862_v53 = vadd.f32 %v7439_v21, %v3797_v5 }
 0x529   :  { %v3573_v0 = vpop.f32.mrf.mxu3  ;;  %v4440_v57 = vadd.f32 %v4376_v6, %v7245_v47  ;;  %v3103_v47 = vmul.f32 %v2922_v48, %v9450_v63 }
 0x52a   :  { %v3669_v33 = vmax.f32 %v3573_v0, 0.0  ;;  %v2927_v50 = vsub.f32 1.5, %v2926_v28  ;;  %v10540_v0 = vld [vmem:[#allocation45_spill] sm:$0xff] }
 0x52b   :  { %4504 = vst.msk [vmem:[%s10076_s5 + $0x118] sm:$0xff] %vm99_vm0, %v4440_v57  ;;  %v3168_v23 = vmul.f32 %v6699_v62, %v3103_v47 }
 0x52c   :  { %v3734_v18 = vmul.f32 %v7404_v56, %v3669_v33  ;;  %v2928_v25 = vmul.f32 %v4867_v29, %v2927_v50 }
 0x52d   :  { %v3233_v63 = vadd.f32 %v6715_v27, %v3168_v23 }
 0x52e   :  { %v3798_v1 = vmul.f32 %v3734_v18, %v3669_v33  ;;  %v2932_v43 = vsel %vm2931_vm3, %v4867_v29, %v2928_v25 }
 0x52f   :  { %v3104_v12 = vmul.f32 %v2932_v43, %v9481_v32  ;;  %v10541_v43 = vld [vmem:[#allocation50_spill] sm:$0xff] }
 0x530   :  { %v3863_v13 = vadd.f32 %v7439_v21, %v3798_v1 }
 0x531   :  { %v3169_v4 = vmul.f32 %v6699_v62, %v3104_v12 }
 0x532   :  { %v3969_v42 = vpack.c.bf16 %v3863_v13, %v3862_v53 }
 0x533   :  { %v3234_v35 = vadd.f32 %v6715_v27, %v3169_v4 }
 0x534   :  { %4157 = vmatmul.bf16.gmra.mxu2 %v3969_v42 }
 0x535   :  { %v4143_v24 = vpop.f32.mrf.mxu2  ;;  %v3272_v60 = vpack.c.bf16 %v3234_v35, %v3233_v63 }
 0x536   :  { %v4249_v44 = vadd.f32 %v4143_v24, %v3920_v20 }
 0x537   :  { %v2251_v34 = vpop.xlane.xlu1 %2250  ;;  %4572 = vmatmul.msk.bf16.gmra.mxu3 %vm99_vm0, %v3272_v60 }
 0x538   :  { %4313 = vst.msk [vmem:[#allocation2 + $0x120] sm:$0xff] %vm99_vm0, %v4249_v44  ;;  %v2337_v29 = vmul.f32 %v2251_v34, %v5180_v54 }
 0x53a   :  { %v2401_v32 = vadd.f32 1e-05, %v2337_v29 }
 0x53c   :  { %4868 = vrsqrt.f32 %v2401_v32  ;;  %vm2939_vm6 = vweird.f32 %v2401_v32 }
 0x53d   :  { %v4145_v2 = vpop.f32.mrf.mxu2 }
 0x53e   :  { %v4250_v11 = vadd.f32 %v4145_v2, %v3921_v10 }
 0x53f   :  { %v4377_v6 = vld [vmem:[#allocation2 + $0x120] sm:$0xff]  ;;  %v1888_v17 = vpop.xlane.xlu1 %1887  ;;  %v2254_v33 = vpop.xlane.xlu2 %2253 }
 0x540   :  { %v4441_v46 = vadd.f32 %v4377_v6, %v10540_v0  ;;  %4314 = vst.msk [vmem:[#allocation2 + $0x128] sm:$0xff] %vm99_vm0, %v4250_v11  ;;  %v1960_v57 = vmul.f32 %v1888_v17, %v5180_v54  ;;  %v2338_v26 = vmul.f32 %v2254_v33, %v5180_v54 }
 0x542   :  { %4505 = vst.msk [vmem:[%s10076_s5 + $0x120] sm:$0xff] %vm99_vm0, %v4441_v46  ;;  %v4869_v48 = vpop.eup %4868  ;;  %v9785_v28 = vsub.f32 %v9581_v45, %v1960_v57  ;;  %v2402_v18 = vadd.f32 1e-05, %v2338_v26 }
 0x543   :  { %v2934_v5 = vmul.f32 %v4869_v48, %v2401_v32  ;;  %vm2940_vm5 = vweird.f32 %v4869_v48 }
 0x544   :  { %v2088_v50 = vmul.f32 %v9785_v28, %v9785_v28  ;;  %4870 = vrsqrt.f32 %v2402_v18  ;;  %vm2941_vm9 = vmor %vm2939_vm6, %vm2940_vm5  ;;  %vm2949_vm11 = vweird.f32 %v2402_v18 }
 0x545   :  { %v2935_v1 = vmul.f32 %v4869_v48, %v2934_v5 }
 0x546   :  { %v3576_v25 = vpop.f32.mrf.mxu3  ;;  %v2270_v53 = vsel %vm99_vm0, %v2088_v50, 0.0 }
 0x547   :  { %v4378_v47 = vld [vmem:[#allocation2 + $0x128] sm:$0xff]  ;;  %v2936_v13 = vmul.f32 0.5, %v2935_v1  ;;  %v1891_v12 = vpop.xlane.xlu1 %1890  ;;  %2271 = vadd.xlane.f32.xlu2 %v2270_v53  ;;  %v3670_v24 = vmax.f32 %v3576_v25, 0.0 }
 0x548   :  { %v4442_v42 = vadd.f32 %v4378_v47, %v10541_v43  ;;  %v1961_v20 = vmul.f32 %v1891_v12, %v5180_v54 }
 0x549   :  { %v2937_v23 = vsub.f32 1.5, %v2936_v13  ;;  %v3735_v60 = vmul.f32 %v7404_v56, %v3670_v24 }
 0x54a   :  { %4506 = vst.msk [vmem:[%s10076_s5 + $0x128] sm:$0xff] %vm99_vm0, %v4442_v42  ;;  %v9797_v4 = vsub.f32 %v9607_v59, %v1961_v20  ;;  %v4871_v44 = vpop.eup %4870  ;;  %v3923_v20 = vld [vmem:[#allocation2 + $0x138] sm:$0xff] }
 0x54b   :  { %v2938_v63 = vmul.f32 %v4869_v48, %v2937_v23  ;;  %v2944_v35 = vmul.f32 %v4871_v44, %v2402_v18  ;;  %v3799_v46 = vmul.f32 %v3735_v60, %v3670_v24  ;;  %vm2950_vm10 = vweird.f32 %v4871_v44 }
 0x54c   :  { %v2089_v34 = vmul.f32 %v9797_v4, %v9797_v4  ;;  %vm2951_vm8 = vmor %vm2949_vm11, %vm2950_vm10 }
 0x54d   :  { %v2945_v29 = vmul.f32 %v4871_v44, %v2944_v35  ;;  %v2942_v6 = vsel %vm2941_vm9, %v4869_v48, %v2938_v63  ;;  %v3864_v32 = vadd.f32 %v7439_v21, %v3799_v46  ;;  %v3922_v48 = vld [vmem:[#allocation2 + $0x130] sm:$0xff]  ;;  %v10542_v35 = vld [vmem:[#allocation51_spill] sm:$0xff] }
 0x54e   :  { %v3578_v10 = vpop.f32.mrf.mxu3  ;;  %v2273_v2 = vsel %vm99_vm0, %v2089_v34, 0.0  ;;  %v3105_v33 = vmul.f32 %v2942_v6, %v9554_v19 }
 0x54f   :  { %v3671_v11 = vmax.f32 %v3578_v10, 0.0  ;;  %2274 = vadd.xlane.f32.xlu0 %v2273_v2  ;;  %v2946_v0 = vmul.f32 0.5, %v2945_v29 }
 0x550   :  { %v3170_v53 = vmul.f32 %v6699_v62, %v3105_v33 }
 0x551   :  { %v3736_v17 = vmul.f32 %v7404_v56, %v3671_v11  ;;  %v2947_v57 = vsub.f32 1.5, %v2946_v0  ;;  %v10543_v0 = vld [vmem:[#allocation43_spill] sm:$0xff] }
 0x552   :  { %v3235_v42 = vadd.f32 %v6715_v27, %v3170_v53 }
 0x553   :  { %v3800_v26 = vmul.f32 %v3736_v17, %v3671_v11  ;;  %v2948_v5 = vmul.f32 %v4871_v44, %v2947_v57 }
 0x555   :  { %v3865_v50 = vadd.f32 %v7439_v21, %v3800_v26  ;;  %v2952_v1 = vsel %vm2951_vm8, %v4871_v44, %v2948_v5 }
 0x556   :  { %v3106_v47 = vmul.f32 %v2952_v1, %v9589_v51 }
 0x557   :  { %v3970_v25 = vpack.c.bf16 %v3865_v50, %v3864_v32 }
 0x558   :  { %v3171_v43 = vmul.f32 %v6699_v62, %v3106_v47 }
 0x559   :  { %v4148_v13 = vpop.f32.mrf.mxu2  ;;  %4162 = vmatmul.bf16.gmra.mxu2 %v3970_v25 }
 0x55a   :  { %v4251_v19 = vadd.f32 %v4148_v13, %v3922_v48  ;;  %v3236_v18 = vadd.f32 %v6715_v27, %v3171_v43 }
 0x55c   :  { %4315 = vst.msk [vmem:[#allocation2 + $0x130] sm:$0xff] %vm99_vm0, %v4251_v19  ;;  %v3273_v12 = vpack.c.bf16 %v3236_v18, %v3235_v42 }
 0x55e   :  { %4573 = vmatmul.msk.bf16.gmra.mxu3 %vm99_vm0, %v3273_v12 }
 0x55f   :  { %v3581_v51 = vpop.f32.mrf.mxu3 }
 0x560   :  { %v3672_v63 = vmax.f32 %v3581_v51, 0.0 }
 0x561   :  { %v4150_v23 = vpop.f32.mrf.mxu2 }
 0x562   :  { %v4252_v24 = vadd.f32 %v4150_v23, %v3923_v20  ;;  %v3737_v60 = vmul.f32 %v7404_v56, %v3672_v63 }
 0x563   :  { %v4379_v44 = vld [vmem:[#allocation2 + $0x130] sm:$0xff] }
 0x564   :  { %v4443_v34 = vadd.f32 %v4379_v44, %v10542_v35  ;;  %4316 = vst.msk [vmem:[#allocation2 + $0x138] sm:$0xff] %vm99_vm0, %v4252_v24  ;;  %v3801_v2 = vmul.f32 %v3737_v60, %v3672_v63 }
 0x566   :  { %4507 = vst.msk [vmem:[%s10076_s5 + $0x130] sm:$0xff] %vm99_vm0, %v4443_v34  ;;  %v3866_v33 = vadd.f32 %v7439_v21, %v3801_v2 }
 0x567   :  { %v3583_v29 = vpop.f32.mrf.mxu3 }
 0x568   :  { %v3673_v10 = vmax.f32 %v3583_v29, 0.0 }
 0x56a   :  { %v3738_v6 = vmul.f32 %v7404_v56, %v3673_v10 }
 0x56b   :  { %v4380_v11 = vld [vmem:[#allocation2 + $0x138] sm:$0xff] }
 0x56c   :  { %v4444_v46 = vadd.f32 %v4380_v11, %v10543_v0  ;;  %v3802_v17 = vmul.f32 %v3738_v6, %v3673_v10 }
 0x56e   :  { %4508 = vst.msk [vmem:[%s10076_s5 + $0x138] sm:$0xff] %vm99_vm0, %v4444_v46  ;;  %v3867_v26 = vadd.f32 %v7439_v21, %v3802_v17 }
 0x56f   :  { %v2257_v57 = vpop.xlane.xlu2 %2256 }
 0x570   :  { %v2339_v5 = vmul.f32 %v2257_v57, %v5180_v54  ;;  %v3971_v32 = vpack.c.bf16 %v3867_v26, %v3866_v33 }
 0x572   :  { %v2403_v50 = vadd.f32 1e-05, %v2339_v5  ;;  %4167 = vmatmul.bf16.gmra.mxu2 %v3971_v32 }
 0x574   :  { %4872 = vrsqrt.f32 %v2403_v50  ;;  %vm2959_vm13 = vweird.f32 %v2403_v50 }
 0x577   :  { %v2260_v1 = vpop.xlane.xlu0 %2259  ;;  %v1894_v48 = vpop.xlane.xlu2 %1893 }
 0x578   :  { %v2340_v47 = vmul.f32 %v2260_v1, %v5180_v54  ;;  %v1962_v53 = vmul.f32 %v1894_v48, %v5180_v54 }
 0x57a   :  { %v2404_v25 = vadd.f32 1e-05, %v2340_v47  ;;  %v4873_v13 = vpop.eup %4872  ;;  %v9833_v43 = vsub.f32 %v9671_v40, %v1962_v53 }
 0x57b   :  { %v2954_v19 = vmul.f32 %v4873_v13, %v2403_v50  ;;  %vm2960_vm12 = vweird.f32 %v4873_v13 }
 0x57c   :  { %4874 = vrsqrt.f32 %v2404_v25  ;;  %v2090_v42 = vmul.f32 %v9833_v43, %v9833_v43  ;;  %vm2961_vm14 = vmor %vm2959_vm13, %vm2960_vm12  ;;  %vm2969_vm1 = vweird.f32 %v2404_v25 }
 0x57d   :  { %v2955_v18 = vmul.f32 %v4873_v13, %v2954_v19 }
 0x57e   :  { %v2276_v12 = vsel %vm99_vm0, %v2090_v42, 0.0 }
 0x57f   :  { %v2956_v51 = vmul.f32 0.5, %v2955_v18  ;;  %v1897_v23 = vpop.xlane.xlu2 %1896  ;;  %2277 = vadd.xlane.f32.xlu1 %v2276_v12 }
 0x580   :  { %v1963_v44 = vmul.f32 %v1897_v23, %v5180_v54 }
 0x581   :  { %v2957_v63 = vsub.f32 1.5, %v2956_v51  ;;  %v3924_v51 = vld [vmem:[#allocation2 + $0x140] sm:$0xff] }
 0x582   :  { %v4875_v20 = vpop.eup %4874  ;;  %v9840_v34 = vsub.f32 %v9688_v8, %v1963_v44 }
 0x583   :  { %v2964_v24 = vmul.f32 %v4875_v20, %v2404_v25  ;;  %v2958_v60 = vmul.f32 %v4873_v13, %v2957_v63  ;;  %vm2970_vm15 = vweird.f32 %v4875_v20 }
 0x584   :  { %v2091_v10 = vmul.f32 %v9840_v34, %v9840_v34  ;;  %v2263_v11 = vpop.xlane.xlu0 %2262  ;;  %vm2971_vm7 = vmor %vm2969_vm1, %vm2970_vm15 }
 0x585   :  { %v2965_v35 = vmul.f32 %v4875_v20, %v2964_v24  ;;  %v2962_v0 = vsel %vm2961_vm14, %v4873_v13, %v2958_v60  ;;  %v2341_v46 = vmul.f32 %v2263_v11, %v5180_v54  ;;  %v3925_v60 = vld [vmem:[#allocation2 + $0x148] sm:$0xff] }
 0x586   :  { %v2279_v6 = vsel %vm99_vm0, %v2091_v10, 0.0  ;;  %v3107_v33 = vmul.f32 %v2962_v0, %v9641_v3 }
 0x587   :  { %v2966_v29 = vmul.f32 0.5, %v2965_v35  ;;  %2280 = vadd.xlane.f32.xlu2 %v2279_v6  ;;  %v2405_v57 = vadd.f32 1e-05, %v2341_v46 }
 0x588   :  { %v3172_v50 = vmul.f32 %v6699_v62, %v3107_v33  ;;  %v10544_v33 = vld [vmem:[#allocation55_spill] sm:$0xff] }
 0x589   :  { %v2967_v2 = vsub.f32 1.5, %v2966_v29  ;;  %4876 = vrsqrt.f32 %v2405_v57  ;;  %vm2979_vm4 = vweird.f32 %v2405_v57 }
 0x58a   :  { %v3237_v48 = vadd.f32 %v6715_v27, %v3172_v50 }
 0x58b   :  { %v2968_v17 = vmul.f32 %v4875_v20, %v2967_v2 }
 0x58c   :  { %v1900_v32 = vpop.xlane.xlu0 %1899 }
 0x58d   :  { %v2972_v26 = vsel %vm2971_vm7, %v4875_v20, %v2968_v17  ;;  %v1964_v47 = vmul.f32 %v1900_v32, %v5180_v54 }
 0x58e   :  { %v3108_v5 = vmul.f32 %v2972_v26, %v9656_v30 }
 0x58f   :  { %v4877_v25 = vpop.eup %4876  ;;  %v9854_v13 = vsub.f32 %v9725_v38, %v1964_v47 }
 0x590   :  { %v3173_v1 = vmul.f32 %v6699_v62, %v3108_v5  ;;  %v2974_v19 = vmul.f32 %v4877_v25, %v2405_v57  ;;  %vm2980_vm2 = vweird.f32 %v4877_v25 }
 0x591   :  { %v2092_v30 = vmul.f32 %v9854_v13, %v9854_v13  ;;  %vm2981_vm3 = vmor %vm2979_vm4, %vm2980_vm2 }
 0x592   :  { %v3238_v53 = vadd.f32 %v6715_v27, %v3173_v1  ;;  %v2975_v18 = vmul.f32 %v4877_v25, %v2974_v19 }
 0x593   :  { %v2282_v42 = vsel %vm99_vm0, %v2092_v30, 0.0  ;;  %v2266_v12 = vpop.xlane.xlu1 %2265 }
 0x594   :  { %v3274_v3 = vpack.c.bf16 %v3238_v53, %v3237_v48  ;;  %2283 = vadd.xlane.f32.xlu0 %v2282_v42  ;;  %v2342_v20 = vmul.f32 %v2266_v12, %v5180_v54  ;;  %v2976_v44 = vmul.f32 0.5, %v2975_v18 }
 0x596   :  { %4574 = vmatmul.msk.bf16.gmra.mxu3 %vm99_vm0, %v3274_v3  ;;  %v2406_v23 = vadd.f32 1e-05, %v2342_v20  ;;  %v2977_v35 = vsub.f32 1.5, %v2976_v44 }
 0x598   :  { %4878 = vrsqrt.f32 %v2406_v23  ;;  %v2978_v2 = vmul.f32 %v4877_v25, %v2977_v35  ;;  %vm2989_vm6 = vweird.f32 %v2406_v23 }
 0x599   :  { %v4153_v24 = vpop.f32.mrf.mxu2 }
 0x59a   :  { %v4253_v63 = vadd.f32 %v4153_v24, %v3924_v51  ;;  %v2982_v50 = vsel %vm2981_vm3, %v4877_v25, %v2978_v2  ;;  %v10545_v25 = vld [vmem:[#allocation56_spill] sm:$0xff] }
 0x59b   :  { %v2269_v6 = vpop.xlane.xlu1 %2268  ;;  %v3109_v57 = vmul.f32 %v2982_v50, %v9702_v36 }
 0x59c   :  { %4317 = vst.msk [vmem:[#allocation2 + $0x140] sm:$0xff] %vm99_vm0, %v4253_v63  ;;  %v2343_v32 = vmul.f32 %v2269_v6, %v5180_v54 }
 0x59d   :  { %v3174_v24 = vmul.f32 %v6699_v62, %v3109_v57 }
 0x59e   :  { %v4879_v29 = vpop.eup %4878  ;;  %v2407_v53 = vadd.f32 1e-05, %v2343_v32  ;;  %v3927_v32 = vld [vmem:[#allocation2 + $0x158] sm:$0xff] }
 0x59f   :  { %v2984_v11 = vmul.f32 %v4879_v29, %v2406_v23  ;;  %vm2990_vm5 = vweird.f32 %v4879_v29  ;;  %v3239_v35 = vadd.f32 %v6715_v27, %v3174_v24 }
 0x5a0   :  { %vm2991_vm9 = vmor %vm2989_vm6, %vm2990_vm5  ;;  %4880 = vrsqrt.f32 %v2407_v53  ;;  %vm2999_vm11 = vweird.f32 %v2407_v53 }
 0x5a1   :  { %v4155_v10 = vpop.f32.mrf.mxu2  ;;  %v2985_v17 = vmul.f32 %v4879_v29, %v2984_v11  ;;  %v3926_v11 = vld [vmem:[#allocation2 + $0x150] sm:$0xff] }
 0x5a2   :  { %v4254_v0 = vadd.f32 %v4155_v10, %v3925_v60 }
 0x5a3   :  { %v4381_v46 = vld [vmem:[#allocation2 + $0x140] sm:$0xff]  ;;  %v2986_v1 = vmul.f32 0.5, %v2985_v17 }
 0x5a4   :  { %v4445_v26 = vadd.f32 %v4381_v46, %v10544_v33  ;;  %v3586_v5 = vpop.f32.mrf.mxu3  ;;  %4318 = vst.msk [vmem:[#allocation2 + $0x148] sm:$0xff] %vm99_vm0, %v4254_v0 }
 0x5a5   :  { %v3674_v47 = vmax.f32 %v3586_v5, 0.0  ;;  %v2987_v48 = vsub.f32 1.5, %v2986_v1 }
 0x5a6   :  { %4509 = vst.msk [vmem:[%s10076_s5 + $0x140] sm:$0xff] %vm99_vm0, %v4445_v26 }
 0x5a7   :  { %v2988_v3 = vmul.f32 %v4879_v29, %v2987_v48  ;;  %v3739_v19 = vmul.f32 %v7404_v56, %v3674_v47 }
 0x5a9   :  { %v2992_v42 = vsel %vm2991_vm9, %v4879_v29, %v2988_v3  ;;  %v3803_v36 = vmul.f32 %v3739_v19, %v3674_v47 }
 0x5aa   :  { %v3110_v20 = vmul.f32 %v2992_v42, %v9739_v49  ;;  %v4881_v49 = vpop.eup %4880 }
 0x5ab   :  { %v4382_v30 = vld [vmem:[#allocation2 + $0x148] sm:$0xff]  ;;  %v3868_v10 = vadd.f32 %v7439_v21, %v3803_v36  ;;  %v2994_v0 = vmul.f32 %v4881_v49, %v2407_v53  ;;  %vm3000_vm10 = vweird.f32 %v4881_v49 }
 0x5ac   :  { %v4446_v18 = vadd.f32 %v4382_v30, %v10545_v25  ;;  %v3588_v12 = vpop.f32.mrf.mxu3  ;;  %v3175_v44 = vmul.f32 %v6699_v62, %v3110_v20  ;;  %v10546_v30 = vld [vmem:[#allocation40_spill] sm:$0xff]  ;;  %vm3001_vm8 = vmor %vm2999_vm11, %vm3000_vm10 }
 0x5ad   :  { %v3675_v51 = vmax.f32 %v3588_v12, 0.0  ;;  %v2995_v33 = vmul.f32 %v4881_v49, %v2994_v0 }
 0x5ae   :  { %4510 = vst.msk [vmem:[%s10076_s5 + $0x148] sm:$0xff] %vm99_vm0, %v4446_v18  ;;  %v3240_v60 = vadd.f32 %v6715_v27, %v3175_v44 }
 0x5af   :  { %v3740_v23 = vmul.f32 %v7404_v56, %v3675_v51  ;;  %v2996_v47 = vmul.f32 0.5, %v2995_v33 }
 0x5b0   :  { %v3275_v29 = vpack.c.bf16 %v3240_v60, %v3239_v35  ;;  %v10547_v60 = vld [vmem:[#allocation21_spill] sm:$0xff] }
 0x5b1   :  { %v3804_v63 = vmul.f32 %v3740_v23, %v3675_v51  ;;  %v2997_v25 = vsub.f32 1.5, %v2996_v47 }
 0x5b2   :  { %4575 = vmatmul.msk.bf16.gmra.mxu3 %vm99_vm0, %v3275_v29 }
 0x5b3   :  { %v3869_v2 = vadd.f32 %v7439_v21, %v3804_v63  ;;  %v2998_v51 = vmul.f32 %v4881_v49, %v2997_v25 }
 0x5b5   :  { %v3972_v6 = vpack.c.bf16 %v3869_v2, %v3868_v10  ;;  %v3002_v10 = vsel %vm3001_vm8, %v4881_v49, %v2998_v51  ;;  %v10548_v51 = vld [vmem:[#allocation33_spill] sm:$0xff] }
 0x5b7   :  { %v4158_v46 = vpop.f32.mrf.mxu2  ;;  %4172 = vmatmul.bf16.gmra.mxu2 %v3972_v6 }
 0x5b8   :  { %v4255_v17 = vadd.f32 %v4158_v46, %v3926_v11  ;;  %v3111_v46 = vmul.f32 %v3002_v10, %v9753_v61  ;;  %v3928_v61 = vld [vmem:[#allocation2 + $0x160] sm:$0xff] }
 0x5ba   :  { %4319 = vst.msk [vmem:[#allocation2 + $0x150] sm:$0xff] %vm99_vm0, %v4255_v17  ;;  %v2272_v26 = vpop.xlane.xlu2 %2271  ;;  %v3591_v50 = vpop.f32.mrf.mxu3 }
 0x5bb   :  { %v2344_v5 = vmul.f32 %v2272_v26, %v5180_v54  ;;  %v3676_v19 = vmax.f32 %v3591_v50, 0.0 }
 0x5bd   :  { %v2408_v1 = vadd.f32 1e-05, %v2344_v5  ;;  %v3741_v18 = vmul.f32 %v7404_v56, %v3676_v19  ;;  %v3176_v5 = vmul.f32 %v6699_v62, %v3111_v46 }
 0x5bf   :  { %v4160_v48 = vpop.f32.mrf.mxu2  ;;  %4882 = vrsqrt.f32 %v2408_v1  ;;  %v3805_v23 = vmul.f32 %v3741_v18, %v3676_v19  ;;  %vm3009_vm13 = vweird.f32 %v2408_v1  ;;  %v3241_v50 = vadd.f32 %v6715_v27, %v3176_v5 }
 0x5c0   :  { %v4256_v57 = vadd.f32 %v4160_v48, %v3927_v32 }
 0x5c1   :  { %v4383_v3 = vld [vmem:[#allocation2 + $0x150] sm:$0xff]  ;;  %v3870_v53 = vadd.f32 %v7439_v21, %v3805_v23 }
 0x5c2   :  { %v4447_v42 = vadd.f32 %v4383_v3, %v10546_v30  ;;  %4320 = vst.msk [vmem:[#allocation2 + $0x158] sm:$0xff] %vm99_vm0, %v4256_v57  ;;  %v3593_v20 = vpop.f32.mrf.mxu3  ;;  %v2275_v57 = vpop.xlane.xlu0 %2274 }
 0x5c3   :  { %v3677_v36 = vmax.f32 %v3593_v20, 0.0 }
 0x5c4   :  { %4511 = vst.msk [vmem:[%s10076_s5 + $0x150] sm:$0xff] %vm99_vm0, %v4447_v42  ;;  %v3929_v42 = vld [vmem:[#allocation2 + $0x168] sm:$0xff] }
 0x5c5   :  { %v4883_v12 = vpop.eup %4882  ;;  %v3742_v35 = vmul.f32 %v7404_v56, %v3677_v36 }
 0x5c6   :  { %v3004_v24 = vmul.f32 %v4883_v12, %v2408_v1  ;;  %vm3010_vm12 = vweird.f32 %v4883_v12  ;;  %v2345_v1 = vmul.f32 %v2275_v57, %v5180_v54 }
 0x5c7   :  { %v3806_v11 = vmul.f32 %v3742_v35, %v3677_v36  ;;  %vm3011_vm14 = vmor %vm3009_vm13, %vm3010_vm12 }
 0x5c8   :  { %v3005_v44 = vmul.f32 %v4883_v12, %v3004_v24 }
 0x5c9   :  { %v4384_v63 = vld [vmem:[#allocation2 + $0x158] sm:$0xff]  ;;  %v3871_v0 = vadd.f32 %v7439_v21, %v3806_v11 }
 0x5ca   :  { %v4448_v29 = vadd.f32 %v4384_v63, %v10547_v60  ;;  %v3006_v2 = vmul.f32 0.5, %v3005_v44 }
 0x5cb   :  { %v3973_v33 = vpack.c.bf16 %v3871_v0, %v3870_v53 }
 0x5cc   :  { %4512 = vst.msk [vmem:[%s10076_s5 + $0x158] sm:$0xff] %vm99_vm0, %v4448_v29  ;;  %v3007_v6 = vsub.f32 1.5, %v3006_v2  ;;  %v10549_v2 = vld [vmem:[#allocation25_spill] sm:$0xff] }
 0x5cd   :  { %4177 = vmatmul.bf16.gmra.mxu2 %v3973_v33 }
 0x5ce   :  { %v3008_v17 = vmul.f32 %v4883_v12, %v3007_v6 }
 0x5d0   :  { %v3012_v49 = vsel %vm3011_vm14, %v4883_v12, %v3008_v17 }
 0x5d1   :  { %v3112_v26 = vmul.f32 %v3012_v49, %v9785_v28  ;;  %v2409_v28 = vadd.f32 1e-05, %v2345_v1 }
 0x5d3   :  { %v3177_v32 = vmul.f32 %v6699_v62, %v3112_v26  ;;  %4884 = vrsqrt.f32 %v2409_v28  ;;  %v3930_v26 = vld [vmem:[#allocation2 + $0x170] sm:$0xff]  ;;  %vm3019_vm1 = vweird.f32 %v2409_v28 }
 0x5d5   :  { %v3242_v47 = vadd.f32 %v6715_v27, %v3177_v32 }
 0x5d7   :  { %v3276_v48 = vpack.c.bf16 %v3242_v47, %v3241_v50 }
 0x5d9   :  { %4576 = vmatmul.msk.bf16.gmra.mxu3 %vm99_vm0, %v3276_v48  ;;  %v4885_v23 = vpop.eup %4884 }
 0x5da   :  { %v3014_v35 = vmul.f32 %v4885_v23, %v2409_v28  ;;  %vm3020_vm15 = vweird.f32 %v4885_v23 }
 0x5db   :  { %vm3021_vm7 = vmor %vm3019_vm1, %vm3020_vm15 }
 0x5dc   :  { %v4163_v3 = vpop.f32.mrf.mxu2  ;;  %v3015_v53 = vmul.f32 %v4885_v23, %v3014_v35 }
 0x5dd   :  { %v4257_v19 = vadd.f32 %v4163_v3, %v3928_v61  ;;  %v3931_v3 = vld [vmem:[#allocation2 + $0x178] sm:$0xff] }
 0x5de   :  { %v3016_v32 = vmul.f32 0.5, %v3015_v53 }
 0x5df   :  { %4321 = vst.msk [vmem:[#allocation2 + $0x160] sm:$0xff] %vm99_vm0, %v4257_v19 }
 0x5e0   :  { %v3017_v48 = vsub.f32 1.5, %v3016_v32 }
 0x5e1   :  { %v3596_v30 = vpop.f32.mrf.mxu3 }
 0x5e2   :  { %v3678_v18 = vmax.f32 %v3596_v30, 0.0  ;;  %v3018_v30 = vmul.f32 %v4885_v23, %v3017_v48 }
 0x5e4   :  { %v4165_v25 = vpop.f32.mrf.mxu2  ;;  %v3743_v36 = vmul.f32 %v7404_v56, %v3678_v18 }
 0x5e5   :  { %v4258_v12 = vadd.f32 %v4165_v25, %v3929_v42 }
 0x5e6   :  { %v4385_v20 = vld [vmem:[#allocation2 + $0x160] sm:$0xff]  ;;  %v3807_v60 = vmul.f32 %v3743_v36, %v3678_v18 }
 0x5e7   :  { %v4449_v24 = vadd.f32 %v4385_v20, %v10548_v51  ;;  %4322 = vst.msk [vmem:[#allocation2 + $0x168] sm:$0xff] %vm99_vm0, %v4258_v12  ;;  %v3022_v51 = vsel %vm3021_vm7, %v4885_v23, %v3018_v30 }
 0x5e8   :  { %v3872_v0 = vadd.f32 %v7439_v21, %v3807_v60  ;;  %v3113_v28 = vmul.f32 %v3022_v51, %v9797_v4 }
 0x5e9   :  { %4513 = vst.msk [vmem:[%s10076_s5 + $0x160] sm:$0xff] %vm99_vm0, %v4449_v24  ;;  %v3598_v44 = vpop.f32.mrf.mxu3 }
 0x5ea   :  { %v3679_v63 = vmax.f32 %v3598_v44, 0.0 }
 0x5ec   :  { %v3744_v29 = vmul.f32 %v7404_v56, %v3679_v63 }
 0x5ee   :  { %v4386_v10 = vld [vmem:[#allocation2 + $0x168] sm:$0xff]  ;;  %v3808_v6 = vmul.f32 %v3744_v29, %v3679_v63 }
 0x5ef   :  { %v4450_v11 = vadd.f32 %v4386_v10, %v10549_v2 }
 0x5f0   :  { %v3873_v46 = vadd.f32 %v7439_v21, %v3808_v6 }
 0x5f1   :  { %4514 = vst.msk [vmem:[%s10076_s5 + $0x168] sm:$0xff] %vm99_vm0, %v4450_v11  ;;  %v3178_v11 = vmul.f32 %v6699_v62, %v3113_v28 }
 0x5f2   :  { %v2278_v17 = vpop.xlane.xlu1 %2277  ;;  %v3974_v49 = vpack.c.bf16 %v3873_v46, %v3872_v0 }
 0x5f3   :  { %v2346_v33 = vmul.f32 %v2278_v17, %v5180_v54 }
 0x5f4   :  { %4182 = vmatmul.bf16.gmra.mxu2 %v3974_v49 }
 0x5f5   :  { %v2410_v5 = vadd.f32 1e-05, %v2346_v33  ;;  %v4168_v50 = vpop.f32.mrf.mxu2 }
 0x5f6   :  { %v4259_v47 = vadd.f32 %v4168_v50, %v3930_v26 }
 0x5f7   :  { %4886 = vrsqrt.f32 %v2410_v5  ;;  %vm3029_vm4 = vweird.f32 %v2410_v5 }
 0x5f8   :  { %4323 = vst.msk [vmem:[#allocation2 + $0x170] sm:$0xff] %vm99_vm0, %v4259_v47 }
 0x5fa   :  { %v2281_v57 = vpop.xlane.xlu2 %2280 }
 0x5fb   :  { %v2347_v61 = vmul.f32 %v2281_v57, %v5180_v54 }
 0x5fd   :  { %v4887_v1 = vpop.eup %4886  ;;  %v2411_v19 = vadd.f32 1e-05, %v2347_v61  ;;  %v4170_v25 = vpop.f32.mrf.mxu2 }
 0x5fe   :  { %v3024_v42 = vmul.f32 %v4887_v1, %v2410_v5  ;;  %v4260_v12 = vadd.f32 %v4170_v25, %v3931_v3  ;;  %vm3030_vm2 = vweird.f32 %v4887_v1 }
 0x5ff   :  { %4888 = vrsqrt.f32 %v2411_v19  ;;  %v4387_v20 = vld [vmem:[#allocation2 + $0x170] sm:$0xff]  ;;  %vm3031_vm3 = vmor %vm3029_vm4, %vm3030_vm2  ;;  %vm3039_vm6 = vweird.f32 %v2411_v19 }
 0x600   :  { %v3025_v18 = vmul.f32 %v4887_v1, %v3024_v42  ;;  %v4451_v24 = vadd.f32 %v4387_v20, %v8650_v16  ;;  %4324 = vst.msk [vmem:[#allocation2 + $0x178] sm:$0xff] %vm99_vm0, %v4260_v12 }
 0x602   :  { %v3026_v36 = vmul.f32 0.5, %v3025_v18  ;;  %4515 = vst.msk [vmem:[%s10076_s5 + $0x170] sm:$0xff] %vm99_vm0, %v4451_v24 }
 0x604   :  { %v3027_v44 = vsub.f32 1.5, %v3026_v36 }
 0x605   :  { %v4889_v63 = vpop.eup %4888 }
 0x606   :  { %v3028_v35 = vmul.f32 %v4887_v1, %v3027_v44  ;;  %v3034_v60 = vmul.f32 %v4889_v63, %v2411_v19  ;;  %vm3040_vm5 = vweird.f32 %v4889_v63 }
 0x607   :  { %v4388_v29 = vld [vmem:[#allocation2 + $0x178] sm:$0xff]  ;;  %v2284_v2 = vpop.xlane.xlu0 %2283  ;;  %vm3041_vm9 = vmor %vm3039_vm6, %vm3040_vm5 }
 0x608   :  { %v3032_v23 = vsel %vm3031_vm3, %v4887_v1, %v3028_v35  ;;  %v3035_v10 = vmul.f32 %v4889_v63, %v3034_v60  ;;  %v4452_v6 = vadd.f32 %v4388_v29, %v8657_v22  ;;  %v2348_v53 = vmul.f32 %v2284_v2, %v5180_v54  ;;  %v3932_v60 = vld [vmem:[#allocation2 + $0x180] sm:$0xff] }
 0x609   :  { %v3114_v16 = vmul.f32 %v3032_v23, %v9833_v43  ;;  %v3243_v43 = vadd.f32 %v6715_v27, %v3178_v11 }
 0x60a   :  { %4516 = vst.msk [vmem:[%s10076_s5 + $0x178] sm:$0xff] %vm99_vm0, %v4452_v6  ;;  %v2412_v4 = vadd.f32 1e-05, %v2348_v53  ;;  %v3036_v46 = vmul.f32 0.5, %v3035_v10 }
 0x60b   :  { %v3179_v0 = vmul.f32 %v6699_v62, %v3114_v16 }
 0x60c   :  { %4890 = vrsqrt.f32 %v2412_v4  ;;  %v3037_v49 = vsub.f32 1.5, %v3036_v46  ;;  %vm3049_vm11 = vweird.f32 %v2412_v4 }
 0x60d   :  { %v3244_v17 = vadd.f32 %v6715_v27, %v3179_v0 }
 0x60e   :  { %v3038_v54 = vmul.f32 %v4889_v63, %v3037_v49 }
 0x60f   :  { %v3277_v33 = vpack.c.bf16 %v3244_v17, %v3243_v43 }
 0x610   :  { %v3042_v50 = vsel %vm3041_vm9, %v4889_v63, %v3038_v54 }
 0x611   :  { %4577 = vmatmul.msk.bf16.gmra.mxu3 %vm99_vm0, %v3277_v33  ;;  %v3115_v61 = vmul.f32 %v3042_v50, %v9840_v34 }
 0x612   :  { %v4891_v22 = vpop.eup %4890 }
 0x613   :  { %v3044_v26 = vmul.f32 %v4891_v22, %v2412_v4  ;;  %vm3050_vm10 = vweird.f32 %v4891_v22  ;;  %v3180_v18 = vmul.f32 %v6699_v62, %v3115_v61 }
 0x614   :  { %vm3051_vm8 = vmor %vm3049_vm11, %vm3050_vm10 }
 0x615   :  { %v3045_v5 = vmul.f32 %v4891_v22, %v3044_v26  ;;  %v3245_v34 = vadd.f32 %v6715_v27, %v3180_v18 }
 0x617   :  { %v3046_v47 = vmul.f32 0.5, %v3045_v5 }
 0x619   :  { %v3601_v32 = vpop.f32.mrf.mxu3  ;;  %v3047_v57 = vsub.f32 1.5, %v3046_v47 }
 0x61a   :  { %v3680_v48 = vmax.f32 %v3601_v32, 0.0  ;;  %v3935_v32 = vld [vmem:[#allocation2 + $0x198] sm:$0xff] }
 0x61b   :  { %v3048_v1 = vmul.f32 %v4891_v22, %v3047_v57 }
 0x61c   :  { %v3745_v3 = vmul.f32 %v7404_v56, %v3680_v48 }
 0x61d   :  { %v3052_v30 = vsel %vm3051_vm8, %v4891_v22, %v3048_v1 }
 0x61e   :  { %v3116_v25 = vmul.f32 %v3052_v30, %v9854_v13  ;;  %v3809_v12 = vmul.f32 %v3745_v3, %v3680_v48 }
 0x620   :  { %v3181_v51 = vmul.f32 %v6699_v62, %v3116_v25  ;;  %v3874_v63 = vadd.f32 %v7439_v21, %v3809_v12 }
 0x621   :  { %v3603_v42 = vpop.f32.mrf.mxu3 }
 0x622   :  { %v3681_v19 = vmax.f32 %v3603_v42, 0.0  ;;  %v3246_v36 = vadd.f32 %v6715_v27, %v3181_v51  ;;  %v3933_v27 = vld [vmem:[#allocation2 + $0x188] sm:$0xff] }
 0x624   :  { %v3746_v20 = vmul.f32 %v7404_v56, %v3681_v19  ;;  %v3278_v44 = vpack.c.bf16 %v3246_v36, %v3245_v34 }
 0x626   :  { %v3810_v24 = vmul.f32 %v3746_v20, %v3681_v19  ;;  %4578 = vmatmul.msk.bf16.gmra.mxu3 %vm99_vm0, %v3278_v44 }
 0x628   :  { %v3875_v28 = vadd.f32 %v7439_v21, %v3810_v24  ;;  %v3936_v24 = vld [vmem:[#allocation2 + $0x1a0] sm:$0xff] }
 0x62a   :  { %v3975_v13 = vpack.c.bf16 %v3875_v28, %v3874_v63 }
 0x62c   :  { %4187 = vmatmul.bf16.gmra.mxu2 %v3975_v13 }
 0x635   :  { %v3606_v35 = vpop.f32.mrf.mxu3 }
 0x636   :  { %v3682_v16 = vmax.f32 %v3606_v35, 0.0 }
 0x638   :  { %v3747_v62 = vmul.f32 %v7404_v56, %v3682_v16 }
 0x63a   :  { %v4173_v23 = vpop.f32.mrf.mxu2  ;;  %v3811_v6 = vmul.f32 %v3747_v62, %v3682_v16 }
 0x63b   :  { %v4261_v29 = vadd.f32 %v4173_v23, %v3932_v60 }
 0x63c   :  { %v3876_v17 = vadd.f32 %v7439_v21, %v3811_v6 }
 0x63d   :  { %4325 = vst.msk [vmem:[#allocation2 + $0x180] sm:$0xff] %vm99_vm0, %v4261_v29  ;;  %v3608_v10 = vpop.f32.mrf.mxu3 }
 0x63e   :  { %v3683_v2 = vmax.f32 %v3608_v10, 0.0 }
 0x640   :  { %v3748_v53 = vmul.f32 %v7404_v56, %v3683_v2 }
 0x642   :  { %v4175_v11 = vpop.f32.mrf.mxu2  ;;  %v3812_v43 = vmul.f32 %v3748_v53, %v3683_v2 }
 0x643   :  { %v4262_v0 = vadd.f32 %v4175_v11, %v3933_v27 }
 0x644   :  { %v4389_v4 = vld [vmem:[#allocation2 + $0x180] sm:$0xff]  ;;  %v3877_v33 = vadd.f32 %v7439_v21, %v3812_v43 }
 0x645   :  { %v4453_v46 = vadd.f32 %v4389_v4, %v8854_v15  ;;  %4326 = vst.msk [vmem:[#allocation2 + $0x188] sm:$0xff] %vm99_vm0, %v4262_v0  ;;  %v3934_v15 = vld [vmem:[#allocation2 + $0x190] sm:$0xff] }
 0x646   :  { %v3976_v49 = vpack.c.bf16 %v3877_v33, %v3876_v17  ;;  %v3938_v0 = vld [vmem:[#allocation2 + $0x1b0] sm:$0xff] }
 0x647   :  { %4517 = vst.msk [vmem:[%s10076_s5 + $0x180] sm:$0xff] %vm99_vm0, %v4453_v46 }
 0x648   :  { %4192 = vmatmul.bf16.gmra.mxu2 %v3976_v49  ;;  %v3939_v49 = vld [vmem:[#allocation2 + $0x1b8] sm:$0xff] }
 0x64c   :  { %v4390_v22 = vld [vmem:[#allocation2 + $0x188] sm:$0xff] }
 0x64d   :  { %v4454_v54 = vadd.f32 %v4390_v22, %v8933_v14 }
 0x64f   :  { %4518 = vst.msk [vmem:[%s10076_s5 + $0x188] sm:$0xff] %vm99_vm0, %v4454_v54 }
 0x650   :  { %v4178_v26 = vpop.f32.mrf.mxu2 }
 0x651   :  { %v4263_v5 = vadd.f32 %v4178_v26, %v3934_v15 }
 0x653   :  { %4327 = vst.msk [vmem:[#allocation2 + $0x190] sm:$0xff] %vm99_vm0, %v4263_v5 }
 0x658   :  { %v4180_v50 = vpop.f32.mrf.mxu2 }
 0x659   :  { %v4264_v47 = vadd.f32 %v4180_v50, %v3935_v32 }
 0x65a   :  { %v4391_v57 = vld [vmem:[#allocation2 + $0x190] sm:$0xff] }
 0x65b   :  { %v4455_v61 = vadd.f32 %v4391_v57, %v9002_v41  ;;  %4328 = vst.msk [vmem:[#allocation2 + $0x198] sm:$0xff] %vm99_vm0, %v4264_v47 }
 0x65c   :  { %v3611_v48 = vpop.f32.mrf.mxu3 }
 0x65d   :  { %v3684_v14 = vmax.f32 %v3611_v48, 0.0  ;;  %4519 = vst.msk [vmem:[%s10076_s5 + $0x190] sm:$0xff] %vm99_vm0, %v4455_v61 }
 0x65f   :  { %v3749_v1 = vmul.f32 %v7404_v56, %v3684_v14 }
 0x661   :  { %v3813_v19 = vmul.f32 %v3749_v1, %v3684_v14 }
 0x662   :  { %v4392_v30 = vld [vmem:[#allocation2 + $0x198] sm:$0xff] }
 0x663   :  { %v4456_v25 = vadd.f32 %v4392_v30, %v9024_v37  ;;  %v3878_v12 = vadd.f32 %v7439_v21, %v3813_v19  ;;  %v3937_v37 = vld [vmem:[#allocation2 + $0x1a8] sm:$0xff] }
 0x664   :  { %v3613_v3 = vpop.f32.mrf.mxu3 }
 0x665   :  { %v3685_v42 = vmax.f32 %v3613_v3, 0.0  ;;  %4520 = vst.msk [vmem:[%s10076_s5 + $0x198] sm:$0xff] %vm99_vm0, %v4456_v25 }
 0x667   :  { %v3750_v18 = vmul.f32 %v7404_v56, %v3685_v42 }
 0x669   :  { %v3814_v41 = vmul.f32 %v3750_v18, %v3685_v42 }
 0x66b   :  { %v3879_v20 = vadd.f32 %v7439_v21, %v3814_v41  ;;  %v3942_v41 = vld [vmem:[#allocation2 + $0x1d0] sm:$0xff] }
 0x66d   :  { %v3977_v51 = vpack.c.bf16 %v3879_v20, %v3878_v12 }
 0x66f   :  { %4197 = vmatmul.bf16.gmra.mxu2 %v3977_v51 }
 0x677   :  { %v4183_v34 = vpop.f32.mrf.mxu2 }
 0x678   :  { %v4265_v36 = vadd.f32 %v4183_v34, %v3936_v24 }
 0x67a   :  { %4329 = vst.msk [vmem:[#allocation2 + $0x1a0] sm:$0xff] %vm99_vm0, %v4265_v36 }
 0x67f   :  { %v4185_v44 = vpop.f32.mrf.mxu2 }
 0x680   :  { %v4266_v63 = vadd.f32 %v4185_v44, %v3937_v37  ;;  %v3944_v44 = vld [vmem:[#allocation2 + $0x1e0] sm:$0xff] }
 0x681   :  { %v4393_v28 = vld [vmem:[#allocation2 + $0x1a0] sm:$0xff] }
 0x682   :  { %v4457_v13 = vadd.f32 %v4393_v28, %v9134_v55  ;;  %4330 = vst.msk [vmem:[#allocation2 + $0x1a8] sm:$0xff] %vm99_vm0, %v4266_v63 }
 0x684   :  { %4521 = vst.msk [vmem:[%s10076_s5 + $0x1a0] sm:$0xff] %vm99_vm0, %v4457_v13 }
 0x689   :  { %v4394_v35 = vld [vmem:[#allocation2 + $0x1a8] sm:$0xff] }
 0x68a   :  { %v4458_v60 = vadd.f32 %v4394_v35, %v9171_v58 }
 0x68c   :  { %4522 = vst.msk [vmem:[%s10076_s5 + $0x1a8] sm:$0xff] %vm99_vm0, %v4458_v60 }
 0x694   :  { %v3616_v23 = vpop.f32.mrf.mxu3 }
 0x695   :  { %v3686_v16 = vmax.f32 %v3616_v23, 0.0 }
 0x697   :  { %v3751_v29 = vmul.f32 %v7404_v56, %v3686_v16 }
 0x699   :  { %v3815_v10 = vmul.f32 %v3751_v29, %v3686_v16  ;;  %v3946_v29 = vld [vmem:[#allocation2 + $0x1f0] sm:$0xff] }
 0x69b   :  { %v3880_v11 = vadd.f32 %v7439_v21, %v3815_v10 }
 0x69c   :  { %v3618_v55 = vpop.f32.mrf.mxu3 }
 0x69d   :  { %v3687_v62 = vmax.f32 %v3618_v55, 0.0 }
 0x69f   :  { %v3752_v27 = vmul.f32 %v7404_v56, %v3687_v62 }
 0x6a1   :  { %v3816_v2 = vmul.f32 %v3752_v27, %v3687_v62 }
 0x6a3   :  { %v3881_v6 = vadd.f32 %v7439_v21, %v3816_v2 }
 0x6a5   :  { %v3978_v58 = vpack.c.bf16 %v3881_v6, %v3880_v11 }
 0x6a7   :  { %4202 = vmatmul.bf16.gmra.mxu2 %v3978_v58 }
 0x6a9   :  { %v3621_v53 = vpop.f32.mrf.mxu3 }
 0x6aa   :  { %v3688_v46 = vmax.f32 %v3621_v53, 0.0 }
 0x6ac   :  { %v3753_v17 = vmul.f32 %v7404_v56, %v3688_v46 }
 0x6ae   :  { %v3817_v15 = vmul.f32 %v3753_v17, %v3688_v46 }
 0x6af   :  { %v4188_v4 = vpop.f32.mrf.mxu2 }
 0x6b0   :  { %v4267_v43 = vadd.f32 %v4188_v4, %v3938_v0  ;;  %v3882_v48 = vadd.f32 %v7439_v21, %v3817_v15 }
 0x6b1   :  { %v3623_v33 = vpop.f32.mrf.mxu3 }
 0x6b2   :  { %4331 = vst.msk [vmem:[#allocation2 + $0x1b0] sm:$0xff] %vm99_vm0, %v4267_v43  ;;  %v3689_v22 = vmax.f32 %v3623_v33, 0.0 }
 0x6b4   :  { %v3754_v26 = vmul.f32 %v7404_v56, %v3689_v22 }
 0x6b6   :  { %v3818_v50 = vmul.f32 %v3754_v26, %v3689_v22 }
 0x6b7   :  { %v4190_v54 = vpop.f32.mrf.mxu2 }
 0x6b8   :  { %v4268_v5 = vadd.f32 %v4190_v54, %v3939_v49  ;;  %v3883_v57 = vadd.f32 %v7439_v21, %v3818_v50  ;;  %v3941_v21 = vld [vmem:[#allocation2 + $0x1c8] sm:$0xff] }
 0x6b9   :  { %v4395_v32 = vld [vmem:[#allocation2 + $0x1b0] sm:$0xff] }
 0x6ba   :  { %v4459_v47 = vadd.f32 %v4395_v32, %v9309_v7  ;;  %4332 = vst.msk [vmem:[#allocation2 + $0x1b8] sm:$0xff] %vm99_vm0, %v4268_v5  ;;  %v3979_v61 = vpack.c.bf16 %v3883_v57, %v3882_v48  ;;  %v3940_v7 = vld [vmem:[#allocation2 + $0x1c0] sm:$0xff] }
 0x6bc   :  { %4523 = vst.msk [vmem:[%s10076_s5 + $0x1b0] sm:$0xff] %vm99_vm0, %v4459_v47  ;;  %4207 = vmatmul.bf16.gmra.mxu2 %v3979_v61 }
 0x6c1   :  { %v4396_v14 = vld [vmem:[#allocation2 + $0x1b8] sm:$0xff] }
 0x6c2   :  { %v4460_v56 = vadd.f32 %v4396_v14, %v9327_v9 }
 0x6c4   :  { %4524 = vst.msk [vmem:[%s10076_s5 + $0x1b8] sm:$0xff] %vm99_vm0, %v4460_v56 }
 0x6cb   :  { %v4193_v1 = vpop.f32.mrf.mxu2 }
 0x6cc   :  { %v4269_v3 = vadd.f32 %v4193_v1, %v3940_v7 }
 0x6ce   :  { %4333 = vst.msk [vmem:[#allocation2 + $0x1c0] sm:$0xff] %vm99_vm0, %v4269_v3 }
 0x6d3   :  { %v4195_v30 = vpop.f32.mrf.mxu2 }
 0x6d4   :  { %v4270_v42 = vadd.f32 %v4195_v30, %v3941_v21 }
 0x6d5   :  { %v4397_v25 = vld [vmem:[#allocation2 + $0x1c0] sm:$0xff] }
 0x6d6   :  { %v4461_v19 = vadd.f32 %v4397_v25, %v9418_v52  ;;  %4334 = vst.msk [vmem:[#allocation2 + $0x1c8] sm:$0xff] %vm99_vm0, %v4270_v42  ;;  %v3943_v52 = vld [vmem:[#allocation2 + $0x1d8] sm:$0xff] }
 0x6d8   :  { %4525 = vst.msk [vmem:[%s10076_s5 + $0x1c0] sm:$0xff] %vm99_vm0, %v4461_v19 }
 0x6dd   :  { %v4398_v9 = vld [vmem:[#allocation2 + $0x1c8] sm:$0xff] }
 0x6de   :  { %v4462_v18 = vadd.f32 %v4398_v9, %v9476_v39 }
 0x6e0   :  { %4526 = vst.msk [vmem:[%s10076_s5 + $0x1c8] sm:$0xff] %vm99_vm0, %v4462_v18 }
 0x6f2   :  { %v4198_v12 = vpop.f32.mrf.mxu2 }
 0x6f3   :  { %v4271_v20 = vadd.f32 %v4198_v12, %v3942_v41 }
 0x6f5   :  { %4335 = vst.msk [vmem:[#allocation2 + $0x1d0] sm:$0xff] %vm99_vm0, %v4271_v20 }
 0x6fa   :  { %v4200_v51 = vpop.f32.mrf.mxu2 }
 0x6fb   :  { %v4272_v24 = vadd.f32 %v4200_v51, %v3943_v52 }
 0x6fc   :  { %v4399_v34 = vld [vmem:[#allocation2 + $0x1d0] sm:$0xff] }
 0x6fd   :  { %v4463_v36 = vadd.f32 %v4399_v34, %v9508_v31  ;;  %4336 = vst.msk [vmem:[#allocation2 + $0x1d8] sm:$0xff] %vm99_vm0, %v4272_v24  ;;  %v3945_v31 = vld [vmem:[#allocation2 + $0x1e8] sm:$0xff] }
 0x6ff   :  { %4527 = vst.msk [vmem:[%s10076_s5 + $0x1d0] sm:$0xff] %vm99_vm0, %v4463_v36 }
 0x704   :  { %v4400_v39 = vld [vmem:[#allocation2 + $0x1d8] sm:$0xff] }
 0x705   :  { %v4464_v37 = vadd.f32 %v4400_v39, %v9581_v45 }
 0x707   :  { %4528 = vst.msk [vmem:[%s10076_s5 + $0x1d8] sm:$0xff] %vm99_vm0, %v4464_v37 }
 0x72a   :  { %v4203_v63 = vpop.f32.mrf.mxu2 }
 0x72b   :  { %v4273_v28 = vadd.f32 %v4203_v63, %v3944_v44 }
 0x72d   :  { %4337 = vst.msk [vmem:[#allocation2 + $0x1e0] sm:$0xff] %vm99_vm0, %v4273_v28 }
 0x732   :  { %v4205_v13 = vpop.f32.mrf.mxu2 }
 0x733   :  { %v4274_v35 = vadd.f32 %v4205_v13, %v3945_v31 }
 0x734   :  { %v4401_v60 = vld [vmem:[#allocation2 + $0x1e0] sm:$0xff] }
 0x735   :  { %v4465_v23 = vadd.f32 %v4401_v60, %v9607_v59  ;;  %4338 = vst.msk [vmem:[#allocation2 + $0x1e8] sm:$0xff] %vm99_vm0, %v4274_v35  ;;  %v3947_v59 = vld [vmem:[#allocation2 + $0x1f8] sm:$0xff] }
 0x737   :  { %4529 = vst.msk [vmem:[%s10076_s5 + $0x1e0] sm:$0xff] %vm99_vm0, %v4465_v23 }
 0x73c   :  { %v4402_v45 = vld [vmem:[#allocation2 + $0x1e8] sm:$0xff] }
 0x73d   :  { %v4466_v16 = vadd.f32 %v4402_v45, %v9671_v40 }
 0x73f   :  { %4530 = vst.msk [vmem:[%s10076_s5 + $0x1e8] sm:$0xff] %vm99_vm0, %v4466_v16  ;;  %v4208_v55 = vpop.f32.mrf.mxu2 }
 0x740   :  { %v4275_v62 = vadd.f32 %v4208_v55, %v3946_v29 }
 0x742   :  { %4339 = vst.msk [vmem:[#allocation2 + $0x1f0] sm:$0xff] %vm99_vm0, %v4275_v62 }
 0x747   :  { %v4210_v10 = vpop.f32.mrf.mxu2 }
 0x748   :  { %v4276_v27 = vadd.f32 %v4210_v10, %v3947_v59 }
 0x749   :  { %v4403_v2 = vld [vmem:[#allocation2 + $0x1f0] sm:$0xff] }
 0x74a   :  { %v4467_v11 = vadd.f32 %v4403_v2, %v9688_v8  ;;  %4340 = vst.msk [vmem:[#allocation2 + $0x1f8] sm:$0xff] %vm99_vm0, %v4276_v27 }
 0x74c   :  { %4531 = vst.msk [vmem:[%s10076_s5 + $0x1f0] sm:$0xff] %vm99_vm0, %v4467_v11 }
 0x751   :  { %v4404_v40 = vld [vmem:[#allocation2 + $0x1f8] sm:$0xff] }
 0x752   :  { %v4468_v6 = vadd.f32 %v4404_v40, %v9725_v38 }
 0x754   :  { %4532 = vst.msk [vmem:[%s10076_s5 + $0x1f8] sm:$0xff] %vm99_vm0, %v4468_v6 }
 0x755   :  { %4537 = vsyncpa [#allocation4], 1 }

</bundles_post_ra>
